<compile_context>
chip_gen: v6e
topology: v6e:2x2x1
jax: 0.10.0
libtpu: 0.0.40
codegen_flags: <defaults>
</compile_context>

<pallas_src>
import functools

import jax
import jax.numpy as jnp
from jax.experimental import pallas as pl
from jax.experimental.pallas import tpu as pltpu


def _round_up(n, m):
    return ((n + m - 1) // m) * m


def _pick_bt(B):
    """Batch elements per conv grid step: divides B, keeps >=2 grid steps."""
    for bt in (8, 4, 2):
        if B % bt == 0 and B // bt >= 2:
            return bt
    return 1


# ----------------------------------------------------------------------------
# Pallas kernel: conv as ONE deep-K matmul per batch element.
#   - gather the Kq*Kq phase bands into a bf16 VMEM scratch lhs
#   - single MXU matmul (f32 accumulation) into a f32 VMEM scratch
#   - fused bias + ReLU + bf16 store
# ----------------------------------------------------------------------------
def _conv_kernel(x_ref, w_ref, b_ref, o_ref, lhs_ref, acc_ref,
                 *, Kq, Hq, Ho, Wq, Bt, CC):
    """x_ref:   (Bt, Kq*Hq*Wq, CC)      bf16 phase-stacked input rows
       w_ref:   (Kq*Kq*CC, Cout)        bf16 packed conv weights (2-D)
       b_ref:   (1, Cout)               f32
       o_ref:   (Bt, Ho*Wq, Cout)       bf16 width-padded output rows
       lhs_ref: (Ho*Wq, Kq*Kq*CC)       bf16 VMEM scratch (gathered bands)
       acc_ref: (Ho*Wq, Cout)           f32  VMEM scratch (matmul result)"""
    for bt in range(Bt):
        # Gather: each band is a contiguous, sublane-aligned row range of the
        # phase stack; destination column blocks are lane-aligned (CC % 128 == 0).
        for qi in range(Kq):
            for qj in range(Kq):
                g = qi * Kq + qj
                lhs_ref[:, g * CC:(g + 1) * CC] = (
                    x_ref[bt, pl.ds((qj * Hq + qi) * Wq, Ho * Wq), :])
        # One deep-K matmul; MXU accumulates internally, result streams to VMEM.
        acc_ref[...] = jnp.dot(lhs_ref[...], w_ref[...],
                               preferred_element_type=jnp.float32)
        o_ref[bt] = jnp.maximum(acc_ref[...] + b_ref[...], 0.0).astype(o_ref.dtype)


def conv_layer(xstk, w2d, bias, *, Kq, Hq, Ho, Wq, Bt):
    """xstk: (B, Kq*Hq*Wq, CC) bf16 -> (B, Ho, Wq, Cout) bf16."""
    B, R, CC = xstk.shape
    KKCC, Cout = w2d.shape
    assert R == Kq * Hq * Wq and KKCC == Kq * Kq * CC
    assert B % Bt == 0
    out = pl.pallas_call(
        functools.partial(_conv_kernel, Kq=Kq, Hq=Hq, Ho=Ho, Wq=Wq, Bt=Bt, CC=CC),
        out_shape=jax.ShapeDtypeStruct((B, Ho * Wq, Cout), jnp.bfloat16),
        grid_spec=pltpu.PrefetchScalarGridSpec(
            num_scalar_prefetch=0,
            grid=(B // Bt,),
            in_specs=[
                pl.BlockSpec((Bt, R, CC), lambda b: (b, 0, 0)),
                pl.BlockSpec((KKCC, Cout), lambda b: (0, 0)),   # grid-invariant
                pl.BlockSpec((1, Cout), lambda b: (0, 0)),      # grid-invariant
            ],
            out_specs=pl.BlockSpec((Bt, Ho * Wq, Cout), lambda b: (b, 0, 0)),
            scratch_shapes=[
                pltpu.VMEM((Ho * Wq, KKCC), jnp.bfloat16),
                pltpu.VMEM((Ho * Wq, Cout), jnp.float32),
            ],
        ),
        compiler_params=pltpu.CompilerParams(
            dimension_semantics=("parallel",)),
    )(xstk, w2d, bias)
    return out.reshape(B, Ho, Wq, Cout)   # contiguous -> free reshape


# ----------------------------------------------------------------------------
# Pallas kernel: fused linear1 (+ReLU) and selected critic head,
# K-tiled (streams the big weight) and B-tiled ("parallel").
# ----------------------------------------------------------------------------
def _linear_critic_kernel(x_ref, wl_ref, bl_ref, wc_ref, bc_ref,
                          lin_ref, crit_ref, acc_ref):
    k = pl.program_id(1)

    @pl.when(k == 0)
    def _():
        acc_ref[...] = jnp.zeros_like(acc_ref)

    acc_ref[...] += jnp.dot(x_ref[...], wl_ref[...],
                            preferred_element_type=jnp.float32)

    @pl.when(k == pl.num_programs(1) - 1)
    def _():
        h = jnp.maximum(acc_ref[...] + bl_ref[...], 0.0)       # (tb, Hp) f32
        lin_ref[...] = h
        crit_ref[...] = (jnp.sum(h * wc_ref[...], axis=-1, keepdims=True)
                         + bc_ref[...])


def linear_critic(flat, wl, bl, wc, bc, *, hidden, tk=2048):
    """flat: (B, Kin) bf16; wl: (Kin, Hp) bf16 (Hp = hidden padded to 128);
    bl/wc: (1, Hp) f32; bc: (1, 1) f32.  Returns (critic (B,1), linear (B,hidden))."""
    B, Kin = flat.shape
    Hp = wl.shape[1]
    if Kin % tk != 0:
        tk = Kin
    nk = Kin // tk

    if B <= 256:
        tb, Bp = B, B
    else:
        tb = 256
        Bp = _round_up(B, tb)
        if Bp != B:
            flat = jnp.pad(flat, ((0, Bp - B), (0, 0)))
    nb = Bp // tb

    lin, crit = pl.pallas_call(
        _linear_critic_kernel,
        out_shape=(jax.ShapeDtypeStruct((Bp, Hp), jnp.float32),
                   jax.ShapeDtypeStruct((Bp, 1), jnp.float32)),
        grid_spec=pltpu.PrefetchScalarGridSpec(
            num_scalar_prefetch=0,
            grid=(nb, nk),
            in_specs=[
                pl.BlockSpec((tb, tk), lambda b, k: (b, k)),
                pl.BlockSpec((tk, Hp), lambda b, k: (k, 0)),
                pl.BlockSpec((1, Hp), lambda b, k: (0, 0)),
                pl.BlockSpec((1, Hp), lambda b, k: (0, 0)),
                pl.BlockSpec((1, 1), lambda b, k: (0, 0)),
            ],
            out_specs=[
                pl.BlockSpec((tb, Hp), lambda b, k: (b, 0)),
                pl.BlockSpec((tb, 1), lambda b, k: (b, 0)),
            ],
            scratch_shapes=[pltpu.VMEM((tb, Hp), jnp.float32)],
        ),
        compiler_params=pltpu.CompilerParams(
            dimension_semantics=("parallel", "arbitrary")),
    )(flat, wl, bl, wc, bc)
    return crit[:B], lin[:B, :hidden]


# ----------------------------------------------------------------------------
# XLA glue: phase-stack construction (the only per-forward data rearrangement).
# ----------------------------------------------------------------------------
def _phase_stack(x, *, S, K, Wq, cin_pad=None):
    """x: (B, H, W, C) NHWC (valid data in the leading columns/channels).
    Returns (B, Kq*Hq*Wq, S*S*C') bf16, Kq = K//S, Hq = H//S, where
    row (qj*Hq + a)*Wq + c, feature (ri*S + rj)*C' + ci
      == x[b, a*S + ri, (c + qj)*S + rj, ci]."""
    B, H, W, C = x.shape
    assert K % S == 0 and H % S == 0
    Kq = K // S
    Hq = H // S
    if cin_pad is not None and cin_pad > C:
        x = jnp.pad(x, ((0, 0), (0, 0), (0, 0), (0, cin_pad - C)))
        C = cin_pad
    Wp = S * (Wq + Kq - 1)
    if W < Wp:
        x = jnp.pad(x, ((0, 0), (0, 0), (0, Wp - W), (0, 0)))
    elif W > Wp:
        x = x[:, :, :Wp, :]
    xs = x.reshape(B, Hq, S, Wq + Kq - 1, S, C)
    xs = jnp.transpose(xs, (0, 1, 3, 2, 4, 5)).reshape(B, Hq, Wq + Kq - 1, S * S * C)
    xs = jnp.stack([xs[:, :, qj:qj + Wq, :] for qj in range(Kq)], axis=1)
    return xs.reshape(B, Kq * Hq * Wq, S * S * C).astype(jnp.bfloat16)


# ----------------------------------------------------------------------------
# Parameters: raw (PyTorch layout, used for reference) + one-time packing.
# ----------------------------------------------------------------------------
def init_cnnbase_params(key, num_inputs, taskcla, hidden_size):
    ks = jax.random.split(key, 8 + len(taskcla))
    scale = 0.05
    params = {
        "w1": scale * jax.random.normal(ks[0], (128, num_inputs, 8, 8), jnp.float32),
        "b1": 0.01 * jax.random.normal(ks[1], (128,), jnp.float32),
        "w2": scale * jax.random.normal(ks[2], (256, 128, 4, 4), jnp.float32),
        "b2": 0.01 * jax.random.normal(ks[3], (256,), jnp.float32),
        "w3": scale * jax.random.normal(ks[4], (128, 256, 3, 3), jnp.float32),
        "b3": 0.01 * jax.random.normal(ks[5], (128,), jnp.float32),
        "wl": scale * jax.random.normal(ks[6], (hidden_size, 128 * 7 * 7), jnp.float32),
        "bl": 0.01 * jax.random.normal(ks[7], (hidden_size,), jnp.float32),
        "critic": [],
    }
    for i, (t, _n) in enumerate(taskcla):
        wc = scale * jax.random.normal(ks[8 + i], (1, hidden_size), jnp.float32)
        bc = 0.01 * jnp.ones((1,), jnp.float32)
        params["critic"].append((wc, bc))
    return params


def _pack_conv_weight(w_oihw, *, S, cin_pad=None):
    """(Cout, Cin, K, K) -> (Kq*Kq*S*S*Cin', Cout) bf16, matching the in-kernel
    band-gather order (group g = qi*Kq + qj, feature (ri*S+rj)*Cin' + ci)."""
    Cout, Cin, K, K2 = w_oihw.shape
    assert K == K2 and K % S == 0
    Kq = K // S
    if cin_pad is not None and cin_pad > Cin:
        w_oihw = jnp.pad(w_oihw, ((0, 0), (0, cin_pad - Cin), (0, 0), (0, 0)))
        Cin = cin_pad
    w = jnp.transpose(w_oihw, (2, 3, 1, 0))           # (ki, kj, ci, co)
    w = w.reshape(Kq, S, Kq, S, Cin, Cout)            # (qi, ri, qj, rj, ci, co)
    w = jnp.transpose(w, (0, 2, 1, 3, 4, 5))          # (qi, qj, ri, rj, ci, co)
    return w.reshape(Kq * Kq * S * S * Cin, Cout).astype(jnp.bfloat16)


def pack_cnnbase_params(params, hidden_size):
    """All per-forward weight prep hoisted here (runs once)."""
    cin1 = _round_up(params["w1"].shape[1], 8)
    Hp = _round_up(hidden_size, 128)        # lane-dense linear output
    # linear1: fold the PyTorch NCHW flatten order and the padded activation
    # width (7 -> 16 columns, extra columns get zero weights) into the weight;
    # pad the hidden dim to Hp with zero columns.
    wl = params["wl"].reshape(hidden_size, 128, 7, 7)     # (hid, c, h, w)
    wl = jnp.transpose(wl, (2, 3, 1, 0))                  # (h, w, c, hid)
    wl = jnp.pad(wl, ((0, 0), (0, 16 - 7), (0, 0), (0, Hp - hidden_size)))
    wl = wl.reshape(7 * 16 * 128, Hp).astype(jnp.bfloat16)
    bl = jnp.pad(params["bl"], (0, Hp - hidden_size)).reshape(1, Hp).astype(jnp.float32)
    critic = []
    for wc, bc in params["critic"]:
        wc_p = jnp.pad(wc, ((0, 0), (0, Hp - hidden_size))).astype(jnp.float32)
        critic.append((wc_p, bc.reshape(1, 1).astype(jnp.float32)))
    return {
        "w1": _pack_conv_weight(params["w1"] / 255.0, S=4, cin_pad=cin1),  # fold /255
        "b1": params["b1"].reshape(1, -1).astype(jnp.float32),
        "w2": _pack_conv_weight(params["w2"], S=2),
        "b2": params["b2"].reshape(1, -1).astype(jnp.float32),
        "w3": _pack_conv_weight(params["w3"], S=1),
        "b3": params["b3"].reshape(1, -1).astype(jnp.float32),
        "wl": wl,
        "bl": bl,
        "critic": critic,
    }


# ----------------------------------------------------------------------------
# CNNBase.forward (recurrent=False)
# ----------------------------------------------------------------------------
def cnnbase_forward(packed, inputs_nchw, rnn_hxs, masks, *, task_num, hidden_size):
    """Returns (critic_output[task_num], linear, rnn_hxs).  `masks` is only
    used by the GRU path, which is disabled (recurrent=False)."""
    del masks
    B = inputs_nchw.shape[0]
    x = jnp.transpose(inputs_nchw, (0, 2, 3, 1)).astype(jnp.bfloat16)  # NCHW -> NHWC
    cin1 = _round_up(x.shape[-1], 8)
    Bt = _pick_bt(B)

    # conv1: 8x8 / stride 4, 84x84 -> 20x20, Cout=128 (the /255 lives in w1)
    x1 = _phase_stack(x, S=4, K=8, Wq=32, cin_pad=cin1)
    a1 = conv_layer(x1, packed["w1"], packed["b1"], Kq=2, Hq=21, Ho=20, Wq=32, Bt=Bt)
    # conv2: 4x4 / stride 2, 20x20 -> 9x9, Cout=256
    x2 = _phase_stack(a1, S=2, K=4, Wq=16)
    a2 = conv_layer(x2, packed["w2"], packed["b2"], Kq=2, Hq=10, Ho=9, Wq=16, Bt=Bt)
    # conv3: 3x3 / stride 1, 9x9 -> 7x7, Cout=128
    x3 = _phase_stack(a2, S=1, K=3, Wq=16)
    a3 = conv_layer(x3, packed["w3"], packed["b3"], Kq=3, Hq=9, Ho=7, Wq=16, Bt=Bt)

    # Flatten is free: the NCHW view() permutation is folded into packed["wl"].
    flat = a3.reshape(B, 7 * 16 * 128)

    wc, bc = packed["critic"][task_num]
    critic, linear = linear_critic(flat, packed["wl"], packed["bl"], wc, bc,
                                   hidden=hidden_size)
    return critic, linear, rnn_hxs


# ----------------------------------------------------------------------------
# Pure-JAX f32 reference (for the correctness check in main)
# ----------------------------------------------------------------------------
def reference_forward(params, inputs_nchw, task_num):
    def conv(x, w, b, s):
        y = jax.lax.conv_general_dilated(
            x, w, window_strides=(s, s), padding="VALID",
            dimension_numbers=("NCHW", "OIHW", "NCHW"))
        return jax.nn.relu(y + b[None, :, None, None])
    x = inputs_nchw / 255.0
    a1 = conv(x, params["w1"], params["b1"], 4)
    a2 = conv(a1, params["w2"], params["b2"], 2)
    a3 = conv(a2, params["w3"], params["b3"], 1)
    flat = a3.reshape(a3.shape[0], -1)
    lin = jax.nn.relu(flat @ params["wl"].T + params["bl"])
    wc, bc = params["critic"][task_num]
    crit = lin @ wc.T + bc
    return crit, lin


# ----------------------------------------------------------------------------
# main
# ----------------------------------------------------------------------------
if __name__ == "__main__":
    key = jax.random.PRNGKey(0)
    kx, kp = jax.random.split(key)

    # Small config; spatial must be 84x84 because linear1 hard-codes 128*7*7.
    B = 2
    num_inputs = 4
    hidden_size = 32
    taskcla = [(0, 5), (1, 3)]
    task_num = 0

    inputs = jax.random.uniform(kx, (B, num_inputs, 84, 84),
                                minval=0.0, maxval=255.0, dtype=jnp.float32)
    rnn_hxs = jnp.zeros((B, 1), jnp.float32)   # recurrent_hidden_state_size == 1
    masks = jnp.ones((B, 1), jnp.float32)

    params = init_cnnbase_params(kp, num_inputs, taskcla, hidden_size)
    packed = pack_cnnbase_params(params, hidden_size)

    fwd = jax.jit(functools.partial(cnnbase_forward,
                                    task_num=task_num, hidden_size=hidden_size))
    critic, linear, hxs_out = fwd(packed, inputs, rnn_hxs, masks)
    jax.block_until_ready((critic, linear, hxs_out))

    assert critic.shape == (B, 1)
    assert linear.shape == (B, hidden_size)
    assert hxs_out.shape == rnn_hxs.shape

    # Sanity check against a pure-JAX f32 reference (bf16-matmul tolerance).
    crit_ref, lin_ref = reference_forward(params, inputs, task_num)
    lin_scale = float(jnp.max(jnp.abs(lin_ref))) + 1e-6
    lin_err = float(jnp.max(jnp.abs(linear - lin_ref)))
    crit_err = float(jnp.max(jnp.abs(critic - crit_ref)))
    assert lin_err < 0.08 * lin_scale, (lin_err, lin_scale)
    assert crit_err < 0.08 * lin_scale + 0.05, (crit_err, lin_scale)

    print("KERNEL_OK")
</pallas_src>

<mosaic_0001>
module attributes {stable_mosaic.version = 11 : i64} {
  func.func @_conv_kernel(%arg0: i32, %arg1: memref<1x1344x128xbf16, #tpu.memory_space<vmem>>, %arg2: memref<512x128xbf16, #tpu.memory_space<vmem>>, %arg3: memref<1x128xf32, #tpu.memory_space<vmem>>, %arg4: memref<1x640x128xbf16, #tpu.memory_space<vmem>>, %arg5: memref<640x512xbf16, #tpu.memory_space<vmem>>, %arg6: memref<640x128xf32, #tpu.memory_space<vmem>>) attributes {dimension_semantics = [#tpu.dimension_semantics<parallel>], iteration_bounds = array<i64: 2>, scalar_prefetch = 0 : i64, scratch_operands = 2 : i64, tpu.core_type = #tpu.core_type<tc>, window_params = [{transform_indices = @transform_0, window_bounds = array<i64: 1, 1344, 128>}, {pipeline_mode = #tpu.pipeline_mode<synchronous>, transform_indices = @transform_1, window_bounds = array<i64: 512, 128>}, {pipeline_mode = #tpu.pipeline_mode<synchronous>, transform_indices = @transform_2, window_bounds = array<i64: 1, 128>}, {transform_indices = @transform_3, window_bounds = array<i64: 1, 640, 128>}]} {
    %c0 = arith.constant 0 : index
    %c0_0 = arith.constant 0 : index
    %c0_1 = arith.constant 0 : index
    %0 = vector.load %arg1[%c0, %c0_0, %c0_1] : memref<1x1344x128xbf16, #tpu.memory_space<vmem>>, vector<1x640x128xbf16>
    %1 = vector.shape_cast %0 : vector<1x640x128xbf16> to vector<640x128xbf16>
    %c0_2 = arith.constant 0 : index
    %c0_3 = arith.constant 0 : index
    %2 = vector.load %arg5[%c0_2, %c0_3] : memref<640x512xbf16, #tpu.memory_space<vmem>>, vector<640x128xbf16>
    tpu.vector_store %arg5[%c0_2, %c0_3], %1 {strides = array<i32>} : memref<640x512xbf16, #tpu.memory_space<vmem>>, vector<640x128xbf16>,
    %c0_4 = arith.constant 0 : index
    %c672 = arith.constant 672 : index
    %c0_5 = arith.constant 0 : index
    %3 = vector.load %arg1[%c0_4, %c672, %c0_5] : memref<1x1344x128xbf16, #tpu.memory_space<vmem>>, vector<1x640x128xbf16>
    %4 = vector.shape_cast %3 : vector<1x640x128xbf16> to vector<640x128xbf16>
    %c0_6 = arith.constant 0 : index
    %c128 = arith.constant 128 : index
    %5 = vector.load %arg5[%c0_6, %c128] : memref<640x512xbf16, #tpu.memory_space<vmem>>, vector<640x128xbf16>
    tpu.vector_store %arg5[%c0_6, %c128], %4 {strides = array<i32>} : memref<640x512xbf16, #tpu.memory_space<vmem>>, vector<640x128xbf16>,
    %c0_7 = arith.constant 0 : index
    %c32 = arith.constant 32 : index
    %c0_8 = arith.constant 0 : index
    %6 = vector.load %arg1[%c0_7, %c32, %c0_8] : memref<1x1344x128xbf16, #tpu.memory_space<vmem>>, vector<1x640x128xbf16>
    %7 = vector.shape_cast %6 : vector<1x640x128xbf16> to vector<640x128xbf16>
    %c0_9 = arith.constant 0 : index
    %c256 = arith.constant 256 : index
    %8 = vector.load %arg5[%c0_9, %c256] : memref<640x512xbf16, #tpu.memory_space<vmem>>, vector<640x128xbf16>
    tpu.vector_store %arg5[%c0_9, %c256], %7 {strides = array<i32>} : memref<640x512xbf16, #tpu.memory_space<vmem>>, vector<640x128xbf16>,
    %c0_10 = arith.constant 0 : index
    %c704 = arith.constant 704 : index
    %c0_11 = arith.constant 0 : index
    %9 = vector.load %arg1[%c0_10, %c704, %c0_11] : memref<1x1344x128xbf16, #tpu.memory_space<vmem>>, vector<1x640x128xbf16>
    %10 = vector.shape_cast %9 : vector<1x640x128xbf16> to vector<640x128xbf16>
    %c0_12 = arith.constant 0 : index
    %c384 = arith.constant 384 : index
    %11 = vector.load %arg5[%c0_12, %c384] : memref<640x512xbf16, #tpu.memory_space<vmem>>, vector<640x128xbf16>
    tpu.vector_store %arg5[%c0_12, %c384], %10 {strides = array<i32>} : memref<640x512xbf16, #tpu.memory_space<vmem>>, vector<640x128xbf16>,
    %c0_13 = arith.constant 0 : index
    %c0_14 = arith.constant 0 : index
    %12 = vector.load %arg5[%c0_13, %c0_14] : memref<640x512xbf16, #tpu.memory_space<vmem>>, vector<640x512xbf16>
    %c0_15 = arith.constant 0 : index
    %c0_16 = arith.constant 0 : index
    %13 = vector.load %arg2[%c0_15, %c0_16] : memref<512x128xbf16, #tpu.memory_space<vmem>>, vector<512x128xbf16>
    %cst = arith.constant dense<0.000000e+00> : vector<640x128xf32>
    %14 = tpu.matmul %12, %13, %cst {dimension_numbers = #tpu.dot_dimension_numbers<[1], [0], [0], [1], [0, 0, 1, 1], [], []>} : vector<640x512xbf16>, vector<512x128xbf16>, vector<640x128xf32> -> vector<640x128xf32>
    %c0_17 = arith.constant 0 : index
    %c0_18 = arith.constant 0 : index
    %15 = vector.load %arg6[%c0_17, %c0_18] : memref<640x128xf32, #tpu.memory_space<vmem>>, vector<640x128xf32>
    tpu.vector_store %arg6[%c0_17, %c0_18], %14 {strides = array<i32>} : memref<640x128xf32, #tpu.memory_space<vmem>>, vector<640x128xf32>,
    %c0_19 = arith.constant 0 : index
    %c0_20 = arith.constant 0 : index
    %16 = vector.load %arg6[%c0_19, %c0_20] : memref<640x128xf32, #tpu.memory_space<vmem>>, vector<640x128xf32>
    %c0_21 = arith.constant 0 : index
    %c0_22 = arith.constant 0 : index
    %17 = vector.load %arg3[%c0_21, %c0_22] : memref<1x128xf32, #tpu.memory_space<vmem>>, vector<1x128xf32>
    %18 = vector.broadcast %17 : vector<1x128xf32> to vector<640x128xf32>
    %19 = arith.addf %16, %18 : vector<640x128xf32>
    %cst_23 = arith.constant 0.000000e+00 : f32
    %20 = vector.broadcast %cst_23 : f32 to vector<640x128xf32>
    %21 = arith.maximumf %19, %20 : vector<640x128xf32>
    %22 = arith.truncf %21 : vector<640x128xf32> to vector<640x128xbf16>
    %c0_24 = arith.constant 0 : index
    %c0_25 = arith.constant 0 : index
    %c0_26 = arith.constant 0 : index
    %23 = vector.load %arg4[%c0_24, %c0_25, %c0_26] : memref<1x640x128xbf16, #tpu.memory_space<vmem>>, vector<1x640x128xbf16>
    %24 = vector.shape_cast %23 : vector<1x640x128xbf16> to vector<640x128xbf16>
    %25 = vector.shape_cast %22 : vector<640x128xbf16> to vector<1x640x128xbf16>
    tpu.vector_store %arg4[%c0_24, %c0_25, %c0_26], %25 {strides = array<i32>} : memref<1x640x128xbf16, #tpu.memory_space<vmem>>, vector<1x640x128xbf16>,
    return
  }
  func.func @transform_0(%arg0: i32) -> (i32, i32, i32) {
    %c0_i32 = arith.constant 0 : i32
    %c0_i32_0 = arith.constant 0 : i32
    %c0_i32_1 = arith.constant 0 : i32
    return %arg0, %c0_i32, %c0_i32_0 : i32, i32, i32
  }
  func.func @transform_1(%arg0: i32) -> (i32, i32) {
    %c0_i32 = arith.constant 0 : i32
    %c0_i32_0 = arith.constant 0 : i32
    %c0_i32_1 = arith.constant 0 : i32
    return %c0_i32, %c0_i32_0 : i32, i32
  }
  func.func @transform_2(%arg0: i32) -> (i32, i32) {
    %c0_i32 = arith.constant 0 : i32
    %c0_i32_0 = arith.constant 0 : i32
    %c0_i32_1 = arith.constant 0 : i32
    return %c0_i32, %c0_i32_0 : i32, i32
  }
  func.func @transform_3(%arg0: i32) -> (i32, i32, i32) {
    %c0_i32 = arith.constant 0 : i32
    %c0_i32_0 = arith.constant 0 : i32
    %c0_i32_1 = arith.constant 0 : i32
    return %arg0, %c0_i32, %c0_i32_0 : i32, i32, i32
  }
}

module attributes {stable_mosaic.version = 11 : i64} {
  func.func @_conv_kernel(%arg0: i32, %arg1: memref<1x320x512xbf16, #tpu.memory_space<vmem>>, %arg2: memref<2048x256xbf16, #tpu.memory_space<vmem>>, %arg3: memref<1x256xf32, #tpu.memory_space<vmem>>, %arg4: memref<1x144x256xbf16, #tpu.memory_space<vmem>>, %arg5: memref<144x2048xbf16, #tpu.memory_space<vmem>>, %arg6: memref<144x256xf32, #tpu.memory_space<vmem>>) attributes {dimension_semantics = [#tpu.dimension_semantics<parallel>], iteration_bounds = array<i64: 2>, scalar_prefetch = 0 : i64, scratch_operands = 2 : i64, tpu.core_type = #tpu.core_type<tc>, window_params = [{transform_indices = @transform_0, window_bounds = array<i64: 1, 320, 512>}, {pipeline_mode = #tpu.pipeline_mode<synchronous>, transform_indices = @transform_1, window_bounds = array<i64: 2048, 256>}, {pipeline_mode = #tpu.pipeline_mode<synchronous>, transform_indices = @transform_2, window_bounds = array<i64: 1, 256>}, {transform_indices = @transform_3, window_bounds = array<i64: 1, 144, 256>}]} {
    %c0 = arith.constant 0 : index
    %c0_0 = arith.constant 0 : index
    %c0_1 = arith.constant 0 : index
    %0 = vector.load %arg1[%c0, %c0_0, %c0_1] : memref<1x320x512xbf16, #tpu.memory_space<vmem>>, vector<1x144x512xbf16>
    %1 = vector.shape_cast %0 : vector<1x144x512xbf16> to vector<144x512xbf16>
    %c0_2 = arith.constant 0 : index
    %c0_3 = arith.constant 0 : index
    %2 = vector.load %arg5[%c0_2, %c0_3] : memref<144x2048xbf16, #tpu.memory_space<vmem>>, vector<144x512xbf16>
    tpu.vector_store %arg5[%c0_2, %c0_3], %1 {strides = array<i32>} : memref<144x2048xbf16, #tpu.memory_space<vmem>>, vector<144x512xbf16>,
    %c0_4 = arith.constant 0 : index
    %c160 = arith.constant 160 : index
    %c0_5 = arith.constant 0 : index
    %3 = vector.load %arg1[%c0_4, %c160, %c0_5] : memref<1x320x512xbf16, #tpu.memory_space<vmem>>, vector<1x144x512xbf16>
    %4 = vector.shape_cast %3 : vector<1x144x512xbf16> to vector<144x512xbf16>
    %c0_6 = arith.constant 0 : index
    %c512 = arith.constant 512 : index
    %5 = vector.load %arg5[%c0_6, %c512] : memref<144x2048xbf16, #tpu.memory_space<vmem>>, vector<144x512xbf16>
    tpu.vector_store %arg5[%c0_6, %c512], %4 {strides = array<i32>} : memref<144x2048xbf16, #tpu.memory_space<vmem>>, vector<144x512xbf16>,
    %c0_7 = arith.constant 0 : index
    %c16 = arith.constant 16 : index
    %c0_8 = arith.constant 0 : index
    %6 = vector.load %arg1[%c0_7, %c16, %c0_8] : memref<1x320x512xbf16, #tpu.memory_space<vmem>>, vector<1x144x512xbf16>
    %7 = vector.shape_cast %6 : vector<1x144x512xbf16> to vector<144x512xbf16>
    %c0_9 = arith.constant 0 : index
    %c1024 = arith.constant 1024 : index
    %8 = vector.load %arg5[%c0_9, %c1024] : memref<144x2048xbf16, #tpu.memory_space<vmem>>, vector<144x512xbf16>
    tpu.vector_store %arg5[%c0_9, %c1024], %7 {strides = array<i32>} : memref<144x2048xbf16, #tpu.memory_space<vmem>>, vector<144x512xbf16>,
    %c0_10 = arith.constant 0 : index
    %c176 = arith.constant 176 : index
    %c0_11 = arith.constant 0 : index
    %9 = vector.load %arg1[%c0_10, %c176, %c0_11] : memref<1x320x512xbf16, #tpu.memory_space<vmem>>, vector<1x144x512xbf16>
    %10 = vector.shape_cast %9 : vector<1x144x512xbf16> to vector<144x512xbf16>
    %c0_12 = arith.constant 0 : index
    %c1536 = arith.constant 1536 : index
    %11 = vector.load %arg5[%c0_12, %c1536] : memref<144x2048xbf16, #tpu.memory_space<vmem>>, vector<144x512xbf16>
    tpu.vector_store %arg5[%c0_12, %c1536], %10 {strides = array<i32>} : memref<144x2048xbf16, #tpu.memory_space<vmem>>, vector<144x512xbf16>,
    %c0_13 = arith.constant 0 : index
    %c0_14 = arith.constant 0 : index
    %12 = vector.load %arg5[%c0_13, %c0_14] : memref<144x2048xbf16, #tpu.memory_space<vmem>>, vector<144x2048xbf16>
    %c0_15 = arith.constant 0 : index
    %c0_16 = arith.constant 0 : index
    %13 = vector.load %arg2[%c0_15, %c0_16] : memref<2048x256xbf16, #tpu.memory_space<vmem>>, vector<2048x256xbf16>
    %cst = arith.constant dense<0.000000e+00> : vector<144x256xf32>
    %14 = tpu.matmul %12, %13, %cst {dimension_numbers = #tpu.dot_dimension_numbers<[1], [0], [0], [1], [0, 0, 1, 1], [], []>} : vector<144x2048xbf16>, vector<2048x256xbf16>, vector<144x256xf32> -> vector<144x256xf32>
    %c0_17 = arith.constant 0 : index
    %c0_18 = arith.constant 0 : index
    %15 = vector.load %arg6[%c0_17, %c0_18] : memref<144x256xf32, #tpu.memory_space<vmem>>, vector<144x256xf32>
    tpu.vector_store %arg6[%c0_17, %c0_18], %14 {strides = array<i32>} : memref<144x256xf32, #tpu.memory_space<vmem>>, vector<144x256xf32>,
    %c0_19 = arith.constant 0 : index
    %c0_20 = arith.constant 0 : index
    %16 = vector.load %arg6[%c0_19, %c0_20] : memref<144x256xf32, #tpu.memory_space<vmem>>, vector<144x256xf32>
    %c0_21 = arith.constant 0 : index
    %c0_22 = arith.constant 0 : index
    %17 = vector.load %arg3[%c0_21, %c0_22] : memref<1x256xf32, #tpu.memory_space<vmem>>, vector<1x256xf32>
    %18 = vector.broadcast %17 : vector<1x256xf32> to vector<144x256xf32>
    %19 = arith.addf %16, %18 : vector<144x256xf32>
    %cst_23 = arith.constant 0.000000e+00 : f32
    %20 = vector.broadcast %cst_23 : f32 to vector<144x256xf32>
    %21 = arith.maximumf %19, %20 : vector<144x256xf32>
    %22 = arith.truncf %21 : vector<144x256xf32> to vector<144x256xbf16>
    %c0_24 = arith.constant 0 : index
    %c0_25 = arith.constant 0 : index
    %c0_26 = arith.constant 0 : index
    %23 = vector.load %arg4[%c0_24, %c0_25, %c0_26] : memref<1x144x256xbf16, #tpu.memory_space<vmem>>, vector<1x144x256xbf16>
    %24 = vector.shape_cast %23 : vector<1x144x256xbf16> to vector<144x256xbf16>
    %25 = vector.shape_cast %22 : vector<144x256xbf16> to vector<1x144x256xbf16>
    tpu.vector_store %arg4[%c0_24, %c0_25, %c0_26], %25 {strides = array<i32>} : memref<1x144x256xbf16, #tpu.memory_space<vmem>>, vector<1x144x256xbf16>,
    return
  }
  func.func @transform_0(%arg0: i32) -> (i32, i32, i32) {
    %c0_i32 = arith.constant 0 : i32
    %c0_i32_0 = arith.constant 0 : i32
    %c0_i32_1 = arith.constant 0 : i32
    return %arg0, %c0_i32, %c0_i32_0 : i32, i32, i32
  }
  func.func @transform_1(%arg0: i32) -> (i32, i32) {
    %c0_i32 = arith.constant 0 : i32
    %c0_i32_0 = arith.constant 0 : i32
    %c0_i32_1 = arith.constant 0 : i32
    return %c0_i32, %c0_i32_0 : i32, i32
  }
  func.func @transform_2(%arg0: i32) -> (i32, i32) {
    %c0_i32 = arith.constant 0 : i32
    %c0_i32_0 = arith.constant 0 : i32
    %c0_i32_1 = arith.constant 0 : i32
    return %c0_i32, %c0_i32_0 : i32, i32
  }
  func.func @transform_3(%arg0: i32) -> (i32, i32, i32) {
    %c0_i32 = arith.constant 0 : i32
    %c0_i32_0 = arith.constant 0 : i32
    %c0_i32_1 = arith.constant 0 : i32
    return %arg0, %c0_i32, %c0_i32_0 : i32, i32, i32
  }
}

module attributes {stable_mosaic.version = 11 : i64} {
  func.func @_conv_kernel(%arg0: i32, %arg1: memref<1x432x256xbf16, #tpu.memory_space<vmem>>, %arg2: memref<2304x128xbf16, #tpu.memory_space<vmem>>, %arg3: memref<1x128xf32, #tpu.memory_space<vmem>>, %arg4: memref<1x112x128xbf16, #tpu.memory_space<vmem>>, %arg5: memref<112x2304xbf16, #tpu.memory_space<vmem>>, %arg6: memref<112x128xf32, #tpu.memory_space<vmem>>) attributes {dimension_semantics = [#tpu.dimension_semantics<parallel>], iteration_bounds = array<i64: 2>, scalar_prefetch = 0 : i64, scratch_operands = 2 : i64, tpu.core_type = #tpu.core_type<tc>, window_params = [{transform_indices = @transform_0, window_bounds = array<i64: 1, 432, 256>}, {pipeline_mode = #tpu.pipeline_mode<synchronous>, transform_indices = @transform_1, window_bounds = array<i64: 2304, 128>}, {pipeline_mode = #tpu.pipeline_mode<synchronous>, transform_indices = @transform_2, window_bounds = array<i64: 1, 128>}, {transform_indices = @transform_3, window_bounds = array<i64: 1, 112, 128>}]} {
    %c0 = arith.constant 0 : index
    %c0_0 = arith.constant 0 : index
    %c0_1 = arith.constant 0 : index
    %0 = vector.load %arg1[%c0, %c0_0, %c0_1] : memref<1x432x256xbf16, #tpu.memory_space<vmem>>, vector<1x112x256xbf16>
    %1 = vector.shape_cast %0 : vector<1x112x256xbf16> to vector<112x256xbf16>
    %c0_2 = arith.constant 0 : index
    %c0_3 = arith.constant 0 : index
    %2 = vector.load %arg5[%c0_2, %c0_3] : memref<112x2304xbf16, #tpu.memory_space<vmem>>, vector<112x256xbf16>
    tpu.vector_store %arg5[%c0_2, %c0_3], %1 {strides = array<i32>} : memref<112x2304xbf16, #tpu.memory_space<vmem>>, vector<112x256xbf16>,
    %c0_4 = arith.constant 0 : index
    %c144 = arith.constant 144 : index
    %c0_5 = arith.constant 0 : index
    %3 = vector.load %arg1[%c0_4, %c144, %c0_5] : memref<1x432x256xbf16, #tpu.memory_space<vmem>>, vector<1x112x256xbf16>
    %4 = vector.shape_cast %3 : vector<1x112x256xbf16> to vector<112x256xbf16>
    %c0_6 = arith.constant 0 : index
    %c256 = arith.constant 256 : index
    %5 = vector.load %arg5[%c0_6, %c256] : memref<112x2304xbf16, #tpu.memory_space<vmem>>, vector<112x256xbf16>
    tpu.vector_store %arg5[%c0_6, %c256], %4 {strides = array<i32>} : memref<112x2304xbf16, #tpu.memory_space<vmem>>, vector<112x256xbf16>,
    %c0_7 = arith.constant 0 : index
    %c288 = arith.constant 288 : index
    %c0_8 = arith.constant 0 : index
    %6 = vector.load %arg1[%c0_7, %c288, %c0_8] : memref<1x432x256xbf16, #tpu.memory_space<vmem>>, vector<1x112x256xbf16>
    %7 = vector.shape_cast %6 : vector<1x112x256xbf16> to vector<112x256xbf16>
    %c0_9 = arith.constant 0 : index
    %c512 = arith.constant 512 : index
    %8 = vector.load %arg5[%c0_9, %c512] : memref<112x2304xbf16, #tpu.memory_space<vmem>>, vector<112x256xbf16>
    tpu.vector_store %arg5[%c0_9, %c512], %7 {strides = array<i32>} : memref<112x2304xbf16, #tpu.memory_space<vmem>>, vector<112x256xbf16>,
    %c0_10 = arith.constant 0 : index
    %c16 = arith.constant 16 : index
    %c0_11 = arith.constant 0 : index
    %9 = vector.load %arg1[%c0_10, %c16, %c0_11] : memref<1x432x256xbf16, #tpu.memory_space<vmem>>, vector<1x112x256xbf16>
    %10 = vector.shape_cast %9 : vector<1x112x256xbf16> to vector<112x256xbf16>
    %c0_12 = arith.constant 0 : index
    %c768 = arith.constant 768 : index
    %11 = vector.load %arg5[%c0_12, %c768] : memref<112x2304xbf16, #tpu.memory_space<vmem>>, vector<112x256xbf16>
    tpu.vector_store %arg5[%c0_12, %c768], %10 {strides = array<i32>} : memref<112x2304xbf16, #tpu.memory_space<vmem>>, vector<112x256xbf16>,
    %c0_13 = arith.constant 0 : index
    %c160 = arith.constant 160 : index
    %c0_14 = arith.constant 0 : index
    %12 = vector.load %arg1[%c0_13, %c160, %c0_14] : memref<1x432x256xbf16, #tpu.memory_space<vmem>>, vector<1x112x256xbf16>
    %13 = vector.shape_cast %12 : vector<1x112x256xbf16> to vector<112x256xbf16>
    %c0_15 = arith.constant 0 : index
    %c1024 = arith.constant 1024 : index
    %14 = vector.load %arg5[%c0_15, %c1024] : memref<112x2304xbf16, #tpu.memory_space<vmem>>, vector<112x256xbf16>
    tpu.vector_store %arg5[%c0_15, %c1024], %13 {strides = array<i32>} : memref<112x2304xbf16, #tpu.memory_space<vmem>>, vector<112x256xbf16>,
    %c0_16 = arith.constant 0 : index
    %c304 = arith.constant 304 : index
    %c0_17 = arith.constant 0 : index
    %15 = vector.load %arg1[%c0_16, %c304, %c0_17] : memref<1x432x256xbf16, #tpu.memory_space<vmem>>, vector<1x112x256xbf16>
    %16 = vector.shape_cast %15 : vector<1x112x256xbf16> to vector<112x256xbf16>
    %c0_18 = arith.constant 0 : index
    %c1280 = arith.constant 1280 : index
    %17 = vector.load %arg5[%c0_18, %c1280] : memref<112x2304xbf16, #tpu.memory_space<vmem>>, vector<112x256xbf16>
    tpu.vector_store %arg5[%c0_18, %c1280], %16 {strides = array<i32>} : memref<112x2304xbf16, #tpu.memory_space<vmem>>, vector<112x256xbf16>,
    %c0_19 = arith.constant 0 : index
    %c32 = arith.constant 32 : index
    %c0_20 = arith.constant 0 : index
    %18 = vector.load %arg1[%c0_19, %c32, %c0_20] : memref<1x432x256xbf16, #tpu.memory_space<vmem>>, vector<1x112x256xbf16>
    %19 = vector.shape_cast %18 : vector<1x112x256xbf16> to vector<112x256xbf16>
    %c0_21 = arith.constant 0 : index
    %c1536 = arith.constant 1536 : index
    %20 = vector.load %arg5[%c0_21, %c1536] : memref<112x2304xbf16, #tpu.memory_space<vmem>>, vector<112x256xbf16>
    tpu.vector_store %arg5[%c0_21, %c1536], %19 {strides = array<i32>} : memref<112x2304xbf16, #tpu.memory_space<vmem>>, vector<112x256xbf16>,
    %c0_22 = arith.constant 0 : index
    %c176 = arith.constant 176 : index
    %c0_23 = arith.constant 0 : index
    %21 = vector.load %arg1[%c0_22, %c176, %c0_23] : memref<1x432x256xbf16, #tpu.memory_space<vmem>>, vector<1x112x256xbf16>
    %22 = vector.shape_cast %21 : vector<1x112x256xbf16> to vector<112x256xbf16>
    %c0_24 = arith.constant 0 : index
    %c1792 = arith.constant 1792 : index
    %23 = vector.load %arg5[%c0_24, %c1792] : memref<112x2304xbf16, #tpu.memory_space<vmem>>, vector<112x256xbf16>
    tpu.vector_store %arg5[%c0_24, %c1792], %22 {strides = array<i32>} : memref<112x2304xbf16, #tpu.memory_space<vmem>>, vector<112x256xbf16>,
    %c0_25 = arith.constant 0 : index
    %c320 = arith.constant 320 : index
    %c0_26 = arith.constant 0 : index
    %24 = vector.load %arg1[%c0_25, %c320, %c0_26] : memref<1x432x256xbf16, #tpu.memory_space<vmem>>, vector<1x112x256xbf16>
    %25 = vector.shape_cast %24 : vector<1x112x256xbf16> to vector<112x256xbf16>
    %c0_27 = arith.constant 0 : index
    %c2048 = arith.constant 2048 : index
    %26 = vector.load %arg5[%c0_27, %c2048] : memref<112x2304xbf16, #tpu.memory_space<vmem>>, vector<112x256xbf16>
    tpu.vector_store %arg5[%c0_27, %c2048], %25 {strides = array<i32>} : memref<112x2304xbf16, #tpu.memory_space<vmem>>, vector<112x256xbf16>,
    %c0_28 = arith.constant 0 : index
    %c0_29 = arith.constant 0 : index
    %27 = vector.load %arg5[%c0_28, %c0_29] : memref<112x2304xbf16, #tpu.memory_space<vmem>>, vector<112x2304xbf16>
    %c0_30 = arith.constant 0 : index
    %c0_31 = arith.constant 0 : index
    %28 = vector.load %arg2[%c0_30, %c0_31] : memref<2304x128xbf16, #tpu.memory_space<vmem>>, vector<2304x128xbf16>
    %cst = arith.constant dense<0.000000e+00> : vector<112x128xf32>
    %29 = tpu.matmul %27, %28, %cst {dimension_numbers = #tpu.dot_dimension_numbers<[1], [0], [0], [1], [0, 0, 1, 1], [], []>} : vector<112x2304xbf16>, vector<2304x128xbf16>, vector<112x128xf32> -> vector<112x128xf32>
    %c0_32 = arith.constant 0 : index
    %c0_33 = arith.constant 0 : index
    %30 = vector.load %arg6[%c0_32, %c0_33] : memref<112x128xf32, #tpu.memory_space<vmem>>, vector<112x128xf32>
    tpu.vector_store %arg6[%c0_32, %c0_33], %29 {strides = array<i32>} : memref<112x128xf32, #tpu.memory_space<vmem>>, vector<112x128xf32>,
    %c0_34 = arith.constant 0 : index
    %c0_35 = arith.constant 0 : index
    %31 = vector.load %arg6[%c0_34, %c0_35] : memref<112x128xf32, #tpu.memory_space<vmem>>, vector<112x128xf32>
    %c0_36 = arith.constant 0 : index
    %c0_37 = arith.constant 0 : index
    %32 = vector.load %arg3[%c0_36, %c0_37] : memref<1x128xf32, #tpu.memory_space<vmem>>, vector<1x128xf32>
    %33 = vector.broadcast %32 : vector<1x128xf32> to vector<112x128xf32>
    %34 = arith.addf %31, %33 : vector<112x128xf32>
    %cst_38 = arith.constant 0.000000e+00 : f32
    %35 = vector.broadcast %cst_38 : f32 to vector<112x128xf32>
    %36 = arith.maximumf %34, %35 : vector<112x128xf32>
    %37 = arith.truncf %36 : vector<112x128xf32> to vector<112x128xbf16>
    %c0_39 = arith.constant 0 : index
    %c0_40 = arith.constant 0 : index
    %c0_41 = arith.constant 0 : index
    %38 = vector.load %arg4[%c0_39, %c0_40, %c0_41] : memref<1x112x128xbf16, #tpu.memory_space<vmem>>, vector<1x112x128xbf16>
    %39 = vector.shape_cast %38 : vector<1x112x128xbf16> to vector<112x128xbf16>
    %40 = vector.shape_cast %37 : vector<112x128xbf16> to vector<1x112x128xbf16>
    tpu.vector_store %arg4[%c0_39, %c0_40, %c0_41], %40 {strides = array<i32>} : memref<1x112x128xbf16, #tpu.memory_space<vmem>>, vector<1x112x128xbf16>,
    return
  }
  func.func @transform_0(%arg0: i32) -> (i32, i32, i32) {
    %c0_i32 = arith.constant 0 : i32
    %c0_i32_0 = arith.constant 0 : i32
    %c0_i32_1 = arith.constant 0 : i32
    return %arg0, %c0_i32, %c0_i32_0 : i32, i32, i32
  }
  func.func @transform_1(%arg0: i32) -> (i32, i32) {
    %c0_i32 = arith.constant 0 : i32
    %c0_i32_0 = arith.constant 0 : i32
    %c0_i32_1 = arith.constant 0 : i32
    return %c0_i32, %c0_i32_0 : i32, i32
  }
  func.func @transform_2(%arg0: i32) -> (i32, i32) {
    %c0_i32 = arith.constant 0 : i32
    %c0_i32_0 = arith.constant 0 : i32
    %c0_i32_1 = arith.constant 0 : i32
    return %c0_i32, %c0_i32_0 : i32, i32
  }
  func.func @transform_3(%arg0: i32) -> (i32, i32, i32) {
    %c0_i32 = arith.constant 0 : i32
    %c0_i32_0 = arith.constant 0 : i32
    %c0_i32_1 = arith.constant 0 : i32
    return %arg0, %c0_i32, %c0_i32_0 : i32, i32, i32
  }
}

module attributes {stable_mosaic.version = 11 : i64} {
  func.func @_linear_critic_kernel(%arg0: i32, %arg1: i32, %arg2: memref<2x2048xbf16, #tpu.memory_space<vmem>>, %arg3: memref<2048x128xbf16, #tpu.memory_space<vmem>>, %arg4: memref<1x128xf32, #tpu.memory_space<vmem>>, %arg5: memref<1x128xf32, #tpu.memory_space<vmem>>, %arg6: memref<1x1xf32, #tpu.memory_space<vmem>>, %arg7: memref<2x128xf32, #tpu.memory_space<vmem>>, %arg8: memref<2x1xf32, #tpu.memory_space<vmem>>, %arg9: memref<2x128xf32, #tpu.memory_space<vmem>>) attributes {dimension_semantics = [#tpu.dimension_semantics<parallel>, #tpu.dimension_semantics<arbitrary>], iteration_bounds = array<i64: 1, 7>, scalar_prefetch = 0 : i64, scratch_operands = 1 : i64, tpu.core_type = #tpu.core_type<tc>, window_params = [{transform_indices = @transform_0, window_bounds = array<i64: 2, 2048>}, {transform_indices = @transform_1, window_bounds = array<i64: 2048, 128>}, {pipeline_mode = #tpu.pipeline_mode<synchronous>, transform_indices = @transform_2, window_bounds = array<i64: 1, 128>}, {pipeline_mode = #tpu.pipeline_mode<synchronous>, transform_indices = @transform_3, window_bounds = array<i64: 1, 128>}, {pipeline_mode = #tpu.pipeline_mode<synchronous>, transform_indices = @transform_4, window_bounds = array<i64: 1, 1>}, {transform_indices = @transform_5, window_bounds = array<i64: 2, 128>}, {transform_indices = @transform_6, window_bounds = array<i64: 2, 1>}]} {
    %c0_i32 = arith.constant 0 : i32
    %0 = arith.cmpi eq, %arg1, %c0_i32 : i32
    %1 = arith.extui %0 : i1 to i32
    %c0_i32_0 = arith.constant 0 : i32
    %2 = arith.cmpi ne, %1, %c0_i32_0 : i32
    scf.if %2 {
      %cst_9 = arith.constant 0.000000e+00 : f32
      %12 = vector.broadcast %cst_9 : f32 to vector<2x128xf32>
      %c0_10 = arith.constant 0 : index
      %c0_11 = arith.constant 0 : index
      %13 = vector.load %arg9[%c0_10, %c0_11] : memref<2x128xf32, #tpu.memory_space<vmem>>, vector<2x128xf32>
      tpu.vector_store %arg9[%c0_10, %c0_11], %12 {strides = array<i32>} : memref<2x128xf32, #tpu.memory_space<vmem>>, vector<2x128xf32>,
    } else {
    }
    %c0 = arith.constant 0 : index
    %c0_1 = arith.constant 0 : index
    %3 = vector.load %arg9[%c0, %c0_1] : memref<2x128xf32, #tpu.memory_space<vmem>>, vector<2x128xf32>
    %c0_2 = arith.constant 0 : index
    %c0_3 = arith.constant 0 : index
    %4 = vector.load %arg2[%c0_2, %c0_3] : memref<2x2048xbf16, #tpu.memory_space<vmem>>, vector<2x2048xbf16>
    %c0_4 = arith.constant 0 : index
    %c0_5 = arith.constant 0 : index
    %5 = vector.load %arg3[%c0_4, %c0_5] : memref<2048x128xbf16, #tpu.memory_space<vmem>>, vector<2048x128xbf16>
    %cst = arith.constant dense<0.000000e+00> : vector<2x128xf32>
    %6 = tpu.matmul %4, %5, %cst {dimension_numbers = #tpu.dot_dimension_numbers<[1], [0], [0], [1], [0, 0, 1, 1], [], []>} : vector<2x2048xbf16>, vector<2048x128xbf16>, vector<2x128xf32> -> vector<2x128xf32>
    %7 = arith.addf %3, %6 : vector<2x128xf32>
    %c0_6 = arith.constant 0 : index
    %c0_7 = arith.constant 0 : index
    %8 = vector.load %arg9[%c0_6, %c0_7] : memref<2x128xf32, #tpu.memory_space<vmem>>, vector<2x128xf32>
    tpu.vector_store %arg9[%c0_6, %c0_7], %7 {strides = array<i32>} : memref<2x128xf32, #tpu.memory_space<vmem>>, vector<2x128xf32>,
    %c6_i32 = arith.constant 6 : i32
    %9 = arith.cmpi eq, %arg1, %c6_i32 : i32
    %10 = arith.extui %9 : i1 to i32
    %c0_i32_8 = arith.constant 0 : i32
    %11 = arith.cmpi ne, %10, %c0_i32_8 : i32
    scf.if %11 {
      %c0_9 = arith.constant 0 : index
      %c0_10 = arith.constant 0 : index
      %12 = vector.load %arg9[%c0_9, %c0_10] : memref<2x128xf32, #tpu.memory_space<vmem>>, vector<2x128xf32>
      %c0_11 = arith.constant 0 : index
      %c0_12 = arith.constant 0 : index
      %13 = vector.load %arg4[%c0_11, %c0_12] : memref<1x128xf32, #tpu.memory_space<vmem>>, vector<1x128xf32>
      %14 = vector.broadcast %13 : vector<1x128xf32> to vector<2x128xf32>
      %15 = arith.addf %12, %14 : vector<2x128xf32>
      %cst_13 = arith.constant 0.000000e+00 : f32
      %16 = vector.broadcast %cst_13 : f32 to vector<2x128xf32>
      %17 = arith.maximumf %15, %16 : vector<2x128xf32>
      %c0_14 = arith.constant 0 : index
      %c0_15 = arith.constant 0 : index
      %18 = vector.load %arg7[%c0_14, %c0_15] : memref<2x128xf32, #tpu.memory_space<vmem>>, vector<2x128xf32>
      tpu.vector_store %arg7[%c0_14, %c0_15], %17 {strides = array<i32>} : memref<2x128xf32, #tpu.memory_space<vmem>>, vector<2x128xf32>,
      %c0_16 = arith.constant 0 : index
      %c0_17 = arith.constant 0 : index
      %19 = vector.load %arg5[%c0_16, %c0_17] : memref<1x128xf32, #tpu.memory_space<vmem>>, vector<1x128xf32>
      %20 = vector.broadcast %19 : vector<1x128xf32> to vector<2x128xf32>
      %21 = arith.mulf %17, %20 : vector<2x128xf32>
      %cst_18 = arith.constant dense<0.000000e+00> : vector<2xf32>
      %22 = vector.multi_reduction <add>, %21, %cst_18 [1] : vector<2x128xf32> to vector<2xf32>
      %23 = vector.shape_cast %22 : vector<2xf32> to vector<2x1xf32>
      %c0_19 = arith.constant 0 : index
      %c0_20 = arith.constant 0 : index
      %24 = vector.load %arg6[%c0_19, %c0_20] : memref<1x1xf32, #tpu.memory_space<vmem>>, vector<1x1xf32>
      %25 = vector.broadcast %24 : vector<1x1xf32> to vector<2x1xf32>
      %26 = arith.addf %23, %25 : vector<2x1xf32>
      %c0_21 = arith.constant 0 : index
      %c0_22 = arith.constant 0 : index
      %27 = vector.load %arg8[%c0_21, %c0_22] : memref<2x1xf32, #tpu.memory_space<vmem>>, vector<2x1xf32>
      tpu.vector_store %arg8[%c0_21, %c0_22], %26 {strides = array<i32>} : memref<2x1xf32, #tpu.memory_space<vmem>>, vector<2x1xf32>,
    } else {
    }
    return
  }
  func.func @transform_0(%arg0: i32, %arg1: i32) -> (i32, i32) {
    %c0_i32 = arith.constant 0 : i32
    return %arg0, %arg1 : i32, i32
  }
  func.func @transform_1(%arg0: i32, %arg1: i32) -> (i32, i32) {
    %c0_i32 = arith.constant 0 : i32
    %c0_i32_0 = arith.constant 0 : i32
    return %arg1, %c0_i32 : i32, i32
  }
  func.func @transform_2(%arg0: i32, %arg1: i32) -> (i32, i32) {
    %c0_i32 = arith.constant 0 : i32
    %c0_i32_0 = arith.constant 0 : i32
    %c0_i32_1 = arith.constant 0 : i32
    return %c0_i32, %c0_i32_0 : i32, i32
  }
  func.func @transform_3(%arg0: i32, %arg1: i32) -> (i32, i32) {
    %c0_i32 = arith.constant 0 : i32
    %c0_i32_0 = arith.constant 0 : i32
    %c0_i32_1 = arith.constant 0 : i32
    return %c0_i32, %c0_i32_0 : i32, i32
  }
  func.func @transform_4(%arg0: i32, %arg1: i32) -> (i32, i32) {
    %c0_i32 = arith.constant 0 : i32
    %c0_i32_0 = arith.constant 0 : i32
    %c0_i32_1 = arith.constant 0 : i32
    return %c0_i32, %c0_i32_0 : i32, i32
  }
  func.func @transform_5(%arg0: i32, %arg1: i32) -> (i32, i32) {
    %c0_i32 = arith.constant 0 : i32
    %c0_i32_0 = arith.constant 0 : i32
    return %arg0, %c0_i32 : i32, i32
  }
  func.func @transform_6(%arg0: i32, %arg1: i32) -> (i32, i32) {
    %c0_i32 = arith.constant 0 : i32
    %c0_i32_0 = arith.constant 0 : i32
    return %arg0, %c0_i32 : i32, i32
  }
}

</mosaic_0001>

<bundles_post_ra>
// kernel: cnnbase_forward.4
= control target key start
LH: loop header
LB: loop body
LE: loop exit
PB: predicated region body
PF: predicated region fallthrough
CT: control target
= control target key end

     0   :  { %s4430_s12 = smov 0   ;;  %s5037_s0 = inlined_call_operand.vmem [shape: bf16[2,1344,128], index: 0, kind: input, shape index: {}]   ;;  %s5038_s1 = inlined_call_operand.vmem [shape: bf16[512,128], index: 1, kind: input, shape index: {}]   ;;  %s5039_s2 = inlined_call_operand.vmem [shape: f32[1,128], index: 2, kind: input, shape index: {}]   ;;  %s5040_s3 = inlined_call_operand.vmem [shape: bf16[2,640,128], index: 3, kind: output, shape index: {}]  }
   0x1 LB: > { %s3516_s13 = sadd.s32 4294967295, %s4407_s12   ;;  %p3520_p0 = scmp.ge.s32.totalorder %s4407_s12, 1  ;;  %s4407_s12 = sphi %s4430_s12, %s13_s12  }
   0x2   : > { %p137_p1 = scmp.lt.s32.totalorder %s4407_s12, 3 }
   0x4   : > { %p138_p2 = pnand %p3520_p0, %p137_p1 }
   0x5   : > { %p161_p3 = scmp.lt.s32.totalorder (!%p138_p2), %s3516_s13, 1 }
   0x6   : > { %141 = sbr.rel (%p138_p2) target bundleno = 602 (0x25a), region = 32 }
   0xb   : > { %v4128_v0 = vld [vmem:[%s5038_s1 + $0x38] sm:$0xff]   ;;  %v4409_v1 = vmov 0   ;;  %v4130_v3 = vld [vmem:[%s5038_s1 + $0x30] sm:$0xff]   ;;  %v4132_v5 = vld [vmem:[%s5038_s1 + $0x28] sm:$0xff]   ;;  %s5042_s13 = smov (!%p161_p3, %s3516_s13), 1 }
   0xc   : > { %2028 = vmatprep.subr.bf16.mxu0 %v4409_v1  ;;  %2381 = vmatprep.subr.bf16.mxu1 %v4409_v1  ;;  %v4129_v2 = vld [vmem:[%s5038_s1 + $0xb8] sm:$0xff]   ;;  %v4131_v4 = vld [vmem:[%s5038_s1 + $0xb0] sm:$0xff]   ;;  %v4133_v6 = vld [vmem:[%s5038_s1 + $0xa8] sm:$0xff]   ;;  %s4117_s17 = smul.u32 672, %s5042_s13 }
   0xd   : > { %2029 = vmatpush1.bf16.msra.mxu0 %v4128_v0  ;;  %2382 = vmatpush1.bf16.msra.mxu1 %v4129_v2  ;;  %v4134_v7 = vld [vmem:[%s5038_s1 + $0x20] sm:$0xff]   ;;  %v4136_v9 = vld [vmem:[%s5038_s1 + $0x18] sm:$0xff]   ;;  %v4138_v11 = vld [vmem:[%s5038_s1 + $0x10] sm:$0xff]   ;;  %s4118_s7 = smul.u32 320, %s5042_s13 }
   0xe   : > { %2030 = vmatprep.subr.bf16.mxu0 %v4409_v1  ;;  %2383 = vmatprep.subr.bf16.mxu1 %v4409_v1  ;;  %v4135_v8 = vld [vmem:[%s5038_s1 + $0xa0] sm:$0xff]   ;;  %v4137_v10 = vld [vmem:[%s5038_s1 + $0x98] sm:$0xff]   ;;  %v4139_v12 = vld [vmem:[%s5038_s1 + $0x90] sm:$0xff]   ;;  %s4512_s24 = scalar_lea.vmem %s5037_s0, %s4117_s17 }
   0xf   : > { %v4140_v13 = vld [vmem:[%s5038_s1 + $0x8] sm:$0xff]   ;;  %v4142_v15 = vld [vmem:[%s5038_s1] sm:$0xff]   ;;  %v4144_v17 = vld [vmem:[%s5038_s1 + $0x78] sm:$0xff]   ;;  %s4909_s10 = scalar_lea.vmem %s5040_s3, %s4118_s7 }
  0x10   : > { %v4141_v14 = vld [vmem:[%s5038_s1 + $0x88] sm:$0xff]   ;;  %v4143_v16 = vld [vmem:[%s5038_s1 + $0x80] sm:$0xff]   ;;  %v4145_v18 = vld [vmem:[%s5038_s1 + $0xf8] sm:$0xff]  }
  0x11   : > { %2031 = vmatpush1.bf16.msra.mxu0 %v4130_v3  ;;  %2384 = vmatpush1.bf16.msra.mxu1 %v4131_v4  ;;  %v4146_v19 = vld [vmem:[%s5038_s1 + $0x70] sm:$0xff]   ;;  %v172_v20 = vld [vmem:[%s4512_s24] sm:$0xf]  ;;  %v173_v21 = vld [vmem:[%s4512_s24 + $0x4] sm:$0xf] }
  0x12   : > { %2032 = vmatprep.subr.bf16.mxu0 %v4409_v1  ;;  %2385 = vmatprep.subr.bf16.mxu1 %v4409_v1  ;;  %v332_v22 = vld [vmem:[%s4512_s24 + $0x150] sm:$0xf]  ;;  %252 = vst [vmem:[#allocation2] sm:$0xf] %v172_v20  ;;  %253 = vst [vmem:[#allocation2 + $0x10] sm:$0xf] %v173_v21 }
  0x13   : > { %v4147_v23 = vld [vmem:[%s5038_s1 + $0xf0] sm:$0xff]   ;;  %412 = vst [vmem:[#allocation2 + $0x4] sm:$0xf] %v332_v22  ;;  %v652_v27 = vld [vmem:[%s4512_s24 + $0x160] sm:$0xf]  ;;  %v4148_v33 = vld [vmem:[%s5038_s1 + $0x68] sm:$0xff]  }
  0x14   : > { %v333_v24 = vld [vmem:[%s4512_s24 + $0x154] sm:$0xf]  ;;  %v492_v25 = vld [vmem:[%s4512_s24 + $0x10] sm:$0xf]  ;;  %v653_v28 = vld [vmem:[%s4512_s24 + $0x164] sm:$0xf] }
  0x15   : > { %2033 = vmatpush1.bf16.msra.mxu0 %v4132_v5  ;;  %2386 = vmatpush1.bf16.msra.mxu1 %v4133_v6  ;;  %v493_v26 = vld [vmem:[%s4512_s24 + $0x14] sm:$0xf]  ;;  %413 = vst [vmem:[#allocation2 + $0x14] sm:$0xf] %v333_v24  ;;  %572 = vst [vmem:[#allocation2 + $0x8] sm:$0xf] %v492_v25 }
  0x16   : > { %2034 = vmatprep.subr.bf16.mxu0 %v4409_v1  ;;  %2387 = vmatprep.subr.bf16.mxu1 %v4409_v1  ;;  %573 = vst [vmem:[#allocation2 + $0x18] sm:$0xf] %v493_v26  ;;  %v174_v29 = vld [vmem:[%s4512_s24 + $0x8] sm:$0xf]  ;;  %732 = vst [vmem:[#allocation2 + $0xc] sm:$0xf] %v652_v27 }
  0x17   : > { %733 = vst [vmem:[#allocation2 + $0x1c] sm:$0xf] %v653_v28  ;;  %v175_v30 = vld [vmem:[%s4512_s24 + $0xc] sm:$0xf]  ;;  %254 = vst [vmem:[#allocation2 + $0x20] sm:$0xf] %v174_v29 }
  0x18   : > { %v334_v31 = vld [vmem:[%s4512_s24 + $0x158] sm:$0xf]  ;;  %v335_v32 = vld [vmem:[%s4512_s24 + $0x15c] sm:$0xf]  ;;  %255 = vst [vmem:[#allocation2 + $0x30] sm:$0xf] %v175_v30 }
  0x19   : > { %2035 = vmatpush1.bf16.msra.mxu0 %v4134_v7  ;;  %2388 = vmatpush1.bf16.msra.mxu1 %v4135_v8  ;;  %414 = vst [vmem:[#allocation2 + $0x24] sm:$0xf] %v334_v31  ;;  %415 = vst [vmem:[#allocation2 + $0x34] sm:$0xf] %v335_v32  ;;  %v494_v34 = vld [vmem:[%s4512_s24 + $0x18] sm:$0xf] }
  0x1a   : > { %2036 = vmatprep.subr.bf16.mxu0 %v4409_v1  ;;  %2389 = vmatprep.subr.bf16.mxu1 %v4409_v1  ;;  %v495_v35 = vld [vmem:[%s4512_s24 + $0x1c] sm:$0xf]  ;;  %v654_v36 = vld [vmem:[%s4512_s24 + $0x168] sm:$0xf]  ;;  %574 = vst [vmem:[#allocation2 + $0x28] sm:$0xf] %v494_v34 }
  0x1b   : > { %v4149_v37 = vld [vmem:[%s5038_s1 + $0xe8] sm:$0xff]   ;;  %575 = vst [vmem:[#allocation2 + $0x38] sm:$0xf] %v495_v35  ;;  %734 = vst [vmem:[#allocation2 + $0x2c] sm:$0xf] %v654_v36  ;;  %v4150_v49 = vld [vmem:[%s5038_s1 + $0x60] sm:$0xff]  }
  0x1c   : > { %v655_v38 = vld [vmem:[%s4512_s24 + $0x16c] sm:$0xf]  ;;  %v176_v39 = vld [vmem:[%s4512_s24 + $0x10] sm:$0xf]  ;;  %v177_v40 = vld [vmem:[%s4512_s24 + $0x14] sm:$0xf] }
  0x1d   : > { %2037 = vmatpush1.bf16.msra.mxu0 %v4136_v9  ;;  %2390 = vmatpush1.bf16.msra.mxu1 %v4137_v10  ;;  %735 = vst [vmem:[#allocation2 + $0x3c] sm:$0xf] %v655_v38  ;;  %256 = vst [vmem:[#allocation2 + $0x40] sm:$0xf] %v176_v39  ;;  %v336_v41 = vld [vmem:[%s4512_s24 + $0x160] sm:$0xf] }
  0x1e   : > { %2038 = vmatprep.subr.bf16.mxu0 %v4409_v1  ;;  %2391 = vmatprep.subr.bf16.mxu1 %v4409_v1  ;;  %257 = vst [vmem:[#allocation2 + $0x50] sm:$0xf] %v177_v40  ;;  %v337_v42 = vld [vmem:[%s4512_s24 + $0x164] sm:$0xf]  ;;  %v496_v43 = vld [vmem:[%s4512_s24 + $0x20] sm:$0xf] }
  0x1f   : > { %416 = vst [vmem:[#allocation2 + $0x44] sm:$0xf] %v336_v41  ;;  %417 = vst [vmem:[#allocation2 + $0x54] sm:$0xf] %v337_v42  ;;  %v497_v44 = vld [vmem:[%s4512_s24 + $0x24] sm:$0xf] }
  0x20   : > { %576 = vst [vmem:[#allocation2 + $0x48] sm:$0xf] %v496_v43  ;;  %v656_v45 = vld [vmem:[%s4512_s24 + $0x170] sm:$0xf]  ;;  %v657_v46 = vld [vmem:[%s4512_s24 + $0x174] sm:$0xf] }
  0x21   : > { %2039 = vmatpush1.bf16.msra.mxu0 %v4138_v11  ;;  %2392 = vmatpush1.bf16.msra.mxu1 %v4139_v12  ;;  %577 = vst [vmem:[#allocation2 + $0x58] sm:$0xf] %v497_v44  ;;  %736 = vst [vmem:[#allocation2 + $0x4c] sm:$0xf] %v656_v45  ;;  %v178_v47 = vld [vmem:[%s4512_s24 + $0x18] sm:$0xf] }
  0x22   : > { %2040 = vmatprep.subr.bf16.mxu0 %v4409_v1  ;;  %2393 = vmatprep.subr.bf16.mxu1 %v4409_v1  ;;  %737 = vst [vmem:[#allocation2 + $0x5c] sm:$0xf] %v657_v46  ;;  %v179_v48 = vld [vmem:[%s4512_s24 + $0x1c] sm:$0xf]  ;;  %v4162_v50 = vld [vmem:[#allocation2 + $0x4] ss:$16 sps:$4 sm:$0xff]  }
  0x23   : > { %258 = vst [vmem:[#allocation2 + $0x60] sm:$0xf] %v178_v47  ;;  %259 = vst [vmem:[#allocation2 + $0x70] sm:$0xf] %v179_v48  ;;  %v4151_v51 = vld [vmem:[%s5038_s1 + $0xe0] sm:$0xff]   ;;  %2060 = vmatprep.mubr.bf16.mxu0 %v4162_v50  ;;  %v4152_v53 = vld [vmem:[%s5038_s1 + $0x58] sm:$0xff]  }
  0x24   : > { %v4165_v52 = vld [vmem:[#allocation2 + $0xc] ss:$16 sps:$4 sm:$0xff]   ;;  %v4154_v55 = vld [vmem:[%s5038_s1 + $0x50] sm:$0xff]   ;;  %v338_v56 = vld [vmem:[%s4512_s24 + $0x168] sm:$0xf] }
  0x25   : > { %2041 = vmatpush1.bf16.msra.mxu0 %v4140_v13  ;;  %2394 = vmatpush1.bf16.msra.mxu1 %v4141_v14  ;;  %v4153_v54 = vld [vmem:[%s5038_s1 + $0xd8] sm:$0xff]   ;;  %v4155_v57 = vld [vmem:[%s5038_s1 + $0xd0] sm:$0xff]   ;;  %v339_v58 = vld [vmem:[%s4512_s24 + $0x16c] sm:$0xf]  ;;  %418 = vst [vmem:[#allocation2 + $0x64] sm:$0xf] %v338_v56 }
  0x26   : > { %2042 = vmatprep.subr.bf16.mxu0 %v4409_v1  ;;  %2395 = vmatprep.subr.bf16.mxu1 %v4409_v1  ;;  %v498_v59 = vld [vmem:[%s4512_s24 + $0x28] sm:$0xf]  ;;  %v499_v60 = vld [vmem:[%s4512_s24 + $0x2c] sm:$0xf]  ;;  %419 = vst [vmem:[#allocation2 + $0x74] sm:$0xf] %v339_v58 }
  0x27   : > { %2413 = vmatprep.mubr.bf16.mxu1 %v4165_v52  ;;  %578 = vst [vmem:[#allocation2 + $0x68] sm:$0xf] %v498_v59  ;;  %579 = vst [vmem:[#allocation2 + $0x78] sm:$0xf] %v499_v60  ;;  %v658_v61 = vld [vmem:[%s4512_s24 + $0x178] sm:$0xf] }
  0x28   : > { %v659_v62 = vld [vmem:[%s4512_s24 + $0x17c] sm:$0xf]  ;;  %v180_v63 = vld [vmem:[%s4512_s24 + $0x20] sm:$0xf]  ;;  %738 = vst [vmem:[#allocation2 + $0x6c] sm:$0xf] %v658_v61 }
  0x29   : > { %2043 = vmatpush1.bf16.msra.mxu0 %v4142_v15  ;;  %2396 = vmatpush1.bf16.msra.mxu1 %v4143_v16  ;;  %739 = vst [vmem:[#allocation2 + $0x7c] sm:$0xf] %v659_v62  ;;  %v181_v0 = vld [vmem:[%s4512_s24 + $0x24] sm:$0xf]  ;;  %260 = vst [vmem:[#allocation2 + $0x80] sm:$0xf] %v180_v63 }
  0x2a   : > { %2044 = vmatprep.subr.bf16.mxu0 %v4409_v1  ;;  %2397 = vmatprep.subr.bf16.mxu1 %v4409_v1  ;;  %v340_v2 = vld [vmem:[%s4512_s24 + $0x170] sm:$0xf]  ;;  %v341_v3 = vld [vmem:[%s4512_s24 + $0x174] sm:$0xf]  ;;  %v4156_v4 = vld [vmem:[%s5038_s1 + $0x48] sm:$0xff]  }
  0x2b   : > { %261 = vst [vmem:[#allocation2 + $0x90] sm:$0xf] %v181_v0  ;;  %420 = vst [vmem:[#allocation2 + $0x84] sm:$0xf] %v340_v2  ;;  %v500_v5 = vld [vmem:[%s4512_s24 + $0x30] sm:$0xf] }
  0x2c   : > { %421 = vst [vmem:[#allocation2 + $0x94] sm:$0xf] %v341_v3  ;;  %v501_v6 = vld [vmem:[%s4512_s24 + $0x34] sm:$0xf]  ;;  %v660_v7 = vld [vmem:[%s4512_s24 + $0x180] sm:$0xf] }
  0x2d   : > { %2045 = vmatpush2.bf16.msra.mxu0 %v4144_v17  ;;  %2398 = vmatpush2.bf16.msra.mxu1 %v4145_v18  ;;  %v4157_v8 = vld [vmem:[%s5038_s1 + $0xc8] sm:$0xff]   ;;  %580 = vst [vmem:[#allocation2 + $0x88] sm:$0xf] %v500_v5  ;;  %581 = vst [vmem:[#allocation2 + $0x98] sm:$0xf] %v501_v6  ;;  %v4158_v20 = vld [vmem:[%s5038_s1 + $0x40] sm:$0xff]  }
  0x2e   : > { %2046 = vmatprep.subr.bf16.mxu0 %v4409_v1  ;;  %2399 = vmatprep.subr.bf16.mxu1 %v4409_v1  ;;  %v661_v9 = vld [vmem:[%s4512_s24 + $0x184] sm:$0xf]  ;;  %740 = vst [vmem:[#allocation2 + $0x8c] sm:$0xf] %v660_v7  ;;  %v182_v10 = vld [vmem:[%s4512_s24 + $0x28] sm:$0xf] }
  0x2f   : > { %v183_v11 = vld [vmem:[%s4512_s24 + $0x2c] sm:$0xf]  ;;  %741 = vst [vmem:[#allocation2 + $0x9c] sm:$0xf] %v661_v9  ;;  %262 = vst [vmem:[#allocation2 + $0xa0] sm:$0xf] %v182_v10 }
  0x30   : > { %263 = vst [vmem:[#allocation2 + $0xb0] sm:$0xf] %v183_v11  ;;  %v342_v12 = vld [vmem:[%s4512_s24 + $0x178] sm:$0xf]  ;;  %v343_v13 = vld [vmem:[%s4512_s24 + $0x17c] sm:$0xf] }
  0x31   : > { %2047 = vmatpush2.bf16.msra.mxu0 %v4146_v19  ;;  %2400 = vmatpush2.bf16.msra.mxu1 %v4147_v23  ;;  %v502_v14 = vld [vmem:[%s4512_s24 + $0x38] sm:$0xf]  ;;  %422 = vst [vmem:[#allocation2 + $0xa4] sm:$0xf] %v342_v12  ;;  %423 = vst [vmem:[#allocation2 + $0xb4] sm:$0xf] %v343_v13 }
  0x32   : > { %2048 = vmatprep.subr.bf16.mxu0 %v4409_v1  ;;  %2401 = vmatprep.subr.bf16.mxu1 %v4409_v1  ;;  %v503_v15 = vld [vmem:[%s4512_s24 + $0x3c] sm:$0xf]  ;;  %582 = vst [vmem:[#allocation2 + $0xa8] sm:$0xf] %v502_v14  ;;  %v662_v16 = vld [vmem:[%s4512_s24 + $0x188] sm:$0xf] }
  0x33   : > { %v663_v17 = vld [vmem:[%s4512_s24 + $0x18c] sm:$0xf]  ;;  %583 = vst [vmem:[#allocation2 + $0xb8] sm:$0xf] %v503_v15  ;;  %742 = vst [vmem:[#allocation2 + $0xac] sm:$0xf] %v662_v16 }
  0x34   : > { %743 = vst [vmem:[#allocation2 + $0xbc] sm:$0xf] %v663_v17  ;;  %v184_v18 = vld [vmem:[%s4512_s24 + $0x30] sm:$0xf]  ;;  %v185_v19 = vld [vmem:[%s4512_s24 + $0x34] sm:$0xf] }
  0x35   : > { %2049 = vmatpush2.bf16.msra.mxu0 %v4148_v33  ;;  %2402 = vmatpush2.bf16.msra.mxu1 %v4149_v37  ;;  %264 = vst [vmem:[#allocation2 + $0xc0] sm:$0xf] %v184_v18  ;;  %265 = vst [vmem:[#allocation2 + $0xd0] sm:$0xf] %v185_v19  ;;  %v4159_v21 = vld [vmem:[%s5038_s1 + $0xc0] sm:$0xff]  }
  0x36   : > { %2050 = vmatprep.subr.bf16.mxu0 %v4409_v1  ;;  %2403 = vmatprep.subr.bf16.mxu1 %v4409_v1  ;;  %v4160_v22 = vld [vmem:[#allocation2] ss:$16 sps:$4 sm:$0xff]   ;;  %v4163_v23 = vld [vmem:[#allocation2 + $0x8] ss:$16 sps:$4 sm:$0xff]   ;;  %v4166_v24 = vld [vmem:[#allocation2 + $0x24] ss:$16 sps:$4 sm:$0xff]  }
  0x37   : > { %v4168_v25 = vld [vmem:[#allocation2 + $0x2c] ss:$16 sps:$4 sm:$0xff]   ;;  %v344_v26 = vld [vmem:[%s4512_s24 + $0x180] sm:$0xf]  ;;  %v345_v27 = vld [vmem:[%s4512_s24 + $0x184] sm:$0xf] }
  0x38   : > { %424 = vst [vmem:[#allocation2 + $0xc4] sm:$0xf] %v344_v26  ;;  %v504_v28 = vld [vmem:[%s4512_s24 + $0x40] sm:$0xf]  ;;  %v505_v29 = vld [vmem:[%s4512_s24 + $0x44] sm:$0xf] }
  0x39   : > { %2051 = vmatpush2.bf16.msra.mxu0 %v4150_v49  ;;  %2404 = vmatpush2.bf16.msra.mxu1 %v4151_v51  ;;  %425 = vst [vmem:[#allocation2 + $0xd4] sm:$0xf] %v345_v27  ;;  %584 = vst [vmem:[#allocation2 + $0xc8] sm:$0xf] %v504_v28  ;;  %v665_v30 = vld [vmem:[%s4512_s24 + $0x194] sm:$0xf] }
  0x3a   : > { %2052 = vmatprep.subr.bf16.mxu0 %v4409_v1  ;;  %2405 = vmatprep.subr.bf16.mxu1 %v4409_v1  ;;  %585 = vst [vmem:[#allocation2 + $0xd8] sm:$0xf] %v505_v29  ;;  %v186_v31 = vld [vmem:[%s4512_s24 + $0x38] sm:$0xf]  ;;  %v4170_v32 = vld [vmem:[#allocation2 + $0x20] ss:$16 sps:$4 sm:$0xff]  }
  0x3b   : > { %745 = vst [vmem:[#allocation2 + $0xdc] sm:$0xf] %v665_v30  ;;  %v187_v33 = vld [vmem:[%s4512_s24 + $0x3c] sm:$0xf]  ;;  %266 = vst [vmem:[#allocation2 + $0xe0] sm:$0xf] %v186_v31 }
  0x3c   : > { %v346_v34 = vld [vmem:[%s4512_s24 + $0x188] sm:$0xf]  ;;  %v347_v35 = vld [vmem:[%s4512_s24 + $0x18c] sm:$0xf]  ;;  %v4172_v37 = vld [vmem:[#allocation2 + $0x44] ss:$16 sps:$4 sm:$0xff]  }
  0x3d   : > { %2053 = vmatpush2.bf16.msra.mxu0 %v4152_v53  ;;  %2406 = vmatpush2.bf16.msra.mxu1 %v4153_v54  ;;  %v4171_v36 = vld [vmem:[#allocation2 + $0x28] ss:$16 sps:$4 sm:$0xff]   ;;  %267 = vst [vmem:[#allocation2 + $0xf0] sm:$0xf] %v187_v33  ;;  %426 = vst [vmem:[#allocation2 + $0xe4] sm:$0xf] %v346_v34 }
  0x3e   : > { %2054 = vmatprep.subr.bf16.mxu0 %v4409_v1  ;;  %2407 = vmatprep.subr.bf16.mxu1 %v4409_v1  ;;  %427 = vst [vmem:[#allocation2 + $0xf4] sm:$0xf] %v347_v35  ;;  %v506_v38 = vld [vmem:[%s4512_s24 + $0x48] sm:$0xf]  ;;  %v507_v39 = vld [vmem:[%s4512_s24 + $0x4c] sm:$0xf] }
  0x3f   : > { %v666_v40 = vld [vmem:[%s4512_s24 + $0x198] sm:$0xf]  ;;  %v4174_v41 = vld [vmem:[#allocation2 + $0x4c] ss:$16 sps:$4 sm:$0xff]   ;;  %586 = vst [vmem:[#allocation2 + $0xe8] sm:$0xf] %v506_v38 }
  0x40   : > { %587 = vst [vmem:[#allocation2 + $0xf8] sm:$0xf] %v507_v39  ;;  %v667_v42 = vld [vmem:[%s4512_s24 + $0x19c] sm:$0xf]  ;;  %746 = vst [vmem:[#allocation2 + $0xec] sm:$0xf] %v666_v40 }
  0x41   : > { %2055 = vmatpush2.bf16.msra.mxu0 %v4154_v55  ;;  %2408 = vmatpush2.bf16.msra.mxu1 %v4155_v57  ;;  %v188_v43 = vld [vmem:[%s4512_s24 + $0x40] sm:$0xf]  ;;  %v189_v44 = vld [vmem:[%s4512_s24 + $0x44] sm:$0xf]  ;;  %747 = vst [vmem:[#allocation2 + $0xfc] sm:$0xf] %v667_v42 }
  0x42   : > { %2056 = vmatprep.subr.bf16.mxu0 %v4409_v1  ;;  %2409 = vmatprep.subr.bf16.mxu1 %v4409_v1  ;;  %268 = vst [vmem:[#allocation2 + $0x100] sm:$0xf] %v188_v43  ;;  %269 = vst [vmem:[#allocation2 + $0x110] sm:$0xf] %v189_v44  ;;  %v348_v45 = vld [vmem:[%s4512_s24 + $0x190] sm:$0xf] }
  0x43   : > { %v349_v46 = vld [vmem:[%s4512_s24 + $0x194] sm:$0xf]  ;;  %v508_v47 = vld [vmem:[%s4512_s24 + $0x50] sm:$0xf]  ;;  %428 = vst [vmem:[#allocation2 + $0x104] sm:$0xf] %v348_v45 }
  0x44   : > { %429 = vst [vmem:[#allocation2 + $0x114] sm:$0xf] %v349_v46  ;;  %v509_v48 = vld [vmem:[%s4512_s24 + $0x54] sm:$0xf]  ;;  %588 = vst [vmem:[#allocation2 + $0x108] sm:$0xf] %v508_v47 }
  0x45   : > { %2057 = vmatpush2.bf16.msra.mxu0 %v4156_v4  ;;  %2410 = vmatpush2.bf16.msra.mxu1 %v4157_v8  ;;  %v668_v49 = vld [vmem:[%s4512_s24 + $0x1a0] sm:$0xf]  ;;  %v669_v50 = vld [vmem:[%s4512_s24 + $0x1a4] sm:$0xf]  ;;  %589 = vst [vmem:[#allocation2 + $0x118] sm:$0xf] %v509_v48 }
  0x46   : > { %2058 = vmatprep.subr.bf16.mxu0 %v4409_v1  ;;  %2411 = vmatprep.subr.bf16.mxu1 %v4409_v1  ;;  %v664_v1 = vld [vmem:[%s4512_s24 + $0x190] sm:$0xf]  ;;  %748 = vst [vmem:[#allocation2 + $0x10c] sm:$0xf] %v668_v49  ;;  %749 = vst [vmem:[#allocation2 + $0x11c] sm:$0xf] %v669_v50 }
  0x47   : > { %744 = vst [vmem:[#allocation2 + $0xcc] sm:$0xf] %v664_v1  ;;  %v190_v51 = vld [vmem:[%s4512_s24 + $0x48] sm:$0xf]  ;;  %v191_v52 = vld [vmem:[%s4512_s24 + $0x4c] sm:$0xf] }
  0x48   : > { %270 = vst [vmem:[#allocation2 + $0x120] sm:$0xf] %v190_v51  ;;  %271 = vst [vmem:[#allocation2 + $0x130] sm:$0xf] %v191_v52  ;;  %v4176_v53 = vld [vmem:[#allocation2 + $0x40] ss:$16 sps:$4 sm:$0xff]  }
  0x49   : > { %2059 = vmatpush2.bf16.msra.mxu0 %v4158_v20  ;;  %2412 = vmatpush2.bf16.msra.mxu1 %v4159_v21  ;;  %v4177_v54 = vld [vmem:[#allocation2 + $0x48] ss:$16 sps:$4 sm:$0xff]   ;;  %v4178_v55 = vld [vmem:[#allocation2 + $0x64] ss:$16 sps:$4 sm:$0xff]   ;;  %v4180_v56 = vld [vmem:[#allocation2 + $0x6c] ss:$16 sps:$4 sm:$0xff]  }
  0x4a   : > { %v350_v57 = vld [vmem:[%s4512_s24 + $0x198] sm:$0xf]  ;;  %v351_v58 = vld [vmem:[%s4512_s24 + $0x19c] sm:$0xf]  ;;  %v670_v61 = vld [vmem:[%s4512_s24 + $0x1a8] sm:$0xf] }
  0x4b   : > { %430 = vst [vmem:[#allocation2 + $0x124] sm:$0xf] %v350_v57  ;;  %v510_v59 = vld [vmem:[%s4512_s24 + $0x58] sm:$0xf]  ;;  %v511_v60 = vld [vmem:[%s4512_s24 + $0x5c] sm:$0xf] }
  0x4c   : > { %2061 = vmatmul.mubr.bf16.vlgmr.msra.gmra.mxu0 %v4160_v22  ;;  %2414 = vmatmul.mubr.bf16.vlgmr.msra.gmra.mxu1 %v4163_v23  ;;  %431 = vst [vmem:[#allocation2 + $0x134] sm:$0xf] %v351_v58  ;;  %590 = vst [vmem:[#allocation2 + $0x128] sm:$0xf] %v510_v59  ;;  %v671_v62 = vld [vmem:[%s4512_s24 + $0x1ac] sm:$0xf] }
  0x4d   : > { %2068 = vmatprep.mubr.bf16.mxu0 %v4166_v24  ;;  %2421 = vmatprep.mubr.bf16.mxu1 %v4168_v25  ;;  %591 = vst [vmem:[#allocation2 + $0x138] sm:$0xf] %v511_v60  ;;  %v192_v63 = vld [vmem:[%s4512_s24 + $0x50] sm:$0xf]  ;;  %750 = vst [vmem:[#allocation2 + $0x12c] sm:$0xf] %v670_v61 }
  0x4e   : > { %v4182_v0 = vld [vmem:[#allocation2 + $0x60] ss:$16 sps:$4 sm:$0xff]   ;;  %751 = vst [vmem:[#allocation2 + $0x13c] sm:$0xf] %v671_v62  ;;  %v193_v2 = vld [vmem:[%s4512_s24 + $0x54] sm:$0xf] }
  0x4f   : > { %272 = vst [vmem:[#allocation2 + $0x140] sm:$0xf] %v192_v63  ;;  %v352_v3 = vld [vmem:[%s4512_s24 + $0x1a0] sm:$0xf]  ;;  %v353_v4 = vld [vmem:[%s4512_s24 + $0x1a4] sm:$0xf] }
  0x50   : > { %v4183_v5 = vld [vmem:[#allocation2 + $0x68] ss:$16 sps:$4 sm:$0xff]   ;;  %v4184_v6 = vld [vmem:[#allocation2 + $0x84] ss:$16 sps:$4 sm:$0xff]   ;;  %273 = vst [vmem:[#allocation2 + $0x150] sm:$0xf] %v193_v2 }
  0x51   : > { %432 = vst [vmem:[#allocation2 + $0x144] sm:$0xf] %v352_v3  ;;  %433 = vst [vmem:[#allocation2 + $0x154] sm:$0xf] %v353_v4  ;;  %v512_v7 = vld [vmem:[%s4512_s24 + $0x60] sm:$0xf] }
  0x52   : > { %v513_v8 = vld [vmem:[%s4512_s24 + $0x64] sm:$0xf]  ;;  %v672_v9 = vld [vmem:[%s4512_s24 + $0x1b0] sm:$0xf]  ;;  %v4186_v10 = vld [vmem:[#allocation2 + $0x8c] ss:$16 sps:$4 sm:$0xff]  }
  0x53   : > { %592 = vst [vmem:[#allocation2 + $0x148] sm:$0xf] %v512_v7  ;;  %593 = vst [vmem:[#allocation2 + $0x158] sm:$0xf] %v513_v8  ;;  %v673_v11 = vld [vmem:[%s4512_s24 + $0x1b4] sm:$0xf] }
  0x54   : > { %2069 = vmatmul.mubr.bf16.gmra.mxu0 %v4170_v32  ;;  %2422 = vmatmul.mubr.bf16.gmra.mxu1 %v4171_v36  ;;  %752 = vst [vmem:[#allocation2 + $0x14c] sm:$0xf] %v672_v9  ;;  %v194_v12 = vld [vmem:[%s4512_s24 + $0x58] sm:$0xf]  ;;  %v195_v13 = vld [vmem:[%s4512_s24 + $0x5c] sm:$0xf] }
  0x55   : > { %2076 = vmatprep.mubr.bf16.mxu0 %v4172_v37  ;;  %2429 = vmatprep.mubr.bf16.mxu1 %v4174_v41  ;;  %753 = vst [vmem:[#allocation2 + $0x15c] sm:$0xf] %v673_v11  ;;  %274 = vst [vmem:[#allocation2 + $0x160] sm:$0xf] %v194_v12  ;;  %v354_v14 = vld [vmem:[%s4512_s24 + $0x1a8] sm:$0xf] }
  0x56   : > { %275 = vst [vmem:[#allocation2 + $0x170] sm:$0xf] %v195_v13  ;;  %v355_v15 = vld [vmem:[%s4512_s24 + $0x1ac] sm:$0xf]  ;;  %v514_v16 = vld [vmem:[%s4512_s24 + $0x68] sm:$0xf] }
  0x57   : > { %434 = vst [vmem:[#allocation2 + $0x164] sm:$0xf] %v354_v14  ;;  %435 = vst [vmem:[#allocation2 + $0x174] sm:$0xf] %v355_v15  ;;  %v515_v17 = vld [vmem:[%s4512_s24 + $0x6c] sm:$0xf] }
  0x58   : > { %594 = vst [vmem:[#allocation2 + $0x168] sm:$0xf] %v514_v16  ;;  %v674_v18 = vld [vmem:[%s4512_s24 + $0x1b8] sm:$0xf]  ;;  %v675_v19 = vld [vmem:[%s4512_s24 + $0x1bc] sm:$0xf] }
  0x59   : > { %595 = vst [vmem:[#allocation2 + $0x178] sm:$0xf] %v515_v17  ;;  %754 = vst [vmem:[#allocation2 + $0x16c] sm:$0xf] %v674_v18  ;;  %v196_v20 = vld [vmem:[%s4512_s24 + $0x60] sm:$0xf] }
  0x5a   : > { %755 = vst [vmem:[#allocation2 + $0x17c] sm:$0xf] %v675_v19  ;;  %v197_v21 = vld [vmem:[%s4512_s24 + $0x64] sm:$0xf]  ;;  %276 = vst [vmem:[#allocation2 + $0x180] sm:$0xf] %v196_v20 }
  0x5b   : > { %277 = vst [vmem:[#allocation2 + $0x190] sm:$0xf] %v197_v21  ;;  %v4188_v22 = vld [vmem:[#allocation2 + $0x80] ss:$16 sps:$4 sm:$0xff]   ;;  %v4189_v23 = vld [vmem:[#allocation2 + $0x88] ss:$16 sps:$4 sm:$0xff]  }
  0x5c   : > { %2077 = vmatmul.mubr.bf16.gmra.mxu0 %v4176_v53  ;;  %2430 = vmatmul.mubr.bf16.gmra.mxu1 %v4177_v54  ;;  %v4190_v24 = vld [vmem:[#allocation2 + $0xa4] ss:$16 sps:$4 sm:$0xff]   ;;  %v4192_v25 = vld [vmem:[#allocation2 + $0xac] ss:$16 sps:$4 sm:$0xff]   ;;  %v356_v26 = vld [vmem:[%s4512_s24 + $0x1b0] sm:$0xf] }
  0x5d   : > { %2084 = vmatprep.mubr.bf16.mxu0 %v4178_v55  ;;  %2437 = vmatprep.mubr.bf16.mxu1 %v4180_v56  ;;  %v357_v27 = vld [vmem:[%s4512_s24 + $0x1b4] sm:$0xf]  ;;  %436 = vst [vmem:[#allocation2 + $0x184] sm:$0xf] %v356_v26  ;;  %v516_v28 = vld [vmem:[%s4512_s24 + $0x70] sm:$0xf] }
  0x5e   : > { %v517_v29 = vld [vmem:[%s4512_s24 + $0x74] sm:$0xf]  ;;  %437 = vst [vmem:[#allocation2 + $0x194] sm:$0xf] %v357_v27  ;;  %596 = vst [vmem:[#allocation2 + $0x188] sm:$0xf] %v516_v28 }
  0x5f   : > { %597 = vst [vmem:[#allocation2 + $0x198] sm:$0xf] %v517_v29  ;;  %v676_v1 = vld [vmem:[%s4512_s24 + $0x1c0] sm:$0xf]  ;;  %v677_v30 = vld [vmem:[%s4512_s24 + $0x1c4] sm:$0xf] }
  0x60   : > { %v198_v31 = vld [vmem:[%s4512_s24 + $0x68] sm:$0xf]  ;;  %v4194_v32 = vld [vmem:[#allocation2 + $0xa0] ss:$16 sps:$4 sm:$0xff]   ;;  %756 = vst [vmem:[#allocation2 + $0x18c] sm:$0xf] %v676_v1 }
  0x61   : > { %757 = vst [vmem:[#allocation2 + $0x19c] sm:$0xf] %v677_v30  ;;  %v199_v33 = vld [vmem:[%s4512_s24 + $0x6c] sm:$0xf]  ;;  %278 = vst [vmem:[#allocation2 + $0x1a0] sm:$0xf] %v198_v31 }
  0x62   : > { %v358_v34 = vld [vmem:[%s4512_s24 + $0x1b8] sm:$0xf]  ;;  %v359_v35 = vld [vmem:[%s4512_s24 + $0x1bc] sm:$0xf]  ;;  %v4196_v37 = vld [vmem:[#allocation2 + $0xc4] ss:$16 sps:$4 sm:$0xff]  }
  0x63   : > { %v4195_v36 = vld [vmem:[#allocation2 + $0xa8] ss:$16 sps:$4 sm:$0xff]   ;;  %279 = vst [vmem:[#allocation2 + $0x1b0] sm:$0xf] %v199_v33  ;;  %438 = vst [vmem:[#allocation2 + $0x1a4] sm:$0xf] %v358_v34 }
  0x64   : > { %2085 = vmatmul.mubr.bf16.gmra.mxu0 %v4182_v0  ;;  %2438 = vmatmul.mubr.bf16.gmra.mxu1 %v4183_v5  ;;  %439 = vst [vmem:[#allocation2 + $0x1b4] sm:$0xf] %v359_v35  ;;  %v518_v38 = vld [vmem:[%s4512_s24 + $0x78] sm:$0xf]  ;;  %v519_v39 = vld [vmem:[%s4512_s24 + $0x7c] sm:$0xf] }
  0x65   : > { %2092 = vmatprep.mubr.bf16.mxu0 %v4184_v6  ;;  %2445 = vmatprep.mubr.bf16.mxu1 %v4186_v10  ;;  %v678_v40 = vld [vmem:[%s4512_s24 + $0x1c8] sm:$0xf]  ;;  %v4198_v41 = vld [vmem:[#allocation2 + $0xcc] ss:$16 sps:$4 sm:$0xff]   ;;  %598 = vst [vmem:[#allocation2 + $0x1a8] sm:$0xf] %v518_v38 }
  0x66   : > { %599 = vst [vmem:[#allocation2 + $0x1b8] sm:$0xf] %v519_v39  ;;  %v679_v42 = vld [vmem:[%s4512_s24 + $0x1cc] sm:$0xf]  ;;  %758 = vst [vmem:[#allocation2 + $0x1ac] sm:$0xf] %v678_v40 }
  0x67   : > { %v200_v43 = vld [vmem:[%s4512_s24 + $0x70] sm:$0xf]  ;;  %v201_v44 = vld [vmem:[%s4512_s24 + $0x74] sm:$0xf]  ;;  %759 = vst [vmem:[#allocation2 + $0x1bc] sm:$0xf] %v679_v42 }
  0x68   : > { %280 = vst [vmem:[#allocation2 + $0x1c0] sm:$0xf] %v200_v43  ;;  %281 = vst [vmem:[#allocation2 + $0x1d0] sm:$0xf] %v201_v44  ;;  %v360_v45 = vld [vmem:[%s4512_s24 + $0x1c0] sm:$0xf] }
  0x69   : > { %v361_v46 = vld [vmem:[%s4512_s24 + $0x1c4] sm:$0xf]  ;;  %v520_v47 = vld [vmem:[%s4512_s24 + $0x80] sm:$0xf]  ;;  %440 = vst [vmem:[#allocation2 + $0x1c4] sm:$0xf] %v360_v45 }
  0x6a   : > { %441 = vst [vmem:[#allocation2 + $0x1d4] sm:$0xf] %v361_v46  ;;  %v521_v48 = vld [vmem:[%s4512_s24 + $0x84] sm:$0xf]  ;;  %600 = vst [vmem:[#allocation2 + $0x1c8] sm:$0xf] %v520_v47 }
  0x6b   : > { %v680_v49 = vld [vmem:[%s4512_s24 + $0x1d0] sm:$0xf]  ;;  %v681_v50 = vld [vmem:[%s4512_s24 + $0x1d4] sm:$0xf]  ;;  %601 = vst [vmem:[#allocation2 + $0x1d8] sm:$0xf] %v521_v48 }
  0x6c   : > { %2093 = vmatmul.mubr.bf16.gmra.mxu0 %v4188_v22  ;;  %2446 = vmatmul.mubr.bf16.gmra.mxu1 %v4189_v23  ;;  %760 = vst [vmem:[#allocation2 + $0x1cc] sm:$0xf] %v680_v49  ;;  %761 = vst [vmem:[#allocation2 + $0x1dc] sm:$0xf] %v681_v50  ;;  %v202_v51 = vld [vmem:[%s4512_s24 + $0x78] sm:$0xf] }
  0x6d   : > { %2100 = vmatprep.mubr.bf16.mxu0 %v4190_v24  ;;  %2453 = vmatprep.mubr.bf16.mxu1 %v4192_v25  ;;  %v203_v52 = vld [vmem:[%s4512_s24 + $0x7c] sm:$0xf]  ;;  %282 = vst [vmem:[#allocation2 + $0x1e0] sm:$0xf] %v202_v51  ;;  %v4200_v53 = vld [vmem:[#allocation2 + $0xc0] ss:$16 sps:$4 sm:$0xff]  }
  0x6e   : > { %283 = vst [vmem:[#allocation2 + $0x1f0] sm:$0xf] %v203_v52  ;;  %v4201_v54 = vld [vmem:[#allocation2 + $0xc8] ss:$16 sps:$4 sm:$0xff]   ;;  %v4202_v55 = vld [vmem:[#allocation2 + $0xe4] ss:$16 sps:$4 sm:$0xff]  }
  0x6f   : > { %v4204_v56 = vld [vmem:[#allocation2 + $0xec] ss:$16 sps:$4 sm:$0xff]   ;;  %v362_v57 = vld [vmem:[%s4512_s24 + $0x1c8] sm:$0xf]  ;;  %v682_v61 = vld [vmem:[%s4512_s24 + $0x1d8] sm:$0xf] }
  0x70   : > { %v363_v58 = vld [vmem:[%s4512_s24 + $0x1cc] sm:$0xf]  ;;  %442 = vst [vmem:[#allocation2 + $0x1e4] sm:$0xf] %v362_v57  ;;  %v522_v59 = vld [vmem:[%s4512_s24 + $0x88] sm:$0xf] }
  0x71   : > { %v523_v60 = vld [vmem:[%s4512_s24 + $0x8c] sm:$0xf]  ;;  %443 = vst [vmem:[#allocation2 + $0x1f4] sm:$0xf] %v363_v58  ;;  %602 = vst [vmem:[#allocation2 + $0x1e8] sm:$0xf] %v522_v59 }
  0x72   : > { %603 = vst [vmem:[#allocation2 + $0x1f8] sm:$0xf] %v523_v60  ;;  %v683_v62 = vld [vmem:[%s4512_s24 + $0x1dc] sm:$0xf]  ;;  %v204_v63 = vld [vmem:[%s4512_s24 + $0x80] sm:$0xf] }
  0x73   : > { %v4206_v0 = vld [vmem:[#allocation2 + $0xe0] ss:$16 sps:$4 sm:$0xff]   ;;  %762 = vst [vmem:[#allocation2 + $0x1ec] sm:$0xf] %v682_v61  ;;  %763 = vst [vmem:[#allocation2 + $0x1fc] sm:$0xf] %v683_v62 }
  0x74   : > { %2101 = vmatmul.mubr.bf16.gmra.mxu0 %v4194_v32  ;;  %2454 = vmatmul.mubr.bf16.gmra.mxu1 %v4195_v36  ;;  %v205_v2 = vld [vmem:[%s4512_s24 + $0x84] sm:$0xf]  ;;  %284 = vst [vmem:[#allocation2 + $0x200] sm:$0xf] %v204_v63  ;;  %v364_v3 = vld [vmem:[%s4512_s24 + $0x1d0] sm:$0xf] }
  0x75   : > { %2108 = vmatprep.mubr.bf16.mxu0 %v4196_v37  ;;  %2461 = vmatprep.mubr.bf16.mxu1 %v4198_v41  ;;  %v365_v4 = vld [vmem:[%s4512_s24 + $0x1d4] sm:$0xf]  ;;  %v4207_v5 = vld [vmem:[#allocation2 + $0xe8] ss:$16 sps:$4 sm:$0xff]   ;;  %285 = vst [vmem:[#allocation2 + $0x210] sm:$0xf] %v205_v2 }
  0x76   : > { %v4208_v6 = vld [vmem:[#allocation2 + $0x104] ss:$16 sps:$4 sm:$0xff]   ;;  %444 = vst [vmem:[#allocation2 + $0x204] sm:$0xf] %v364_v3  ;;  %445 = vst [vmem:[#allocation2 + $0x214] sm:$0xf] %v365_v4 }
  0x77   : > { %v524_v7 = vld [vmem:[%s4512_s24 + $0x90] sm:$0xf]  ;;  %v525_v8 = vld [vmem:[%s4512_s24 + $0x94] sm:$0xf]  ;;  %v684_v9 = vld [vmem:[%s4512_s24 + $0x1e0] sm:$0xf] }
  0x78   : > { %v4210_v10 = vld [vmem:[#allocation2 + $0x10c] ss:$16 sps:$4 sm:$0xff]   ;;  %604 = vst [vmem:[#allocation2 + $0x208] sm:$0xf] %v524_v7  ;;  %605 = vst [vmem:[#allocation2 + $0x218] sm:$0xf] %v525_v8 }
  0x79   : > { %v685_v11 = vld [vmem:[%s4512_s24 + $0x1e4] sm:$0xf]  ;;  %764 = vst [vmem:[#allocation2 + $0x20c] sm:$0xf] %v684_v9  ;;  %v206_v12 = vld [vmem:[%s4512_s24 + $0x88] sm:$0xf] }
  0x7a   : > { %v207_v13 = vld [vmem:[%s4512_s24 + $0x8c] sm:$0xf]  ;;  %765 = vst [vmem:[#allocation2 + $0x21c] sm:$0xf] %v685_v11  ;;  %286 = vst [vmem:[#allocation2 + $0x220] sm:$0xf] %v206_v12 }
  0x7b   : > { %287 = vst [vmem:[#allocation2 + $0x230] sm:$0xf] %v207_v13  ;;  %v366_v14 = vld [vmem:[%s4512_s24 + $0x1d8] sm:$0xf]  ;;  %v367_v15 = vld [vmem:[%s4512_s24 + $0x1dc] sm:$0xf] }
  0x7c   : > { %2109 = vmatmul.mubr.bf16.gmra.mxu0 %v4200_v53  ;;  %2462 = vmatmul.mubr.bf16.gmra.mxu1 %v4201_v54  ;;  %v526_v16 = vld [vmem:[%s4512_s24 + $0x98] sm:$0xf]  ;;  %446 = vst [vmem:[#allocation2 + $0x224] sm:$0xf] %v366_v14  ;;  %447 = vst [vmem:[#allocation2 + $0x234] sm:$0xf] %v367_v15 }
  0x7d   : > { %2116 = vmatprep.mubr.bf16.mxu0 %v4202_v55  ;;  %2469 = vmatprep.mubr.bf16.mxu1 %v4204_v56  ;;  %v527_v17 = vld [vmem:[%s4512_s24 + $0x9c] sm:$0xf]  ;;  %606 = vst [vmem:[#allocation2 + $0x228] sm:$0xf] %v526_v16  ;;  %v686_v18 = vld [vmem:[%s4512_s24 + $0x1e8] sm:$0xf] }
  0x7e   : > { %v687_v19 = vld [vmem:[%s4512_s24 + $0x1ec] sm:$0xf]  ;;  %607 = vst [vmem:[#allocation2 + $0x238] sm:$0xf] %v527_v17  ;;  %766 = vst [vmem:[#allocation2 + $0x22c] sm:$0xf] %v686_v18 }
  0x7f   : > { %767 = vst [vmem:[#allocation2 + $0x23c] sm:$0xf] %v687_v19  ;;  %v208_v20 = vld [vmem:[%s4512_s24 + $0x90] sm:$0xf]  ;;  %v209_v21 = vld [vmem:[%s4512_s24 + $0x94] sm:$0xf] }
  0x80   : > { %288 = vst [vmem:[#allocation2 + $0x240] sm:$0xf] %v208_v20  ;;  %289 = vst [vmem:[#allocation2 + $0x250] sm:$0xf] %v209_v21  ;;  %v4212_v22 = vld [vmem:[#allocation2 + $0x100] ss:$16 sps:$4 sm:$0xff]  }
  0x81   : > { %v4213_v23 = vld [vmem:[#allocation2 + $0x108] ss:$16 sps:$4 sm:$0xff]   ;;  %v4214_v24 = vld [vmem:[#allocation2 + $0x124] ss:$16 sps:$4 sm:$0xff]   ;;  %v4216_v25 = vld [vmem:[#allocation2 + $0x12c] ss:$16 sps:$4 sm:$0xff]  }
  0x82   : > { %v368_v26 = vld [vmem:[%s4512_s24 + $0x1e0] sm:$0xf]  ;;  %v369_v27 = vld [vmem:[%s4512_s24 + $0x1e4] sm:$0xf]  ;;  %v688_v1 = vld [vmem:[%s4512_s24 + $0x1f0] sm:$0xf] }
  0x83   : > { %448 = vst [vmem:[#allocation2 + $0x244] sm:$0xf] %v368_v26  ;;  %v528_v28 = vld [vmem:[%s4512_s24 + $0xa0] sm:$0xf]  ;;  %v529_v29 = vld [vmem:[%s4512_s24 + $0xa4] sm:$0xf] }
  0x84   : > { %2117 = vmatmul.mubr.bf16.gmra.mxu0 %v4206_v0  ;;  %2470 = vmatmul.mubr.bf16.gmra.mxu1 %v4207_v5  ;;  %449 = vst [vmem:[#allocation2 + $0x254] sm:$0xf] %v369_v27  ;;  %608 = vst [vmem:[#allocation2 + $0x248] sm:$0xf] %v528_v28  ;;  %v689_v30 = vld [vmem:[%s4512_s24 + $0x1f4] sm:$0xf] }
  0x85   : > { %2124 = vmatprep.mubr.bf16.mxu0 %v4208_v6  ;;  %2477 = vmatprep.mubr.bf16.mxu1 %v4210_v10  ;;  %609 = vst [vmem:[#allocation2 + $0x258] sm:$0xf] %v529_v29  ;;  %v210_v31 = vld [vmem:[%s4512_s24 + $0x98] sm:$0xf]  ;;  %v4218_v32 = vld [vmem:[#allocation2 + $0x120] ss:$16 sps:$4 sm:$0xff]  }
  0x86   : > { %768 = vst [vmem:[#allocation2 + $0x24c] sm:$0xf] %v688_v1  ;;  %769 = vst [vmem:[#allocation2 + $0x25c] sm:$0xf] %v689_v30  ;;  %v211_v33 = vld [vmem:[%s4512_s24 + $0x9c] sm:$0xf] }
  0x87   : > { %290 = vst [vmem:[#allocation2 + $0x260] sm:$0xf] %v210_v31  ;;  %v370_v34 = vld [vmem:[%s4512_s24 + $0x1e8] sm:$0xf]  ;;  %v371_v35 = vld [vmem:[%s4512_s24 + $0x1ec] sm:$0xf] }
  0x88   : > { %v4219_v36 = vld [vmem:[#allocation2 + $0x128] ss:$16 sps:$4 sm:$0xff]   ;;  %v4220_v37 = vld [vmem:[#allocation2 + $0x144] ss:$16 sps:$4 sm:$0xff]   ;;  %291 = vst [vmem:[#allocation2 + $0x270] sm:$0xf] %v211_v33 }
  0x89   : > { %450 = vst [vmem:[#allocation2 + $0x264] sm:$0xf] %v370_v34  ;;  %451 = vst [vmem:[#allocation2 + $0x274] sm:$0xf] %v371_v35  ;;  %v530_v38 = vld [vmem:[%s4512_s24 + $0xa8] sm:$0xf] }
  0x8a   : > { %v531_v39 = vld [vmem:[%s4512_s24 + $0xac] sm:$0xf]  ;;  %v690_v40 = vld [vmem:[%s4512_s24 + $0x1f8] sm:$0xf]  ;;  %610 = vst [vmem:[#allocation2 + $0x268] sm:$0xf] %v530_v38 }
  0x8b   : > { %v4222_v41 = vld [vmem:[#allocation2 + $0x14c] ss:$16 sps:$4 sm:$0xff]   ;;  %611 = vst [vmem:[#allocation2 + $0x278] sm:$0xf] %v531_v39  ;;  %770 = vst [vmem:[#allocation2 + $0x26c] sm:$0xf] %v690_v40 }
  0x8c   : > { %2125 = vmatmul.mubr.bf16.gmra.mxu0 %v4212_v22  ;;  %2478 = vmatmul.mubr.bf16.gmra.mxu1 %v4213_v23  ;;  %v691_v42 = vld [vmem:[%s4512_s24 + $0x1fc] sm:$0xf]  ;;  %v212_v43 = vld [vmem:[%s4512_s24 + $0xa0] sm:$0xf]  ;;  %v213_v44 = vld [vmem:[%s4512_s24 + $0xa4] sm:$0xf] }
  0x8d   : > { %2132 = vmatprep.mubr.bf16.mxu0 %v4214_v24  ;;  %2485 = vmatprep.mubr.bf16.mxu1 %v4216_v25  ;;  %771 = vst [vmem:[#allocation2 + $0x27c] sm:$0xf] %v691_v42  ;;  %292 = vst [vmem:[#allocation2 + $0x280] sm:$0xf] %v212_v43  ;;  %v372_v45 = vld [vmem:[%s4512_s24 + $0x1f0] sm:$0xf] }
  0x8e   : > { %293 = vst [vmem:[#allocation2 + $0x290] sm:$0xf] %v213_v44  ;;  %v373_v46 = vld [vmem:[%s4512_s24 + $0x1f4] sm:$0xf]  ;;  %v532_v47 = vld [vmem:[%s4512_s24 + $0xb0] sm:$0xf] }
  0x8f   : > { %452 = vst [vmem:[#allocation2 + $0x284] sm:$0xf] %v372_v45  ;;  %453 = vst [vmem:[#allocation2 + $0x294] sm:$0xf] %v373_v46  ;;  %v533_v48 = vld [vmem:[%s4512_s24 + $0xb4] sm:$0xf] }
  0x90   : > { %612 = vst [vmem:[#allocation2 + $0x288] sm:$0xf] %v532_v47  ;;  %v692_v49 = vld [vmem:[%s4512_s24 + $0x200] sm:$0xf]  ;;  %v693_v50 = vld [vmem:[%s4512_s24 + $0x204] sm:$0xf] }
  0x91   : > { %613 = vst [vmem:[#allocation2 + $0x298] sm:$0xf] %v533_v48  ;;  %772 = vst [vmem:[#allocation2 + $0x28c] sm:$0xf] %v692_v49  ;;  %v214_v51 = vld [vmem:[%s4512_s24 + $0xa8] sm:$0xf] }
  0x92   : > { %773 = vst [vmem:[#allocation2 + $0x29c] sm:$0xf] %v693_v50  ;;  %v215_v52 = vld [vmem:[%s4512_s24 + $0xac] sm:$0xf]  ;;  %294 = vst [vmem:[#allocation2 + $0x2a0] sm:$0xf] %v214_v51 }
  0x93   : > { %295 = vst [vmem:[#allocation2 + $0x2b0] sm:$0xf] %v215_v52  ;;  %v4224_v53 = vld [vmem:[#allocation2 + $0x140] ss:$16 sps:$4 sm:$0xff]   ;;  %v4225_v54 = vld [vmem:[#allocation2 + $0x148] ss:$16 sps:$4 sm:$0xff]  }
  0x94   : > { %2133 = vmatmul.mubr.bf16.gmra.mxu0 %v4218_v32  ;;  %2486 = vmatmul.mubr.bf16.gmra.mxu1 %v4219_v36  ;;  %v4226_v55 = vld [vmem:[#allocation2 + $0x164] ss:$16 sps:$4 sm:$0xff]   ;;  %v4228_v56 = vld [vmem:[#allocation2 + $0x16c] ss:$16 sps:$4 sm:$0xff]   ;;  %v374_v57 = vld [vmem:[%s4512_s24 + $0x1f8] sm:$0xf] }
  0x95   : > { %2140 = vmatprep.mubr.bf16.mxu0 %v4220_v37  ;;  %2493 = vmatprep.mubr.bf16.mxu1 %v4222_v41  ;;  %v375_v58 = vld [vmem:[%s4512_s24 + $0x1fc] sm:$0xf]  ;;  %454 = vst [vmem:[#allocation2 + $0x2a4] sm:$0xf] %v374_v57  ;;  %v534_v59 = vld [vmem:[%s4512_s24 + $0xb8] sm:$0xf] }
  0x96   : > { %v535_v60 = vld [vmem:[%s4512_s24 + $0xbc] sm:$0xf]  ;;  %455 = vst [vmem:[#allocation2 + $0x2b4] sm:$0xf] %v375_v58  ;;  %614 = vst [vmem:[#allocation2 + $0x2a8] sm:$0xf] %v534_v59 }
  0x97   : > { %615 = vst [vmem:[#allocation2 + $0x2b8] sm:$0xf] %v535_v60  ;;  %v694_v61 = vld [vmem:[%s4512_s24 + $0x208] sm:$0xf]  ;;  %v695_v62 = vld [vmem:[%s4512_s24 + $0x20c] sm:$0xf] }
  0x98   : > { %v216_v63 = vld [vmem:[%s4512_s24 + $0xb0] sm:$0xf]  ;;  %774 = vst [vmem:[#allocation2 + $0x2ac] sm:$0xf] %v694_v61  ;;  %775 = vst [vmem:[#allocation2 + $0x2bc] sm:$0xf] %v695_v62 }
  0x99   : > { %v4230_v0 = vld [vmem:[#allocation2 + $0x160] ss:$16 sps:$4 sm:$0xff]   ;;  %v217_v2 = vld [vmem:[%s4512_s24 + $0xb4] sm:$0xf]  ;;  %296 = vst [vmem:[#allocation2 + $0x2c0] sm:$0xf] %v216_v63 }
  0x9a   : > { %v376_v3 = vld [vmem:[%s4512_s24 + $0x200] sm:$0xf]  ;;  %v377_v4 = vld [vmem:[%s4512_s24 + $0x204] sm:$0xf]  ;;  %v4231_v5 = vld [vmem:[#allocation2 + $0x168] ss:$16 sps:$4 sm:$0xff]  }
  0x9b   : > { %v4232_v6 = vld [vmem:[#allocation2 + $0x184] ss:$16 sps:$4 sm:$0xff]   ;;  %297 = vst [vmem:[#allocation2 + $0x2d0] sm:$0xf] %v217_v2  ;;  %456 = vst [vmem:[#allocation2 + $0x2c4] sm:$0xf] %v376_v3 }
  0x9c   : > { %2141 = vmatmul.mubr.bf16.gmra.mxu0 %v4224_v53  ;;  %2494 = vmatmul.mubr.bf16.gmra.mxu1 %v4225_v54  ;;  %457 = vst [vmem:[#allocation2 + $0x2d4] sm:$0xf] %v377_v4  ;;  %v536_v7 = vld [vmem:[%s4512_s24 + $0xc0] sm:$0xf]  ;;  %v537_v8 = vld [vmem:[%s4512_s24 + $0xc4] sm:$0xf] }
  0x9d   : > { %2148 = vmatprep.mubr.bf16.mxu0 %v4226_v55  ;;  %2501 = vmatprep.mubr.bf16.mxu1 %v4228_v56  ;;  %v696_v9 = vld [vmem:[%s4512_s24 + $0x210] sm:$0xf]  ;;  %v4234_v10 = vld [vmem:[#allocation2 + $0x18c] ss:$16 sps:$4 sm:$0xff]   ;;  %616 = vst [vmem:[#allocation2 + $0x2c8] sm:$0xf] %v536_v7 }
  0x9e   : > { %617 = vst [vmem:[#allocation2 + $0x2d8] sm:$0xf] %v537_v8  ;;  %v697_v11 = vld [vmem:[%s4512_s24 + $0x214] sm:$0xf]  ;;  %776 = vst [vmem:[#allocation2 + $0x2cc] sm:$0xf] %v696_v9 }
  0x9f   : > { %v218_v12 = vld [vmem:[%s4512_s24 + $0xb8] sm:$0xf]  ;;  %v219_v13 = vld [vmem:[%s4512_s24 + $0xbc] sm:$0xf]  ;;  %777 = vst [vmem:[#allocation2 + $0x2dc] sm:$0xf] %v697_v11 }
  0xa0   : > { %298 = vst [vmem:[#allocation2 + $0x2e0] sm:$0xf] %v218_v12  ;;  %299 = vst [vmem:[#allocation2 + $0x2f0] sm:$0xf] %v219_v13  ;;  %v378_v14 = vld [vmem:[%s4512_s24 + $0x208] sm:$0xf] }
  0xa1   : > { %v379_v15 = vld [vmem:[%s4512_s24 + $0x20c] sm:$0xf]  ;;  %v538_v16 = vld [vmem:[%s4512_s24 + $0xc8] sm:$0xf]  ;;  %458 = vst [vmem:[#allocation2 + $0x2e4] sm:$0xf] %v378_v14 }
  0xa2   : > { %459 = vst [vmem:[#allocation2 + $0x2f4] sm:$0xf] %v379_v15  ;;  %v539_v17 = vld [vmem:[%s4512_s24 + $0xcc] sm:$0xf]  ;;  %618 = vst [vmem:[#allocation2 + $0x2e8] sm:$0xf] %v538_v16 }
  0xa3   : > { %v698_v18 = vld [vmem:[%s4512_s24 + $0x218] sm:$0xf]  ;;  %v699_v19 = vld [vmem:[%s4512_s24 + $0x21c] sm:$0xf]  ;;  %619 = vst [vmem:[#allocation2 + $0x2f8] sm:$0xf] %v539_v17 }
  0xa4   : > { %778 = vst [vmem:[#allocation2 + $0x2ec] sm:$0xf] %v698_v18  ;;  %779 = vst [vmem:[#allocation2 + $0x2fc] sm:$0xf] %v699_v19  ;;  %v220_v20 = vld [vmem:[%s4512_s24 + $0xc0] sm:$0xf]  ;;  %2149 = vmatmul.mubr.bf16.gmra.mxu0 %v4230_v0  ;;  %2502 = vmatmul.mubr.bf16.gmra.mxu1 %v4231_v5 }
  0xa5   : > { %v221_v21 = vld [vmem:[%s4512_s24 + $0xc4] sm:$0xf]  ;;  %300 = vst [vmem:[#allocation2 + $0x300] sm:$0xf] %v220_v20  ;;  %2156 = vmatprep.mubr.bf16.mxu0 %v4232_v6  ;;  %2509 = vmatprep.mubr.bf16.mxu1 %v4234_v10  ;;  %v4236_v22 = vld [vmem:[#allocation2 + $0x180] ss:$16 sps:$4 sm:$0xff]  }
  0xa6   : > { %301 = vst [vmem:[#allocation2 + $0x310] sm:$0xf] %v221_v21  ;;  %v4237_v23 = vld [vmem:[#allocation2 + $0x188] ss:$16 sps:$4 sm:$0xff]   ;;  %v4238_v24 = vld [vmem:[#allocation2 + $0x1a4] ss:$16 sps:$4 sm:$0xff]  }
  0xa7   : > { %v4240_v25 = vld [vmem:[#allocation2 + $0x1ac] ss:$16 sps:$4 sm:$0xff]   ;;  %v380_v26 = vld [vmem:[%s4512_s24 + $0x210] sm:$0xf]  ;;  %v381_v27 = vld [vmem:[%s4512_s24 + $0x214] sm:$0xf] }
  0xa8   : > { %460 = vst [vmem:[#allocation2 + $0x304] sm:$0xf] %v380_v26  ;;  %v540_v28 = vld [vmem:[%s4512_s24 + $0xd0] sm:$0xf]  ;;  %v541_v29 = vld [vmem:[%s4512_s24 + $0xd4] sm:$0xf] }
  0xa9   : > { %461 = vst [vmem:[#allocation2 + $0x314] sm:$0xf] %v381_v27  ;;  %620 = vst [vmem:[#allocation2 + $0x308] sm:$0xf] %v540_v28  ;;  %v700_v1 = vld [vmem:[%s4512_s24 + $0x220] sm:$0xf] }
  0xaa   : > { %621 = vst [vmem:[#allocation2 + $0x318] sm:$0xf] %v541_v29  ;;  %v701_v30 = vld [vmem:[%s4512_s24 + $0x224] sm:$0xf]  ;;  %v4242_v31 = vld [vmem:[#allocation2 + $0x1a0] ss:$16 sps:$4 sm:$0xff]  }
  0xab   : > { %780 = vst [vmem:[#allocation2 + $0x30c] sm:$0xf] %v700_v1  ;;  %781 = vst [vmem:[#allocation2 + $0x31c] sm:$0xf] %v701_v30  ;;  %v222_v32 = vld [vmem:[%s4512_s24 + $0xc8] sm:$0xf] }
  0xac   : > { %2157 = vmatmul.mubr.bf16.gmra.mxu0 %v4236_v22  ;;  %2510 = vmatmul.mubr.bf16.gmra.mxu1 %v4237_v23  ;;  %v223_v33 = vld [vmem:[%s4512_s24 + $0xcc] sm:$0xf]  ;;  %v382_v34 = vld [vmem:[%s4512_s24 + $0x218] sm:$0xf]  ;;  %v4244_v36 = vld [vmem:[#allocation2 + $0x1c4] ss:$16 sps:$4 sm:$0xff]  }
  0xad   : > { %2164 = vmatprep.mubr.bf16.mxu0 %v4238_v24  ;;  %2517 = vmatprep.mubr.bf16.mxu1 %v4240_v25  ;;  %v4243_v35 = vld [vmem:[#allocation2 + $0x1a8] ss:$16 sps:$4 sm:$0xff]   ;;  %302 = vst [vmem:[#allocation2 + $0x320] sm:$0xf] %v222_v32  ;;  %303 = vst [vmem:[#allocation2 + $0x330] sm:$0xf] %v223_v33 }
  0xae   : > { %v383_v37 = vld [vmem:[%s4512_s24 + $0x21c] sm:$0xf]  ;;  %462 = vst [vmem:[#allocation2 + $0x324] sm:$0xf] %v382_v34  ;;  %v542_v38 = vld [vmem:[%s4512_s24 + $0xd8] sm:$0xf] }
  0xaf   : > { %v543_v39 = vld [vmem:[%s4512_s24 + $0xdc] sm:$0xf]  ;;  %463 = vst [vmem:[#allocation2 + $0x334] sm:$0xf] %v383_v37  ;;  %622 = vst [vmem:[#allocation2 + $0x328] sm:$0xf] %v542_v38 }
  0xb0   : > { %v4246_v40 = vld [vmem:[#allocation2 + $0x1cc] ss:$16 sps:$4 sm:$0xff]   ;;  %623 = vst [vmem:[#allocation2 + $0x338] sm:$0xf] %v543_v39  ;;  %v702_v41 = vld [vmem:[%s4512_s24 + $0x228] sm:$0xf] }
  0xb1   : > { %v703_v42 = vld [vmem:[%s4512_s24 + $0x22c] sm:$0xf]  ;;  %v224_v43 = vld [vmem:[%s4512_s24 + $0xd0] sm:$0xf]  ;;  %782 = vst [vmem:[#allocation2 + $0x32c] sm:$0xf] %v702_v41 }
  0xb2   : > { %783 = vst [vmem:[#allocation2 + $0x33c] sm:$0xf] %v703_v42  ;;  %v225_v44 = vld [vmem:[%s4512_s24 + $0xd4] sm:$0xf]  ;;  %304 = vst [vmem:[#allocation2 + $0x340] sm:$0xf] %v224_v43 }
  0xb3   : > { %v384_v45 = vld [vmem:[%s4512_s24 + $0x220] sm:$0xf]  ;;  %v385_v46 = vld [vmem:[%s4512_s24 + $0x224] sm:$0xf]  ;;  %305 = vst [vmem:[#allocation2 + $0x350] sm:$0xf] %v225_v44 }
  0xb4   : > { %464 = vst [vmem:[#allocation2 + $0x344] sm:$0xf] %v384_v45  ;;  %465 = vst [vmem:[#allocation2 + $0x354] sm:$0xf] %v385_v46  ;;  %v544_v47 = vld [vmem:[%s4512_s24 + $0xe0] sm:$0xf]  ;;  %2165 = vmatmul.mubr.bf16.gmra.mxu0 %v4242_v31  ;;  %2518 = vmatmul.mubr.bf16.gmra.mxu1 %v4243_v35 }
  0xb5   : > { %v545_v48 = vld [vmem:[%s4512_s24 + $0xe4] sm:$0xf]  ;;  %v704_v49 = vld [vmem:[%s4512_s24 + $0x230] sm:$0xf]  ;;  %624 = vst [vmem:[#allocation2 + $0x348] sm:$0xf] %v544_v47  ;;  %2172 = vmatprep.mubr.bf16.mxu0 %v4244_v36  ;;  %2525 = vmatprep.mubr.bf16.mxu1 %v4246_v40 }
  0xb6   : > { %625 = vst [vmem:[#allocation2 + $0x358] sm:$0xf] %v545_v48  ;;  %v705_v50 = vld [vmem:[%s4512_s24 + $0x234] sm:$0xf]  ;;  %784 = vst [vmem:[#allocation2 + $0x34c] sm:$0xf] %v704_v49 }
  0xb7   : > { %v226_v51 = vld [vmem:[%s4512_s24 + $0xd8] sm:$0xf]  ;;  %785 = vst [vmem:[#allocation2 + $0x35c] sm:$0xf] %v705_v50  ;;  %v227_v52 = vld [vmem:[%s4512_s24 + $0xdc] sm:$0xf] }
  0xb8   : > { %306 = vst [vmem:[#allocation2 + $0x360] sm:$0xf] %v226_v51  ;;  %v4248_v53 = vld [vmem:[#allocation2 + $0x1c0] ss:$16 sps:$4 sm:$0xff]   ;;  %307 = vst [vmem:[#allocation2 + $0x370] sm:$0xf] %v227_v52 }
  0xb9   : > { %v4249_v54 = vld [vmem:[#allocation2 + $0x1c8] ss:$16 sps:$4 sm:$0xff]   ;;  %v4250_v55 = vld [vmem:[#allocation2 + $0x1e4] ss:$16 sps:$4 sm:$0xff]   ;;  %v4252_v56 = vld [vmem:[#allocation2 + $0x1ec] ss:$16 sps:$4 sm:$0xff]  }
  0xba   : > { %v386_v57 = vld [vmem:[%s4512_s24 + $0x228] sm:$0xf]  ;;  %v387_v58 = vld [vmem:[%s4512_s24 + $0x22c] sm:$0xf]  ;;  %v706_v61 = vld [vmem:[%s4512_s24 + $0x238] sm:$0xf] }
  0xbb   : > { %v546_v59 = vld [vmem:[%s4512_s24 + $0xe8] sm:$0xf]  ;;  %466 = vst [vmem:[#allocation2 + $0x364] sm:$0xf] %v386_v57  ;;  %467 = vst [vmem:[#allocation2 + $0x374] sm:$0xf] %v387_v58 }
  0xbc   : > { %2173 = vmatmul.mubr.bf16.gmra.mxu0 %v4248_v53  ;;  %2526 = vmatmul.mubr.bf16.gmra.mxu1 %v4249_v54  ;;  %v547_v60 = vld [vmem:[%s4512_s24 + $0xec] sm:$0xf]  ;;  %626 = vst [vmem:[#allocation2 + $0x368] sm:$0xf] %v546_v59  ;;  %v707_v62 = vld [vmem:[%s4512_s24 + $0x23c] sm:$0xf] }
  0xbd   : > { %2180 = vmatprep.mubr.bf16.mxu0 %v4250_v55  ;;  %2533 = vmatprep.mubr.bf16.mxu1 %v4252_v56  ;;  %v4254_v63 = vld [vmem:[#allocation2 + $0x1e0] ss:$16 sps:$4 sm:$0xff]   ;;  %627 = vst [vmem:[#allocation2 + $0x378] sm:$0xf] %v547_v60  ;;  %786 = vst [vmem:[#allocation2 + $0x36c] sm:$0xf] %v706_v61 }
  0xbe   : > { %787 = vst [vmem:[#allocation2 + $0x37c] sm:$0xf] %v707_v62  ;;  %v228_v0 = vld [vmem:[%s4512_s24 + $0xe0] sm:$0xf]  ;;  %v229_v2 = vld [vmem:[%s4512_s24 + $0xe4] sm:$0xf] }
  0xbf   : > { %v388_v3 = vld [vmem:[%s4512_s24 + $0x230] sm:$0xf]  ;;  %v4255_v4 = vld [vmem:[#allocation2 + $0x1e8] ss:$16 sps:$4 sm:$0xff]   ;;  %v4256_v5 = vld [vmem:[#allocation2 + $0x204] ss:$16 sps:$4 sm:$0xff]  }
  0xc0   : > { %308 = vst [vmem:[#allocation2 + $0x380] sm:$0xf] %v228_v0  ;;  %309 = vst [vmem:[#allocation2 + $0x390] sm:$0xf] %v229_v2  ;;  %v389_v6 = vld [vmem:[%s4512_s24 + $0x234] sm:$0xf] }
  0xc1   : > { %468 = vst [vmem:[#allocation2 + $0x384] sm:$0xf] %v388_v3  ;;  %v548_v7 = vld [vmem:[%s4512_s24 + $0xf0] sm:$0xf]  ;;  %v549_v8 = vld [vmem:[%s4512_s24 + $0xf4] sm:$0xf] }
  0xc2   : > { %v4258_v9 = vld [vmem:[#allocation2 + $0x20c] ss:$16 sps:$4 sm:$0xff]   ;;  %469 = vst [vmem:[#allocation2 + $0x394] sm:$0xf] %v389_v6  ;;  %628 = vst [vmem:[#allocation2 + $0x388] sm:$0xf] %v548_v7 }
  0xc3   : > { %629 = vst [vmem:[#allocation2 + $0x398] sm:$0xf] %v549_v8  ;;  %v708_v10 = vld [vmem:[%s4512_s24 + $0x240] sm:$0xf]  ;;  %v709_v11 = vld [vmem:[%s4512_s24 + $0x244] sm:$0xf] }
  0xc4   : > { %v230_v12 = vld [vmem:[%s4512_s24 + $0xe8] sm:$0xf]  ;;  %788 = vst [vmem:[#allocation2 + $0x38c] sm:$0xf] %v708_v10  ;;  %789 = vst [vmem:[#allocation2 + $0x39c] sm:$0xf] %v709_v11  ;;  %2181 = vmatmul.mubr.bf16.gmra.mxu0 %v4254_v63  ;;  %2534 = vmatmul.mubr.bf16.gmra.mxu1 %v4255_v4 }
  0xc5   : > { %v231_v13 = vld [vmem:[%s4512_s24 + $0xec] sm:$0xf]  ;;  %310 = vst [vmem:[#allocation2 + $0x3a0] sm:$0xf] %v230_v12  ;;  %v390_v14 = vld [vmem:[%s4512_s24 + $0x238] sm:$0xf]  ;;  %2188 = vmatprep.mubr.bf16.mxu0 %v4256_v5  ;;  %2541 = vmatprep.mubr.bf16.mxu1 %v4258_v9 }
  0xc6   : > { %v391_v15 = vld [vmem:[%s4512_s24 + $0x23c] sm:$0xf]  ;;  %311 = vst [vmem:[#allocation2 + $0x3b0] sm:$0xf] %v231_v13  ;;  %470 = vst [vmem:[#allocation2 + $0x3a4] sm:$0xf] %v390_v14 }
  0xc7   : > { %471 = vst [vmem:[#allocation2 + $0x3b4] sm:$0xf] %v391_v15  ;;  %v550_v16 = vld [vmem:[%s4512_s24 + $0xf8] sm:$0xf]  ;;  %v551_v17 = vld [vmem:[%s4512_s24 + $0xfc] sm:$0xf] }
  0xc8   : > { %v710_v18 = vld [vmem:[%s4512_s24 + $0x248] sm:$0xf]  ;;  %630 = vst [vmem:[#allocation2 + $0x3a8] sm:$0xf] %v550_v16  ;;  %631 = vst [vmem:[#allocation2 + $0x3b8] sm:$0xf] %v551_v17 }
  0xc9   : > { %v711_v19 = vld [vmem:[%s4512_s24 + $0x24c] sm:$0xf]  ;;  %790 = vst [vmem:[#allocation2 + $0x3ac] sm:$0xf] %v710_v18  ;;  %v232_v20 = vld [vmem:[%s4512_s24 + $0xf0] sm:$0xf] }
  0xca   : > { %v233_v21 = vld [vmem:[%s4512_s24 + $0xf4] sm:$0xf]  ;;  %791 = vst [vmem:[#allocation2 + $0x3bc] sm:$0xf] %v711_v19  ;;  %312 = vst [vmem:[#allocation2 + $0x3c0] sm:$0xf] %v232_v20 }
  0xcb   : > { %313 = vst [vmem:[#allocation2 + $0x3d0] sm:$0xf] %v233_v21  ;;  %v4260_v22 = vld [vmem:[#allocation2 + $0x200] ss:$16 sps:$4 sm:$0xff]   ;;  %v4261_v23 = vld [vmem:[#allocation2 + $0x208] ss:$16 sps:$4 sm:$0xff]  }
  0xcc   : > { %v4262_v24 = vld [vmem:[#allocation2 + $0x224] ss:$16 sps:$4 sm:$0xff]   ;;  %v4264_v25 = vld [vmem:[#allocation2 + $0x22c] ss:$16 sps:$4 sm:$0xff]   ;;  %2189 = vmatmul.mubr.bf16.gmra.mxu0 %v4260_v22  ;;  %v392_v26 = vld [vmem:[%s4512_s24 + $0x240] sm:$0xf]  ;;  %2542 = vmatmul.mubr.bf16.gmra.mxu1 %v4261_v23 }
  0xcd   : > { %v393_v27 = vld [vmem:[%s4512_s24 + $0x244] sm:$0xf]  ;;  %v552_v28 = vld [vmem:[%s4512_s24 + $0x100] sm:$0xf]  ;;  %2196 = vmatprep.mubr.bf16.mxu0 %v4262_v24  ;;  %472 = vst [vmem:[#allocation2 + $0x3c4] sm:$0xf] %v392_v26  ;;  %2549 = vmatprep.mubr.bf16.mxu1 %v4264_v25 }
  0xce   : > { %473 = vst [vmem:[#allocation2 + $0x3d4] sm:$0xf] %v393_v27  ;;  %v553_v29 = vld [vmem:[%s4512_s24 + $0x104] sm:$0xf]  ;;  %632 = vst [vmem:[#allocation2 + $0x3c8] sm:$0xf] %v552_v28 }
  0xcf   : > { %v712_v1 = vld [vmem:[%s4512_s24 + $0x250] sm:$0xf]  ;;  %v713_v30 = vld [vmem:[%s4512_s24 + $0x254] sm:$0xf]  ;;  %633 = vst [vmem:[#allocation2 + $0x3d8] sm:$0xf] %v553_v29 }
  0xd0   : > { %v4266_v31 = vld [vmem:[#allocation2 + $0x220] ss:$16 sps:$4 sm:$0xff]   ;;  %792 = vst [vmem:[#allocation2 + $0x3cc] sm:$0xf] %v712_v1  ;;  %793 = vst [vmem:[#allocation2 + $0x3dc] sm:$0xf] %v713_v30 }
  0xd1   : > { %v234_v32 = vld [vmem:[%s4512_s24 + $0xf8] sm:$0xf]  ;;  %v235_v33 = vld [vmem:[%s4512_s24 + $0xfc] sm:$0xf]  ;;  %v394_v34 = vld [vmem:[%s4512_s24 + $0x248] sm:$0xf] }
  0xd2   : > { %v4267_v35 = vld [vmem:[#allocation2 + $0x228] ss:$16 sps:$4 sm:$0xff]   ;;  %v4268_v36 = vld [vmem:[#allocation2 + $0x244] ss:$16 sps:$4 sm:$0xff]   ;;  %314 = vst [vmem:[#allocation2 + $0x3e0] sm:$0xf] %v234_v32 }
  0xd3   : > { %315 = vst [vmem:[#allocation2 + $0x3f0] sm:$0xf] %v235_v33  ;;  %v395_v37 = vld [vmem:[%s4512_s24 + $0x24c] sm:$0xf]  ;;  %474 = vst [vmem:[#allocation2 + $0x3e4] sm:$0xf] %v394_v34 }
  0xd4   : > { %v554_v38 = vld [vmem:[%s4512_s24 + $0x108] sm:$0xf]  ;;  %v555_v39 = vld [vmem:[%s4512_s24 + $0x10c] sm:$0xf]  ;;  %475 = vst [vmem:[#allocation2 + $0x3f4] sm:$0xf] %v395_v37  ;;  %2197 = vmatmul.mubr.bf16.gmra.mxu0 %v4266_v31  ;;  %2550 = vmatmul.mubr.bf16.gmra.mxu1 %v4267_v35 }
  0xd5   : > { %v4270_v40 = vld [vmem:[#allocation2 + $0x24c] ss:$16 sps:$4 sm:$0xff]   ;;  %634 = vst [vmem:[#allocation2 + $0x3e8] sm:$0xf] %v554_v38  ;;  %635 = vst [vmem:[#allocation2 + $0x3f8] sm:$0xf] %v555_v39  ;;  %2204 = vmatprep.mubr.bf16.mxu0 %v4268_v36 }
  0xd6   : > { %v714_v41 = vld [vmem:[%s4512_s24 + $0x258] sm:$0xf]  ;;  %v715_v42 = vld [vmem:[%s4512_s24 + $0x25c] sm:$0xf]  ;;  %v236_v43 = vld [vmem:[%s4512_s24 + $0x100] sm:$0xf]  ;;  %2557 = vmatprep.mubr.bf16.mxu1 %v4270_v40 }
  0xd7   : > { %794 = vst [vmem:[#allocation2 + $0x3ec] sm:$0xf] %v714_v41  ;;  %795 = vst [vmem:[#allocation2 + $0x3fc] sm:$0xf] %v715_v42  ;;  %v237_v44 = vld [vmem:[%s4512_s24 + $0x104] sm:$0xf] }
  0xd8   : > { %316 = vst [vmem:[#allocation2 + $0x400] sm:$0xf] %v236_v43  ;;  %v396_v45 = vld [vmem:[%s4512_s24 + $0x250] sm:$0xf]  ;;  %v397_v46 = vld [vmem:[%s4512_s24 + $0x254] sm:$0xf] }
  0xd9   : > { %317 = vst [vmem:[#allocation2 + $0x410] sm:$0xf] %v237_v44  ;;  %476 = vst [vmem:[#allocation2 + $0x404] sm:$0xf] %v396_v45  ;;  %v556_v47 = vld [vmem:[%s4512_s24 + $0x110] sm:$0xf] }
  0xda   : > { %477 = vst [vmem:[#allocation2 + $0x414] sm:$0xf] %v397_v46  ;;  %v557_v48 = vld [vmem:[%s4512_s24 + $0x114] sm:$0xf]  ;;  %v716_v49 = vld [vmem:[%s4512_s24 + $0x260] sm:$0xf] }
  0xdb   : > { %636 = vst [vmem:[#allocation2 + $0x408] sm:$0xf] %v556_v47  ;;  %637 = vst [vmem:[#allocation2 + $0x418] sm:$0xf] %v557_v48  ;;  %v717_v50 = vld [vmem:[%s4512_s24 + $0x264] sm:$0xf] }
  0xdc   : > { %796 = vst [vmem:[#allocation2 + $0x40c] sm:$0xf] %v716_v49  ;;  %v238_v51 = vld [vmem:[%s4512_s24 + $0x108] sm:$0xf]  ;;  %v239_v52 = vld [vmem:[%s4512_s24 + $0x10c] sm:$0xf] }
  0xdd   : > { %797 = vst [vmem:[#allocation2 + $0x41c] sm:$0xf] %v717_v50  ;;  %318 = vst [vmem:[#allocation2 + $0x420] sm:$0xf] %v238_v51  ;;  %v4272_v53 = vld [vmem:[#allocation2 + $0x240] ss:$16 sps:$4 sm:$0xff]  }
  0xde   : > { %319 = vst [vmem:[#allocation2 + $0x430] sm:$0xf] %v239_v52  ;;  %v4273_v54 = vld [vmem:[#allocation2 + $0x248] ss:$16 sps:$4 sm:$0xff]   ;;  %v4274_v55 = vld [vmem:[#allocation2 + $0x264] ss:$16 sps:$4 sm:$0xff]   ;;  %2205 = vmatmul.mubr.bf16.gmra.mxu0 %v4272_v53 }
  0xdf   : > { %v4276_v56 = vld [vmem:[#allocation2 + $0x26c] ss:$16 sps:$4 sm:$0xff]   ;;  %v398_v57 = vld [vmem:[%s4512_s24 + $0x258] sm:$0xf]  ;;  %2558 = vmatmul.mubr.bf16.gmra.mxu1 %v4273_v54  ;;  %2212 = vmatprep.mubr.bf16.mxu0 %v4274_v55  ;;  %v718_v61 = vld [vmem:[%s4512_s24 + $0x268] sm:$0xf] }
  0xe0   : > { %v399_v58 = vld [vmem:[%s4512_s24 + $0x25c] sm:$0xf]  ;;  %v558_v59 = vld [vmem:[%s4512_s24 + $0x118] sm:$0xf]  ;;  %478 = vst [vmem:[#allocation2 + $0x424] sm:$0xf] %v398_v57  ;;  %2565 = vmatprep.mubr.bf16.mxu1 %v4276_v56 }
  0xe1   : > { %479 = vst [vmem:[#allocation2 + $0x434] sm:$0xf] %v399_v58  ;;  %v559_v60 = vld [vmem:[%s4512_s24 + $0x11c] sm:$0xf]  ;;  %638 = vst [vmem:[#allocation2 + $0x428] sm:$0xf] %v558_v59 }
  0xe2   : > { %v719_v62 = vld [vmem:[%s4512_s24 + $0x26c] sm:$0xf]  ;;  %v4278_v63 = vld [vmem:[#allocation2 + $0x260] ss:$16 sps:$4 sm:$0xff]   ;;  %639 = vst [vmem:[#allocation2 + $0x438] sm:$0xf] %v559_v60 }
  0xe3   : > { %798 = vst [vmem:[#allocation2 + $0x42c] sm:$0xf] %v718_v61  ;;  %799 = vst [vmem:[#allocation2 + $0x43c] sm:$0xf] %v719_v62  ;;  %v240_v0 = vld [vmem:[%s4512_s24 + $0x110] sm:$0xf] }
  0xe4   : > { %v241_v2 = vld [vmem:[%s4512_s24 + $0x114] sm:$0xf]  ;;  %v400_v3 = vld [vmem:[%s4512_s24 + $0x260] sm:$0xf]  ;;  %v4279_v4 = vld [vmem:[#allocation2 + $0x268] ss:$16 sps:$4 sm:$0xff]  }
  0xe5   : > { %v4280_v5 = vld [vmem:[#allocation2 + $0x284] ss:$16 sps:$4 sm:$0xff]   ;;  %320 = vst [vmem:[#allocation2 + $0x440] sm:$0xf] %v240_v0  ;;  %321 = vst [vmem:[#allocation2 + $0x450] sm:$0xf] %v241_v2 }
  0xe6   : > { %v401_v6 = vld [vmem:[%s4512_s24 + $0x264] sm:$0xf]  ;;  %480 = vst [vmem:[#allocation2 + $0x444] sm:$0xf] %v400_v3  ;;  %v560_v7 = vld [vmem:[%s4512_s24 + $0x120] sm:$0xf]  ;;  %2213 = vmatmul.mubr.bf16.gmra.mxu0 %v4278_v63 }
  0xe7   : > { %v561_v8 = vld [vmem:[%s4512_s24 + $0x124] sm:$0xf]  ;;  %v4282_v9 = vld [vmem:[#allocation2 + $0x28c] ss:$16 sps:$4 sm:$0xff]   ;;  %481 = vst [vmem:[#allocation2 + $0x454] sm:$0xf] %v401_v6  ;;  %2566 = vmatmul.mubr.bf16.gmra.mxu1 %v4279_v4  ;;  %2220 = vmatprep.mubr.bf16.mxu0 %v4280_v5 }
  0xe8   : > { %640 = vst [vmem:[#allocation2 + $0x448] sm:$0xf] %v560_v7  ;;  %641 = vst [vmem:[#allocation2 + $0x458] sm:$0xf] %v561_v8  ;;  %v720_v10 = vld [vmem:[%s4512_s24 + $0x270] sm:$0xf]  ;;  %2573 = vmatprep.mubr.bf16.mxu1 %v4282_v9 }
  0xe9   : > { %v721_v11 = vld [vmem:[%s4512_s24 + $0x274] sm:$0xf]  ;;  %v242_v12 = vld [vmem:[%s4512_s24 + $0x118] sm:$0xf]  ;;  %800 = vst [vmem:[#allocation2 + $0x44c] sm:$0xf] %v720_v10 }
  0xea   : > { %801 = vst [vmem:[#allocation2 + $0x45c] sm:$0xf] %v721_v11  ;;  %v243_v13 = vld [vmem:[%s4512_s24 + $0x11c] sm:$0xf]  ;;  %322 = vst [vmem:[#allocation2 + $0x460] sm:$0xf] %v242_v12 }
  0xeb   : > { %v402_v14 = vld [vmem:[%s4512_s24 + $0x268] sm:$0xf]  ;;  %v403_v15 = vld [vmem:[%s4512_s24 + $0x26c] sm:$0xf]  ;;  %323 = vst [vmem:[#allocation2 + $0x470] sm:$0xf] %v243_v13 }
  0xec   : > { %482 = vst [vmem:[#allocation2 + $0x464] sm:$0xf] %v402_v14  ;;  %483 = vst [vmem:[#allocation2 + $0x474] sm:$0xf] %v403_v15  ;;  %v562_v16 = vld [vmem:[%s4512_s24 + $0x128] sm:$0xf] }
  0xed   : > { %v563_v17 = vld [vmem:[%s4512_s24 + $0x12c] sm:$0xf]  ;;  %v722_v18 = vld [vmem:[%s4512_s24 + $0x278] sm:$0xf]  ;;  %642 = vst [vmem:[#allocation2 + $0x468] sm:$0xf] %v562_v16 }
  0xee   : > { %643 = vst [vmem:[#allocation2 + $0x478] sm:$0xf] %v563_v17  ;;  %v723_v19 = vld [vmem:[%s4512_s24 + $0x27c] sm:$0xf]  ;;  %802 = vst [vmem:[#allocation2 + $0x46c] sm:$0xf] %v722_v18 }
  0xef   : > { %v244_v20 = vld [vmem:[%s4512_s24 + $0x120] sm:$0xf]  ;;  %v245_v21 = vld [vmem:[%s4512_s24 + $0x124] sm:$0xf]  ;;  %803 = vst [vmem:[#allocation2 + $0x47c] sm:$0xf] %v723_v19 }
  0xf0   : > { %324 = vst [vmem:[#allocation2 + $0x480] sm:$0xf] %v244_v20  ;;  %325 = vst [vmem:[#allocation2 + $0x490] sm:$0xf] %v245_v21  ;;  %v4284_v22 = vld [vmem:[#allocation2 + $0x280] ss:$16 sps:$4 sm:$0xff]  }
  0xf1   : > { %v4285_v23 = vld [vmem:[#allocation2 + $0x288] ss:$16 sps:$4 sm:$0xff]   ;;  %v4286_v24 = vld [vmem:[#allocation2 + $0x2a4] ss:$16 sps:$4 sm:$0xff]   ;;  %v4288_v25 = vld [vmem:[#allocation2 + $0x2ac] ss:$16 sps:$4 sm:$0xff]   ;;  %2221 = vmatmul.mubr.bf16.gmra.mxu0 %v4284_v22 }
  0xf2   : > { %v404_v26 = vld [vmem:[%s4512_s24 + $0x270] sm:$0xf]  ;;  %v405_v27 = vld [vmem:[%s4512_s24 + $0x274] sm:$0xf]  ;;  %2574 = vmatmul.mubr.bf16.gmra.mxu1 %v4285_v23  ;;  %2228 = vmatprep.mubr.bf16.mxu0 %v4286_v24  ;;  %v724_v1 = vld [vmem:[%s4512_s24 + $0x280] sm:$0xf] }
  0xf3   : > { %v564_v28 = vld [vmem:[%s4512_s24 + $0x130] sm:$0xf]  ;;  %484 = vst [vmem:[#allocation2 + $0x484] sm:$0xf] %v404_v26  ;;  %485 = vst [vmem:[#allocation2 + $0x494] sm:$0xf] %v405_v27  ;;  %2581 = vmatprep.mubr.bf16.mxu1 %v4288_v25 }
  0xf4   : > { %v565_v29 = vld [vmem:[%s4512_s24 + $0x134] sm:$0xf]  ;;  %644 = vst [vmem:[#allocation2 + $0x488] sm:$0xf] %v564_v28  ;;  %v725_v30 = vld [vmem:[%s4512_s24 + $0x284] sm:$0xf] }
  0xf5   : > { %645 = vst [vmem:[#allocation2 + $0x498] sm:$0xf] %v565_v29  ;;  %804 = vst [vmem:[#allocation2 + $0x48c] sm:$0xf] %v724_v1  ;;  %v246_v31 = vld [vmem:[%s4512_s24 + $0x128] sm:$0xf] }
  0xf6   : > { %805 = vst [vmem:[#allocation2 + $0x49c] sm:$0xf] %v725_v30  ;;  %v247_v32 = vld [vmem:[%s4512_s24 + $0x12c] sm:$0xf]  ;;  %v406_v33 = vld [vmem:[%s4512_s24 + $0x278] sm:$0xf] }
  0xf7   : > { %326 = vst [vmem:[#allocation2 + $0x4a0] sm:$0xf] %v246_v31  ;;  %327 = vst [vmem:[#allocation2 + $0x4b0] sm:$0xf] %v247_v32  ;;  %v407_v34 = vld [vmem:[%s4512_s24 + $0x27c] sm:$0xf] }
  0xf8   : > { %486 = vst [vmem:[#allocation2 + $0x4a4] sm:$0xf] %v406_v33  ;;  %v566_v35 = vld [vmem:[%s4512_s24 + $0x138] sm:$0xf]  ;;  %v567_v36 = vld [vmem:[%s4512_s24 + $0x13c] sm:$0xf] }
  0xf9   : > { %v4290_v37 = vld [vmem:[#allocation2 + $0x2a0] ss:$16 sps:$4 sm:$0xff]   ;;  %487 = vst [vmem:[#allocation2 + $0x4b4] sm:$0xf] %v407_v34  ;;  %646 = vst [vmem:[#allocation2 + $0x4a8] sm:$0xf] %v566_v35 }
  0xfa   : > { %647 = vst [vmem:[#allocation2 + $0x4b8] sm:$0xf] %v567_v36  ;;  %v726_v38 = vld [vmem:[%s4512_s24 + $0x288] sm:$0xf]  ;;  %v727_v39 = vld [vmem:[%s4512_s24 + $0x28c] sm:$0xf]  ;;  %2229 = vmatmul.mubr.bf16.gmra.mxu0 %v4290_v37 }
  0xfb   : > { %v4291_v40 = vld [vmem:[#allocation2 + $0x2a8] ss:$16 sps:$4 sm:$0xff]   ;;  %v4292_v41 = vld [vmem:[#allocation2 + $0x2c4] ss:$16 sps:$4 sm:$0xff]   ;;  %v4294_v42 = vld [vmem:[#allocation2 + $0x2cc] ss:$16 sps:$4 sm:$0xff]  }
  0xfc   : > { %806 = vst [vmem:[#allocation2 + $0x4ac] sm:$0xf] %v726_v38  ;;  %807 = vst [vmem:[#allocation2 + $0x4bc] sm:$0xf] %v727_v39  ;;  %v248_v43 = vld [vmem:[%s4512_s24 + $0x130] sm:$0xf]  ;;  %2582 = vmatmul.mubr.bf16.gmra.mxu1 %v4291_v40  ;;  %2236 = vmatprep.mubr.bf16.mxu0 %v4292_v41 }
  0xfd   : > { %v249_v44 = vld [vmem:[%s4512_s24 + $0x134] sm:$0xf]  ;;  %v408_v45 = vld [vmem:[%s4512_s24 + $0x280] sm:$0xf]  ;;  %328 = vst [vmem:[#allocation2 + $0x4c0] sm:$0xf] %v248_v43  ;;  %2589 = vmatprep.mubr.bf16.mxu1 %v4294_v42 }
  0xfe   : > { %329 = vst [vmem:[#allocation2 + $0x4d0] sm:$0xf] %v249_v44  ;;  %v409_v46 = vld [vmem:[%s4512_s24 + $0x284] sm:$0xf]  ;;  %488 = vst [vmem:[#allocation2 + $0x4c4] sm:$0xf] %v408_v45 }
  0xff   : > { %v568_v47 = vld [vmem:[%s4512_s24 + $0x140] sm:$0xf]  ;;  %v569_v48 = vld [vmem:[%s4512_s24 + $0x144] sm:$0xf]  ;;  %489 = vst [vmem:[#allocation2 + $0x4d4] sm:$0xf] %v409_v46 }
 0x100   : > { %648 = vst [vmem:[#allocation2 + $0x4c8] sm:$0xf] %v568_v47  ;;  %649 = vst [vmem:[#allocation2 + $0x4d8] sm:$0xf] %v569_v48  ;;  %v4296_v49 = vld [vmem:[#allocation2 + $0x2c0] ss:$16 sps:$4 sm:$0xff]  }
 0x101   : > { %v4297_v50 = vld [vmem:[#allocation2 + $0x2c8] ss:$16 sps:$4 sm:$0xff]   ;;  %v4298_v51 = vld [vmem:[#allocation2 + $0x2e4] ss:$16 sps:$4 sm:$0xff]   ;;  %v4300_v52 = vld [vmem:[#allocation2 + $0x2ec] ss:$16 sps:$4 sm:$0xff]  }
 0x102   : > { %v728_v53 = vld [vmem:[%s4512_s24 + $0x290] sm:$0xf]  ;;  %v729_v54 = vld [vmem:[%s4512_s24 + $0x294] sm:$0xf]  ;;  %v250_v55 = vld [vmem:[%s4512_s24 + $0x138] sm:$0xf]  ;;  %2237 = vmatmul.mubr.bf16.gmra.mxu0 %v4296_v49 }
 0x103   : > { %808 = vst [vmem:[#allocation2 + $0x4cc] sm:$0xf] %v728_v53  ;;  %809 = vst [vmem:[#allocation2 + $0x4dc] sm:$0xf] %v729_v54  ;;  %v251_v56 = vld [vmem:[%s4512_s24 + $0x13c] sm:$0xf]  ;;  %2244 = vmatprep.mubr.bf16.mxu0 %v4298_v51 }
 0x104   : > { %330 = vst [vmem:[#allocation2 + $0x4e0] sm:$0xf] %v250_v55  ;;  %331 = vst [vmem:[#allocation2 + $0x4f0] sm:$0xf] %v251_v56  ;;  %v410_v57 = vld [vmem:[%s4512_s24 + $0x288] sm:$0xf]  ;;  %2590 = vmatmul.mubr.bf16.gmra.mxu1 %v4297_v50 }
 0x105   : > { %v411_v58 = vld [vmem:[%s4512_s24 + $0x28c] sm:$0xf]  ;;  %v570_v59 = vld [vmem:[%s4512_s24 + $0x148] sm:$0xf]  ;;  %490 = vst [vmem:[#allocation2 + $0x4e4] sm:$0xf] %v410_v57  ;;  %2597 = vmatprep.mubr.bf16.mxu1 %v4300_v52 }
 0x106   : > { %491 = vst [vmem:[#allocation2 + $0x4f4] sm:$0xf] %v411_v58  ;;  %v571_v60 = vld [vmem:[%s4512_s24 + $0x14c] sm:$0xf]  ;;  %650 = vst [vmem:[#allocation2 + $0x4e8] sm:$0xf] %v570_v59 }
 0x107   : > { %v730_v61 = vld [vmem:[%s4512_s24 + $0x298] sm:$0xf]  ;;  %v731_v62 = vld [vmem:[%s4512_s24 + $0x29c] sm:$0xf]  ;;  %651 = vst [vmem:[#allocation2 + $0x4f8] sm:$0xf] %v571_v60 }
 0x108   : > { %810 = vst [vmem:[#allocation2 + $0x4ec] sm:$0xf] %v730_v61  ;;  %811 = vst [vmem:[#allocation2 + $0x4fc] sm:$0xf] %v731_v62  ;;  %v4302_v63 = vld [vmem:[#allocation2 + $0x2e0] ss:$16 sps:$4 sm:$0xff]  }
 0x109   : > { %v4303_v0 = vld [vmem:[#allocation2 + $0x2e8] ss:$16 sps:$4 sm:$0xff]   ;;  %v4304_v2 = vld [vmem:[#allocation2 + $0x304] ss:$16 sps:$4 sm:$0xff]   ;;  %v4306_v3 = vld [vmem:[#allocation2 + $0x30c] ss:$16 sps:$4 sm:$0xff]  }
 0x10a   : > { %2245 = vmatmul.mubr.bf16.gmra.mxu0 %v4302_v63  ;;  %v4308_v4 = vld [vmem:[#allocation2 + $0x300] ss:$16 sps:$4 sm:$0xff]   ;;  %v4309_v5 = vld [vmem:[#allocation2 + $0x308] ss:$16 sps:$4 sm:$0xff]   ;;  %v4310_v6 = vld [vmem:[#allocation2 + $0x324] ss:$16 sps:$4 sm:$0xff]  }
 0x10b   : > { %2252 = vmatprep.mubr.bf16.mxu0 %v4304_v2  ;;  %v4312_v7 = vld [vmem:[#allocation2 + $0x32c] ss:$16 sps:$4 sm:$0xff]   ;;  %v4901_v12 = vld [vmem:[%s5039_s2] ss:$0 sm:$0xff]  ;;  %v4315_v17 = vld [vmem:[#allocation2 + $0x328] ss:$16 sps:$4 sm:$0xff]  }
 0x10c   : > { %2598 = vmatmul.mubr.bf16.gmra.mxu1 %v4303_v0  ;;  %v2062_v8 = vpop.f32.mrf.mxu0  ;;  %v2415_v9 = vpop.f32.mrf.mxu1  ;;  %v4314_v15 = vld [vmem:[#allocation2 + $0x320] ss:$16 sps:$4 sm:$0xff]   ;;  %v4316_v18 = vld [vmem:[#allocation2 + $0x344] ss:$16 sps:$4 sm:$0xff]   ;;  %v4318_v22 = vld [vmem:[#allocation2 + $0x34c] ss:$16 sps:$4 sm:$0xff]  }
 0x10d   : > { %2605 = vmatprep.mubr.bf16.mxu1 %v4306_v3  ;;  %v2416_v10 = vadd.f32 %v2415_v9, %v2062_v8  ;;  %v4320_v33 = vld [vmem:[#allocation2 + $0x340] ss:$16 sps:$4 sm:$0xff]   ;;  %v4321_v35 = vld [vmem:[#allocation2 + $0x348] ss:$16 sps:$4 sm:$0xff]   ;;  %v4322_v36 = vld [vmem:[#allocation2 + $0x364] ss:$16 sps:$4 sm:$0xff]  }
 0x10e   : > { %v2064_v11 = vpop.f32.mrf.mxu0  ;;  %v2417_v13 = vpop.f32.mrf.mxu1  ;;  %v4324_v40 = vld [vmem:[#allocation2 + $0x36c] ss:$16 sps:$4 sm:$0xff]   ;;  %v4326_v52 = vld [vmem:[#allocation2 + $0x360] ss:$16 sps:$4 sm:$0xff]   ;;  %v4327_v54 = vld [vmem:[#allocation2 + $0x368] ss:$16 sps:$4 sm:$0xff]  }
 0x10f   : > { %v2901_v19 = vadd.f32 %v4901_v12, %v2416_v10  ;;  %v4330_v55 = vld [vmem:[#allocation2 + $0x384] ss:$16 sps:$4 sm:$0xff]   ;;  %v4333_v59 = vld [vmem:[#allocation2 + $0x38c] ss:$16 sps:$4 sm:$0xff]   ;;  %v4328_v8 = vld [vmem:[#allocation2 + $0x380] ss:$16 sps:$4 sm:$0xff]  }
 0x110   : > { %v2065_v14 = vpop.f32.mrf.mxu0  ;;  %v2418_v16 = vpop.f32.mrf.mxu1  ;;  %v4331_v10 = vld [vmem:[#allocation2 + $0x388] ss:$16 sps:$4 sm:$0xff]   ;;  %v4336_v11 = vld [vmem:[#allocation2 + $0x3a4] ss:$16 sps:$4 sm:$0xff]  }
 0x111   : > { %v2419_v20 = vadd.f32 %v2418_v16, %v2065_v14  ;;  %v2981_v27 = vmax.f32 %v2901_v19, 0.0  ;;  %v4339_v16 = vld [vmem:[#allocation2 + $0x3ac] ss:$16 sps:$4 sm:$0xff]  }
 0x112   : > { %2253 = vmatmul.mubr.bf16.gmra.mxu0 %v4308_v4  ;;  %v2067_v21 = vpop.f32.mrf.mxu0  ;;  %v2420_v23 = vpop.f32.mrf.mxu1 }
 0x113   : > { %2260 = vmatprep.mubr.bf16.mxu0 %v4310_v6  ;;  %v2902_v24 = vadd.f32 %v4901_v12, %v2419_v20 }
 0x114   : > { %2606 = vmatmul.mubr.bf16.gmra.mxu1 %v4309_v5  ;;  %v2070_v25 = vpop.f32.mrf.mxu0  ;;  %v2423_v26 = vpop.f32.mrf.mxu1 }
 0x115   : > { %2613 = vmatprep.mubr.bf16.mxu1 %v4312_v7  ;;  %v2982_v28 = vmax.f32 %v2902_v24, 0.0  ;;  %v2424_v29 = vadd.f32 %v2423_v26, %v2070_v25 }
 0x116   : > { %v2072_v1 = vpop.f32.mrf.mxu0  ;;  %v2425_v30 = vpop.f32.mrf.mxu1 }
 0x117   : > { %v3881_v31 = vpack.c.bf16 %v2982_v28, %v2981_v27  ;;  %v2903_v37 = vadd.f32 %v4901_v12, %v2424_v29  ;;  %v4334_v28 = vld [vmem:[#allocation2 + $0x3a0] ss:$16 sps:$4 sm:$0xff]   ;;  %v4337_v1 = vld [vmem:[#allocation2 + $0x3a8] ss:$16 sps:$4 sm:$0xff]   ;;  %v4342_v30 = vld [vmem:[#allocation2 + $0x3c4] ss:$16 sps:$4 sm:$0xff]  }
 0x118   : > { %v2073_v32 = vpop.f32.mrf.mxu0  ;;  %v2426_v34 = vpop.f32.mrf.mxu1 }
 0x119   : > { %3882 = vst [vmem:[%s4909_s10] sm:$0xff] %v3881_v31   ;;  %v2427_v38 = vadd.f32 %v2426_v34, %v2073_v32  ;;  %v2983_v45 = vmax.f32 %v2903_v37, 0.0  ;;  %v4345_v34 = vld [vmem:[#allocation2 + $0x3cc] ss:$16 sps:$4 sm:$0xff]  }
 0x11a   : > { %2261 = vmatmul.mubr.bf16.gmra.mxu0 %v4314_v15  ;;  %v2075_v39 = vpop.f32.mrf.mxu0  ;;  %v2428_v41 = vpop.f32.mrf.mxu1 }
 0x11b   : > { %2268 = vmatprep.mubr.bf16.mxu0 %v4316_v18  ;;  %v2904_v42 = vadd.f32 %v4901_v12, %v2427_v38 }
 0x11c   : > { %2614 = vmatmul.mubr.bf16.gmra.mxu1 %v4315_v17  ;;  %v2078_v43 = vpop.f32.mrf.mxu0  ;;  %v2431_v44 = vpop.f32.mrf.mxu1 }
 0x11d   : > { %2621 = vmatprep.mubr.bf16.mxu1 %v4318_v22  ;;  %v2984_v46 = vmax.f32 %v2904_v42, 0.0  ;;  %v2432_v47 = vadd.f32 %v2431_v44, %v2078_v43 }
 0x11e   : > { %v2080_v48 = vpop.f32.mrf.mxu0  ;;  %v2433_v49 = vpop.f32.mrf.mxu1 }
 0x11f   : > { %v3886_v50 = vpack.c.bf16 %v2984_v46, %v2983_v45  ;;  %v2905_v56 = vadd.f32 %v4901_v12, %v2432_v47  ;;  %v4340_v46 = vld [vmem:[#allocation2 + $0x3c0] ss:$16 sps:$4 sm:$0xff]   ;;  %v4343_v48 = vld [vmem:[#allocation2 + $0x3c8] ss:$16 sps:$4 sm:$0xff]   ;;  %v4348_v49 = vld [vmem:[#allocation2 + $0x3e4] ss:$16 sps:$4 sm:$0xff]  }
 0x120   : > { %v2081_v51 = vpop.f32.mrf.mxu0  ;;  %v2434_v53 = vpop.f32.mrf.mxu1 }
 0x121   : > { %4078 = vst [vmem:[%s4909_s10 + $0x8] sm:$0xff] %v3886_v50   ;;  %v2435_v57 = vadd.f32 %v2434_v53, %v2081_v51  ;;  %v2985_v0 = vmax.f32 %v2905_v56, 0.0  ;;  %v4351_v53 = vld [vmem:[#allocation2 + $0x3ec] ss:$16 sps:$4 sm:$0xff]  }
 0x122   : > { %2269 = vmatmul.mubr.bf16.gmra.mxu0 %v4320_v33  ;;  %v2083_v58 = vpop.f32.mrf.mxu0  ;;  %v2436_v60 = vpop.f32.mrf.mxu1 }
 0x123   : > { %2276 = vmatprep.mubr.bf16.mxu0 %v4322_v36  ;;  %v2906_v61 = vadd.f32 %v4901_v12, %v2435_v57 }
 0x124   : > { %2622 = vmatmul.mubr.bf16.gmra.mxu1 %v4321_v35  ;;  %v2086_v62 = vpop.f32.mrf.mxu0  ;;  %v2439_v63 = vpop.f32.mrf.mxu1 }
 0x125   : > { %2629 = vmatprep.mubr.bf16.mxu1 %v4324_v40  ;;  %v2986_v2 = vmax.f32 %v2906_v61, 0.0  ;;  %v2440_v3 = vadd.f32 %v2439_v63, %v2086_v62 }
 0x126   : > { %v2088_v4 = vpop.f32.mrf.mxu0  ;;  %v2441_v5 = vpop.f32.mrf.mxu1 }
 0x127   : > { %v3891_v6 = vpack.c.bf16 %v2986_v2, %v2985_v0  ;;  %v2907_v13 = vadd.f32 %v4901_v12, %v2440_v3  ;;  %v4346_v2 = vld [vmem:[#allocation2 + $0x3e0] ss:$16 sps:$4 sm:$0xff]   ;;  %v4349_v4 = vld [vmem:[#allocation2 + $0x3e8] ss:$16 sps:$4 sm:$0xff]   ;;  %v4354_v5 = vld [vmem:[#allocation2 + $0x404] ss:$16 sps:$4 sm:$0xff]  }
 0x128   : > { %v2089_v7 = vpop.f32.mrf.mxu0  ;;  %v2442_v9 = vpop.f32.mrf.mxu1 }
 0x129   : > { %4079 = vst [vmem:[%s4909_s10 + $0x10] sm:$0xff] %v3891_v6   ;;  %v2443_v14 = vadd.f32 %v2442_v9, %v2089_v7  ;;  %v2987_v21 = vmax.f32 %v2907_v13, 0.0  ;;  %v4357_v9 = vld [vmem:[#allocation2 + $0x40c] ss:$16 sps:$4 sm:$0xff]  }
 0x12a   : > { %2277 = vmatmul.mubr.bf16.gmra.mxu0 %v4326_v52  ;;  %v2091_v15 = vpop.f32.mrf.mxu0  ;;  %v2444_v17 = vpop.f32.mrf.mxu1 }
 0x12b   : > { %2284 = vmatprep.mubr.bf16.mxu0 %v4330_v55  ;;  %v2908_v18 = vadd.f32 %v4901_v12, %v2443_v14 }
 0x12c   : > { %2630 = vmatmul.mubr.bf16.gmra.mxu1 %v4327_v54  ;;  %v2094_v19 = vpop.f32.mrf.mxu0  ;;  %v2447_v20 = vpop.f32.mrf.mxu1 }
 0x12d   : > { %2637 = vmatprep.mubr.bf16.mxu1 %v4333_v59  ;;  %v2988_v22 = vmax.f32 %v2908_v18, 0.0  ;;  %v2448_v23 = vadd.f32 %v2447_v20, %v2094_v19 }
 0x12e   : > { %v2096_v24 = vpop.f32.mrf.mxu0  ;;  %v2449_v25 = vpop.f32.mrf.mxu1 }
 0x12f   : > { %v3896_v26 = vpack.c.bf16 %v2988_v22, %v2987_v21  ;;  %v2909_v31 = vadd.f32 %v4901_v12, %v2448_v23  ;;  %v4352_v22 = vld [vmem:[#allocation2 + $0x400] ss:$16 sps:$4 sm:$0xff]   ;;  %v4355_v24 = vld [vmem:[#allocation2 + $0x408] ss:$16 sps:$4 sm:$0xff]   ;;  %v4360_v25 = vld [vmem:[#allocation2 + $0x424] ss:$16 sps:$4 sm:$0xff]  }
 0x130   : > { %v2097_v27 = vpop.f32.mrf.mxu0  ;;  %v2450_v29 = vpop.f32.mrf.mxu1 }
 0x131   : > { %4080 = vst [vmem:[%s4909_s10 + $0x18] sm:$0xff] %v3896_v26   ;;  %v2451_v32 = vadd.f32 %v2450_v29, %v2097_v27  ;;  %v2989_v39 = vmax.f32 %v2909_v31, 0.0  ;;  %v4363_v29 = vld [vmem:[#allocation2 + $0x42c] ss:$16 sps:$4 sm:$0xff]  }
 0x132   : > { %2285 = vmatmul.mubr.bf16.gmra.mxu0 %v4328_v8  ;;  %v2099_v33 = vpop.f32.mrf.mxu0  ;;  %v2452_v35 = vpop.f32.mrf.mxu1 }
 0x133   : > { %2292 = vmatprep.mubr.bf16.mxu0 %v4336_v11  ;;  %v2910_v36 = vadd.f32 %v4901_v12, %v2451_v32 }
 0x134   : > { %2638 = vmatmul.mubr.bf16.gmra.mxu1 %v4331_v10  ;;  %v2102_v37 = vpop.f32.mrf.mxu0  ;;  %v2455_v38 = vpop.f32.mrf.mxu1 }
 0x135   : > { %2645 = vmatprep.mubr.bf16.mxu1 %v4339_v16  ;;  %v2990_v40 = vmax.f32 %v2910_v36, 0.0  ;;  %v2456_v41 = vadd.f32 %v2455_v38, %v2102_v37 }
 0x136   : > { %v2104_v42 = vpop.f32.mrf.mxu0  ;;  %v2457_v43 = vpop.f32.mrf.mxu1 }
 0x137   : > { %v3901_v44 = vpack.c.bf16 %v2990_v40, %v2989_v39  ;;  %v2911_v50 = vadd.f32 %v4901_v12, %v2456_v41  ;;  %v4358_v40 = vld [vmem:[#allocation2 + $0x420] ss:$16 sps:$4 sm:$0xff]   ;;  %v4361_v42 = vld [vmem:[#allocation2 + $0x428] ss:$16 sps:$4 sm:$0xff]   ;;  %v4366_v43 = vld [vmem:[#allocation2 + $0x444] ss:$16 sps:$4 sm:$0xff]  }
 0x138   : > { %v2105_v45 = vpop.f32.mrf.mxu0  ;;  %v2458_v47 = vpop.f32.mrf.mxu1 }
 0x139   : > { %4081 = vst [vmem:[%s4909_s10 + $0x20] sm:$0xff] %v3901_v44   ;;  %v2459_v51 = vadd.f32 %v2458_v47, %v2105_v45  ;;  %v2991_v58 = vmax.f32 %v2911_v50, 0.0  ;;  %v4369_v47 = vld [vmem:[#allocation2 + $0x44c] ss:$16 sps:$4 sm:$0xff]  }
 0x13a   : > { %2293 = vmatmul.mubr.bf16.gmra.mxu0 %v4334_v28  ;;  %v2107_v52 = vpop.f32.mrf.mxu0  ;;  %v2460_v54 = vpop.f32.mrf.mxu1 }
 0x13b   : > { %2300 = vmatprep.mubr.bf16.mxu0 %v4342_v30  ;;  %v2912_v55 = vadd.f32 %v4901_v12, %v2459_v51 }
 0x13c   : > { %2646 = vmatmul.mubr.bf16.gmra.mxu1 %v4337_v1  ;;  %v2110_v56 = vpop.f32.mrf.mxu0  ;;  %v2463_v57 = vpop.f32.mrf.mxu1 }
 0x13d   : > { %2653 = vmatprep.mubr.bf16.mxu1 %v4345_v34  ;;  %v2992_v59 = vmax.f32 %v2912_v55, 0.0  ;;  %v2464_v60 = vadd.f32 %v2463_v57, %v2110_v56 }
 0x13e   : > { %v2112_v61 = vpop.f32.mrf.mxu0  ;;  %v2465_v62 = vpop.f32.mrf.mxu1 }
 0x13f   : > { %v3906_v63 = vpack.c.bf16 %v2992_v59, %v2991_v58  ;;  %v2913_v6 = vadd.f32 %v4901_v12, %v2464_v60  ;;  %v4364_v59 = vld [vmem:[#allocation2 + $0x440] ss:$16 sps:$4 sm:$0xff]   ;;  %v4367_v61 = vld [vmem:[#allocation2 + $0x448] ss:$16 sps:$4 sm:$0xff]   ;;  %v4372_v62 = vld [vmem:[#allocation2 + $0x464] ss:$16 sps:$4 sm:$0xff]  }
 0x140   : > { %v2113_v0 = vpop.f32.mrf.mxu0  ;;  %v2466_v3 = vpop.f32.mrf.mxu1 }
 0x141   : > { %4082 = vst [vmem:[%s4909_s10 + $0x28] sm:$0xff] %v3906_v63   ;;  %v2467_v7 = vadd.f32 %v2466_v3, %v2113_v0  ;;  %v2993_v15 = vmax.f32 %v2913_v6, 0.0  ;;  %v4375_v3 = vld [vmem:[#allocation2 + $0x46c] ss:$16 sps:$4 sm:$0xff]  }
 0x142   : > { %2301 = vmatmul.mubr.bf16.gmra.mxu0 %v4340_v46  ;;  %v2115_v8 = vpop.f32.mrf.mxu0  ;;  %v2468_v10 = vpop.f32.mrf.mxu1 }
 0x143   : > { %2308 = vmatprep.mubr.bf16.mxu0 %v4348_v49  ;;  %v2914_v11 = vadd.f32 %v4901_v12, %v2467_v7 }
 0x144   : > { %2654 = vmatmul.mubr.bf16.gmra.mxu1 %v4343_v48  ;;  %v2118_v13 = vpop.f32.mrf.mxu0  ;;  %v2471_v14 = vpop.f32.mrf.mxu1 }
 0x145   : > { %2661 = vmatprep.mubr.bf16.mxu1 %v4351_v53  ;;  %v2994_v16 = vmax.f32 %v2914_v11, 0.0  ;;  %v2472_v17 = vadd.f32 %v2471_v14, %v2118_v13 }
 0x146   : > { %v2120_v18 = vpop.f32.mrf.mxu0  ;;  %v2473_v19 = vpop.f32.mrf.mxu1 }
 0x147   : > { %v3911_v20 = vpack.c.bf16 %v2994_v16, %v2993_v15  ;;  %v2915_v26 = vadd.f32 %v4901_v12, %v2472_v17  ;;  %v4370_v16 = vld [vmem:[#allocation2 + $0x460] ss:$16 sps:$4 sm:$0xff]   ;;  %v4373_v18 = vld [vmem:[#allocation2 + $0x468] ss:$16 sps:$4 sm:$0xff]   ;;  %v4378_v19 = vld [vmem:[#allocation2 + $0x484] ss:$16 sps:$4 sm:$0xff]  }
 0x148   : > { %v2121_v21 = vpop.f32.mrf.mxu0  ;;  %v2474_v23 = vpop.f32.mrf.mxu1 }
 0x149   : > { %4083 = vst [vmem:[%s4909_s10 + $0x30] sm:$0xff] %v3911_v20   ;;  %v2475_v27 = vadd.f32 %v2474_v23, %v2121_v21  ;;  %v2995_v33 = vmax.f32 %v2915_v26, 0.0  ;;  %v4381_v23 = vld [vmem:[#allocation2 + $0x48c] ss:$16 sps:$4 sm:$0xff]  }
 0x14a   : > { %2309 = vmatmul.mubr.bf16.gmra.mxu0 %v4346_v2  ;;  %v2123_v28 = vpop.f32.mrf.mxu0  ;;  %v2476_v1 = vpop.f32.mrf.mxu1 }
 0x14b   : > { %2316 = vmatprep.mubr.bf16.mxu0 %v4354_v5  ;;  %v2916_v30 = vadd.f32 %v4901_v12, %v2475_v27 }
 0x14c   : > { %2662 = vmatmul.mubr.bf16.gmra.mxu1 %v4349_v4  ;;  %v2126_v31 = vpop.f32.mrf.mxu0  ;;  %v2479_v32 = vpop.f32.mrf.mxu1 }
 0x14d   : > { %2669 = vmatprep.mubr.bf16.mxu1 %v4357_v9  ;;  %v2996_v34 = vmax.f32 %v2916_v30, 0.0  ;;  %v2480_v35 = vadd.f32 %v2479_v32, %v2126_v31 }
 0x14e   : > { %v2128_v36 = vpop.f32.mrf.mxu0  ;;  %v2481_v37 = vpop.f32.mrf.mxu1 }
 0x14f   : > { %v3916_v38 = vpack.c.bf16 %v2996_v34, %v2995_v33  ;;  %v2917_v44 = vadd.f32 %v4901_v12, %v2480_v35  ;;  %v4376_v34 = vld [vmem:[#allocation2 + $0x480] ss:$16 sps:$4 sm:$0xff]   ;;  %v4379_v36 = vld [vmem:[#allocation2 + $0x488] ss:$16 sps:$4 sm:$0xff]   ;;  %v4384_v37 = vld [vmem:[#allocation2 + $0x4a4] ss:$16 sps:$4 sm:$0xff]  }
 0x150   : > { %v2129_v39 = vpop.f32.mrf.mxu0  ;;  %v2482_v41 = vpop.f32.mrf.mxu1 }
 0x151   : > { %4084 = vst [vmem:[%s4909_s10 + $0x38] sm:$0xff] %v3916_v38   ;;  %v2483_v45 = vadd.f32 %v2482_v41, %v2129_v39  ;;  %v2997_v52 = vmax.f32 %v2917_v44, 0.0  ;;  %v4387_v41 = vld [vmem:[#allocation2 + $0x4ac] ss:$16 sps:$4 sm:$0xff]  }
 0x152   : > { %2317 = vmatmul.mubr.bf16.gmra.mxu0 %v4352_v22  ;;  %v2131_v46 = vpop.f32.mrf.mxu0  ;;  %v2484_v48 = vpop.f32.mrf.mxu1 }
 0x153   : > { %2324 = vmatprep.mubr.bf16.mxu0 %v4360_v25  ;;  %v2918_v49 = vadd.f32 %v4901_v12, %v2483_v45 }
 0x154   : > { %2670 = vmatmul.mubr.bf16.gmra.mxu1 %v4355_v24  ;;  %v2134_v50 = vpop.f32.mrf.mxu0  ;;  %v2487_v51 = vpop.f32.mrf.mxu1 }
 0x155   : > { %2677 = vmatprep.mubr.bf16.mxu1 %v4363_v29  ;;  %v2998_v53 = vmax.f32 %v2918_v49, 0.0  ;;  %v2488_v54 = vadd.f32 %v2487_v51, %v2134_v50 }
 0x156   : > { %v2136_v55 = vpop.f32.mrf.mxu0  ;;  %v2489_v56 = vpop.f32.mrf.mxu1 }
 0x157   : > { %v3921_v57 = vpack.c.bf16 %v2998_v53, %v2997_v52  ;;  %v2919_v63 = vadd.f32 %v4901_v12, %v2488_v54  ;;  %v4382_v53 = vld [vmem:[#allocation2 + $0x4a0] ss:$16 sps:$4 sm:$0xff]   ;;  %v4385_v55 = vld [vmem:[#allocation2 + $0x4a8] ss:$16 sps:$4 sm:$0xff]   ;;  %v4390_v56 = vld [vmem:[#allocation2 + $0x4c4] ss:$16 sps:$4 sm:$0xff]  }
 0x158   : > { %v2137_v58 = vpop.f32.mrf.mxu0  ;;  %v2490_v60 = vpop.f32.mrf.mxu1 }
 0x159   : > { %4085 = vst [vmem:[%s4909_s10 + $0x40] sm:$0xff] %v3921_v57   ;;  %v2491_v0 = vadd.f32 %v2490_v60, %v2137_v58  ;;  %v2999_v8 = vmax.f32 %v2919_v63, 0.0  ;;  %v4393_v60 = vld [vmem:[#allocation2 + $0x4cc] ss:$16 sps:$4 sm:$0xff]  }
 0x15a   : > { %2325 = vmatmul.mubr.bf16.gmra.mxu0 %v4358_v40  ;;  %v2139_v2 = vpop.f32.mrf.mxu0  ;;  %v2492_v4 = vpop.f32.mrf.mxu1 }
 0x15b   : > { %2332 = vmatprep.mubr.bf16.mxu0 %v4366_v43  ;;  %v2920_v5 = vadd.f32 %v4901_v12, %v2491_v0 }
 0x15c   : > { %2678 = vmatmul.mubr.bf16.gmra.mxu1 %v4361_v42  ;;  %v2142_v6 = vpop.f32.mrf.mxu0  ;;  %v2495_v7 = vpop.f32.mrf.mxu1 }
 0x15d   : > { %2685 = vmatprep.mubr.bf16.mxu1 %v4369_v47  ;;  %v3000_v9 = vmax.f32 %v2920_v5, 0.0  ;;  %v2496_v10 = vadd.f32 %v2495_v7, %v2142_v6 }
 0x15e   : > { %v2144_v11 = vpop.f32.mrf.mxu0  ;;  %v2497_v13 = vpop.f32.mrf.mxu1 }
 0x15f   : > { %v3926_v14 = vpack.c.bf16 %v3000_v9, %v2999_v8  ;;  %v2921_v20 = vadd.f32 %v4901_v12, %v2496_v10  ;;  %v4388_v9 = vld [vmem:[#allocation2 + $0x4c0] ss:$16 sps:$4 sm:$0xff]   ;;  %v4391_v11 = vld [vmem:[#allocation2 + $0x4c8] ss:$16 sps:$4 sm:$0xff]   ;;  %v4396_v13 = vld [vmem:[#allocation2 + $0x4e4] ss:$16 sps:$4 sm:$0xff]  }
 0x160   : > { %v2145_v15 = vpop.f32.mrf.mxu0  ;;  %v2498_v17 = vpop.f32.mrf.mxu1 }
 0x161   : > { %4086 = vst [vmem:[%s4909_s10 + $0x48] sm:$0xff] %v3926_v14   ;;  %v2499_v21 = vadd.f32 %v2498_v17, %v2145_v15  ;;  %v3001_v28 = vmax.f32 %v2921_v20, 0.0  ;;  %v4399_v17 = vld [vmem:[#allocation2 + $0x4ec] ss:$16 sps:$4 sm:$0xff]  }
 0x162   : > { %2333 = vmatmul.mubr.bf16.gmra.mxu0 %v4364_v59  ;;  %v2147_v22 = vpop.f32.mrf.mxu0  ;;  %v2500_v24 = vpop.f32.mrf.mxu1 }
 0x163   : > { %2340 = vmatprep.mubr.bf16.mxu0 %v4372_v62  ;;  %v2922_v25 = vadd.f32 %v4901_v12, %v2499_v21 }
 0x164   : > { %2686 = vmatmul.mubr.bf16.gmra.mxu1 %v4367_v61  ;;  %v2150_v26 = vpop.f32.mrf.mxu0  ;;  %v2503_v27 = vpop.f32.mrf.mxu1 }
 0x165   : > { %2693 = vmatprep.mubr.bf16.mxu1 %v4375_v3  ;;  %v3002_v29 = vmax.f32 %v2922_v25, 0.0  ;;  %v2504_v1 = vadd.f32 %v2503_v27, %v2150_v26 }
 0x166   : > { %v2152_v30 = vpop.f32.mrf.mxu0  ;;  %v2505_v31 = vpop.f32.mrf.mxu1 }
 0x167   : > { %v3931_v32 = vpack.c.bf16 %v3002_v29, %v3001_v28  ;;  %v2923_v38 = vadd.f32 %v4901_v12, %v2504_v1  ;;  %v4394_v29 = vld [vmem:[#allocation2 + $0x4e0] ss:$16 sps:$4 sm:$0xff]   ;;  %v4397_v30 = vld [vmem:[#allocation2 + $0x4e8] ss:$16 sps:$4 sm:$0xff]  }
 0x168   : > { %v2153_v33 = vpop.f32.mrf.mxu0  ;;  %v2506_v35 = vpop.f32.mrf.mxu1 }
 0x169   : > { %4087 = vst [vmem:[%s4909_s10 + $0x50] sm:$0xff] %v3931_v32   ;;  %v2507_v39 = vadd.f32 %v2506_v35, %v2153_v33  ;;  %v3003_v46 = vmax.f32 %v2923_v38, 0.0 }
 0x16a   : > { %2341 = vmatmul.mubr.bf16.gmra.mxu0 %v4370_v16  ;;  %v2155_v40 = vpop.f32.mrf.mxu0  ;;  %v2508_v42 = vpop.f32.mrf.mxu1 }
 0x16b   : > { %2348 = vmatprep.mubr.bf16.mxu0 %v4378_v19  ;;  %v2924_v43 = vadd.f32 %v4901_v12, %v2507_v39 }
 0x16c   : > { %2694 = vmatmul.mubr.bf16.gmra.mxu1 %v4373_v18  ;;  %v2158_v44 = vpop.f32.mrf.mxu0  ;;  %v2511_v45 = vpop.f32.mrf.mxu1 }
 0x16d   : > { %2701 = vmatprep.mubr.bf16.mxu1 %v4381_v23  ;;  %v3004_v47 = vmax.f32 %v2924_v43, 0.0  ;;  %v2512_v48 = vadd.f32 %v2511_v45, %v2158_v44 }
 0x16e   : > { %v2160_v49 = vpop.f32.mrf.mxu0  ;;  %v2513_v50 = vpop.f32.mrf.mxu1 }
 0x16f   : > { %v3936_v51 = vpack.c.bf16 %v3004_v47, %v3003_v46  ;;  %v2925_v57 = vadd.f32 %v4901_v12, %v2512_v48 }
 0x170   : > { %v2161_v52 = vpop.f32.mrf.mxu0  ;;  %v2514_v54 = vpop.f32.mrf.mxu1 }
 0x171   : > { %4088 = vst [vmem:[%s4909_s10 + $0x58] sm:$0xff] %v3936_v51   ;;  %v2515_v58 = vadd.f32 %v2514_v54, %v2161_v52  ;;  %v3005_v2 = vmax.f32 %v2925_v57, 0.0 }
 0x172   : > { %2349 = vmatmul.mubr.bf16.gmra.mxu0 %v4376_v34  ;;  %v2163_v59 = vpop.f32.mrf.mxu0  ;;  %v2516_v61 = vpop.f32.mrf.mxu1 }
 0x173   : > { %2356 = vmatprep.mubr.bf16.mxu0 %v4384_v37  ;;  %v2926_v62 = vadd.f32 %v4901_v12, %v2515_v58 }
 0x174   : > { %2702 = vmatmul.mubr.bf16.gmra.mxu1 %v4379_v36  ;;  %v2166_v63 = vpop.f32.mrf.mxu0  ;;  %v2519_v0 = vpop.f32.mrf.mxu1 }
 0x175   : > { %2709 = vmatprep.mubr.bf16.mxu1 %v4387_v41  ;;  %v3006_v3 = vmax.f32 %v2926_v62, 0.0  ;;  %v2520_v4 = vadd.f32 %v2519_v0, %v2166_v63 }
 0x176   : > { %v2168_v5 = vpop.f32.mrf.mxu0  ;;  %v2521_v6 = vpop.f32.mrf.mxu1 }
 0x177   : > { %v3941_v7 = vpack.c.bf16 %v3006_v3, %v3005_v2  ;;  %v2927_v14 = vadd.f32 %v4901_v12, %v2520_v4 }
 0x178   : > { %v2169_v8 = vpop.f32.mrf.mxu0  ;;  %v2522_v10 = vpop.f32.mrf.mxu1 }
 0x179   : > { %4089 = vst [vmem:[%s4909_s10 + $0x60] sm:$0xff] %v3941_v7   ;;  %v2523_v15 = vadd.f32 %v2522_v10, %v2169_v8  ;;  %v3007_v22 = vmax.f32 %v2927_v14, 0.0 }
 0x17a   : > { %2357 = vmatmul.mubr.bf16.gmra.mxu0 %v4382_v53  ;;  %v2171_v16 = vpop.f32.mrf.mxu0  ;;  %v2524_v18 = vpop.f32.mrf.mxu1 }
 0x17b   : > { %2364 = vmatprep.mubr.bf16.mxu0 %v4390_v56  ;;  %v2928_v19 = vadd.f32 %v4901_v12, %v2523_v15 }
 0x17c   : > { %2710 = vmatmul.mubr.bf16.gmra.mxu1 %v4385_v55  ;;  %v2174_v20 = vpop.f32.mrf.mxu0  ;;  %v2527_v21 = vpop.f32.mrf.mxu1 }
 0x17d   : > { %2717 = vmatprep.mubr.bf16.mxu1 %v4393_v60  ;;  %v3008_v23 = vmax.f32 %v2928_v19, 0.0  ;;  %v2528_v24 = vadd.f32 %v2527_v21, %v2174_v20 }
 0x17e   : > { %v2176_v25 = vpop.f32.mrf.mxu0  ;;  %v2529_v26 = vpop.f32.mrf.mxu1 }
 0x17f   : > { %v3946_v27 = vpack.c.bf16 %v3008_v23, %v3007_v22  ;;  %v2929_v31 = vadd.f32 %v4901_v12, %v2528_v24 }
 0x180   : > { %v2177_v28 = vpop.f32.mrf.mxu0  ;;  %v2530_v1 = vpop.f32.mrf.mxu1 }
 0x181   : > { %4090 = vst [vmem:[%s4909_s10 + $0x68] sm:$0xff] %v3946_v27   ;;  %v2531_v32 = vadd.f32 %v2530_v1, %v2177_v28  ;;  %v3009_v38 = vmax.f32 %v2929_v31, 0.0 }
 0x182   : > { %2365 = vmatmul.mubr.bf16.gmra.mxu0 %v4388_v9  ;;  %v2179_v33 = vpop.f32.mrf.mxu0  ;;  %v2532_v34 = vpop.f32.mrf.mxu1 }
 0x183   : > { %2372 = vmatprep.mubr.bf16.mxu0 %v4396_v13  ;;  %v2930_v35 = vadd.f32 %v4901_v12, %v2531_v32 }
 0x184   : > { %2718 = vmatmul.mubr.bf16.gmra.mxu1 %v4391_v11  ;;  %v2182_v36 = vpop.f32.mrf.mxu0  ;;  %v2535_v37 = vpop.f32.mrf.mxu1 }
 0x185   : > { %2725 = vmatprep.mubr.bf16.mxu1 %v4399_v17  ;;  %v3010_v39 = vmax.f32 %v2930_v35, 0.0  ;;  %v2536_v40 = vadd.f32 %v2535_v37, %v2182_v36 }
 0x186   : > { %v2184_v41 = vpop.f32.mrf.mxu0  ;;  %v2537_v42 = vpop.f32.mrf.mxu1 }
 0x187   : > { %v3951_v43 = vpack.c.bf16 %v3010_v39, %v3009_v38  ;;  %v2931_v46 = vadd.f32 %v4901_v12, %v2536_v40 }
 0x188   : > { %v2185_v44 = vpop.f32.mrf.mxu0  ;;  %v2538_v45 = vpop.f32.mrf.mxu1 }
 0x189   : > { %4091 = vst [vmem:[%s4909_s10 + $0x70] sm:$0xff] %v3951_v43   ;;  %v2539_v47 = vadd.f32 %v2538_v45, %v2185_v44  ;;  %v3011_v53 = vmax.f32 %v2931_v46, 0.0 }
 0x18a   : > { %2373 = vmatmul.mubr.bf16.gmra.mxu0 %v4394_v29  ;;  %v2187_v48 = vpop.f32.mrf.mxu0  ;;  %v2540_v49 = vpop.f32.mrf.mxu1 }
 0x18b   : > { %v2932_v50 = vadd.f32 %v4901_v12, %v2539_v47 }
 0x18c   : > { %2726 = vmatmul.mubr.bf16.gmra.mxu1 %v4397_v30  ;;  %v2190_v51 = vpop.f32.mrf.mxu0  ;;  %v2543_v52 = vpop.f32.mrf.mxu1 }
 0x18d   : > { %v3012_v54 = vmax.f32 %v2932_v50, 0.0  ;;  %v2544_v55 = vadd.f32 %v2543_v52, %v2190_v51 }
 0x18e   : > { %v2192_v56 = vpop.f32.mrf.mxu0  ;;  %v2545_v57 = vpop.f32.mrf.mxu1 }
 0x18f   : > { %v3956_v58 = vpack.c.bf16 %v3012_v54, %v3011_v53  ;;  %v2933_v61 = vadd.f32 %v4901_v12, %v2544_v55 }
 0x190   : > { %v2193_v59 = vpop.f32.mrf.mxu0  ;;  %v2546_v60 = vpop.f32.mrf.mxu1 }
 0x191   : > { %4092 = vst [vmem:[%s4909_s10 + $0x78] sm:$0xff] %v3956_v58   ;;  %v2547_v62 = vadd.f32 %v2546_v60, %v2193_v59  ;;  %v3013_v5 = vmax.f32 %v2933_v61, 0.0 }
 0x192   : > { %v2195_v63 = vpop.f32.mrf.mxu0  ;;  %v2548_v0 = vpop.f32.mrf.mxu1 }
 0x193   : > { %v2934_v2 = vadd.f32 %v4901_v12, %v2547_v62 }
 0x194   : > { %v2198_v3 = vpop.f32.mrf.mxu0  ;;  %v2551_v4 = vpop.f32.mrf.mxu1 }
 0x195   : > { %v3014_v6 = vmax.f32 %v2934_v2, 0.0  ;;  %v2552_v7 = vadd.f32 %v2551_v4, %v2198_v3 }
 0x196   : > { %v2200_v8 = vpop.f32.mrf.mxu0  ;;  %v2553_v9 = vpop.f32.mrf.mxu1 }
 0x197   : > { %v3961_v10 = vpack.c.bf16 %v3014_v6, %v3013_v5  ;;  %v2935_v14 = vadd.f32 %v4901_v12, %v2552_v7 }
 0x198   : > { %v2201_v11 = vpop.f32.mrf.mxu0  ;;  %v2554_v13 = vpop.f32.mrf.mxu1 }
 0x199   : > { %4093 = vst [vmem:[%s4909_s10 + $0x80] sm:$0xff] %v3961_v10   ;;  %v2555_v15 = vadd.f32 %v2554_v13, %v2201_v11  ;;  %v3015_v21 = vmax.f32 %v2935_v14, 0.0 }
 0x19a   : > { %v2203_v16 = vpop.f32.mrf.mxu0  ;;  %v2556_v17 = vpop.f32.mrf.mxu1 }
 0x19b   : > { %v2936_v18 = vadd.f32 %v4901_v12, %v2555_v15 }
 0x19d   : > { %v3016_v22 = vmax.f32 %v2936_v18, 0.0 }
 0x19e   : > { %v2206_v19 = vpop.f32.mrf.mxu0 }
 0x19f   : > { %v2559_v20 = vpop.f32.mrf.mxu1  ;;  %v3966_v26 = vpack.c.bf16 %v3016_v22, %v3015_v21 }
 0x1a0   : > { %v2560_v23 = vadd.f32 %v2559_v20, %v2206_v19  ;;  %v2208_v24 = vpop.f32.mrf.mxu0 }
 0x1a1   : > { %v2561_v25 = vpop.f32.mrf.mxu1  ;;  %4094 = vst [vmem:[%s4909_s10 + $0x88] sm:$0xff] %v3966_v26  }
 0x1a2   : > { %v2209_v27 = vpop.f32.mrf.mxu0  ;;  %v2937_v29 = vadd.f32 %v4901_v12, %v2560_v23 }
 0x1a3   : > { %v2562_v28 = vpop.f32.mrf.mxu1 }
 0x1a4   : > { %v2563_v1 = vadd.f32 %v2562_v28, %v2209_v27  ;;  %v2211_v30 = vpop.f32.mrf.mxu0  ;;  %v3017_v35 = vmax.f32 %v2937_v29, 0.0 }
 0x1a5   : > { %v2564_v31 = vpop.f32.mrf.mxu1 }
 0x1a6   : > { %v2938_v32 = vadd.f32 %v4901_v12, %v2563_v1  ;;  %v2214_v33 = vpop.f32.mrf.mxu0 }
 0x1a7   : > { %v2567_v34 = vpop.f32.mrf.mxu1 }
 0x1a8   : > { %v3018_v36 = vmax.f32 %v2938_v32, 0.0  ;;  %v2568_v37 = vadd.f32 %v2567_v34, %v2214_v33  ;;  %v2216_v38 = vpop.f32.mrf.mxu0 }
 0x1a9   : > { %v2569_v39 = vpop.f32.mrf.mxu1 }
 0x1aa   : > { %v3971_v40 = vpack.c.bf16 %v3018_v36, %v3017_v35  ;;  %v2217_v41 = vpop.f32.mrf.mxu0  ;;  %v2939_v43 = vadd.f32 %v4901_v12, %v2568_v37 }
 0x1ab   : > { %v2570_v42 = vpop.f32.mrf.mxu1 }
 0x1ac   : > { %4095 = vst [vmem:[%s4909_s10 + $0x90] sm:$0xff] %v3971_v40   ;;  %v2571_v44 = vadd.f32 %v2570_v42, %v2217_v41  ;;  %v2219_v45 = vpop.f32.mrf.mxu0  ;;  %v3019_v50 = vmax.f32 %v2939_v43, 0.0 }
 0x1ad   : > { %v2572_v46 = vpop.f32.mrf.mxu1 }
 0x1ae   : > { %v2940_v47 = vadd.f32 %v4901_v12, %v2571_v44 }
 0x1b0   : > { %v3020_v51 = vmax.f32 %v2940_v47, 0.0 }
 0x1b1   : > { %v2222_v48 = vpop.f32.mrf.mxu0 }
 0x1b2   : > { %v2575_v49 = vpop.f32.mrf.mxu1  ;;  %v3976_v55 = vpack.c.bf16 %v3020_v51, %v3019_v50 }
 0x1b3   : > { %v2576_v52 = vadd.f32 %v2575_v49, %v2222_v48  ;;  %v2224_v53 = vpop.f32.mrf.mxu0 }
 0x1b4   : > { %v2577_v54 = vpop.f32.mrf.mxu1  ;;  %4096 = vst [vmem:[%s4909_s10 + $0x98] sm:$0xff] %v3976_v55  }
 0x1b5   : > { %v2225_v56 = vpop.f32.mrf.mxu0  ;;  %v2941_v58 = vadd.f32 %v4901_v12, %v2576_v52 }
 0x1b6   : > { %v2578_v57 = vpop.f32.mrf.mxu1 }
 0x1b7   : > { %v2579_v59 = vadd.f32 %v2578_v57, %v2225_v56  ;;  %v2227_v60 = vpop.f32.mrf.mxu0  ;;  %v3021_v2 = vmax.f32 %v2941_v58, 0.0 }
 0x1b8   : > { %v2580_v61 = vpop.f32.mrf.mxu1 }
 0x1b9   : > { %v2942_v62 = vadd.f32 %v4901_v12, %v2579_v59 }
 0x1ba   : > { %v2230_v63 = vpop.f32.mrf.mxu0 }
 0x1bb   : > { %v3022_v3 = vmax.f32 %v2942_v62, 0.0 }
 0x1bc   : > { %v2583_v0 = vpop.f32.mrf.mxu1  ;;  %v2232_v5 = vpop.f32.mrf.mxu0 }
 0x1bd   : > { %v2584_v4 = vadd.f32 %v2583_v0, %v2230_v63  ;;  %v3981_v7 = vpack.c.bf16 %v3022_v3, %v3021_v2 }
 0x1be   : > { %v2585_v6 = vpop.f32.mrf.mxu1  ;;  %v2233_v8 = vpop.f32.mrf.mxu0 }
 0x1bf   : > { %4097 = vst [vmem:[%s4909_s10 + $0xa0] sm:$0xff] %v3981_v7   ;;  %v2943_v10 = vadd.f32 %v4901_v12, %v2584_v4  ;;  %v4987_v7 = vld [vmem:[%s5039_s2] ss:$0 sm:$0xff] }
 0x1c0   : > { %v2586_v9 = vpop.f32.mrf.mxu1  ;;  %v2235_v13 = vpop.f32.mrf.mxu0 }
 0x1c1   : > { %v2587_v11 = vadd.f32 %v2586_v9, %v2233_v8  ;;  %v3023_v18 = vmax.f32 %v2943_v10, 0.0 }
 0x1c2   : > { %v2588_v14 = vpop.f32.mrf.mxu1  ;;  %v2238_v16 = vpop.f32.mrf.mxu0 }
 0x1c3   : > { %v2944_v15 = vadd.f32 %v4901_v12, %v2587_v11 }
 0x1c4   : > { %v2591_v17 = vpop.f32.mrf.mxu1  ;;  %v2240_v21 = vpop.f32.mrf.mxu0 }
 0x1c5   : > { %v3024_v19 = vmax.f32 %v2944_v15, 0.0  ;;  %v2592_v20 = vadd.f32 %v2591_v17, %v2238_v16 }
 0x1c6   : > { %v2593_v22 = vpop.f32.mrf.mxu1  ;;  %v2241_v24 = vpop.f32.mrf.mxu0 }
 0x1c7   : > { %v3986_v23 = vpack.c.bf16 %v3024_v19, %v3023_v18  ;;  %v2945_v26 = vadd.f32 %v4901_v12, %v2592_v20 }
 0x1c8   : > { %v2594_v25 = vpop.f32.mrf.mxu1  ;;  %v2243_v28 = vpop.f32.mrf.mxu0 }
 0x1c9   : > { %4098 = vst [vmem:[%s4909_s10 + $0xa8] sm:$0xff] %v3986_v23   ;;  %v2595_v27 = vadd.f32 %v2594_v25, %v2241_v24  ;;  %v3025_v32 = vmax.f32 %v2945_v26, 0.0 }
 0x1ca   : > { %v2596_v29 = vpop.f32.mrf.mxu1  ;;  %v2246_v30 = vpop.f32.mrf.mxu0 }
 0x1cb   : > { %v2946_v1 = vadd.f32 %v4901_v12, %v2595_v27 }
 0x1cc   : > { %v2599_v31 = vpop.f32.mrf.mxu1  ;;  %v2248_v35 = vpop.f32.mrf.mxu0 }
 0x1cd   : > { %v3026_v33 = vmax.f32 %v2946_v1, 0.0  ;;  %v2600_v34 = vadd.f32 %v2599_v31, %v2246_v30 }
 0x1ce   : > { %v2601_v36 = vpop.f32.mrf.mxu1  ;;  %v2249_v38 = vpop.f32.mrf.mxu0 }
 0x1cf   : > { %v3991_v37 = vpack.c.bf16 %v3026_v33, %v3025_v32  ;;  %v2947_v40 = vadd.f32 %v4901_v12, %v2600_v34 }
 0x1d0   : > { %v2602_v39 = vpop.f32.mrf.mxu1  ;;  %v2251_v42 = vpop.f32.mrf.mxu0 }
 0x1d1   : > { %4099 = vst [vmem:[%s4909_s10 + $0xb0] sm:$0xff] %v3991_v37   ;;  %v2603_v41 = vadd.f32 %v2602_v39, %v2249_v38  ;;  %v3027_v47 = vmax.f32 %v2947_v40, 0.0 }
 0x1d2   : > { %v2604_v43 = vpop.f32.mrf.mxu1  ;;  %v2254_v45 = vpop.f32.mrf.mxu0 }
 0x1d3   : > { %v2948_v44 = vadd.f32 %v4901_v12, %v2603_v41 }
 0x1d4   : > { %v2607_v46 = vpop.f32.mrf.mxu1  ;;  %v2256_v50 = vpop.f32.mrf.mxu0 }
 0x1d5   : > { %v3028_v48 = vmax.f32 %v2948_v44, 0.0  ;;  %v2608_v49 = vadd.f32 %v2607_v46, %v2254_v45 }
 0x1d6   : > { %v2609_v51 = vpop.f32.mrf.mxu1  ;;  %v2257_v53 = vpop.f32.mrf.mxu0 }
 0x1d7   : > { %v3996_v52 = vpack.c.bf16 %v3028_v48, %v3027_v47  ;;  %v2949_v55 = vadd.f32 %v4901_v12, %v2608_v49 }
 0x1d8   : > { %v2610_v54 = vpop.f32.mrf.mxu1  ;;  %v2259_v57 = vpop.f32.mrf.mxu0 }
 0x1d9   : > { %4100 = vst [vmem:[%s4909_s10 + $0xb8] sm:$0xff] %v3996_v52   ;;  %v2611_v56 = vadd.f32 %v2610_v54, %v2257_v53  ;;  %v3029_v62 = vmax.f32 %v2949_v55, 0.0 }
 0x1da   : > { %v2612_v58 = vpop.f32.mrf.mxu1  ;;  %v2262_v60 = vpop.f32.mrf.mxu0 }
 0x1db   : > { %v2950_v59 = vadd.f32 %v4901_v12, %v2611_v56 }
 0x1dc   : > { %v2615_v61 = vpop.f32.mrf.mxu1  ;;  %v2264_v2 = vpop.f32.mrf.mxu0 }
 0x1dd   : > { %v3030_v63 = vmax.f32 %v2950_v59, 0.0  ;;  %v2616_v0 = vadd.f32 %v2615_v61, %v2262_v60 }
 0x1de   : > { %v2617_v3 = vpop.f32.mrf.mxu1  ;;  %v2265_v5 = vpop.f32.mrf.mxu0 }
 0x1df   : > { %v4001_v4 = vpack.c.bf16 %v3030_v63, %v3029_v62  ;;  %v2951_v8 = vadd.f32 %v4987_v7, %v2616_v0 }
 0x1e0   : > { %v2618_v6 = vpop.f32.mrf.mxu1  ;;  %v2267_v9 = vpop.f32.mrf.mxu0 }
 0x1e1   : > { %4101 = vst [vmem:[%s4909_s10 + $0xc0] sm:$0xff] %v4001_v4   ;;  %v2619_v12 = vadd.f32 %v2618_v6, %v2265_v5  ;;  %v3031_v15 = vmax.f32 %v2951_v8, 0.0 }
 0x1e2   : > { %v2620_v10 = vpop.f32.mrf.mxu1  ;;  %v2270_v13 = vpop.f32.mrf.mxu0 }
 0x1e3   : > { %v2952_v11 = vadd.f32 %v4987_v7, %v2619_v12 }
 0x1e4   : > { %v2623_v14 = vpop.f32.mrf.mxu1  ;;  %v2272_v18 = vpop.f32.mrf.mxu0 }
 0x1e5   : > { %v3032_v16 = vmax.f32 %v2952_v11, 0.0  ;;  %v2624_v17 = vadd.f32 %v2623_v14, %v2270_v13 }
 0x1e6   : > { %v2625_v19 = vpop.f32.mrf.mxu1  ;;  %v2273_v21 = vpop.f32.mrf.mxu0 }
 0x1e7   : > { %v4006_v20 = vpack.c.bf16 %v3032_v16, %v3031_v15  ;;  %v2953_v23 = vadd.f32 %v4987_v7, %v2624_v17 }
 0x1e8   : > { %v2626_v22 = vpop.f32.mrf.mxu1  ;;  %v2275_v25 = vpop.f32.mrf.mxu0 }
 0x1e9   : > { %4102 = vst [vmem:[%s4909_s10 + $0xc8] sm:$0xff] %v4006_v20   ;;  %v2627_v24 = vadd.f32 %v2626_v22, %v2273_v21  ;;  %v3033_v1 = vmax.f32 %v2953_v23, 0.0 }
 0x1ea   : > { %v2628_v26 = vpop.f32.mrf.mxu1  ;;  %v2278_v28 = vpop.f32.mrf.mxu0 }
 0x1eb   : > { %v2954_v27 = vadd.f32 %v4987_v7, %v2627_v24 }
 0x1ec   : > { %v2631_v29 = vpop.f32.mrf.mxu1  ;;  %v2280_v32 = vpop.f32.mrf.mxu0 }
 0x1ed   : > { %v3034_v30 = vmax.f32 %v2954_v27, 0.0  ;;  %v2632_v31 = vadd.f32 %v2631_v29, %v2278_v28 }
 0x1ee   : > { %v2633_v33 = vpop.f32.mrf.mxu1  ;;  %v2281_v35 = vpop.f32.mrf.mxu0 }
 0x1ef   : > { %v4011_v34 = vpack.c.bf16 %v3034_v30, %v3033_v1  ;;  %v2955_v37 = vadd.f32 %v4987_v7, %v2632_v31 }
 0x1f0   : > { %v2634_v36 = vpop.f32.mrf.mxu1  ;;  %v2283_v39 = vpop.f32.mrf.mxu0 }
 0x1f1   : > { %4103 = vst [vmem:[%s4909_s10 + $0xd0] sm:$0xff] %v4011_v34   ;;  %v2635_v38 = vadd.f32 %v2634_v36, %v2281_v35  ;;  %v3035_v44 = vmax.f32 %v2955_v37, 0.0 }
 0x1f2   : > { %v2636_v40 = vpop.f32.mrf.mxu1  ;;  %v2286_v42 = vpop.f32.mrf.mxu0 }
 0x1f3   : > { %v2956_v41 = vadd.f32 %v4987_v7, %v2635_v38 }
 0x1f4   : > { %v2639_v43 = vpop.f32.mrf.mxu1  ;;  %v2288_v47 = vpop.f32.mrf.mxu0 }
 0x1f5   : > { %v3036_v45 = vmax.f32 %v2956_v41, 0.0  ;;  %v2640_v46 = vadd.f32 %v2639_v43, %v2286_v42 }
 0x1f6   : > { %v2641_v48 = vpop.f32.mrf.mxu1  ;;  %v2289_v50 = vpop.f32.mrf.mxu0 }
 0x1f7   : > { %v4016_v49 = vpack.c.bf16 %v3036_v45, %v3035_v44  ;;  %v2957_v52 = vadd.f32 %v4987_v7, %v2640_v46 }
 0x1f8   : > { %v2642_v51 = vpop.f32.mrf.mxu1  ;;  %v2291_v54 = vpop.f32.mrf.mxu0 }
 0x1f9   : > { %4104 = vst [vmem:[%s4909_s10 + $0xd8] sm:$0xff] %v4016_v49   ;;  %v2643_v53 = vadd.f32 %v2642_v51, %v2289_v50  ;;  %v3037_v59 = vmax.f32 %v2957_v52, 0.0 }
 0x1fa   : > { %v2644_v55 = vpop.f32.mrf.mxu1  ;;  %v2294_v57 = vpop.f32.mrf.mxu0 }
 0x1fb   : > { %v2958_v56 = vadd.f32 %v4987_v7, %v2643_v53 }
 0x1fc   : > { %v2647_v58 = vpop.f32.mrf.mxu1  ;;  %v2296_v62 = vpop.f32.mrf.mxu0 }
 0x1fd   : > { %v3038_v60 = vmax.f32 %v2958_v56, 0.0  ;;  %v2648_v61 = vadd.f32 %v2647_v58, %v2294_v57 }
 0x1fe   : > { %v2649_v63 = vpop.f32.mrf.mxu1  ;;  %v2297_v2 = vpop.f32.mrf.mxu0 }
 0x1ff   : > { %v4021_v0 = vpack.c.bf16 %v3038_v60, %v3037_v59  ;;  %v2959_v4 = vadd.f32 %v4987_v7, %v2648_v61 }
 0x200   : > { %v2650_v3 = vpop.f32.mrf.mxu1  ;;  %v2299_v6 = vpop.f32.mrf.mxu0 }
 0x201   : > { %4105 = vst [vmem:[%s4909_s10 + $0xe0] sm:$0xff] %v4021_v0   ;;  %v2651_v5 = vadd.f32 %v2650_v3, %v2297_v2  ;;  %v3039_v11 = vmax.f32 %v2959_v4, 0.0 }
 0x202   : > { %v2652_v8 = vpop.f32.mrf.mxu1  ;;  %v2302_v9 = vpop.f32.mrf.mxu0 }
 0x203   : > { %v2960_v12 = vadd.f32 %v4987_v7, %v2651_v5 }
 0x204   : > { %v2655_v10 = vpop.f32.mrf.mxu1  ;;  %v2304_v15 = vpop.f32.mrf.mxu0 }
 0x205   : > { %v3040_v13 = vmax.f32 %v2960_v12, 0.0  ;;  %v2656_v14 = vadd.f32 %v2655_v10, %v2302_v9 }
 0x206   : > { %v2657_v16 = vpop.f32.mrf.mxu1  ;;  %v2305_v18 = vpop.f32.mrf.mxu0 }
 0x207   : > { %v4026_v17 = vpack.c.bf16 %v3040_v13, %v3039_v11  ;;  %v2961_v20 = vadd.f32 %v4987_v7, %v2656_v14 }
 0x208   : > { %v2658_v19 = vpop.f32.mrf.mxu1  ;;  %v2307_v22 = vpop.f32.mrf.mxu0 }
 0x209   : > { %4106 = vst [vmem:[%s4909_s10 + $0xe8] sm:$0xff] %v4026_v17   ;;  %v2659_v21 = vadd.f32 %v2658_v19, %v2305_v18  ;;  %v3041_v27 = vmax.f32 %v2961_v20, 0.0 }
 0x20a   : > { %v2660_v23 = vpop.f32.mrf.mxu1  ;;  %v2310_v25 = vpop.f32.mrf.mxu0 }
 0x20b   : > { %v2962_v24 = vadd.f32 %v4987_v7, %v2659_v21 }
 0x20c   : > { %v2663_v26 = vpop.f32.mrf.mxu1  ;;  %v2312_v1 = vpop.f32.mrf.mxu0 }
 0x20d   : > { %v3042_v28 = vmax.f32 %v2962_v24, 0.0  ;;  %v2664_v29 = vadd.f32 %v2663_v26, %v2310_v25 }
 0x20e   : > { %v2665_v30 = vpop.f32.mrf.mxu1  ;;  %v2313_v32 = vpop.f32.mrf.mxu0 }
 0x20f   : > { %v4031_v31 = vpack.c.bf16 %v3042_v28, %v3041_v27  ;;  %v2963_v34 = vadd.f32 %v4987_v7, %v2664_v29 }
 0x210   : > { %v2666_v33 = vpop.f32.mrf.mxu1  ;;  %v2315_v36 = vpop.f32.mrf.mxu0 }
 0x211   : > { %4107 = vst [vmem:[%s4909_s10 + $0xf0] sm:$0xff] %v4031_v31   ;;  %v2667_v35 = vadd.f32 %v2666_v33, %v2313_v32  ;;  %v3043_v41 = vmax.f32 %v2963_v34, 0.0 }
 0x212   : > { %v2668_v37 = vpop.f32.mrf.mxu1  ;;  %v2318_v39 = vpop.f32.mrf.mxu0 }
 0x213   : > { %v2964_v38 = vadd.f32 %v4987_v7, %v2667_v35 }
 0x214   : > { %v2671_v40 = vpop.f32.mrf.mxu1  ;;  %v2320_v44 = vpop.f32.mrf.mxu0 }
 0x215   : > { %v3044_v42 = vmax.f32 %v2964_v38, 0.0  ;;  %v2672_v43 = vadd.f32 %v2671_v40, %v2318_v39 }
 0x216   : > { %v2673_v45 = vpop.f32.mrf.mxu1  ;;  %v2321_v47 = vpop.f32.mrf.mxu0 }
 0x217   : > { %v4036_v46 = vpack.c.bf16 %v3044_v42, %v3043_v41  ;;  %v2965_v49 = vadd.f32 %v4987_v7, %v2672_v43 }
 0x218   : > { %v2674_v48 = vpop.f32.mrf.mxu1  ;;  %v2323_v51 = vpop.f32.mrf.mxu0 }
 0x219   : > { %4108 = vst [vmem:[%s4909_s10 + $0xf8] sm:$0xff] %v4036_v46   ;;  %v2675_v50 = vadd.f32 %v2674_v48, %v2321_v47  ;;  %v3045_v56 = vmax.f32 %v2965_v49, 0.0 }
 0x21a   : > { %v2676_v52 = vpop.f32.mrf.mxu1  ;;  %v2326_v54 = vpop.f32.mrf.mxu0 }
 0x21b   : > { %v2966_v53 = vadd.f32 %v4987_v7, %v2675_v50 }
 0x21c   : > { %v2679_v55 = vpop.f32.mrf.mxu1  ;;  %v2328_v59 = vpop.f32.mrf.mxu0 }
 0x21d   : > { %v3046_v57 = vmax.f32 %v2966_v53, 0.0  ;;  %v2680_v58 = vadd.f32 %v2679_v55, %v2326_v54 }
 0x21e   : > { %v2681_v60 = vpop.f32.mrf.mxu1  ;;  %v2329_v62 = vpop.f32.mrf.mxu0 }
 0x21f   : > { %v4041_v61 = vpack.c.bf16 %v3046_v57, %v3045_v56  ;;  %v2967_v0 = vadd.f32 %v4987_v7, %v2680_v58 }
 0x220   : > { %v2682_v63 = vpop.f32.mrf.mxu1  ;;  %v2331_v3 = vpop.f32.mrf.mxu0 }
 0x221   : > { %4109 = vst [vmem:[%s4909_s10 + $0x100] sm:$0xff] %v4041_v61   ;;  %v2683_v2 = vadd.f32 %v2682_v63, %v2329_v62  ;;  %v3047_v12 = vmax.f32 %v2967_v0, 0.0 }
 0x222   : > { %v2684_v4 = vpop.f32.mrf.mxu1  ;;  %v2334_v6 = vpop.f32.mrf.mxu0 }
 0x223   : > { %v2968_v5 = vadd.f32 %v4987_v7, %v2683_v2 }
 0x224   : > { %v2687_v8 = vpop.f32.mrf.mxu1  ;;  %v2336_v11 = vpop.f32.mrf.mxu0 }
 0x225   : > { %v3048_v9 = vmax.f32 %v2968_v5, 0.0  ;;  %v2688_v10 = vadd.f32 %v2687_v8, %v2334_v6 }
 0x226   : > { %v2689_v13 = vpop.f32.mrf.mxu1  ;;  %v2337_v15 = vpop.f32.mrf.mxu0 }
 0x227   : > { %v4046_v14 = vpack.c.bf16 %v3048_v9, %v3047_v12  ;;  %v2969_v17 = vadd.f32 %v4987_v7, %v2688_v10 }
 0x228   : > { %v2690_v16 = vpop.f32.mrf.mxu1  ;;  %v2339_v19 = vpop.f32.mrf.mxu0 }
 0x229   : > { %4110 = vst [vmem:[%s4909_s10 + $0x108] sm:$0xff] %v4046_v14   ;;  %v2691_v18 = vadd.f32 %v2690_v16, %v2337_v15  ;;  %v3049_v24 = vmax.f32 %v2969_v17, 0.0 }
 0x22a   : > { %v2692_v20 = vpop.f32.mrf.mxu1  ;;  %v2342_v22 = vpop.f32.mrf.mxu0 }
 0x22b   : > { %v2970_v21 = vadd.f32 %v4987_v7, %v2691_v18 }
 0x22c   : > { %v2695_v23 = vpop.f32.mrf.mxu1  ;;  %v2344_v27 = vpop.f32.mrf.mxu0 }
 0x22d   : > { %v3050_v25 = vmax.f32 %v2970_v21, 0.0  ;;  %v2696_v26 = vadd.f32 %v2695_v23, %v2342_v22 }
 0x22e   : > { %v2697_v28 = vpop.f32.mrf.mxu1  ;;  %v2345_v1 = vpop.f32.mrf.mxu0 }
 0x22f   : > { %v4051_v29 = vpack.c.bf16 %v3050_v25, %v3049_v24  ;;  %v2971_v31 = vadd.f32 %v4987_v7, %v2696_v26 }
 0x230   : > { %v2698_v30 = vpop.f32.mrf.mxu1  ;;  %v2347_v33 = vpop.f32.mrf.mxu0 }
 0x231   : > { %4111 = vst [vmem:[%s4909_s10 + $0x110] sm:$0xff] %v4051_v29   ;;  %v2699_v32 = vadd.f32 %v2698_v30, %v2345_v1  ;;  %v3051_v38 = vmax.f32 %v2971_v31, 0.0 }
 0x232   : > { %v2700_v34 = vpop.f32.mrf.mxu1  ;;  %v2350_v36 = vpop.f32.mrf.mxu0 }
 0x233   : > { %v2972_v35 = vadd.f32 %v4987_v7, %v2699_v32 }
 0x234   : > { %v2703_v37 = vpop.f32.mrf.mxu1  ;;  %v2352_v41 = vpop.f32.mrf.mxu0 }
 0x235   : > { %v3052_v39 = vmax.f32 %v2972_v35, 0.0  ;;  %v2704_v40 = vadd.f32 %v2703_v37, %v2350_v36 }
 0x236   : > { %v2705_v42 = vpop.f32.mrf.mxu1  ;;  %v2353_v44 = vpop.f32.mrf.mxu0 }
 0x237   : > { %v4056_v43 = vpack.c.bf16 %v3052_v39, %v3051_v38  ;;  %v2973_v46 = vadd.f32 %v4987_v7, %v2704_v40 }
 0x238   : > { %v2706_v45 = vpop.f32.mrf.mxu1  ;;  %v2355_v48 = vpop.f32.mrf.mxu0 }
 0x239   : > { %4112 = vst [vmem:[%s4909_s10 + $0x118] sm:$0xff] %v4056_v43   ;;  %v2707_v47 = vadd.f32 %v2706_v45, %v2353_v44  ;;  %v3053_v53 = vmax.f32 %v2973_v46, 0.0 }
 0x23a   : > { %v2708_v49 = vpop.f32.mrf.mxu1  ;;  %v2358_v51 = vpop.f32.mrf.mxu0 }
 0x23b   : > { %v2974_v50 = vadd.f32 %v4987_v7, %v2707_v47 }
 0x23c   : > { %v2711_v52 = vpop.f32.mrf.mxu1  ;;  %v2360_v56 = vpop.f32.mrf.mxu0 }
 0x23d   : > { %v3054_v54 = vmax.f32 %v2974_v50, 0.0  ;;  %v2712_v55 = vadd.f32 %v2711_v52, %v2358_v51 }
 0x23e   : > { %v2713_v57 = vpop.f32.mrf.mxu1  ;;  %v2361_v59 = vpop.f32.mrf.mxu0 }
 0x23f   : > { %v4061_v58 = vpack.c.bf16 %v3054_v54, %v3053_v53  ;;  %v2975_v61 = vadd.f32 %v4987_v7, %v2712_v55 }
 0x240   : > { %v2714_v60 = vpop.f32.mrf.mxu1  ;;  %v2363_v63 = vpop.f32.mrf.mxu0 }
 0x241   : > { %4113 = vst [vmem:[%s4909_s10 + $0x120] sm:$0xff] %v4061_v58   ;;  %v2715_v62 = vadd.f32 %v2714_v60, %v2361_v59  ;;  %v3055_v5 = vmax.f32 %v2975_v61, 0.0 }
 0x242   : > { %v2716_v0 = vpop.f32.mrf.mxu1  ;;  %v2366_v3 = vpop.f32.mrf.mxu0 }
 0x243   : > { %v2976_v2 = vadd.f32 %v4987_v7, %v2715_v62 }
 0x244   : > { %v2719_v4 = vpop.f32.mrf.mxu1  ;;  %v2368_v12 = vpop.f32.mrf.mxu0 }
 0x245   : > { %v3056_v6 = vmax.f32 %v2976_v2, 0.0  ;;  %v2720_v8 = vadd.f32 %v2719_v4, %v2366_v3 }
 0x246   : > { %v2721_v9 = vpop.f32.mrf.mxu1  ;;  %v2369_v11 = vpop.f32.mrf.mxu0 }
 0x247   : > { %v4066_v10 = vpack.c.bf16 %v3056_v6, %v3055_v5  ;;  %v2977_v14 = vadd.f32 %v4987_v7, %v2720_v8 }
 0x248   : > { %v2722_v13 = vpop.f32.mrf.mxu1  ;;  %v2371_v16 = vpop.f32.mrf.mxu0 }
 0x249   : > { %4114 = vst [vmem:[%s4909_s10 + $0x128] sm:$0xff] %v4066_v10   ;;  %v2723_v15 = vadd.f32 %v2722_v13, %v2369_v11  ;;  %v3057_v21 = vmax.f32 %v2977_v14, 0.0 }
 0x24a   : > { %v2724_v17 = vpop.f32.mrf.mxu1  ;;  %v2374_v19 = vpop.f32.mrf.mxu0 }
 0x24b   : > { %v2978_v18 = vadd.f32 %v4987_v7, %v2723_v15 }
 0x24c   : > { %v2727_v20 = vpop.f32.mrf.mxu1  ;;  %v2376_v24 = vpop.f32.mrf.mxu0 }
 0x24d   : > { %v3058_v22 = vmax.f32 %v2978_v18, 0.0  ;;  %v2728_v23 = vadd.f32 %v2727_v20, %v2374_v19 }
 0x24e   : > { %v2729_v25 = vpop.f32.mrf.mxu1  ;;  %v2377_v27 = vpop.f32.mrf.mxu0 }
 0x24f   : > { %v4071_v26 = vpack.c.bf16 %v3058_v22, %v3057_v21  ;;  %v2979_v29 = vadd.f32 %v4987_v7, %v2728_v23 }
 0x250   : > { %v2730_v28 = vpop.f32.mrf.mxu1  ;;  %v2379_v30 = vpop.f32.mrf.mxu0 }
 0x251   : > { %4115 = vst [vmem:[%s4909_s10 + $0x130] sm:$0xff] %v4071_v26   ;;  %v2731_v1 = vadd.f32 %v2730_v28, %v2377_v27  ;;  %v3059_v33 = vmax.f32 %v2979_v29, 0.0 }
 0x252   : > { %v2732_v31 = vpop.f32.mrf.mxu1 }
 0x253   : > { %v2980_v32 = vadd.f32 %v4987_v7, %v2731_v1 }
 0x255   : > { %v3060_v34 = vmax.f32 %v2980_v32, 0.0 }
 0x257   : > { %v4076_v35 = vpack.c.bf16 %v3060_v34, %v3059_v33 }
 0x259   : > { %4116 = vst [vmem:[%s4909_s10 + $0x138] sm:$0xff] %v4076_v35  }
 0x25a PF: > { %s13_s12 = sadd.s32 1, %s4407_s12  }
 0x25b   : > { %p10_p4 = scmp.ge.s32.totalorder %s13_s12, 4  }
 0x25d   :  { %12 = sbr.rel (!%p10_p4) target bundleno = 1 (0x1), region = 62 }

// kernel: cnnbase_forward.5
= control target key start
LH: loop header
LB: loop body
LE: loop exit
PB: predicated region body
PF: predicated region fallthrough
CT: control target
= control target key end

     0   :  { %s5263_s12 = smov 0   ;;  %s6589_s0 = inlined_call_operand.vmem [shape: bf16[2,320,512], index: 0, kind: input, shape index: {}]   ;;  %s6590_s1 = inlined_call_operand.vmem [shape: bf16[2048,256], index: 1, kind: input, shape index: {}]   ;;  %s6591_s2 = inlined_call_operand.vmem [shape: f32[1,256], index: 2, kind: input, shape index: {}]   ;;  %s6592_s3 = inlined_call_operand.vmem [shape: bf16[2,144,256], index: 3, kind: output, shape index: {}]  }
   0x1 LB: > { %s4180_s13 = sadd.s32 4294967295, %s5241_s12   ;;  %p4184_p0 = scmp.ge.s32.totalorder %s5241_s12, 1  ;;  %s5241_s12 = sphi %s5263_s12, %s13_s12  }
   0x2   : > { %p137_p1 = scmp.lt.s32.totalorder %s5241_s12, 3 }
   0x4   : > { %p138_p2 = pnand %p4184_p0, %p137_p1 }
   0x5   : > { %p161_p3 = scmp.lt.s32.totalorder (!%p138_p2), %s4180_s13, 1 }
   0x6   : > { %141 = sbr.rel (%p138_p2) target bundleno = 566 (0x236), region = 32 }
   0xb   : > { %v4635_v0 = vld [vmem:[%s6590_s1 + $0x74] ss:$8 sps:$4 sm:$0xff]   ;;  %v4639_v2 = vld [vmem:[%s6590_s1 + $0x70] ss:$8 sps:$4 sm:$0xff]   ;;  %v4641_v4 = vld [vmem:[%s6590_s1 + $0x64] ss:$8 sps:$4 sm:$0xff]  }
   0xc   : > { %v4637_v1 = vld [vmem:[%s6590_s1 + $0x174] ss:$8 sps:$4 sm:$0xff]   ;;  %2859 = vmatprep.subr.bf16.mxu0 %v4635_v0  ;;  %v4640_v3 = vld [vmem:[%s6590_s1 + $0x170] ss:$8 sps:$4 sm:$0xff]   ;;  %v4643_v5 = vld [vmem:[%s6590_s1 + $0x164] ss:$8 sps:$4 sm:$0xff]  }
   0xd   : > { %2982 = vmatprep.subr.bf16.mxu1 %v4637_v1  ;;  %2860 = vmatpush1.bf16.msra.mxu0 %v4639_v2  ;;  %v4645_v6 = vld [vmem:[%s6590_s1 + $0x60] ss:$8 sps:$4 sm:$0xff]   ;;  %v4647_v8 = vld [vmem:[%s6590_s1 + $0x54] ss:$8 sps:$4 sm:$0xff]   ;;  %v4651_v10 = vld [vmem:[%s6590_s1 + $0x50] ss:$8 sps:$4 sm:$0xff]  }
   0xe   : > { %2983 = vmatpush1.bf16.msra.mxu1 %v4640_v3  ;;  %2861 = vmatprep.subr.bf16.mxu0 %v4641_v4  ;;  %v4646_v7 = vld [vmem:[%s6590_s1 + $0x160] ss:$8 sps:$4 sm:$0xff]   ;;  %v4649_v9 = vld [vmem:[%s6590_s1 + $0x154] ss:$8 sps:$4 sm:$0xff]   ;;  %v4652_v11 = vld [vmem:[%s6590_s1 + $0x150] ss:$8 sps:$4 sm:$0xff]  }
   0xf   : > { %2984 = vmatprep.subr.bf16.mxu1 %v4643_v5  ;;  %v4653_v12 = vld [vmem:[%s6590_s1 + $0x44] ss:$8 sps:$4 sm:$0xff]   ;;  %v4657_v14 = vld [vmem:[%s6590_s1 + $0x40] ss:$8 sps:$4 sm:$0xff]   ;;  %v4659_v16 = vld [vmem:[%s6590_s1 + $0x34] ss:$8 sps:$4 sm:$0xff]  }
  0x10   : > { %v4655_v13 = vld [vmem:[%s6590_s1 + $0x144] ss:$8 sps:$4 sm:$0xff]   ;;  %v4658_v15 = vld [vmem:[%s6590_s1 + $0x140] ss:$8 sps:$4 sm:$0xff]   ;;  %v4661_v17 = vld [vmem:[%s6590_s1 + $0x134] ss:$8 sps:$4 sm:$0xff]  }
  0x11   : > { %2862 = vmatpush1.bf16.msra.mxu0 %v4645_v6  ;;  %v4663_v18 = vld [vmem:[%s6590_s1 + $0x30] ss:$8 sps:$4 sm:$0xff]   ;;  %v4665_v20 = vld [vmem:[%s6590_s1 + $0x24] ss:$8 sps:$4 sm:$0xff]   ;;  %v4669_v22 = vld [vmem:[%s6590_s1 + $0x20] ss:$8 sps:$4 sm:$0xff]  }
  0x12   : > { %2985 = vmatpush1.bf16.msra.mxu1 %v4646_v7  ;;  %2863 = vmatprep.subr.bf16.mxu0 %v4647_v8  ;;  %v4664_v19 = vld [vmem:[%s6590_s1 + $0x130] ss:$8 sps:$4 sm:$0xff]   ;;  %v4667_v21 = vld [vmem:[%s6590_s1 + $0x124] ss:$8 sps:$4 sm:$0xff]   ;;  %v4670_v23 = vld [vmem:[%s6590_s1 + $0x120] ss:$8 sps:$4 sm:$0xff]  }
  0x13   : > { %2986 = vmatprep.subr.bf16.mxu1 %v4649_v9  ;;  %v4671_v24 = vld [vmem:[%s6590_s1 + $0x14] ss:$8 sps:$4 sm:$0xff]   ;;  %v4675_v26 = vld [vmem:[%s6590_s1 + $0x10] ss:$8 sps:$4 sm:$0xff]   ;;  %v4677_v28 = vld [vmem:[%s6590_s1 + $0x4] ss:$8 sps:$4 sm:$0xff]  }
  0x14   : > { %v4673_v25 = vld [vmem:[%s6590_s1 + $0x114] ss:$8 sps:$4 sm:$0xff]   ;;  %v4676_v27 = vld [vmem:[%s6590_s1 + $0x110] ss:$8 sps:$4 sm:$0xff]   ;;  %v4679_v29 = vld [vmem:[%s6590_s1 + $0x104] ss:$8 sps:$4 sm:$0xff]  }
  0x15   : > { %2864 = vmatpush1.bf16.msra.mxu0 %v4651_v10  ;;  %v4681_v30 = vld [vmem:[%s6590_s1] ss:$8 sps:$4 sm:$0xff]   ;;  %v4683_v32 = vld [vmem:[%s6590_s1 + $0xf4] ss:$8 sps:$4 sm:$0xff]   ;;  %v4687_v34 = vld [vmem:[%s6590_s1 + $0xf0] ss:$8 sps:$4 sm:$0xff]  }
  0x16   : > { %2987 = vmatpush1.bf16.msra.mxu1 %v4652_v11  ;;  %2865 = vmatprep.subr.bf16.mxu0 %v4653_v12  ;;  %v4682_v31 = vld [vmem:[%s6590_s1 + $0x100] ss:$8 sps:$4 sm:$0xff]   ;;  %v4685_v33 = vld [vmem:[%s6590_s1 + $0x1f4] ss:$8 sps:$4 sm:$0xff]   ;;  %v4688_v35 = vld [vmem:[%s6590_s1 + $0x1f0] ss:$8 sps:$4 sm:$0xff]  }
  0x17   : > { %2988 = vmatprep.subr.bf16.mxu1 %v4655_v13  ;;  %v4689_v36 = vld [vmem:[%s6590_s1 + $0xe4] ss:$8 sps:$4 sm:$0xff]   ;;  %s6594_s13 = smov (!%p161_p3, %s4180_s13), 1  ;;  %v4693_v38 = vld [vmem:[%s6590_s1 + $0xe0] ss:$8 sps:$4 sm:$0xff]  }
  0x18   : > { %v4691_v37 = vld [vmem:[%s6590_s1 + $0x1e4] ss:$8 sps:$4 sm:$0xff]   ;;  %v4694_v39 = vld [vmem:[%s6590_s1 + $0x1e0] ss:$8 sps:$4 sm:$0xff]   ;;  %v4695_v40 = vld [vmem:[%s6590_s1 + $0xd4] ss:$8 sps:$4 sm:$0xff]  }
  0x19   : > { %2866 = vmatpush1.bf16.msra.mxu0 %v4657_v14  ;;  %s4625_s21 = smul.u32 640, %s6594_s13  ;;  %v4697_v41 = vld [vmem:[%s6590_s1 + $0x1d4] ss:$8 sps:$4 sm:$0xff]   ;;  %v4699_v42 = vld [vmem:[%s6590_s1 + $0xd0] ss:$8 sps:$4 sm:$0xff]  }
  0x1a   : > { %2989 = vmatpush1.bf16.msra.mxu1 %v4658_v15  ;;  %2867 = vmatprep.subr.bf16.mxu0 %v4659_v16  ;;  %v4700_v43 = vld [vmem:[%s6590_s1 + $0x1d0] ss:$8 sps:$4 sm:$0xff]   ;;  %v4701_v44 = vld [vmem:[%s6590_s1 + $0xc4] ss:$8 sps:$4 sm:$0xff]   ;;  %v4705_v46 = vld [vmem:[%s6590_s1 + $0xc0] ss:$8 sps:$4 sm:$0xff]  }
  0x1b   : > { %2990 = vmatprep.subr.bf16.mxu1 %v4661_v17  ;;  %s5416_s5 = scalar_lea.vmem %s6589_s0, %s4625_s21  ;;  %v4703_v45 = vld [vmem:[%s6590_s1 + $0x1c4] ss:$8 sps:$4 sm:$0xff]   ;;  %v4706_v47 = vld [vmem:[%s6590_s1 + $0x1c0] ss:$8 sps:$4 sm:$0xff]   ;;  %v4707_v48 = vld [vmem:[%s6590_s1 + $0xb4] ss:$8 sps:$4 sm:$0xff]  }
  0x1c   : > { %v4733_v49 = vld [vmem:[%s5416_s5 + $0x4] ss:$16 sps:$4 sm:$0xff]   ;;  %v4736_v51 = vld [vmem:[%s5416_s5 + $0xc] ss:$16 sps:$4 sm:$0xff]   ;;  %v4711_v52 = vld [vmem:[%s6590_s1 + $0xb0] ss:$8 sps:$4 sm:$0xff]  }
  0x1d   : > { %2868 = vmatpush1.bf16.msra.mxu0 %v4663_v18  ;;  %v4709_v50 = vld [vmem:[%s6590_s1 + $0x1b4] ss:$8 sps:$4 sm:$0xff]   ;;  %2891 = vmatprep.mubr.bf16.mxu0 %v4733_v49  ;;  %v4712_v53 = vld [vmem:[%s6590_s1 + $0x1b0] ss:$8 sps:$4 sm:$0xff]   ;;  %v4713_v54 = vld [vmem:[%s6590_s1 + $0xa4] ss:$8 sps:$4 sm:$0xff]  }
  0x1e   : > { %2991 = vmatpush1.bf16.msra.mxu1 %v4664_v19  ;;  %2869 = vmatprep.subr.bf16.mxu0 %v4665_v20  ;;  %v4715_v55 = vld [vmem:[%s6590_s1 + $0x1a4] ss:$8 sps:$4 sm:$0xff]   ;;  %v4717_v56 = vld [vmem:[%s6590_s1 + $0xa0] ss:$8 sps:$4 sm:$0xff]   ;;  %v4719_v58 = vld [vmem:[%s6590_s1 + $0x94] ss:$8 sps:$4 sm:$0xff]  }
  0x1f   : > { %2992 = vmatprep.subr.bf16.mxu1 %v4667_v21  ;;  %3014 = vmatprep.mubr.bf16.mxu1 %v4736_v51  ;;  %v4718_v57 = vld [vmem:[%s6590_s1 + $0x1a0] ss:$8 sps:$4 sm:$0xff]   ;;  %v4721_v59 = vld [vmem:[%s6590_s1 + $0x194] ss:$8 sps:$4 sm:$0xff]   ;;  %v4723_v60 = vld [vmem:[%s6590_s1 + $0x90] ss:$8 sps:$4 sm:$0xff]  }
  0x20   : > { %v4724_v61 = vld [vmem:[%s6590_s1 + $0x190] ss:$8 sps:$4 sm:$0xff]   ;;  %v4725_v62 = vld [vmem:[%s6590_s1 + $0x84] ss:$8 sps:$4 sm:$0xff]   ;;  %v4729_v0 = vld [vmem:[%s6590_s1 + $0x80] ss:$8 sps:$4 sm:$0xff]  }
  0x21   : > { %2870 = vmatpush1.bf16.msra.mxu0 %v4669_v22  ;;  %v4727_v63 = vld [vmem:[%s6590_s1 + $0x184] ss:$8 sps:$4 sm:$0xff]   ;;  %v4730_v1 = vld [vmem:[%s6590_s1 + $0x180] ss:$8 sps:$4 sm:$0xff]   ;;  %v4739_v2 = vld [vmem:[%s6590_s1 + $0x274] ss:$8 sps:$4 sm:$0xff]  }
  0x22   : > { %2993 = vmatpush1.bf16.msra.mxu1 %v4670_v23  ;;  %2871 = vmatprep.subr.bf16.mxu0 %v4671_v24  ;;  %v4731_v3 = vld [vmem:[%s5416_s5] ss:$16 sps:$4 sm:$0xff]   ;;  %v4742_v4 = vld [vmem:[%s6590_s1 + $0x374] ss:$8 sps:$4 sm:$0xff]   ;;  %v4734_v5 = vld [vmem:[%s5416_s5 + $0x8] ss:$16 sps:$4 sm:$0xff]  }
  0x23   : > { %2994 = vmatprep.subr.bf16.mxu1 %v4673_v25  ;;  %v4737_v6 = vld [vmem:[%s6590_s1 + $0x270] ss:$8 sps:$4 sm:$0xff]   ;;  %v4745_v8 = vld [vmem:[%s6590_s1 + $0x264] ss:$8 sps:$4 sm:$0xff]   ;;  %v4743_v12 = vld [vmem:[%s6590_s1 + $0x260] ss:$8 sps:$4 sm:$0xff]  }
  0x24   : > { %v4740_v7 = vld [vmem:[%s6590_s1 + $0x370] ss:$8 sps:$4 sm:$0xff]   ;;  %v4746_v9 = vld [vmem:[%s5416_s5 + $0x24] ss:$16 sps:$4 sm:$0xff]   ;;  %v4748_v10 = vld [vmem:[%s5416_s5 + $0x2c] ss:$16 sps:$4 sm:$0xff]  }
  0x25   : > { %2872 = vmatpush1.bf16.msra.mxu0 %v4675_v26  ;;  %v4752_v11 = vld [vmem:[%s6590_s1 + $0x364] ss:$8 sps:$4 sm:$0xff]   ;;  %v4750_v13 = vld [vmem:[%s6590_s1 + $0x360] ss:$8 sps:$4 sm:$0xff]   ;;  %v4757_v14 = vld [vmem:[%s6590_s1 + $0x254] ss:$8 sps:$4 sm:$0xff]  }
  0x26   : > { %2995 = vmatpush1.bf16.msra.mxu1 %v4676_v27  ;;  %2873 = vmatprep.subr.bf16.mxu0 %v4677_v28  ;;  %v4760_v15 = vld [vmem:[%s6590_s1 + $0x354] ss:$8 sps:$4 sm:$0xff]   ;;  %v4753_v16 = vld [vmem:[%s5416_s5 + $0x20] ss:$16 sps:$4 sm:$0xff]   ;;  %v4754_v17 = vld [vmem:[%s5416_s5 + $0x28] ss:$16 sps:$4 sm:$0xff]  }
  0x27   : > { %2996 = vmatprep.subr.bf16.mxu1 %v4679_v29  ;;  %v4755_v18 = vld [vmem:[%s6590_s1 + $0x250] ss:$8 sps:$4 sm:$0xff]   ;;  %v4763_v20 = vld [vmem:[%s6590_s1 + $0x244] ss:$8 sps:$4 sm:$0xff]   ;;  %v4761_v24 = vld [vmem:[%s6590_s1 + $0x240] ss:$8 sps:$4 sm:$0xff]  }
  0x28   : > { %v4758_v19 = vld [vmem:[%s6590_s1 + $0x350] ss:$8 sps:$4 sm:$0xff]   ;;  %v4764_v21 = vld [vmem:[%s5416_s5 + $0x44] ss:$16 sps:$4 sm:$0xff]   ;;  %v4766_v22 = vld [vmem:[%s5416_s5 + $0x4c] ss:$16 sps:$4 sm:$0xff]  }
  0x29   : > { %2874 = vmatpush1.bf16.msra.mxu0 %v4681_v30  ;;  %v4772_v23 = vld [vmem:[%s6590_s1 + $0x344] ss:$8 sps:$4 sm:$0xff]   ;;  %v4770_v25 = vld [vmem:[%s6590_s1 + $0x340] ss:$8 sps:$4 sm:$0xff]   ;;  %v4775_v26 = vld [vmem:[%s6590_s1 + $0x234] ss:$8 sps:$4 sm:$0xff]  }
  0x2a   : > { %2997 = vmatpush1.bf16.msra.mxu1 %v4682_v31  ;;  %2875 = vmatprep.subr.bf16.mxu0 %v4683_v32  ;;  %v4778_v27 = vld [vmem:[%s6590_s1 + $0x334] ss:$8 sps:$4 sm:$0xff]   ;;  %v4768_v28 = vld [vmem:[%s5416_s5 + $0x40] ss:$16 sps:$4 sm:$0xff]   ;;  %v4769_v29 = vld [vmem:[%s5416_s5 + $0x48] ss:$16 sps:$4 sm:$0xff]  }
  0x2b   : > { %2998 = vmatprep.subr.bf16.mxu1 %v4685_v33  ;;  %v4773_v30 = vld [vmem:[%s6590_s1 + $0x230] ss:$8 sps:$4 sm:$0xff]   ;;  %v4779_v32 = vld [vmem:[%s5416_s5 + $0x64] ss:$16 sps:$4 sm:$0xff]   ;;  %v4781_v33 = vld [vmem:[%s5416_s5 + $0x6c] ss:$16 sps:$4 sm:$0xff]  }
  0x2c   : > { %v4776_v31 = vld [vmem:[%s6590_s1 + $0x330] ss:$8 sps:$4 sm:$0xff]   ;;  %v4806_v49 = vld [vmem:[%s6590_s1 + $0x300] ss:$8 sps:$4 sm:$0xff]   ;;  %v4814_v51 = vld [vmem:[%s6590_s1 + $0x3f4] ss:$8 sps:$4 sm:$0xff]  }
  0x2d   : > { %2876 = vmatpush2.bf16.msra.mxu0 %v4687_v34  ;;  %v4785_v34 = vld [vmem:[%s6590_s1 + $0x224] ss:$8 sps:$4 sm:$0xff]   ;;  %s4626_s23 = smul.u32 144, %s6594_s13 }
  0x2e   : > { %2999 = vmatpush2.bf16.msra.mxu1 %v4688_v35  ;;  %2877 = vmatprep.subr.bf16.mxu0 %v4689_v36  ;;  %v4790_v35 = vld [vmem:[%s6590_s1 + $0x324] ss:$8 sps:$4 sm:$0xff]   ;;  %v4783_v36 = vld [vmem:[%s6590_s1 + $0x220] ss:$8 sps:$4 sm:$0xff]  }
  0x2f   : > { %3000 = vmatprep.subr.bf16.mxu1 %v4691_v37  ;;  %v4788_v37 = vld [vmem:[%s6590_s1 + $0x320] ss:$8 sps:$4 sm:$0xff]   ;;  %s6502_s13 = scalar_lea.vmem %s6592_s3, %s4626_s23 }
  0x31   : > { %2878 = vmatpush2.bf16.msra.mxu0 %v4693_v38  ;;  %v4793_v38 = vld [vmem:[%s6590_s1 + $0x214] ss:$8 sps:$4 sm:$0xff]  }
  0x32   : > { %3001 = vmatpush2.bf16.msra.mxu1 %v4694_v39  ;;  %2879 = vmatprep.subr.bf16.mxu0 %v4695_v40  ;;  %v4796_v39 = vld [vmem:[%s6590_s1 + $0x314] ss:$8 sps:$4 sm:$0xff]   ;;  %v4786_v40 = vld [vmem:[%s5416_s5 + $0x60] ss:$16 sps:$4 sm:$0xff]  }
  0x33   : > { %3002 = vmatprep.subr.bf16.mxu1 %v4697_v41  ;;  %v4787_v41 = vld [vmem:[%s5416_s5 + $0x68] ss:$16 sps:$4 sm:$0xff]  }
  0x35   : > { %2880 = vmatpush2.bf16.msra.mxu0 %v4699_v42  ;;  %v4791_v42 = vld [vmem:[%s6590_s1 + $0x210] ss:$8 sps:$4 sm:$0xff]  }
  0x36   : > { %3003 = vmatpush2.bf16.msra.mxu1 %v4700_v43  ;;  %2881 = vmatprep.subr.bf16.mxu0 %v4701_v44  ;;  %v4794_v43 = vld [vmem:[%s6590_s1 + $0x310] ss:$8 sps:$4 sm:$0xff]   ;;  %v4797_v44 = vld [vmem:[%s5416_s5 + $0x84] ss:$16 sps:$4 sm:$0xff]  }
  0x37   : > { %3004 = vmatprep.subr.bf16.mxu1 %v4703_v45  ;;  %v4799_v45 = vld [vmem:[%s5416_s5 + $0x8c] ss:$16 sps:$4 sm:$0xff]  }
  0x39   : > { %2882 = vmatpush2.bf16.msra.mxu0 %v4705_v46  ;;  %v4805_v46 = vld [vmem:[%s6590_s1 + $0x204] ss:$8 sps:$4 sm:$0xff]  }
  0x3a   : > { %3005 = vmatpush2.bf16.msra.mxu1 %v4706_v47  ;;  %2883 = vmatprep.subr.bf16.mxu0 %v4707_v48  ;;  %v4808_v47 = vld [vmem:[%s6590_s1 + $0x304] ss:$8 sps:$4 sm:$0xff]   ;;  %v4803_v48 = vld [vmem:[%s6590_s1 + $0x200] ss:$8 sps:$4 sm:$0xff]  }
  0x3b   : > { %3006 = vmatprep.subr.bf16.mxu1 %v4709_v50  ;;  %v4811_v50 = vld [vmem:[%s6590_s1 + $0x2f4] ss:$8 sps:$4 sm:$0xff]  }
  0x3d   : > { %2884 = vmatpush2.bf16.msra.mxu0 %v4711_v52  ;;  %v4801_v52 = vld [vmem:[%s5416_s5 + $0x80] ss:$16 sps:$4 sm:$0xff]  }
  0x3e   : > { %3007 = vmatpush2.bf16.msra.mxu1 %v4712_v53  ;;  %2885 = vmatprep.subr.bf16.mxu0 %v4713_v54  ;;  %v4802_v53 = vld [vmem:[%s5416_s5 + $0x88] ss:$16 sps:$4 sm:$0xff]  }
  0x3f   : > { %3008 = vmatprep.subr.bf16.mxu1 %v4715_v55  ;;  %v4809_v54 = vld [vmem:[%s6590_s1 + $0x2f0] ss:$8 sps:$4 sm:$0xff]  }
  0x40   : > { %v4812_v55 = vld [vmem:[%s6590_s1 + $0x3f0] ss:$8 sps:$4 sm:$0xff]  }
  0x41   : > { %2886 = vmatpush2.bf16.msra.mxu0 %v4717_v56  ;;  %v4815_v56 = vld [vmem:[%s5416_s5 + $0xa4] ss:$16 sps:$4 sm:$0xff]  }
  0x42   : > { %3009 = vmatpush2.bf16.msra.mxu1 %v4718_v57  ;;  %2887 = vmatprep.subr.bf16.mxu0 %v4719_v58  ;;  %v4817_v57 = vld [vmem:[%s5416_s5 + $0xac] ss:$16 sps:$4 sm:$0xff]  }
  0x43   : > { %3010 = vmatprep.subr.bf16.mxu1 %v4721_v59  ;;  %v4823_v58 = vld [vmem:[%s6590_s1 + $0x2e4] ss:$8 sps:$4 sm:$0xff]  }
  0x44   : > { %v4826_v59 = vld [vmem:[%s6590_s1 + $0x3e4] ss:$8 sps:$4 sm:$0xff]  }
  0x45   : > { %2888 = vmatpush2.bf16.msra.mxu0 %v4723_v60  ;;  %v4821_v60 = vld [vmem:[%s6590_s1 + $0x2e0] ss:$8 sps:$4 sm:$0xff]  }
  0x46   : > { %3011 = vmatpush2.bf16.msra.mxu1 %v4724_v61  ;;  %2889 = vmatprep.subr.bf16.mxu0 %v4725_v62  ;;  %v4824_v61 = vld [vmem:[%s6590_s1 + $0x3e0] ss:$8 sps:$4 sm:$0xff]  }
  0x47   : > { %3012 = vmatprep.subr.bf16.mxu1 %v4727_v63  ;;  %v4819_v62 = vld [vmem:[%s5416_s5 + $0xa0] ss:$16 sps:$4 sm:$0xff]   ;;  %v4829_v63 = vld [vmem:[%s6590_s1 + $0x2d4] ss:$8 sps:$4 sm:$0xff]  }
  0x49   : > { %2890 = vmatpush2.bf16.msra.mxu0 %v4729_v0  ;;  %v4836_v0 = vld [vmem:[%s6590_s1 + $0x3d4] ss:$8 sps:$4 sm:$0xff]  }
  0x4a   : > { %3013 = vmatpush2.bf16.msra.mxu1 %v4730_v1  ;;  %3105 = vmatprep.subr.bf16.mxu0 %v4739_v2  ;;  %v4820_v1 = vld [vmem:[%s5416_s5 + $0xa8] ss:$16 sps:$4 sm:$0xff]  }
  0x4b   : > { %3228 = vmatprep.subr.bf16.mxu1 %v4742_v4  ;;  %v4827_v2 = vld [vmem:[%s6590_s1 + $0x2d0] ss:$8 sps:$4 sm:$0xff]   ;;  %v4832_v4 = vld [vmem:[%s5416_s5 + $0xcc] ss:$16 sps:$4 sm:$0xff]  }
  0x4c   : > { %2892 = vmatmul.mubr.bf16.vlgmr.msra.gmra.mxu0 %v4731_v3  ;;  %v4830_v3 = vld [vmem:[%s5416_s5 + $0xc4] ss:$16 sps:$4 sm:$0xff]  }
  0x4d   : > { %3015 = vmatmul.mubr.bf16.vlgmr.msra.gmra.mxu1 %v4734_v5  ;;  %3106 = vmatpush1.bf16.msra.mxu0 %v4737_v6  ;;  %v4834_v5 = vld [vmem:[%s6590_s1 + $0x3d0] ss:$8 sps:$4 sm:$0xff]   ;;  %v4841_v6 = vld [vmem:[%s6590_s1 + $0x2c4] ss:$8 sps:$4 sm:$0xff]  }
  0x4e   : > { %3229 = vmatpush1.bf16.msra.mxu1 %v4740_v7  ;;  %3107 = vmatprep.subr.bf16.mxu0 %v4745_v8  ;;  %v4844_v7 = vld [vmem:[%s6590_s1 + $0x3c4] ss:$8 sps:$4 sm:$0xff]   ;;  %v4839_v8 = vld [vmem:[%s6590_s1 + $0x2c0] ss:$8 sps:$4 sm:$0xff]  }
  0x4f   : > { %2901 = vmatprep.mubr.bf16.mxu0 %v4746_v9  ;;  %3024 = vmatprep.mubr.bf16.mxu1 %v4748_v10  ;;  %v4842_v9 = vld [vmem:[%s6590_s1 + $0x3c0] ss:$8 sps:$4 sm:$0xff]  }
  0x50   : > { %3230 = vmatprep.subr.bf16.mxu1 %v4752_v11  ;;  %v4837_v10 = vld [vmem:[%s5416_s5 + $0xc0] ss:$16 sps:$4 sm:$0xff]   ;;  %v4847_v11 = vld [vmem:[%s6590_s1 + $0x2b4] ss:$8 sps:$4 sm:$0xff]  }
  0x51   : > { %3108 = vmatpush1.bf16.msra.mxu0 %v4743_v12  ;;  %v4838_v12 = vld [vmem:[%s5416_s5 + $0xc8] ss:$16 sps:$4 sm:$0xff]  }
  0x52   : > { %3231 = vmatpush1.bf16.msra.mxu1 %v4750_v13  ;;  %3109 = vmatprep.subr.bf16.mxu0 %v4757_v14  ;;  %v4856_v13 = vld [vmem:[%s6590_s1 + $0x3b4] ss:$8 sps:$4 sm:$0xff]   ;;  %v4845_v14 = vld [vmem:[%s6590_s1 + $0x2b0] ss:$8 sps:$4 sm:$0xff]  }
  0x53   : > { %3232 = vmatprep.subr.bf16.mxu1 %v4760_v15  ;;  %v4848_v15 = vld [vmem:[%s5416_s5 + $0xe4] ss:$16 sps:$4 sm:$0xff]  }
  0x54   : > { %2902 = vmatmul.mubr.bf16.gmra.mxu0 %v4753_v16  ;;  %v4850_v16 = vld [vmem:[%s5416_s5 + $0xec] ss:$16 sps:$4 sm:$0xff]  }
  0x55   : > { %3025 = vmatmul.mubr.bf16.gmra.mxu1 %v4754_v17  ;;  %3110 = vmatpush1.bf16.msra.mxu0 %v4755_v18  ;;  %v4854_v17 = vld [vmem:[%s6590_s1 + $0x3b0] ss:$8 sps:$4 sm:$0xff]   ;;  %v4859_v18 = vld [vmem:[%s6590_s1 + $0x2a4] ss:$8 sps:$4 sm:$0xff]  }
  0x56   : > { %3233 = vmatpush1.bf16.msra.mxu1 %v4758_v19  ;;  %3111 = vmatprep.subr.bf16.mxu0 %v4763_v20  ;;  %v4862_v19 = vld [vmem:[%s6590_s1 + $0x3a4] ss:$8 sps:$4 sm:$0xff]   ;;  %v4857_v20 = vld [vmem:[%s6590_s1 + $0x2a0] ss:$8 sps:$4 sm:$0xff]  }
  0x57   : > { %2911 = vmatprep.mubr.bf16.mxu0 %v4764_v21  ;;  %3034 = vmatprep.mubr.bf16.mxu1 %v4766_v22  ;;  %v4860_v21 = vld [vmem:[%s6590_s1 + $0x3a0] ss:$8 sps:$4 sm:$0xff]  }
  0x58   : > { %3234 = vmatprep.subr.bf16.mxu1 %v4772_v23  ;;  %v4852_v22 = vld [vmem:[%s5416_s5 + $0xe0] ss:$16 sps:$4 sm:$0xff]   ;;  %v4869_v23 = vld [vmem:[%s6590_s1 + $0x294] ss:$8 sps:$4 sm:$0xff]  }
  0x59   : > { %3112 = vmatpush1.bf16.msra.mxu0 %v4761_v24  ;;  %v4874_v24 = vld [vmem:[%s6590_s1 + $0x394] ss:$8 sps:$4 sm:$0xff]  }
  0x5a   : > { %3235 = vmatpush1.bf16.msra.mxu1 %v4770_v25  ;;  %3113 = vmatprep.subr.bf16.mxu0 %v4775_v26  ;;  %v4853_v25 = vld [vmem:[%s5416_s5 + $0xe8] ss:$16 sps:$4 sm:$0xff]   ;;  %v4863_v26 = vld [vmem:[%s5416_s5 + $0x104] ss:$16 sps:$4 sm:$0xff]  }
  0x5b   : > { %3236 = vmatprep.subr.bf16.mxu1 %v4778_v27  ;;  %v4865_v27 = vld [vmem:[%s5416_s5 + $0x10c] ss:$16 sps:$4 sm:$0xff]  }
  0x5c   : > { %2912 = vmatmul.mubr.bf16.gmra.mxu0 %v4768_v28  ;;  %v4867_v28 = vld [vmem:[%s6590_s1 + $0x290] ss:$8 sps:$4 sm:$0xff]  }
  0x5d   : > { %3035 = vmatmul.mubr.bf16.gmra.mxu1 %v4769_v29  ;;  %3114 = vmatpush1.bf16.msra.mxu0 %v4773_v30  ;;  %v4872_v29 = vld [vmem:[%s6590_s1 + $0x390] ss:$8 sps:$4 sm:$0xff]   ;;  %v4877_v30 = vld [vmem:[%s6590_s1 + $0x284] ss:$8 sps:$4 sm:$0xff]  }
  0x5e   : > { %3237 = vmatpush1.bf16.msra.mxu1 %v4776_v31  ;;  %2921 = vmatprep.mubr.bf16.mxu0 %v4779_v32  ;;  %v4880_v31 = vld [vmem:[%s6590_s1 + $0x384] ss:$8 sps:$4 sm:$0xff]   ;;  %v4875_v32 = vld [vmem:[%s6590_s1 + $0x280] ss:$8 sps:$4 sm:$0xff]  }
  0x5f   : > { %3044 = vmatprep.mubr.bf16.mxu1 %v4781_v33  ;;  %3115 = vmatprep.subr.bf16.mxu0 %v4785_v34  ;;  %v4870_v33 = vld [vmem:[%s5416_s5 + $0x100] ss:$16 sps:$4 sm:$0xff]  }
  0x60   : > { %3238 = vmatprep.subr.bf16.mxu1 %v4790_v35  ;;  %v4878_v34 = vld [vmem:[%s6590_s1 + $0x380] ss:$8 sps:$4 sm:$0xff]   ;;  %v4889_v35 = vld [vmem:[%s6590_s1 + $0x474] ss:$8 sps:$4 sm:$0xff]  }
  0x61   : > { %3116 = vmatpush1.bf16.msra.mxu0 %v4783_v36  ;;  %v4892_v36 = vld [vmem:[%s6590_s1 + $0x574] ss:$8 sps:$4 sm:$0xff]  }
  0x62   : > { %3239 = vmatpush1.bf16.msra.mxu1 %v4788_v37  ;;  %3117 = vmatprep.subr.bf16.mxu0 %v4793_v38  ;;  %v4871_v37 = vld [vmem:[%s5416_s5 + $0x108] ss:$16 sps:$4 sm:$0xff]   ;;  %v4883_v38 = vld [vmem:[%s5416_s5 + $0x144] ss:$16 sps:$4 sm:$0xff]  }
  0x63   : > { %3240 = vmatprep.subr.bf16.mxu1 %v4796_v39  ;;  %v4886_v39 = vld [vmem:[%s5416_s5 + $0x14c] ss:$16 sps:$4 sm:$0xff]  }
  0x64   : > { %2922 = vmatmul.mubr.bf16.gmra.mxu0 %v4786_v40  ;;  %v4881_v40 = vld [vmem:[%s5416_s5 + $0x140] ss:$16 sps:$4 sm:$0xff]  }
  0x65   : > { %3045 = vmatmul.mubr.bf16.gmra.mxu1 %v4787_v41  ;;  %3118 = vmatpush1.bf16.msra.mxu0 %v4791_v42  ;;  %v4884_v41 = vld [vmem:[%s5416_s5 + $0x148] ss:$16 sps:$4 sm:$0xff]  }
  0x66   : > { %3241 = vmatpush1.bf16.msra.mxu1 %v4794_v43  ;;  %2931 = vmatprep.mubr.bf16.mxu0 %v4797_v44  ;;  %v4887_v42 = vld [vmem:[%s6590_s1 + $0x470] ss:$8 sps:$4 sm:$0xff]   ;;  %v4895_v44 = vld [vmem:[%s6590_s1 + $0x464] ss:$8 sps:$4 sm:$0xff]  }
  0x67   : > { %3054 = vmatprep.mubr.bf16.mxu1 %v4799_v45  ;;  %3119 = vmatprep.subr.bf16.mxu0 %v4805_v46  ;;  %v4890_v43 = vld [vmem:[%s6590_s1 + $0x570] ss:$8 sps:$4 sm:$0xff]   ;;  %v4896_v45 = vld [vmem:[%s5416_s5 + $0x164] ss:$16 sps:$4 sm:$0xff]   ;;  %v4898_v46 = vld [vmem:[%s5416_s5 + $0x16c] ss:$16 sps:$4 sm:$0xff]  }
  0x68   : > { %3242 = vmatprep.subr.bf16.mxu1 %v4808_v47  ;;  %v4902_v47 = vld [vmem:[%s6590_s1 + $0x564] ss:$8 sps:$4 sm:$0xff]  }
  0x69   : > { %3120 = vmatpush1.bf16.msra.mxu0 %v4803_v48  ;;  %v4893_v48 = vld [vmem:[%s6590_s1 + $0x460] ss:$8 sps:$4 sm:$0xff]  }
  0x6a   : > { %3243 = vmatpush1.bf16.msra.mxu1 %v4806_v49  ;;  %3121 = vmatprep.subr.bf16.mxu0 %v4811_v50  ;;  %v4900_v49 = vld [vmem:[%s6590_s1 + $0x560] ss:$8 sps:$4 sm:$0xff]   ;;  %v4907_v50 = vld [vmem:[%s6590_s1 + $0x454] ss:$8 sps:$4 sm:$0xff]  }
  0x6b   : > { %3244 = vmatprep.subr.bf16.mxu1 %v4814_v51  ;;  %v4910_v51 = vld [vmem:[%s6590_s1 + $0x554] ss:$8 sps:$4 sm:$0xff]  }
  0x6c   : > { %2932 = vmatmul.mubr.bf16.gmra.mxu0 %v4801_v52  ;;  %v4903_v52 = vld [vmem:[%s5416_s5 + $0x160] ss:$16 sps:$4 sm:$0xff]  }
  0x6d   : > { %3055 = vmatmul.mubr.bf16.gmra.mxu1 %v4802_v53  ;;  %3122 = vmatpush2.bf16.msra.mxu0 %v4809_v54  ;;  %v4904_v53 = vld [vmem:[%s5416_s5 + $0x168] ss:$16 sps:$4 sm:$0xff]  }
  0x6e   : > { %2941 = vmatprep.mubr.bf16.mxu0 %v4815_v56  ;;  %3064 = vmatprep.mubr.bf16.mxu1 %v4817_v57  ;;  %v4905_v54 = vld [vmem:[%s6590_s1 + $0x450] ss:$8 sps:$4 sm:$0xff]   ;;  %v4913_v56 = vld [vmem:[%s6590_s1 + $0x444] ss:$8 sps:$4 sm:$0xff]  }
  0x6f   : > { %3245 = vmatpush2.bf16.msra.mxu1 %v4812_v55  ;;  %3123 = vmatprep.subr.bf16.mxu0 %v4823_v58  ;;  %v4908_v55 = vld [vmem:[%s6590_s1 + $0x550] ss:$8 sps:$4 sm:$0xff]   ;;  %v4914_v57 = vld [vmem:[%s5416_s5 + $0x184] ss:$16 sps:$4 sm:$0xff]   ;;  %v4916_v58 = vld [vmem:[%s5416_s5 + $0x18c] ss:$16 sps:$4 sm:$0xff]  }
  0x70   : > { %3246 = vmatprep.subr.bf16.mxu1 %v4826_v59  ;;  %v4922_v59 = vld [vmem:[%s6590_s1 + $0x544] ss:$8 sps:$4 sm:$0xff]  }
  0x71   : > { %3124 = vmatpush2.bf16.msra.mxu0 %v4821_v60  ;;  %v4911_v60 = vld [vmem:[%s6590_s1 + $0x440] ss:$8 sps:$4 sm:$0xff]  }
  0x72   : > { %3125 = vmatprep.subr.bf16.mxu0 %v4829_v63  ;;  %v4918_v63 = vld [vmem:[%s5416_s5 + $0x180] ss:$16 sps:$4 sm:$0xff]  }
  0x73   : > { %3247 = vmatpush2.bf16.msra.mxu1 %v4824_v61  ;;  %v4920_v61 = vld [vmem:[%s6590_s1 + $0x540] ss:$8 sps:$4 sm:$0xff]  }
  0x74   : > { %3248 = vmatprep.subr.bf16.mxu1 %v4836_v0  ;;  %2942 = vmatmul.mubr.bf16.gmra.mxu0 %v4819_v62  ;;  %v4925_v62 = vld [vmem:[%s6590_s1 + $0x434] ss:$8 sps:$4 sm:$0xff]  }
  0x75   : > { %3065 = vmatmul.mubr.bf16.gmra.mxu1 %v4820_v1  ;;  %3126 = vmatpush2.bf16.msra.mxu0 %v4827_v2  ;;  %v4928_v0 = vld [vmem:[%s6590_s1 + $0x534] ss:$8 sps:$4 sm:$0xff]   ;;  %v4919_v1 = vld [vmem:[%s5416_s5 + $0x188] ss:$16 sps:$4 sm:$0xff]  }
  0x76   : > { %2951 = vmatprep.mubr.bf16.mxu0 %v4830_v3  ;;  %3074 = vmatprep.mubr.bf16.mxu1 %v4832_v4  ;;  %v4923_v2 = vld [vmem:[%s6590_s1 + $0x430] ss:$8 sps:$4 sm:$0xff]   ;;  %v4929_v4 = vld [vmem:[%s5416_s5 + $0x1a4] ss:$16 sps:$4 sm:$0xff]  }
  0x77   : > { %3249 = vmatpush2.bf16.msra.mxu1 %v4834_v5  ;;  %3127 = vmatprep.subr.bf16.mxu0 %v4841_v6  ;;  %v4926_v3 = vld [vmem:[%s6590_s1 + $0x530] ss:$8 sps:$4 sm:$0xff]   ;;  %v4931_v5 = vld [vmem:[%s5416_s5 + $0x1ac] ss:$16 sps:$4 sm:$0xff]  }
  0x78   : > { %3250 = vmatprep.subr.bf16.mxu1 %v4844_v7  ;;  %v4935_v6 = vld [vmem:[%s6590_s1 + $0x424] ss:$8 sps:$4 sm:$0xff]  }
  0x79   : > { %3128 = vmatpush2.bf16.msra.mxu0 %v4839_v8  ;;  %v4940_v7 = vld [vmem:[%s6590_s1 + $0x524] ss:$8 sps:$4 sm:$0xff]   ;;  %v4933_v8 = vld [vmem:[%s6590_s1 + $0x420] ss:$8 sps:$4 sm:$0xff]  }
  0x7a   : > { %3129 = vmatprep.subr.bf16.mxu0 %v4847_v11  ;;  %v4936_v11 = vld [vmem:[%s5416_s5 + $0x1a0] ss:$16 sps:$4 sm:$0xff]  }
  0x7b   : > { %3251 = vmatpush2.bf16.msra.mxu1 %v4842_v9  ;;  %v4938_v9 = vld [vmem:[%s6590_s1 + $0x520] ss:$8 sps:$4 sm:$0xff]  }
  0x7c   : > { %3252 = vmatprep.subr.bf16.mxu1 %v4856_v13  ;;  %2952 = vmatmul.mubr.bf16.gmra.mxu0 %v4837_v10  ;;  %v4943_v10 = vld [vmem:[%s6590_s1 + $0x414] ss:$8 sps:$4 sm:$0xff]   ;;  %v4937_v13 = vld [vmem:[%s5416_s5 + $0x1a8] ss:$16 sps:$4 sm:$0xff]  }
  0x7d   : > { %3075 = vmatmul.mubr.bf16.gmra.mxu1 %v4838_v12  ;;  %2961 = vmatprep.mubr.bf16.mxu0 %v4848_v15  ;;  %v4946_v12 = vld [vmem:[%s6590_s1 + $0x514] ss:$8 sps:$4 sm:$0xff]   ;;  %v4944_v15 = vld [vmem:[%s6590_s1 + $0x510] ss:$8 sps:$4 sm:$0xff]  }
  0x7e   : > { %3084 = vmatprep.mubr.bf16.mxu1 %v4850_v16  ;;  %3130 = vmatpush2.bf16.msra.mxu0 %v4845_v14  ;;  %v4941_v14 = vld [vmem:[%s6590_s1 + $0x410] ss:$8 sps:$4 sm:$0xff]   ;;  %v4947_v16 = vld [vmem:[%s5416_s5 + $0x1c4] ss:$16 sps:$4 sm:$0xff]  }
  0x7f   : > { %3253 = vmatpush2.bf16.msra.mxu1 %v4854_v17  ;;  %3131 = vmatprep.subr.bf16.mxu0 %v4859_v18  ;;  %v4949_v17 = vld [vmem:[%s5416_s5 + $0x1cc] ss:$16 sps:$4 sm:$0xff]  }
  0x80   : > { %3254 = vmatprep.subr.bf16.mxu1 %v4862_v19  ;;  %v4955_v18 = vld [vmem:[%s6590_s1 + $0x404] ss:$8 sps:$4 sm:$0xff]  }
  0x81   : > { %v4958_v19 = vld [vmem:[%s6590_s1 + $0x504] ss:$8 sps:$4 sm:$0xff]  }
  0x82   : > { %3132 = vmatpush2.bf16.msra.mxu0 %v4857_v20  ;;  %v4953_v20 = vld [vmem:[%s6590_s1 + $0x400] ss:$8 sps:$4 sm:$0xff]  }
  0x83   : > { %3255 = vmatpush2.bf16.msra.mxu1 %v4860_v21  ;;  %3133 = vmatprep.subr.bf16.mxu0 %v4869_v23  ;;  %v4956_v21 = vld [vmem:[%s6590_s1 + $0x500] ss:$8 sps:$4 sm:$0xff]  }
  0x84   : > { %3256 = vmatprep.subr.bf16.mxu1 %v4874_v24  ;;  %2962 = vmatmul.mubr.bf16.gmra.mxu0 %v4852_v22  ;;  %v4961_v22 = vld [vmem:[%s6590_s1 + $0x4f4] ss:$8 sps:$4 sm:$0xff]   ;;  %v4951_v23 = vld [vmem:[%s5416_s5 + $0x1c0] ss:$16 sps:$4 sm:$0xff]  }
  0x85   : > { %3085 = vmatmul.mubr.bf16.gmra.mxu1 %v4853_v25  ;;  %2971 = vmatprep.mubr.bf16.mxu0 %v4863_v26  ;;  %v4964_v24 = vld [vmem:[%s6590_s1 + $0x5f4] ss:$8 sps:$4 sm:$0xff]   ;;  %v4952_v25 = vld [vmem:[%s5416_s5 + $0x1c8] ss:$16 sps:$4 sm:$0xff]  }
  0x86   : > { %3094 = vmatprep.mubr.bf16.mxu1 %v4865_v27  ;;  %3134 = vmatpush2.bf16.msra.mxu0 %v4867_v28  ;;  %v4959_v26 = vld [vmem:[%s6590_s1 + $0x4f0] ss:$8 sps:$4 sm:$0xff]   ;;  %v4965_v28 = vld [vmem:[%s5416_s5 + $0x1e4] ss:$16 sps:$4 sm:$0xff]  }
  0x87   : > { %3257 = vmatpush2.bf16.msra.mxu1 %v4872_v29  ;;  %3135 = vmatprep.subr.bf16.mxu0 %v4877_v30  ;;  %v4962_v27 = vld [vmem:[%s6590_s1 + $0x5f0] ss:$8 sps:$4 sm:$0xff]   ;;  %v4967_v29 = vld [vmem:[%s5416_s5 + $0x1ec] ss:$16 sps:$4 sm:$0xff]  }
  0x88   : > { %3258 = vmatprep.subr.bf16.mxu1 %v4880_v31  ;;  %v4973_v30 = vld [vmem:[%s6590_s1 + $0x4e4] ss:$8 sps:$4 sm:$0xff]  }
  0x89   : > { %v4976_v31 = vld [vmem:[%s6590_s1 + $0x5e4] ss:$8 sps:$4 sm:$0xff]  }
  0x8a   : > { %3136 = vmatpush2.bf16.msra.mxu0 %v4875_v32  ;;  %v4971_v32 = vld [vmem:[%s6590_s1 + $0x4e0] ss:$8 sps:$4 sm:$0xff]  }
  0x8b   : > { %3259 = vmatpush2.bf16.msra.mxu1 %v4878_v34  ;;  %3351 = vmatprep.subr.bf16.mxu0 %v4889_v35  ;;  %v4969_v34 = vld [vmem:[%s5416_s5 + $0x1e0] ss:$16 sps:$4 sm:$0xff]   ;;  %v4979_v35 = vld [vmem:[%s6590_s1 + $0x4d4] ss:$8 sps:$4 sm:$0xff]  }
  0x8c   : > { %3474 = vmatprep.subr.bf16.mxu1 %v4892_v36  ;;  %2972 = vmatmul.mubr.bf16.gmra.mxu0 %v4870_v33  ;;  %v4974_v33 = vld [vmem:[%s6590_s1 + $0x5e0] ss:$8 sps:$4 sm:$0xff]  }
  0x8d   : > { %3095 = vmatmul.mubr.bf16.gmra.mxu1 %v4871_v37  ;;  %3137 = vmatprep.mubr.bf16.mxu0 %v4883_v38  ;;  %v4970_v36 = vld [vmem:[%s5416_s5 + $0x1e8] ss:$16 sps:$4 sm:$0xff]   ;;  %v4986_v37 = vld [vmem:[%s6590_s1 + $0x5d4] ss:$8 sps:$4 sm:$0xff]  }
  0x8e   : > { %3260 = vmatprep.mubr.bf16.mxu1 %v4886_v39  ;;  %v4977_v38 = vld [vmem:[%s6590_s1 + $0x4d0] ss:$8 sps:$4 sm:$0xff]   ;;  %v4980_v39 = vld [vmem:[%s5416_s5 + $0x204] ss:$16 sps:$4 sm:$0xff]  }
  0x94   : > { %3138 = vmatmul.mubr.bf16.vlgmr.msra.gmra.mxu0 %v4881_v40  ;;  %v4982_v40 = vld [vmem:[%s5416_s5 + $0x20c] ss:$16 sps:$4 sm:$0xff]  }
  0x95   : > { %3261 = vmatmul.mubr.bf16.vlgmr.msra.gmra.mxu1 %v4884_v41  ;;  %3352 = vmatpush1.bf16.msra.mxu0 %v4887_v42  ;;  %v4984_v41 = vld [vmem:[%s6590_s1 + $0x5d0] ss:$8 sps:$4 sm:$0xff]   ;;  %v4991_v42 = vld [vmem:[%s6590_s1 + $0x4c4] ss:$8 sps:$4 sm:$0xff]  }
  0x96   : > { %3475 = vmatpush1.bf16.msra.mxu1 %v4890_v43  ;;  %3353 = vmatprep.subr.bf16.mxu0 %v4895_v44  ;;  %v4994_v43 = vld [vmem:[%s6590_s1 + $0x5c4] ss:$8 sps:$4 sm:$0xff]   ;;  %v4989_v44 = vld [vmem:[%s6590_s1 + $0x4c0] ss:$8 sps:$4 sm:$0xff]  }
  0x97   : > { %3147 = vmatprep.mubr.bf16.mxu0 %v4896_v45  ;;  %3270 = vmatprep.mubr.bf16.mxu1 %v4898_v46  ;;  %v4992_v45 = vld [vmem:[%s6590_s1 + $0x5c0] ss:$8 sps:$4 sm:$0xff]  }
  0x98   : > { %3476 = vmatprep.subr.bf16.mxu1 %v4902_v47  ;;  %v4987_v46 = vld [vmem:[%s5416_s5 + $0x200] ss:$16 sps:$4 sm:$0xff]   ;;  %v4997_v47 = vld [vmem:[%s6590_s1 + $0x4b4] ss:$8 sps:$4 sm:$0xff]  }
  0x99   : > { %3354 = vmatpush1.bf16.msra.mxu0 %v4893_v48  ;;  %v4988_v48 = vld [vmem:[%s5416_s5 + $0x208] ss:$16 sps:$4 sm:$0xff]  }
  0x9a   : > { %3477 = vmatpush1.bf16.msra.mxu1 %v4900_v49  ;;  %3355 = vmatprep.subr.bf16.mxu0 %v4907_v50  ;;  %v5006_v49 = vld [vmem:[%s6590_s1 + $0x5b4] ss:$8 sps:$4 sm:$0xff]  }
  0x9b   : > { %3478 = vmatprep.subr.bf16.mxu1 %v4910_v51  ;;  %v4998_v50 = vld [vmem:[%s5416_s5 + $0x224] ss:$16 sps:$4 sm:$0xff]   ;;  %v5000_v51 = vld [vmem:[%s5416_s5 + $0x22c] ss:$16 sps:$4 sm:$0xff]  }
  0x9c   : > { %3148 = vmatmul.mubr.bf16.gmra.mxu0 %v4903_v52  ;;  %v4995_v52 = vld [vmem:[%s6590_s1 + $0x4b0] ss:$8 sps:$4 sm:$0xff]  }
  0x9d   : > { %3271 = vmatmul.mubr.bf16.gmra.mxu1 %v4904_v53  ;;  %3356 = vmatpush1.bf16.msra.mxu0 %v4905_v54  ;;  %v5004_v53 = vld [vmem:[%s6590_s1 + $0x5b0] ss:$8 sps:$4 sm:$0xff]   ;;  %v5009_v54 = vld [vmem:[%s6590_s1 + $0x4a4] ss:$8 sps:$4 sm:$0xff]  }
  0x9e   : > { %3479 = vmatpush1.bf16.msra.mxu1 %v4908_v55  ;;  %3357 = vmatprep.subr.bf16.mxu0 %v4913_v56  ;;  %v5012_v55 = vld [vmem:[%s6590_s1 + $0x5a4] ss:$8 sps:$4 sm:$0xff]   ;;  %v5007_v56 = vld [vmem:[%s6590_s1 + $0x4a0] ss:$8 sps:$4 sm:$0xff]  }
  0x9f   : > { %3157 = vmatprep.mubr.bf16.mxu0 %v4914_v57  ;;  %3280 = vmatprep.mubr.bf16.mxu1 %v4916_v58  ;;  %v5002_v57 = vld [vmem:[%s5416_s5 + $0x220] ss:$16 sps:$4 sm:$0xff]   ;;  %v5003_v58 = vld [vmem:[%s5416_s5 + $0x228] ss:$16 sps:$4 sm:$0xff]  }
  0xa0   : > { %3480 = vmatprep.subr.bf16.mxu1 %v4922_v59  ;;  %v5010_v59 = vld [vmem:[%s6590_s1 + $0x5a0] ss:$8 sps:$4 sm:$0xff]  }
  0xa1   : > { %3358 = vmatpush1.bf16.msra.mxu0 %v4911_v60  ;;  %v5019_v60 = vld [vmem:[%s6590_s1 + $0x494] ss:$8 sps:$4 sm:$0xff]  }
  0xa2   : > { %3481 = vmatpush1.bf16.msra.mxu1 %v4920_v61  ;;  %3359 = vmatprep.subr.bf16.mxu0 %v4925_v62  ;;  %v5024_v61 = vld [vmem:[%s6590_s1 + $0x594] ss:$8 sps:$4 sm:$0xff]  }
  0xa3   : > { %3482 = vmatprep.subr.bf16.mxu1 %v4928_v0  ;;  %v5013_v62 = vld [vmem:[%s5416_s5 + $0x244] ss:$16 sps:$4 sm:$0xff]   ;;  %v5017_v0 = vld [vmem:[%s6590_s1 + $0x490] ss:$8 sps:$4 sm:$0xff]  }
  0xa4   : > { %3158 = vmatmul.mubr.bf16.gmra.mxu0 %v4918_v63  ;;  %v5015_v63 = vld [vmem:[%s5416_s5 + $0x24c] ss:$16 sps:$4 sm:$0xff]  }
  0xa5   : > { %3281 = vmatmul.mubr.bf16.gmra.mxu1 %v4919_v1  ;;  %3360 = vmatpush1.bf16.msra.mxu0 %v4923_v2  ;;  %v5022_v1 = vld [vmem:[%s6590_s1 + $0x590] ss:$8 sps:$4 sm:$0xff]   ;;  %v5027_v2 = vld [vmem:[%s6590_s1 + $0x484] ss:$8 sps:$4 sm:$0xff]  }
  0xa6   : > { %3483 = vmatpush1.bf16.msra.mxu1 %v4926_v3  ;;  %3167 = vmatprep.mubr.bf16.mxu0 %v4929_v4  ;;  %v5030_v3 = vld [vmem:[%s6590_s1 + $0x584] ss:$8 sps:$4 sm:$0xff]   ;;  %v5025_v4 = vld [vmem:[%s6590_s1 + $0x480] ss:$8 sps:$4 sm:$0xff]  }
  0xa7   : > { %3290 = vmatprep.mubr.bf16.mxu1 %v4931_v5  ;;  %3361 = vmatprep.subr.bf16.mxu0 %v4935_v6  ;;  %v5028_v5 = vld [vmem:[%s6590_s1 + $0x580] ss:$8 sps:$4 sm:$0xff]  }
  0xa8   : > { %3484 = vmatprep.subr.bf16.mxu1 %v4940_v7  ;;  %v5020_v6 = vld [vmem:[%s5416_s5 + $0x240] ss:$16 sps:$4 sm:$0xff]   ;;  %v5039_v7 = vld [vmem:[%s6590_s1 + $0x674] ss:$8 sps:$4 sm:$0xff]  }
  0xa9   : > { %3362 = vmatpush1.bf16.msra.mxu0 %v4933_v8  ;;  %v5042_v8 = vld [vmem:[%s6590_s1 + $0x774] ss:$8 sps:$4 sm:$0xff]  }
  0xaa   : > { %3485 = vmatpush1.bf16.msra.mxu1 %v4938_v9  ;;  %3363 = vmatprep.subr.bf16.mxu0 %v4943_v10  ;;  %v5021_v9 = vld [vmem:[%s5416_s5 + $0x248] ss:$16 sps:$4 sm:$0xff]   ;;  %v5033_v10 = vld [vmem:[%s5416_s5 + $0x24] ss:$16 sps:$4 sm:$0xff]  }
  0xab   : > { %3486 = vmatprep.subr.bf16.mxu1 %v4946_v12  ;;  %v5031_v12 = vld [vmem:[%s5416_s5 + $0x20] ss:$16 sps:$4 sm:$0xff]  }
  0xac   : > { %3168 = vmatmul.mubr.bf16.gmra.mxu0 %v4936_v11  ;;  %v5036_v11 = vld [vmem:[%s5416_s5 + $0x2c] ss:$16 sps:$4 sm:$0xff]  }
  0xad   : > { %3291 = vmatmul.mubr.bf16.gmra.mxu1 %v4937_v13  ;;  %3364 = vmatpush1.bf16.msra.mxu0 %v4941_v14  ;;  %v5034_v13 = vld [vmem:[%s5416_s5 + $0x28] ss:$16 sps:$4 sm:$0xff]  }
  0xae   : > { %3487 = vmatpush1.bf16.msra.mxu1 %v4944_v15  ;;  %3177 = vmatprep.mubr.bf16.mxu0 %v4947_v16  ;;  %v5037_v14 = vld [vmem:[%s6590_s1 + $0x670] ss:$8 sps:$4 sm:$0xff]   ;;  %v5045_v16 = vld [vmem:[%s6590_s1 + $0x664] ss:$8 sps:$4 sm:$0xff]  }
  0xaf   : > { %3300 = vmatprep.mubr.bf16.mxu1 %v4949_v17  ;;  %3365 = vmatprep.subr.bf16.mxu0 %v4955_v18  ;;  %v5040_v15 = vld [vmem:[%s6590_s1 + $0x770] ss:$8 sps:$4 sm:$0xff]   ;;  %v5046_v17 = vld [vmem:[%s5416_s5 + $0x44] ss:$16 sps:$4 sm:$0xff]   ;;  %v5048_v18 = vld [vmem:[%s5416_s5 + $0x4c] ss:$16 sps:$4 sm:$0xff]  }
  0xb0   : > { %3488 = vmatprep.subr.bf16.mxu1 %v4958_v19  ;;  %v5052_v19 = vld [vmem:[%s6590_s1 + $0x764] ss:$8 sps:$4 sm:$0xff]  }
  0xb1   : > { %3366 = vmatpush1.bf16.msra.mxu0 %v4953_v20  ;;  %v5043_v20 = vld [vmem:[%s6590_s1 + $0x660] ss:$8 sps:$4 sm:$0xff]  }
  0xb2   : > { %3489 = vmatpush1.bf16.msra.mxu1 %v4956_v21  ;;  %3367 = vmatprep.subr.bf16.mxu0 %v4961_v22  ;;  %v5050_v21 = vld [vmem:[%s6590_s1 + $0x760] ss:$8 sps:$4 sm:$0xff]   ;;  %v5057_v22 = vld [vmem:[%s6590_s1 + $0x654] ss:$8 sps:$4 sm:$0xff]  }
  0xb3   : > { %3490 = vmatprep.subr.bf16.mxu1 %v4964_v24  ;;  %v5053_v24 = vld [vmem:[%s5416_s5 + $0x40] ss:$16 sps:$4 sm:$0xff]  }
  0xb4   : > { %3178 = vmatmul.mubr.bf16.gmra.mxu0 %v4951_v23  ;;  %v5060_v23 = vld [vmem:[%s6590_s1 + $0x754] ss:$8 sps:$4 sm:$0xff]  }
  0xb5   : > { %3301 = vmatmul.mubr.bf16.gmra.mxu1 %v4952_v25  ;;  %3368 = vmatpush2.bf16.msra.mxu0 %v4959_v26  ;;  %v5054_v25 = vld [vmem:[%s5416_s5 + $0x48] ss:$16 sps:$4 sm:$0xff]  }
  0xb6   : > { %3187 = vmatprep.mubr.bf16.mxu0 %v4965_v28  ;;  %3310 = vmatprep.mubr.bf16.mxu1 %v4967_v29  ;;  %v5055_v26 = vld [vmem:[%s6590_s1 + $0x650] ss:$8 sps:$4 sm:$0xff]   ;;  %v5063_v28 = vld [vmem:[%s6590_s1 + $0x644] ss:$8 sps:$4 sm:$0xff]  }
  0xb7   : > { %3491 = vmatpush2.bf16.msra.mxu1 %v4962_v27  ;;  %3369 = vmatprep.subr.bf16.mxu0 %v4973_v30  ;;  %v5058_v27 = vld [vmem:[%s6590_s1 + $0x750] ss:$8 sps:$4 sm:$0xff]   ;;  %v5064_v29 = vld [vmem:[%s5416_s5 + $0x64] ss:$16 sps:$4 sm:$0xff]   ;;  %v5066_v30 = vld [vmem:[%s5416_s5 + $0x6c] ss:$16 sps:$4 sm:$0xff]  }
  0xb8   : > { %3492 = vmatprep.subr.bf16.mxu1 %v4976_v31  ;;  %v5072_v31 = vld [vmem:[%s6590_s1 + $0x744] ss:$8 sps:$4 sm:$0xff]  }
  0xb9   : > { %3370 = vmatpush2.bf16.msra.mxu0 %v4971_v32  ;;  %v5061_v32 = vld [vmem:[%s6590_s1 + $0x640] ss:$8 sps:$4 sm:$0xff]  }
  0xba   : > { %3371 = vmatprep.subr.bf16.mxu0 %v4979_v35  ;;  %v5078_v35 = vld [vmem:[%s6590_s1 + $0x734] ss:$8 sps:$4 sm:$0xff]  }
  0xbb   : > { %3493 = vmatpush2.bf16.msra.mxu1 %v4974_v33  ;;  %v5070_v33 = vld [vmem:[%s6590_s1 + $0x740] ss:$8 sps:$4 sm:$0xff]  }
  0xbc   : > { %3494 = vmatprep.subr.bf16.mxu1 %v4986_v37  ;;  %3188 = vmatmul.mubr.bf16.gmra.mxu0 %v4969_v34  ;;  %v5075_v34 = vld [vmem:[%s6590_s1 + $0x634] ss:$8 sps:$4 sm:$0xff]   ;;  %v5069_v37 = vld [vmem:[%s5416_s5 + $0x68] ss:$16 sps:$4 sm:$0xff]  }
  0xbd   : > { %3311 = vmatmul.mubr.bf16.gmra.mxu1 %v4970_v36  ;;  %3372 = vmatpush2.bf16.msra.mxu0 %v4977_v38  ;;  %v5068_v36 = vld [vmem:[%s5416_s5 + $0x60] ss:$16 sps:$4 sm:$0xff]  }
  0xbe   : > { %3197 = vmatprep.mubr.bf16.mxu0 %v4980_v39  ;;  %3320 = vmatprep.mubr.bf16.mxu1 %v4982_v40  ;;  %v5073_v38 = vld [vmem:[%s6590_s1 + $0x630] ss:$8 sps:$4 sm:$0xff]   ;;  %v5079_v40 = vld [vmem:[%s5416_s5 + $0x84] ss:$16 sps:$4 sm:$0xff]  }
  0xbf   : > { %3495 = vmatpush2.bf16.msra.mxu1 %v4984_v41  ;;  %3373 = vmatprep.subr.bf16.mxu0 %v4991_v42  ;;  %v5076_v39 = vld [vmem:[%s6590_s1 + $0x730] ss:$8 sps:$4 sm:$0xff]   ;;  %v5081_v41 = vld [vmem:[%s5416_s5 + $0x8c] ss:$16 sps:$4 sm:$0xff]  }
  0xc0   : > { %3496 = vmatprep.subr.bf16.mxu1 %v4994_v43  ;;  %v5085_v42 = vld [vmem:[%s6590_s1 + $0x624] ss:$8 sps:$4 sm:$0xff]  }
  0xc1   : > { %3374 = vmatpush2.bf16.msra.mxu0 %v4989_v44  ;;  %v5090_v43 = vld [vmem:[%s6590_s1 + $0x724] ss:$8 sps:$4 sm:$0xff]   ;;  %v5083_v44 = vld [vmem:[%s6590_s1 + $0x620] ss:$8 sps:$4 sm:$0xff]  }
  0xc2   : > { %3375 = vmatprep.subr.bf16.mxu0 %v4997_v47  ;;  %v5096_v47 = vld [vmem:[%s6590_s1 + $0x714] ss:$8 sps:$4 sm:$0xff]  }
  0xc3   : > { %3497 = vmatpush2.bf16.msra.mxu1 %v4992_v45  ;;  %v5088_v45 = vld [vmem:[%s6590_s1 + $0x720] ss:$8 sps:$4 sm:$0xff]  }
  0xc4   : > { %3498 = vmatprep.subr.bf16.mxu1 %v5006_v49  ;;  %3198 = vmatmul.mubr.bf16.gmra.mxu0 %v4987_v46  ;;  %v5093_v46 = vld [vmem:[%s6590_s1 + $0x614] ss:$8 sps:$4 sm:$0xff]   ;;  %v5087_v49 = vld [vmem:[%s5416_s5 + $0x88] ss:$16 sps:$4 sm:$0xff]  }
  0xc5   : > { %3321 = vmatmul.mubr.bf16.gmra.mxu1 %v4988_v48  ;;  %3207 = vmatprep.mubr.bf16.mxu0 %v4998_v50  ;;  %v5086_v48 = vld [vmem:[%s5416_s5 + $0x80] ss:$16 sps:$4 sm:$0xff]  }
  0xc6   : > { %3330 = vmatprep.mubr.bf16.mxu1 %v5000_v51  ;;  %3376 = vmatpush2.bf16.msra.mxu0 %v4995_v52  ;;  %v5091_v50 = vld [vmem:[%s6590_s1 + $0x610] ss:$8 sps:$4 sm:$0xff]   ;;  %v5097_v52 = vld [vmem:[%s5416_s5 + $0xa4] ss:$16 sps:$4 sm:$0xff]  }
  0xc7   : > { %3499 = vmatpush2.bf16.msra.mxu1 %v5004_v53  ;;  %3377 = vmatprep.subr.bf16.mxu0 %v5009_v54  ;;  %v5094_v51 = vld [vmem:[%s6590_s1 + $0x710] ss:$8 sps:$4 sm:$0xff]   ;;  %v5099_v53 = vld [vmem:[%s5416_s5 + $0xac] ss:$16 sps:$4 sm:$0xff]  }
  0xc8   : > { %3500 = vmatprep.subr.bf16.mxu1 %v5012_v55  ;;  %v5105_v54 = vld [vmem:[%s6590_s1 + $0x604] ss:$8 sps:$4 sm:$0xff]  }
  0xc9   : > { %v5108_v55 = vld [vmem:[%s6590_s1 + $0x704] ss:$8 sps:$4 sm:$0xff]  }
  0xca   : > { %3378 = vmatpush2.bf16.msra.mxu0 %v5007_v56  ;;  %v5103_v56 = vld [vmem:[%s6590_s1 + $0x600] ss:$8 sps:$4 sm:$0xff]  }
  0xcb   : > { %3501 = vmatpush2.bf16.msra.mxu1 %v5010_v59  ;;  %3379 = vmatprep.subr.bf16.mxu0 %v5019_v60  ;;  %v5114_v59 = vld [vmem:[%s6590_s1 + $0x7f4] ss:$8 sps:$4 sm:$0xff]   ;;  %v5101_v60 = vld [vmem:[%s5416_s5 + $0xa0] ss:$16 sps:$4 sm:$0xff]  }
  0xcc   : > { %3502 = vmatprep.subr.bf16.mxu1 %v5024_v61  ;;  %3208 = vmatmul.mubr.bf16.gmra.mxu0 %v5002_v57  ;;  %v5106_v57 = vld [vmem:[%s6590_s1 + $0x700] ss:$8 sps:$4 sm:$0xff]  }
  0xcd   : > { %3331 = vmatmul.mubr.bf16.gmra.mxu1 %v5003_v58  ;;  %3217 = vmatprep.mubr.bf16.mxu0 %v5013_v62  ;;  %v5111_v58 = vld [vmem:[%s6590_s1 + $0x6f4] ss:$8 sps:$4 sm:$0xff]   ;;  %v5102_v61 = vld [vmem:[%s5416_s5 + $0xa8] ss:$16 sps:$4 sm:$0xff]  }
  0xce   : > { %3340 = vmatprep.mubr.bf16.mxu1 %v5015_v63  ;;  %3380 = vmatpush2.bf16.msra.mxu0 %v5017_v0  ;;  %v5109_v62 = vld [vmem:[%s6590_s1 + $0x6f0] ss:$8 sps:$4 sm:$0xff]   ;;  %v5115_v0 = vld [vmem:[%s5416_s5 + $0xc4] ss:$16 sps:$4 sm:$0xff]  }
  0xcf   : > { %3503 = vmatpush2.bf16.msra.mxu1 %v5022_v1  ;;  %3381 = vmatprep.subr.bf16.mxu0 %v5027_v2  ;;  %v5112_v63 = vld [vmem:[%s6590_s1 + $0x7f0] ss:$8 sps:$4 sm:$0xff]   ;;  %v5117_v1 = vld [vmem:[%s5416_s5 + $0xcc] ss:$16 sps:$4 sm:$0xff]  }
  0xd0   : > { %3504 = vmatprep.subr.bf16.mxu1 %v5030_v3  ;;  %v5123_v2 = vld [vmem:[%s6590_s1 + $0x6e4] ss:$8 sps:$4 sm:$0xff]  }
  0xd1   : > { %v5126_v3 = vld [vmem:[%s6590_s1 + $0x7e4] ss:$8 sps:$4 sm:$0xff]  }
  0xd2   : > { %3382 = vmatpush2.bf16.msra.mxu0 %v5025_v4  ;;  %v5121_v4 = vld [vmem:[%s6590_s1 + $0x6e0] ss:$8 sps:$4 sm:$0xff]  }
  0xd3   : > { %3505 = vmatpush2.bf16.msra.mxu1 %v5028_v5  ;;  %3597 = vmatprep.subr.bf16.mxu0 %v5039_v7  ;;  %v5124_v5 = vld [vmem:[%s6590_s1 + $0x7e0] ss:$8 sps:$4 sm:$0xff]   ;;  %v5129_v7 = vld [vmem:[%s6590_s1 + $0x6d4] ss:$8 sps:$4 sm:$0xff]  }
  0xd4   : > { %3720 = vmatprep.subr.bf16.mxu1 %v5042_v8  ;;  %3218 = vmatmul.mubr.bf16.gmra.mxu0 %v5020_v6  ;;  %v5119_v6 = vld [vmem:[%s5416_s5 + $0xc0] ss:$16 sps:$4 sm:$0xff]   ;;  %v5120_v8 = vld [vmem:[%s5416_s5 + $0xc8] ss:$16 sps:$4 sm:$0xff]  }
  0xd5   : > { %3341 = vmatmul.mubr.bf16.gmra.mxu1 %v5021_v9  ;;  %3383 = vmatprep.mubr.bf16.mxu0 %v5033_v10  ;;  %v5136_v9 = vld [vmem:[%s6590_s1 + $0x7d4] ss:$8 sps:$4 sm:$0xff]   ;;  %v5127_v10 = vld [vmem:[%s6590_s1 + $0x6d0] ss:$8 sps:$4 sm:$0xff]  }
  0xd6   : > { %3506 = vmatprep.mubr.bf16.mxu1 %v5036_v11  ;;  %v5130_v11 = vld [vmem:[%s5416_s5 + $0xe4] ss:$16 sps:$4 sm:$0xff]  }
  0xdc   : > { %3384 = vmatmul.mubr.bf16.vlgmr.msra.gmra.mxu0 %v5031_v12  ;;  %v5132_v12 = vld [vmem:[%s5416_s5 + $0xec] ss:$16 sps:$4 sm:$0xff]  }
  0xdd   : > { %3507 = vmatmul.mubr.bf16.vlgmr.msra.gmra.mxu1 %v5034_v13  ;;  %3598 = vmatpush1.bf16.msra.mxu0 %v5037_v14  ;;  %v5134_v13 = vld [vmem:[%s6590_s1 + $0x7d0] ss:$8 sps:$4 sm:$0xff]   ;;  %v5141_v14 = vld [vmem:[%s6590_s1 + $0x6c4] ss:$8 sps:$4 sm:$0xff]  }
  0xde   : > { %3721 = vmatpush1.bf16.msra.mxu1 %v5040_v15  ;;  %3599 = vmatprep.subr.bf16.mxu0 %v5045_v16  ;;  %v5144_v15 = vld [vmem:[%s6590_s1 + $0x7c4] ss:$8 sps:$4 sm:$0xff]   ;;  %v5139_v16 = vld [vmem:[%s6590_s1 + $0x6c0] ss:$8 sps:$4 sm:$0xff]  }
  0xdf   : > { %3393 = vmatprep.mubr.bf16.mxu0 %v5046_v17  ;;  %3516 = vmatprep.mubr.bf16.mxu1 %v5048_v18  ;;  %v5142_v17 = vld [vmem:[%s6590_s1 + $0x7c0] ss:$8 sps:$4 sm:$0xff]  }
  0xe0   : > { %3722 = vmatprep.subr.bf16.mxu1 %v5052_v19  ;;  %v5137_v18 = vld [vmem:[%s5416_s5 + $0xe0] ss:$16 sps:$4 sm:$0xff]   ;;  %v5147_v19 = vld [vmem:[%s6590_s1 + $0x6b4] ss:$8 sps:$4 sm:$0xff]  }
  0xe1   : > { %3600 = vmatpush1.bf16.msra.mxu0 %v5043_v20  ;;  %v5138_v20 = vld [vmem:[%s5416_s5 + $0xe8] ss:$16 sps:$4 sm:$0xff]  }
  0xe2   : > { %3723 = vmatpush1.bf16.msra.mxu1 %v5050_v21  ;;  %3601 = vmatprep.subr.bf16.mxu0 %v5057_v22  ;;  %v5156_v21 = vld [vmem:[%s6590_s1 + $0x7b4] ss:$8 sps:$4 sm:$0xff]   ;;  %v5145_v22 = vld [vmem:[%s6590_s1 + $0x6b0] ss:$8 sps:$4 sm:$0xff]  }
  0xe3   : > { %3724 = vmatprep.subr.bf16.mxu1 %v5060_v23  ;;  %v5148_v23 = vld [vmem:[%s5416_s5 + $0x104] ss:$16 sps:$4 sm:$0xff]  }
  0xe4   : > { %3394 = vmatmul.mubr.bf16.gmra.mxu0 %v5053_v24  ;;  %v5150_v24 = vld [vmem:[%s5416_s5 + $0x10c] ss:$16 sps:$4 sm:$0xff]  }
  0xe5   : > { %3517 = vmatmul.mubr.bf16.gmra.mxu1 %v5054_v25  ;;  %3602 = vmatpush1.bf16.msra.mxu0 %v5055_v26  ;;  %v5154_v25 = vld [vmem:[%s6590_s1 + $0x7b0] ss:$8 sps:$4 sm:$0xff]   ;;  %v5159_v26 = vld [vmem:[%s6590_s1 + $0x6a4] ss:$8 sps:$4 sm:$0xff]  }
  0xe6   : > { %3725 = vmatpush1.bf16.msra.mxu1 %v5058_v27  ;;  %3603 = vmatprep.subr.bf16.mxu0 %v5063_v28  ;;  %v5162_v27 = vld [vmem:[%s6590_s1 + $0x7a4] ss:$8 sps:$4 sm:$0xff]  }
  0xe7   : > { %3403 = vmatprep.mubr.bf16.mxu0 %v5064_v29  ;;  %3526 = vmatprep.mubr.bf16.mxu1 %v5066_v30 }
  0xe8   : > { %3726 = vmatprep.subr.bf16.mxu1 %v5072_v31  ;;  %v5157_v31 = vld [vmem:[%s6590_s1 + $0x6a0] ss:$8 sps:$4 sm:$0xff]  }
  0xe9   : > { %3604 = vmatpush1.bf16.msra.mxu0 %v5061_v32 }
  0xea   : > { %3727 = vmatpush1.bf16.msra.mxu1 %v5070_v33  ;;  %3605 = vmatprep.subr.bf16.mxu0 %v5075_v34  ;;  %v5152_v34 = vld [vmem:[%s5416_s5 + $0x100] ss:$16 sps:$4 sm:$0xff]  }
  0xeb   : > { %3728 = vmatprep.subr.bf16.mxu1 %v5078_v35  ;;  %v5153_v35 = vld [vmem:[%s5416_s5 + $0x108] ss:$16 sps:$4 sm:$0xff]  }
  0xec   : > { %3404 = vmatmul.mubr.bf16.gmra.mxu0 %v5068_v36  ;;  %v5160_v36 = vld [vmem:[%s6590_s1 + $0x7a0] ss:$8 sps:$4 sm:$0xff]  }
  0xed   : > { %3527 = vmatmul.mubr.bf16.gmra.mxu1 %v5069_v37  ;;  %3606 = vmatpush1.bf16.msra.mxu0 %v5073_v38  ;;  %v5169_v38 = vld [vmem:[%s6590_s1 + $0x694] ss:$8 sps:$4 sm:$0xff]  }
  0xee   : > { %3729 = vmatpush1.bf16.msra.mxu1 %v5076_v39  ;;  %3413 = vmatprep.mubr.bf16.mxu0 %v5079_v40  ;;  %v5174_v39 = vld [vmem:[%s6590_s1 + $0x794] ss:$8 sps:$4 sm:$0xff]  }
  0xef   : > { %3536 = vmatprep.mubr.bf16.mxu1 %v5081_v41  ;;  %3607 = vmatprep.subr.bf16.mxu0 %v5085_v42  ;;  %v5163_v42 = vld [vmem:[%s5416_s5 + $0x124] ss:$16 sps:$4 sm:$0xff]  }
  0xf0   : > { %3730 = vmatprep.subr.bf16.mxu1 %v5090_v43  ;;  %v5165_v43 = vld [vmem:[%s5416_s5 + $0x12c] ss:$16 sps:$4 sm:$0xff]  }
  0xf1   : > { %3608 = vmatpush1.bf16.msra.mxu0 %v5083_v44 }
  0xf2   : > { %3731 = vmatpush1.bf16.msra.mxu1 %v5088_v45  ;;  %3609 = vmatprep.subr.bf16.mxu0 %v5093_v46  ;;  %v5167_v45 = vld [vmem:[%s6590_s1 + $0x690] ss:$8 sps:$4 sm:$0xff]  }
  0xf3   : > { %3732 = vmatprep.subr.bf16.mxu1 %v5096_v47 }
  0xf4   : > { %3414 = vmatmul.mubr.bf16.gmra.mxu0 %v5086_v48  ;;  %v5172_v48 = vld [vmem:[%s6590_s1 + $0x790] ss:$8 sps:$4 sm:$0xff]  }
  0xf5   : > { %3537 = vmatmul.mubr.bf16.gmra.mxu1 %v5087_v49  ;;  %3610 = vmatpush1.bf16.msra.mxu0 %v5091_v50  ;;  %v5177_v50 = vld [vmem:[%s6590_s1 + $0x684] ss:$8 sps:$4 sm:$0xff]  }
  0xf6   : > { %3733 = vmatpush1.bf16.msra.mxu1 %v5094_v51  ;;  %3423 = vmatprep.mubr.bf16.mxu0 %v5097_v52  ;;  %v5180_v51 = vld [vmem:[%s6590_s1 + $0x784] ss:$8 sps:$4 sm:$0xff]  }
  0xf7   : > { %3546 = vmatprep.mubr.bf16.mxu1 %v5099_v53  ;;  %3611 = vmatprep.subr.bf16.mxu0 %v5105_v54 }
  0xf8   : > { %3734 = vmatprep.subr.bf16.mxu1 %v5108_v55 }
  0xf9   : > { %3612 = vmatpush1.bf16.msra.mxu0 %v5103_v56 }
  0xfa   : > { %3735 = vmatpush1.bf16.msra.mxu1 %v5106_v57  ;;  %3613 = vmatprep.subr.bf16.mxu0 %v5111_v58  ;;  %v5175_v57 = vld [vmem:[%s6590_s1 + $0x680] ss:$8 sps:$4 sm:$0xff]  }
  0xfb   : > { %3736 = vmatprep.subr.bf16.mxu1 %v5114_v59  ;;  %v5178_v58 = vld [vmem:[%s6590_s1 + $0x780] ss:$8 sps:$4 sm:$0xff]  }
  0xfc   : > { %3424 = vmatmul.mubr.bf16.gmra.mxu0 %v5101_v60 }
  0xfd   : > { %3547 = vmatmul.mubr.bf16.gmra.mxu1 %v5102_v61  ;;  %3614 = vmatpush2.bf16.msra.mxu0 %v5109_v62  ;;  %v5170_v62 = vld [vmem:[%s5416_s5 + $0x120] ss:$16 sps:$4 sm:$0xff]  }
  0xfe   : > { %3433 = vmatprep.mubr.bf16.mxu0 %v5115_v0  ;;  %3556 = vmatprep.mubr.bf16.mxu1 %v5117_v1  ;;  %v5183_v1 = vld [vmem:[%s5416_s5 + $0x164] ss:$16 sps:$4 sm:$0xff]  }
  0xff   : > { %3737 = vmatpush2.bf16.msra.mxu1 %v5112_v63  ;;  %3615 = vmatprep.subr.bf16.mxu0 %v5123_v2  ;;  %v5171_v63 = vld [vmem:[%s5416_s5 + $0x128] ss:$16 sps:$4 sm:$0xff]   ;;  %v5186_v2 = vld [vmem:[%s5416_s5 + $0x16c] ss:$16 sps:$4 sm:$0xff]  }
 0x100   : > { %3738 = vmatprep.subr.bf16.mxu1 %v5126_v3 }
 0x101   : > { %3616 = vmatpush2.bf16.msra.mxu0 %v5121_v4 }
 0x102   : > { %3617 = vmatprep.subr.bf16.mxu0 %v5129_v7 }
 0x103   : > { %3739 = vmatpush2.bf16.msra.mxu1 %v5124_v5 }
 0x104   : > { %3740 = vmatprep.subr.bf16.mxu1 %v5136_v9  ;;  %3434 = vmatmul.mubr.bf16.gmra.mxu0 %v5119_v6 }
 0x105   : > { %3557 = vmatmul.mubr.bf16.gmra.mxu1 %v5120_v8  ;;  %3618 = vmatpush2.bf16.msra.mxu0 %v5127_v10 }
 0x106   : > { %3443 = vmatprep.mubr.bf16.mxu0 %v5130_v11  ;;  %3566 = vmatprep.mubr.bf16.mxu1 %v5132_v12 }
 0x107   : > { %3741 = vmatpush2.bf16.msra.mxu1 %v5134_v13  ;;  %3619 = vmatprep.subr.bf16.mxu0 %v5141_v14  ;;  %v5181_v14 = vld [vmem:[%s5416_s5 + $0x160] ss:$16 sps:$4 sm:$0xff]  }
 0x108   : > { %3742 = vmatprep.subr.bf16.mxu1 %v5144_v15  ;;  %v5184_v15 = vld [vmem:[%s5416_s5 + $0x168] ss:$16 sps:$4 sm:$0xff]  }
 0x109   : > { %3620 = vmatpush2.bf16.msra.mxu0 %v5139_v16 }
 0x10a   : > { %3621 = vmatprep.subr.bf16.mxu0 %v5147_v19 }
 0x10b   : > { %3743 = vmatpush2.bf16.msra.mxu1 %v5142_v17  ;;  %v5189_v17 = vld [vmem:[%s5416_s5 + $0x184] ss:$16 sps:$4 sm:$0xff]  }
 0x10c   : > { %3744 = vmatprep.subr.bf16.mxu1 %v5156_v21  ;;  %v2893_v28 = vpop.f32.mrf.mxu0  ;;  %3444 = vmatmul.mubr.bf16.gmra.mxu0 %v5137_v18  ;;  %v5192_v18 = vld [vmem:[%s5416_s5 + $0x18c] ss:$16 sps:$4 sm:$0xff]  }
 0x10d   : > { %v3016_v29 = vpop.f32.mrf.mxu1  ;;  %3567 = vmatmul.mubr.bf16.gmra.mxu1 %v5138_v20  ;;  %3453 = vmatprep.mubr.bf16.mxu0 %v5148_v23 }
 0x10e   : > { %v6123_v30 = vadd.f32 %v3016_v29, %v2893_v28  ;;  %3576 = vmatprep.mubr.bf16.mxu1 %v5150_v24  ;;  %v2895_v32 = vpop.f32.mrf.mxu0  ;;  %3622 = vmatpush2.bf16.msra.mxu0 %v5145_v22 }
 0x10f   : > { %v3018_v33 = vpop.f32.mrf.mxu1  ;;  %3745 = vmatpush2.bf16.msra.mxu1 %v5154_v25  ;;  %3623 = vmatprep.subr.bf16.mxu0 %v5159_v26 }
 0x110   : > { %v6133_v37 = vadd.f32 %v3018_v33, %v2895_v32  ;;  %3746 = vmatprep.subr.bf16.mxu1 %v5162_v27  ;;  %v2897_v40 = vpop.f32.mrf.mxu0  ;;  %v5190_v32 = vld [vmem:[%s5416_s5 + $0x188] ss:$16 sps:$4 sm:$0xff]  }
 0x111   : > { %v3020_v41 = vpop.f32.mrf.mxu1 }
 0x112   : > { %v6143_v44 = vadd.f32 %v3020_v41, %v2897_v40  ;;  %v2899_v46 = vpop.f32.mrf.mxu0  ;;  %3624 = vmatpush2.bf16.msra.mxu0 %v5157_v31  ;;  %v5187_v31 = vld [vmem:[%s5416_s5 + $0x180] ss:$16 sps:$4 sm:$0xff]  }
 0x113   : > { %v3022_v47 = vpop.f32.mrf.mxu1  ;;  %3747 = vmatpush2.bf16.msra.mxu1 %v5160_v36  ;;  %3625 = vmatprep.subr.bf16.mxu0 %v5169_v38 }
 0x114   : > { %v6151_v49 = vadd.f32 %v3022_v47, %v2899_v46  ;;  %3748 = vmatprep.subr.bf16.mxu1 %v5174_v39  ;;  %v2903_v52 = vpop.f32.mrf.mxu0  ;;  %3454 = vmatmul.mubr.bf16.gmra.mxu0 %v5152_v34  ;;  %v5195_v34 = vld [vmem:[%s5416_s5 + $0x1a4] ss:$16 sps:$4 sm:$0xff]  }
 0x115   : > { %v3026_v53 = vpop.f32.mrf.mxu1  ;;  %3577 = vmatmul.mubr.bf16.gmra.mxu1 %v5153_v35  ;;  %3463 = vmatprep.mubr.bf16.mxu0 %v5163_v42  ;;  %v5198_v35 = vld [vmem:[%s5416_s5 + $0x1ac] ss:$16 sps:$4 sm:$0xff]  }
 0x116   : > { %v6159_v54 = vadd.f32 %v3026_v53, %v2903_v52  ;;  %3586 = vmatprep.mubr.bf16.mxu1 %v5165_v43  ;;  %v2905_v55 = vpop.f32.mrf.mxu0  ;;  %3626 = vmatpush2.bf16.msra.mxu0 %v5167_v45  ;;  %v5201_v53 = vld [vmem:[%s5416_s5 + $0x1c4] ss:$16 sps:$4 sm:$0xff]  }
 0x117   : > { %v3028_v56 = vpop.f32.mrf.mxu1  ;;  %3749 = vmatpush2.bf16.msra.mxu1 %v5172_v48  ;;  %3627 = vmatprep.subr.bf16.mxu0 %v5177_v50  ;;  %v5193_v50 = vld [vmem:[%s5416_s5 + $0x1a0] ss:$16 sps:$4 sm:$0xff]  }
 0x118   : > { %v6167_v59 = vadd.f32 %v3028_v56, %v2905_v55  ;;  %3750 = vmatprep.subr.bf16.mxu1 %v5180_v51  ;;  %v2907_v60 = vpop.f32.mrf.mxu0  ;;  %v5196_v51 = vld [vmem:[%s5416_s5 + $0x1a8] ss:$16 sps:$4 sm:$0xff]   ;;  %v5204_v55 = vld [vmem:[%s5416_s5 + $0x1cc] ss:$16 sps:$4 sm:$0xff]  }
 0x119   : > { %v3030_v61 = vpop.f32.mrf.mxu1 }
 0x11a   : > { %v6171_v0 = vadd.f32 %v3030_v61, %v2907_v60  ;;  %v2909_v3 = vpop.f32.mrf.mxu0  ;;  %3628 = vmatpush2.bf16.msra.mxu0 %v5175_v57 }
 0x11b   : > { %v3032_v4 = vpop.f32.mrf.mxu1  ;;  %3751 = vmatpush2.bf16.msra.mxu1 %v5178_v58 }
 0x11c   : > { %v6175_v5 = vadd.f32 %v3032_v4, %v2909_v3  ;;  %v2913_v6 = vpop.f32.mrf.mxu0  ;;  %3464 = vmatmul.mubr.bf16.gmra.mxu0 %v5170_v62 }
 0x11d   : > { %v3036_v7 = vpop.f32.mrf.mxu1  ;;  %3587 = vmatmul.mubr.bf16.gmra.mxu1 %v5171_v63  ;;  %3629 = vmatprep.mubr.bf16.mxu0 %v5183_v1 }
 0x11e   : > { %v6177_v8 = vadd.f32 %v3036_v7, %v2913_v6  ;;  %3752 = vmatprep.mubr.bf16.mxu1 %v5186_v2  ;;  %v2915_v9 = vpop.f32.mrf.mxu0  ;;  %v5199_v6 = vld [vmem:[%s5416_s5 + $0x1c0] ss:$16 sps:$4 sm:$0xff]   ;;  %v5202_v7 = vld [vmem:[%s5416_s5 + $0x1c8] ss:$16 sps:$4 sm:$0xff]  }
 0x11f   : > { %v3038_v10 = vpop.f32.mrf.mxu1 }
 0x120   : > { %v6179_v11 = vadd.f32 %v3038_v10, %v2915_v9  ;;  %v2917_v12 = vpop.f32.mrf.mxu0  ;;  %v5207_v10 = vld [vmem:[%s5416_s5 + $0x1e4] ss:$16 sps:$4 sm:$0xff]  }
 0x121   : > { %v3040_v13 = vpop.f32.mrf.mxu1 }
 0x122   : > { %v6183_v16 = vadd.f32 %v3040_v13, %v2917_v12  ;;  %v2919_v19 = vpop.f32.mrf.mxu0  ;;  %v5210_v12 = vld [vmem:[%s5416_s5 + $0x1ec] ss:$16 sps:$4 sm:$0xff]  }
 0x123   : > { %v3042_v20 = vpop.f32.mrf.mxu1 }
 0x124   : > { %v6187_v21 = vadd.f32 %v3042_v20, %v2919_v19  ;;  %v2923_v22 = vpop.f32.mrf.mxu0  ;;  %3630 = vmatmul.mubr.bf16.vlgmr.msra.gmra.mxu0 %v5181_v14 }
 0x125   : > { %v3046_v23 = vpop.f32.mrf.mxu1  ;;  %3753 = vmatmul.mubr.bf16.vlgmr.msra.gmra.mxu1 %v5184_v15  ;;  %3639 = vmatprep.mubr.bf16.mxu0 %v5189_v17 }
 0x126   : > { %v6189_v24 = vadd.f32 %v3046_v23, %v2923_v22  ;;  %3762 = vmatprep.mubr.bf16.mxu1 %v5192_v18  ;;  %v2925_v25 = vpop.f32.mrf.mxu0 }
 0x127   : > { %v3048_v26 = vpop.f32.mrf.mxu1 }
 0x128   : > { %v6191_v27 = vadd.f32 %v3048_v26, %v2925_v25  ;;  %v2927_v28 = vpop.f32.mrf.mxu0 }
 0x129   : > { %v3050_v29 = vpop.f32.mrf.mxu1 }
 0x12a   : > { %v6195_v33 = vadd.f32 %v3050_v29, %v2927_v28  ;;  %v2929_v36 = vpop.f32.mrf.mxu0  ;;  %v5205_v28 = vld [vmem:[%s5416_s5 + $0x1e0] ss:$16 sps:$4 sm:$0xff]   ;;  %v5208_v29 = vld [vmem:[%s5416_s5 + $0x1e8] ss:$16 sps:$4 sm:$0xff]  }
 0x12b   : > { %v3052_v38 = vpop.f32.mrf.mxu1 }
 0x12c   : > { %v6199_v39 = vadd.f32 %v3052_v38, %v2929_v36  ;;  %v2933_v40 = vpop.f32.mrf.mxu0  ;;  %3640 = vmatmul.mubr.bf16.gmra.mxu0 %v5187_v31 }
 0x12d   : > { %v3056_v41 = vpop.f32.mrf.mxu1  ;;  %3763 = vmatmul.mubr.bf16.gmra.mxu1 %v5190_v32  ;;  %3649 = vmatprep.mubr.bf16.mxu0 %v5195_v34  ;;  %v5213_v32 = vld [vmem:[%s5416_s5 + $0x204] ss:$16 sps:$4 sm:$0xff]   ;;  %v5216_v34 = vld [vmem:[%s5416_s5 + $0x20c] ss:$16 sps:$4 sm:$0xff]  }
 0x12e   : > { %v6201_v42 = vadd.f32 %v3056_v41, %v2933_v40  ;;  %3772 = vmatprep.mubr.bf16.mxu1 %v5198_v35  ;;  %v2935_v43 = vpop.f32.mrf.mxu0 }
 0x12f   : > { %v3058_v45 = vpop.f32.mrf.mxu1 }
 0x130   : > { %v6203_v46 = vadd.f32 %v3058_v45, %v2935_v43  ;;  %v2937_v47 = vpop.f32.mrf.mxu0 }
 0x131   : > { %v3060_v48 = vpop.f32.mrf.mxu1 }
 0x132   : > { %v6207_v52 = vadd.f32 %v3060_v48, %v2937_v47  ;;  %v2939_v56 = vpop.f32.mrf.mxu0 }
 0x133   : > { %v3062_v57 = vpop.f32.mrf.mxu1 }
 0x134   : > { %v6211_v58 = vadd.f32 %v3062_v57, %v2939_v56  ;;  %v2943_v60 = vpop.f32.mrf.mxu0  ;;  %3650 = vmatmul.mubr.bf16.gmra.mxu0 %v5193_v50  ;;  %v5219_v57 = vld [vmem:[%s5416_s5 + $0x224] ss:$16 sps:$4 sm:$0xff]  }
 0x135   : > { %v3066_v61 = vpop.f32.mrf.mxu1  ;;  %3773 = vmatmul.mubr.bf16.gmra.mxu1 %v5196_v51  ;;  %3659 = vmatprep.mubr.bf16.mxu0 %v5201_v53  ;;  %v5211_v53 = vld [vmem:[%s5416_s5 + $0x200] ss:$16 sps:$4 sm:$0xff]  }
 0x136   : > { %v6213_v62 = vadd.f32 %v3066_v61, %v2943_v60  ;;  %3782 = vmatprep.mubr.bf16.mxu1 %v5204_v55  ;;  %v2945_v63 = vpop.f32.mrf.mxu0  ;;  %v5214_v55 = vld [vmem:[%s5416_s5 + $0x208] ss:$16 sps:$4 sm:$0xff]   ;;  %v5222_v60 = vld [vmem:[%s5416_s5 + $0x22c] ss:$16 sps:$4 sm:$0xff]  }
 0x137   : > { %v3068_v1 = vpop.f32.mrf.mxu1 }
 0x138   : > { %v6215_v2 = vadd.f32 %v3068_v1, %v2945_v63  ;;  %v2947_v3 = vpop.f32.mrf.mxu0 }
 0x139   : > { %v3070_v4 = vpop.f32.mrf.mxu1 }
 0x13a   : > { %v6219_v9 = vadd.f32 %v3070_v4, %v2947_v3  ;;  %v2949_v13 = vpop.f32.mrf.mxu0 }
 0x13b   : > { %v3072_v14 = vpop.f32.mrf.mxu1 }
 0x13c   : > { %v6223_v15 = vadd.f32 %v3072_v14, %v2949_v13  ;;  %v2953_v17 = vpop.f32.mrf.mxu0  ;;  %3660 = vmatmul.mubr.bf16.gmra.mxu0 %v5199_v6 }
 0x13d   : > { %v3076_v18 = vpop.f32.mrf.mxu1  ;;  %3783 = vmatmul.mubr.bf16.gmra.mxu1 %v5202_v7  ;;  %3669 = vmatprep.mubr.bf16.mxu0 %v5207_v10 }
 0x13e   : > { %v6225_v19 = vadd.f32 %v3076_v18, %v2953_v17  ;;  %3792 = vmatprep.mubr.bf16.mxu1 %v5210_v12  ;;  %v2955_v20 = vpop.f32.mrf.mxu0  ;;  %v5217_v17 = vld [vmem:[%s5416_s5 + $0x220] ss:$16 sps:$4 sm:$0xff]   ;;  %v5220_v18 = vld [vmem:[%s5416_s5 + $0x228] ss:$16 sps:$4 sm:$0xff]  }
 0x13f   : > { %v3078_v22 = vpop.f32.mrf.mxu1 }
 0x140   : > { %v6227_v23 = vadd.f32 %v3078_v22, %v2955_v20  ;;  %v2957_v25 = vpop.f32.mrf.mxu0  ;;  %v5225_v22 = vld [vmem:[%s5416_s5 + $0x244] ss:$16 sps:$4 sm:$0xff]  }
 0x141   : > { %v3080_v26 = vpop.f32.mrf.mxu1 }
 0x142   : > { %v6231_v31 = vadd.f32 %v3080_v26, %v2957_v25  ;;  %v2959_v35 = vpop.f32.mrf.mxu0  ;;  %v5228_v25 = vld [vmem:[%s5416_s5 + $0x24c] ss:$16 sps:$4 sm:$0xff]  }
 0x143   : > { %v3082_v36 = vpop.f32.mrf.mxu1 }
 0x144   : > { %v6235_v38 = vadd.f32 %v3082_v36, %v2959_v35  ;;  %v2963_v40 = vpop.f32.mrf.mxu0  ;;  %3670 = vmatmul.mubr.bf16.gmra.mxu0 %v5205_v28 }
 0x145   : > { %v3086_v41 = vpop.f32.mrf.mxu1  ;;  %3793 = vmatmul.mubr.bf16.gmra.mxu1 %v5208_v29  ;;  %3679 = vmatprep.mubr.bf16.mxu0 %v5213_v32 }
 0x146   : > { %v6237_v43 = vadd.f32 %v3086_v41, %v2963_v40  ;;  %3802 = vmatprep.mubr.bf16.mxu1 %v5216_v34  ;;  %v2965_v45 = vpop.f32.mrf.mxu0 }
 0x147   : > { %v3088_v47 = vpop.f32.mrf.mxu1 }
 0x148   : > { %v6239_v48 = vadd.f32 %v3088_v47, %v2965_v45  ;;  %v2967_v50 = vpop.f32.mrf.mxu0 }
 0x149   : > { %v3090_v51 = vpop.f32.mrf.mxu1 }
 0x14a   : > { %v6243_v56 = vadd.f32 %v3090_v51, %v2967_v50  ;;  %v2969_v61 = vpop.f32.mrf.mxu0  ;;  %v5223_v51 = vld [vmem:[%s5416_s5 + $0x240] ss:$16 sps:$4 sm:$0xff]  }
 0x14b   : > { %v3092_v63 = vpop.f32.mrf.mxu1 }
 0x14c   : > { %v6247_v1 = vadd.f32 %v3092_v63, %v2969_v61  ;;  %v2973_v3 = vpop.f32.mrf.mxu0  ;;  %3680 = vmatmul.mubr.bf16.gmra.mxu0 %v5211_v53  ;;  %v5226_v53 = vld [vmem:[%s5416_s5 + $0x248] ss:$16 sps:$4 sm:$0xff]   ;;  %v5234_v61 = vld [vmem:[%s5416_s5 + $0x26c] ss:$16 sps:$4 sm:$0xff]  }
 0x14d   : > { %v3096_v4 = vpop.f32.mrf.mxu1  ;;  %3803 = vmatmul.mubr.bf16.gmra.mxu1 %v5214_v55  ;;  %3689 = vmatprep.mubr.bf16.mxu0 %v5219_v57 }
 0x14e   : > { %v6249_v6 = vadd.f32 %v3096_v4, %v2973_v3  ;;  %3812 = vmatprep.mubr.bf16.mxu1 %v5222_v60  ;;  %v2975_v7 = vpop.f32.mrf.mxu0  ;;  %v5231_v60 = vld [vmem:[%s5416_s5 + $0x264] ss:$16 sps:$4 sm:$0xff]  }
 0x14f   : > { %v3098_v10 = vpop.f32.mrf.mxu1 }
 0x150   : > { %v6251_v12 = vadd.f32 %v3098_v10, %v2975_v7  ;;  %v2977_v13 = vpop.f32.mrf.mxu0 }
 0x151   : > { %v3100_v14 = vpop.f32.mrf.mxu1 }
 0x152   : > { %v6255_v20 = vadd.f32 %v3100_v14, %v2977_v13  ;;  %v2979_v26 = vpop.f32.mrf.mxu0 }
 0x153   : > { %v3102_v28 = vpop.f32.mrf.mxu1 }
 0x154   : > { %v6259_v29 = vadd.f32 %v3102_v28, %v2979_v26  ;;  %v3139_v32 = vpop.f32.mrf.mxu0  ;;  %3690 = vmatmul.mubr.bf16.gmra.mxu0 %v5217_v17  ;;  %v5232_v26 = vld [vmem:[%s5416_s5 + $0x268] ss:$16 sps:$4 sm:$0xff]  }
 0x155   : > { %v3262_v34 = vpop.f32.mrf.mxu1  ;;  %3813 = vmatmul.mubr.bf16.gmra.mxu1 %v5220_v18  ;;  %v3140_v35 = vadd.f32 %v3139_v32, %v6123_v30  ;;  %3699 = vmatprep.mubr.bf16.mxu0 %v5225_v22 }
 0x156   : > { %3822 = vmatprep.mubr.bf16.mxu1 %v5228_v25  ;;  %v3141_v36 = vpop.f32.mrf.mxu0 }
 0x157   : > { %v3264_v40 = vpop.f32.mrf.mxu1  ;;  %v6262_v41 = vadd.f32 %v3262_v34, %v3140_v35  ;;  %v3142_v45 = vadd.f32 %v3141_v36, %v6133_v37 }
 0x158   : > { %v3143_v47 = vpop.f32.mrf.mxu0 }
 0x159   : > { %v3266_v50 = vpop.f32.mrf.mxu1  ;;  %v6267_v55 = vadd.f32 %v3264_v40, %v3142_v45  ;;  %v3144_v57 = vadd.f32 %v3143_v47, %v6143_v44 }
 0x15a   : > { %v3145_v63 = vpop.f32.mrf.mxu0 }
 0x15b   : > { %v3268_v30 = vpop.f32.mrf.mxu1  ;;  %v6272_v3 = vadd.f32 %v3266_v50, %v3144_v57  ;;  %v3146_v4 = vadd.f32 %v3145_v63, %v6151_v49  ;;  %v5229_v49 = vld [vmem:[%s5416_s5 + $0x260] ss:$16 sps:$4 sm:$0xff]  }
 0x15c   : > { %v3149_v7 = vpop.f32.mrf.mxu0  ;;  %3700 = vmatmul.mubr.bf16.gmra.mxu0 %v5223_v51 }
 0x15d   : > { %v3272_v37 = vpop.f32.mrf.mxu1  ;;  %3823 = vmatmul.mubr.bf16.gmra.mxu1 %v5226_v53  ;;  %v6275_v10 = vadd.f32 %v3268_v30, %v3146_v4  ;;  %v3150_v13 = vadd.f32 %v3149_v7, %v6159_v54  ;;  %3709 = vmatprep.mubr.bf16.mxu0 %v5231_v60 }
 0x15e   : > { %3832 = vmatprep.mubr.bf16.mxu1 %v5234_v61  ;;  %v3151_v44 = vpop.f32.mrf.mxu0 }
 0x15f   : > { %v3274_v14 = vpop.f32.mrf.mxu1  ;;  %v6278_v17 = vadd.f32 %v3272_v37, %v3150_v13  ;;  %v3152_v18 = vadd.f32 %v3151_v44, %v6167_v59 }
 0x160   : > { %v3153_v22 = vpop.f32.mrf.mxu0 }
 0x161   : > { %v3276_v25 = vpop.f32.mrf.mxu1  ;;  %v6283_v28 = vadd.f32 %v3274_v14, %v3152_v18  ;;  %v3154_v32 = vadd.f32 %v3153_v22, %v6171_v0 }
 0x162   : > { %v3155_v34 = vpop.f32.mrf.mxu0 }
 0x163   : > { %v3278_v35 = vpop.f32.mrf.mxu1  ;;  %v6286_v36 = vadd.f32 %v3276_v25, %v3154_v32  ;;  %v3156_v54 = vadd.f32 %v3155_v34, %v6175_v5 }
 0x164   : > { %v3159_v40 = vpop.f32.mrf.mxu0  ;;  %3710 = vmatmul.mubr.bf16.gmra.mxu0 %v5229_v49 }
 0x165   : > { %v3282_v45 = vpop.f32.mrf.mxu1  ;;  %3833 = vmatmul.mubr.bf16.gmra.mxu1 %v5232_v26  ;;  %v6289_v47 = vadd.f32 %v3278_v35, %v3156_v54  ;;  %v3160_v59 = vadd.f32 %v3159_v40, %v6177_v8 }
 0x166   : > { %v3161_v50 = vpop.f32.mrf.mxu0 }
 0x167   : > { %v3284_v51 = vpop.f32.mrf.mxu1  ;;  %v6292_v53 = vadd.f32 %v3282_v45, %v3160_v59  ;;  %v3162_v0 = vadd.f32 %v3161_v50, %v6179_v11 }
 0x168   : > { %v3163_v57 = vpop.f32.mrf.mxu0 }
 0x169   : > { %v3286_v60 = vpop.f32.mrf.mxu1  ;;  %v6295_v61 = vadd.f32 %v3284_v51, %v3162_v0  ;;  %v3164_v5 = vadd.f32 %v3163_v57, %v6183_v16 }
 0x16a   : > { %v3165_v63 = vpop.f32.mrf.mxu0 }
 0x16b   : > { %v3288_v30 = vpop.f32.mrf.mxu1  ;;  %v6298_v4 = vadd.f32 %v3286_v60, %v3164_v5  ;;  %v3166_v7 = vadd.f32 %v3165_v63, %v6187_v21 }
 0x16c   : > { %v3169_v37 = vpop.f32.mrf.mxu0 }
 0x16d   : > { %v3292_v8 = vpop.f32.mrf.mxu1  ;;  %v6301_v13 = vadd.f32 %v3288_v30, %v3166_v7  ;;  %v3170_v44 = vadd.f32 %v3169_v37, %v6189_v24 }
 0x16e   : > { %v3171_v14 = vpop.f32.mrf.mxu0 }
 0x16f   : > { %v3294_v11 = vpop.f32.mrf.mxu1  ;;  %v6304_v18 = vadd.f32 %v3292_v8, %v3170_v44  ;;  %v3172_v22 = vadd.f32 %v3171_v14, %v6191_v27 }
 0x170   : > { %v3173_v25 = vpop.f32.mrf.mxu0 }
 0x171   : > { %v3296_v16 = vpop.f32.mrf.mxu1  ;;  %v6307_v49 = vadd.f32 %v3294_v11, %v3172_v22  ;;  %v3174_v26 = vadd.f32 %v3173_v25, %v6195_v33 }
 0x172   : > { %v3175_v32 = vpop.f32.mrf.mxu0 }
 0x173   : > { %v3298_v21 = vpop.f32.mrf.mxu1  ;;  %v6310_v34 = vadd.f32 %v3296_v16, %v3174_v26  ;;  %v3176_v35 = vadd.f32 %v3175_v32, %v6199_v39 }
 0x174   : > { %v3179_v54 = vpop.f32.mrf.mxu0 }
 0x175   : > { %v3302_v24 = vpop.f32.mrf.mxu1  ;;  %v6313_v40 = vadd.f32 %v3298_v21, %v3176_v35  ;;  %v3180_v45 = vadd.f32 %v3179_v54, %v6201_v42 }
 0x176   : > { %v3181_v59 = vpop.f32.mrf.mxu0 }
 0x177   : > { %v3304_v27 = vpop.f32.mrf.mxu1  ;;  %v6316_v50 = vadd.f32 %v3302_v24, %v3180_v45  ;;  %v3182_v51 = vadd.f32 %v3181_v59, %v6203_v46 }
 0x178   : > { %v3183_v0 = vpop.f32.mrf.mxu0 }
 0x179   : > { %v3306_v33 = vpop.f32.mrf.mxu1  ;;  %v6319_v57 = vadd.f32 %v3304_v27, %v3182_v51  ;;  %v3184_v60 = vadd.f32 %v3183_v0, %v6207_v52 }
 0x17a   : > { %v3185_v5 = vpop.f32.mrf.mxu0 }
 0x17b   : > { %v3308_v39 = vpop.f32.mrf.mxu1  ;;  %v6322_v63 = vadd.f32 %v3306_v33, %v3184_v60  ;;  %v3186_v30 = vadd.f32 %v3185_v5, %v6211_v58 }
 0x17c   : > { %v3189_v7 = vpop.f32.mrf.mxu0 }
 0x17d   : > { %v3312_v42 = vpop.f32.mrf.mxu1  ;;  %v6325_v37 = vadd.f32 %v3308_v39, %v3186_v30  ;;  %v3190_v8 = vadd.f32 %v3189_v7, %v6213_v62 }
 0x17e   : > { %v3191_v44 = vpop.f32.mrf.mxu0 }
 0x17f   : > { %v3314_v46 = vpop.f32.mrf.mxu1  ;;  %v6328_v14 = vadd.f32 %v3312_v42, %v3190_v8  ;;  %v3192_v11 = vadd.f32 %v3191_v44, %v6215_v2 }
 0x180   : > { %v3193_v22 = vpop.f32.mrf.mxu0 }
 0x181   : > { %v3316_v52 = vpop.f32.mrf.mxu1  ;;  %v6331_v25 = vadd.f32 %v3314_v46, %v3192_v11  ;;  %v3194_v16 = vadd.f32 %v3193_v22, %v6219_v9 }
 0x182   : > { %v3195_v26 = vpop.f32.mrf.mxu0 }
 0x183   : > { %v3318_v58 = vpop.f32.mrf.mxu1  ;;  %v6334_v32 = vadd.f32 %v3316_v52, %v3194_v16  ;;  %v3196_v21 = vadd.f32 %v3195_v26, %v6223_v15 }
 0x184   : > { %v3199_v35 = vpop.f32.mrf.mxu0 }
 0x185   : > { %v3322_v62 = vpop.f32.mrf.mxu1  ;;  %v6337_v54 = vadd.f32 %v3318_v58, %v3196_v21  ;;  %v3200_v24 = vadd.f32 %v3199_v35, %v6225_v19 }
 0x186   : > { %v3201_v45 = vpop.f32.mrf.mxu0 }
 0x187   : > { %v3324_v2 = vpop.f32.mrf.mxu1  ;;  %v6340_v59 = vadd.f32 %v3322_v62, %v3200_v24  ;;  %v3202_v27 = vadd.f32 %v3201_v45, %v6227_v23 }
 0x188   : > { %v3203_v51 = vpop.f32.mrf.mxu0 }
 0x189   : > { %v3326_v9 = vpop.f32.mrf.mxu1  ;;  %v6343_v0 = vadd.f32 %v3324_v2, %v3202_v27  ;;  %v3204_v33 = vadd.f32 %v3203_v51, %v6231_v31 }
 0x18a   : > { %v3205_v60 = vpop.f32.mrf.mxu0 }
 0x18b   : > { %v3328_v15 = vpop.f32.mrf.mxu1  ;;  %v6346_v5 = vadd.f32 %v3326_v9, %v3204_v33  ;;  %v3206_v39 = vadd.f32 %v3205_v60, %v6235_v38 }
 0x18c   : > { %v3209_v30 = vpop.f32.mrf.mxu0 }
 0x18d   : > { %v3332_v19 = vpop.f32.mrf.mxu1  ;;  %v6349_v7 = vadd.f32 %v3328_v15, %v3206_v39  ;;  %v3210_v42 = vadd.f32 %v3209_v30, %v6237_v43 }
 0x18e   : > { %v3211_v8 = vpop.f32.mrf.mxu0 }
 0x18f   : > { %v3334_v23 = vpop.f32.mrf.mxu1  ;;  %v6352_v44 = vadd.f32 %v3332_v19, %v3210_v42  ;;  %v3212_v46 = vadd.f32 %v3211_v8, %v6239_v48 }
 0x190   : > { %v3213_v11 = vpop.f32.mrf.mxu0 }
 0x191   : > { %v3336_v31 = vpop.f32.mrf.mxu1  ;;  %v6355_v22 = vadd.f32 %v3334_v23, %v3212_v46  ;;  %v3214_v52 = vadd.f32 %v3213_v11, %v6243_v56 }
 0x192   : > { %v3215_v16 = vpop.f32.mrf.mxu0 }
 0x193   : > { %v3338_v38 = vpop.f32.mrf.mxu1  ;;  %v6358_v26 = vadd.f32 %v3336_v31, %v3214_v52  ;;  %v3216_v58 = vadd.f32 %v3215_v16, %v6247_v1 }
 0x194   : > { %v3219_v21 = vpop.f32.mrf.mxu0 }
 0x195   : > { %v3342_v43 = vpop.f32.mrf.mxu1  ;;  %v6361_v35 = vadd.f32 %v3338_v38, %v3216_v58  ;;  %v3220_v62 = vadd.f32 %v3219_v21, %v6249_v6 }
 0x196   : > { %v3221_v24 = vpop.f32.mrf.mxu0 }
 0x197   : > { %v3344_v48 = vpop.f32.mrf.mxu1  ;;  %v6364_v45 = vadd.f32 %v3342_v43, %v3220_v62  ;;  %v3222_v2 = vadd.f32 %v3221_v24, %v6251_v12 }
 0x198   : > { %v3223_v27 = vpop.f32.mrf.mxu0 }
 0x199   : > { %v3346_v56 = vpop.f32.mrf.mxu1  ;;  %v6367_v51 = vadd.f32 %v3344_v48, %v3222_v2  ;;  %v3224_v9 = vadd.f32 %v3223_v27, %v6255_v20 }
 0x19a   : > { %v3225_v33 = vpop.f32.mrf.mxu0 }
 0x19b   : > { %v3348_v1 = vpop.f32.mrf.mxu1  ;;  %v6370_v60 = vadd.f32 %v3346_v56, %v3224_v9  ;;  %v3226_v15 = vadd.f32 %v3225_v33, %v6259_v29 }
 0x19c   : > { %v3385_v39 = vpop.f32.mrf.mxu0 }
 0x19d   : > { %v3508_v6 = vpop.f32.mrf.mxu1  ;;  %v6373_v30 = vadd.f32 %v3348_v1, %v3226_v15  ;;  %v3386_v19 = vadd.f32 %v3385_v39, %v6262_v41 }
 0x19e   : > { %v3387_v42 = vpop.f32.mrf.mxu0 }
 0x19f   : > { %v3510_v12 = vpop.f32.mrf.mxu1  ;;  %v6376_v8 = vadd.f32 %v3508_v6, %v3386_v19  ;;  %v3388_v23 = vadd.f32 %v3387_v42, %v6267_v55 }
 0x1a0   : > { %v3389_v46 = vpop.f32.mrf.mxu0 }
 0x1a1   : > { %v3512_v20 = vpop.f32.mrf.mxu1  ;;  %v6379_v11 = vadd.f32 %v3510_v12, %v3388_v23  ;;  %v3390_v31 = vadd.f32 %v3389_v46, %v6272_v3 }
 0x1a2   : > { %v3391_v52 = vpop.f32.mrf.mxu0 }
 0x1a3   : > { %v3514_v29 = vpop.f32.mrf.mxu1  ;;  %v6382_v16 = vadd.f32 %v3512_v20, %v3390_v31  ;;  %v3392_v38 = vadd.f32 %v3391_v52, %v6275_v10 }
 0x1a4   : > { %v3395_v58 = vpop.f32.mrf.mxu0 }
 0x1a5   : > { %v3518_v41 = vpop.f32.mrf.mxu1  ;;  %v6385_v21 = vadd.f32 %v3514_v29, %v3392_v38  ;;  %v3396_v43 = vadd.f32 %v3395_v58, %v6278_v17 }
 0x1a6   : > { %v3397_v62 = vpop.f32.mrf.mxu0 }
 0x1a7   : > { %v3520_v55 = vpop.f32.mrf.mxu1  ;;  %v6388_v24 = vadd.f32 %v3518_v41, %v3396_v43  ;;  %v3398_v48 = vadd.f32 %v3397_v62, %v6283_v28 }
 0x1a8   : > { %v3399_v2 = vpop.f32.mrf.mxu0 }
 0x1a9   : > { %v3522_v3 = vpop.f32.mrf.mxu1  ;;  %v6391_v27 = vadd.f32 %v3520_v55, %v3398_v48  ;;  %v3400_v56 = vadd.f32 %v3399_v2, %v6286_v36 }
 0x1aa   : > { %v3401_v9 = vpop.f32.mrf.mxu0 }
 0x1ab   : > { %v3524_v10 = vpop.f32.mrf.mxu1  ;;  %v6394_v33 = vadd.f32 %v3522_v3, %v3400_v56  ;;  %v3402_v1 = vadd.f32 %v3401_v9, %v6289_v47 }
 0x1ac   : > { %v3405_v15 = vpop.f32.mrf.mxu0 }
 0x1ad   : > { %v3528_v17 = vpop.f32.mrf.mxu1  ;;  %v6397_v39 = vadd.f32 %v3524_v10, %v3402_v1  ;;  %v3406_v6 = vadd.f32 %v3405_v15, %v6292_v53 }
 0x1ae   : > { %v3407_v19 = vpop.f32.mrf.mxu0 }
 0x1af   : > { %v3530_v28 = vpop.f32.mrf.mxu1  ;;  %v6400_v42 = vadd.f32 %v3528_v17, %v3406_v6  ;;  %v3408_v12 = vadd.f32 %v3407_v19, %v6295_v61 }
 0x1b0   : > { %v3409_v23 = vpop.f32.mrf.mxu0 }
 0x1b1   : > { %v3532_v36 = vpop.f32.mrf.mxu1  ;;  %v6403_v46 = vadd.f32 %v3530_v28, %v3408_v12  ;;  %v3410_v20 = vadd.f32 %v3409_v23, %v6298_v4 }
 0x1b2   : > { %v3411_v31 = vpop.f32.mrf.mxu0 }
 0x1b3   : > { %v3534_v47 = vpop.f32.mrf.mxu1  ;;  %v6406_v52 = vadd.f32 %v3532_v36, %v3410_v20  ;;  %v3412_v29 = vadd.f32 %v3411_v31, %v6301_v13 }
 0x1b4   : > { %v3415_v38 = vpop.f32.mrf.mxu0 }
 0x1b5   : > { %v3538_v53 = vpop.f32.mrf.mxu1  ;;  %v6409_v58 = vadd.f32 %v3534_v47, %v3412_v29  ;;  %v3416_v41 = vadd.f32 %v3415_v38, %v6304_v18 }
 0x1b6   : > { %v3417_v43 = vpop.f32.mrf.mxu0 }
 0x1b7   : > { %v3540_v61 = vpop.f32.mrf.mxu1  ;;  %v6412_v62 = vadd.f32 %v3538_v53, %v3416_v41  ;;  %v3418_v55 = vadd.f32 %v3417_v43, %v6307_v49 }
 0x1b8   : > { %v3419_v48 = vpop.f32.mrf.mxu0 }
 0x1b9   : > { %v3542_v4 = vpop.f32.mrf.mxu1  ;;  %v6415_v2 = vadd.f32 %v3540_v61, %v3418_v55  ;;  %v3420_v3 = vadd.f32 %v3419_v48, %v6310_v34 }
 0x1ba   : > { %v3421_v56 = vpop.f32.mrf.mxu0 }
 0x1bb   : > { %v3544_v13 = vpop.f32.mrf.mxu1  ;;  %v6418_v9 = vadd.f32 %v3542_v4, %v3420_v3  ;;  %v3422_v10 = vadd.f32 %v3421_v56, %v6313_v40 }
 0x1bc   : > { %v3425_v1 = vpop.f32.mrf.mxu0 }
 0x1bd   : > { %v3548_v18 = vpop.f32.mrf.mxu1  ;;  %v6421_v15 = vadd.f32 %v3544_v13, %v3422_v10  ;;  %v3426_v17 = vadd.f32 %v3425_v1, %v6316_v50 }
 0x1be   : > { %v3427_v6 = vpop.f32.mrf.mxu0 }
 0x1bf   : > { %v3550_v49 = vpop.f32.mrf.mxu1  ;;  %v6424_v19 = vadd.f32 %v3548_v18, %v3426_v17  ;;  %v3428_v28 = vadd.f32 %v3427_v6, %v6319_v57 }
 0x1c0   : > { %v3429_v12 = vpop.f32.mrf.mxu0 }
 0x1c1   : > { %v3552_v34 = vpop.f32.mrf.mxu1  ;;  %v6427_v23 = vadd.f32 %v3550_v49, %v3428_v28  ;;  %v3430_v36 = vadd.f32 %v3429_v12, %v6322_v63 }
 0x1c2   : > { %v3431_v20 = vpop.f32.mrf.mxu0 }
 0x1c3   : > { %v3554_v40 = vpop.f32.mrf.mxu1  ;;  %v6430_v31 = vadd.f32 %v3552_v34, %v3430_v36  ;;  %v3432_v47 = vadd.f32 %v3431_v20, %v6325_v37 }
 0x1c4   : > { %v3435_v29 = vpop.f32.mrf.mxu0 }
 0x1c5   : > { %v3558_v50 = vpop.f32.mrf.mxu1  ;;  %v6433_v38 = vadd.f32 %v3554_v40, %v3432_v47  ;;  %v3436_v53 = vadd.f32 %v3435_v29, %v6328_v14 }
 0x1c6   : > { %v3437_v41 = vpop.f32.mrf.mxu0 }
 0x1c7   : > { %v3560_v57 = vpop.f32.mrf.mxu1  ;;  %v6436_v43 = vadd.f32 %v3558_v50, %v3436_v53  ;;  %v3438_v61 = vadd.f32 %v3437_v41, %v6331_v25 }
 0x1c8   : > { %v3439_v55 = vpop.f32.mrf.mxu0 }
 0x1c9   : > { %v3562_v63 = vpop.f32.mrf.mxu1  ;;  %v6439_v48 = vadd.f32 %v3560_v57, %v3438_v61  ;;  %v3440_v4 = vadd.f32 %v3439_v55, %v6334_v32 }
 0x1ca   : > { %v3441_v3 = vpop.f32.mrf.mxu0 }
 0x1cb   : > { %v3564_v37 = vpop.f32.mrf.mxu1  ;;  %v6442_v56 = vadd.f32 %v3562_v63, %v3440_v4  ;;  %v3442_v13 = vadd.f32 %v3441_v3, %v6337_v54  ;;  %v3917_v4 = vlaneseq }
 0x1cc   : > { %v3445_v10 = vpop.f32.mrf.mxu0 }
 0x1cd   : > { %v3568_v14 = vpop.f32.mrf.mxu1  ;;  %v6445_v1 = vadd.f32 %v3564_v37, %v3442_v13  ;;  %v3446_v18 = vadd.f32 %v3445_v10, %v6340_v59 }
 0x1ce   : > { %v3447_v17 = vpop.f32.mrf.mxu0 }
 0x1cf   : > { %v3570_v25 = vpop.f32.mrf.mxu1  ;;  %v6448_v6 = vadd.f32 %v3568_v14, %v3446_v18  ;;  %v3448_v49 = vadd.f32 %v3447_v17, %v6343_v0 }
 0x1d0   : > { %v3449_v28 = vpop.f32.mrf.mxu0 }
 0x1d1   : > { %v3572_v32 = vpop.f32.mrf.mxu1  ;;  %v6451_v12 = vadd.f32 %v3570_v25, %v3448_v49  ;;  %v3450_v34 = vadd.f32 %v3449_v28, %v6346_v5 }
 0x1d2   : > { %v3451_v36 = vpop.f32.mrf.mxu0 }
 0x1d3   : > { %v3574_v54 = vpop.f32.mrf.mxu1  ;;  %v6454_v20 = vadd.f32 %v3572_v32, %v3450_v34  ;;  %v3452_v40 = vadd.f32 %v3451_v36, %v6349_v7 }
 0x1d4   : > { %v3455_v47 = vpop.f32.mrf.mxu0 }
 0x1d5   : > { %v3578_v59 = vpop.f32.mrf.mxu1  ;;  %v6457_v29 = vadd.f32 %v3574_v54, %v3452_v40  ;;  %v3456_v50 = vadd.f32 %v3455_v47, %v6352_v44 }
 0x1d6   : > { %v3457_v53 = vpop.f32.mrf.mxu0 }
 0x1d7   : > { %v3580_v0 = vpop.f32.mrf.mxu1  ;;  %v6460_v41 = vadd.f32 %v3578_v59, %v3456_v50  ;;  %v3458_v57 = vadd.f32 %v3457_v53, %v6355_v22  ;;  %v3918_v22 = vshrl.u32 %v3917_v4, 7 }
 0x1d8   : > { %v3459_v61 = vpop.f32.mrf.mxu0 }
 0x1d9   : > { %v3582_v5 = vpop.f32.mrf.mxu1  ;;  %v6463_v55 = vadd.f32 %v3580_v0, %v3458_v57  ;;  %v3460_v63 = vadd.f32 %v3459_v61, %v6358_v26  ;;  %v3923_v50 = vsub.s32 1, %v3918_v22 }
 0x1da   : > { %v3461_v7 = vpop.f32.mrf.mxu0 }
 0x1db   : > { %v3584_v3 = vpop.f32.mrf.mxu1  ;;  %v6466_v37 = vadd.f32 %v3582_v5, %v3460_v63  ;;  %v3462_v13 = vadd.f32 %v3461_v7, %v6361_v35  ;;  %v3919_v35 = vsub.s32 0, %v3918_v22 }
 0x1dc   : > { %v3465_v44 = vpop.f32.mrf.mxu0 }
 0x1dd   : > { %v3588_v10 = vpop.f32.mrf.mxu1  ;;  %v6469_v14 = vadd.f32 %v3584_v3, %v3462_v13  ;;  %v3466_v18 = vadd.f32 %v3465_v44, %v6364_v45  ;;  %v3915_v45 = vld [vmem:[%s6591_s2] sm:$0x3] }
 0x1de   : > { %v3467_v17 = vpop.f32.mrf.mxu0  ;;  %v6490_v7 = vrot.slane %v3915_v45, %v3923_v50 }
 0x1df   : > { %v3590_v25 = vpop.f32.mrf.mxu1  ;;  %v6472_v49 = vadd.f32 %v3588_v10, %v3466_v18  ;;  %v3468_v26 = vadd.f32 %v3467_v17, %v6367_v51 }
 0x1e0   : > { %v3469_v28 = vpop.f32.mrf.mxu0 }
 0x1e1   : > { %v3592_v32 = vpop.f32.mrf.mxu1  ;;  %v6475_v34 = vadd.f32 %v3590_v25, %v3468_v26  ;;  %v3470_v36 = vadd.f32 %v3469_v28, %v6370_v60  ;;  %v6487_v60 = vrot.slane %v3915_v45, %v3919_v35 }
 0x1e2   : > { %v3471_v54 = vpop.f32.mrf.mxu0 }
 0x1e3   : > { %v3594_v40 = vpop.f32.mrf.mxu1  ;;  %v6481_v47 = vadd.f32 %v3592_v32, %v3470_v36  ;;  %v3472_v59 = vadd.f32 %v3471_v54, %v6373_v30 }
 0x1e4   : > { %v3631_v51 = vpop.f32.mrf.mxu0 }
 0x1e5   : > { %v3754_v53 = vpop.f32.mrf.mxu1  ;;  %v6484_v0 = vadd.f32 %v3594_v40, %v3472_v59  ;;  %v3632_v57 = vadd.f32 %v3631_v51, %v6376_v8 }
 0x1e6   : > { %v3633_v61 = vpop.f32.mrf.mxu0 }
 0x1e7   : > { %v3756_v5 = vpop.f32.mrf.mxu1  ;;  %v3755_v63 = vadd.f32 %v3754_v53, %v3632_v57  ;;  %v3634_v4 = vadd.f32 %v3633_v61, %v6379_v11 }
 0x1e8   : > { %v3635_v3 = vpop.f32.mrf.mxu0 }
 0x1e9   : > { %v3758_v13 = vpop.f32.mrf.mxu1  ;;  %v3927_v30 = vadd.f32 %v6487_v60, %v3755_v63  ;;  %v3757_v44 = vadd.f32 %v3756_v5, %v3634_v4  ;;  %v3636_v10 = vadd.f32 %v3635_v3, %v6382_v16 }
 0x1ea   : > { %v3637_v18 = vpop.f32.mrf.mxu0 }
 0x1eb   : > { %v3760_v22 = vpop.f32.mrf.mxu1  ;;  %v3928_v8 = vadd.f32 %v6490_v7, %v3757_v44  ;;  %v3759_v17 = vadd.f32 %v3758_v13, %v3636_v10  ;;  %v3638_v25 = vadd.f32 %v3637_v18, %v6385_v21  ;;  %v3963_v26 = vmax.f32 %v3927_v30, 0.0 }
 0x1ec   : > { %v3641_v28 = vpop.f32.mrf.mxu0 }
 0x1ed   : > { %v3764_v11 = vpop.f32.mrf.mxu1  ;;  %v3964_v32 = vmax.f32 %v3928_v8, 0.0  ;;  %v3929_v36 = vadd.f32 %v6487_v60, %v3759_v17  ;;  %v3761_v35 = vadd.f32 %v3760_v22, %v3638_v25  ;;  %v3642_v54 = vadd.f32 %v3641_v28, %v6388_v24 }
 0x1ee   : > { %v3643_v16 = vpop.f32.mrf.mxu0 }
 0x1ef   : > { %v3766_v40 = vpop.f32.mrf.mxu1  ;;  %v4607_v45 = vpack.c.bf16 %v3964_v32, %v3963_v26  ;;  %v3930_v21 = vadd.f32 %v6490_v7, %v3761_v35  ;;  %v3765_v59 = vadd.f32 %v3764_v11, %v3642_v54  ;;  %v3644_v50 = vadd.f32 %v3643_v16, %v6391_v27 }
 0x1f0   : > { %v3645_v51 = vpop.f32.mrf.mxu0  ;;  %v3965_v57 = vmax.f32 %v3929_v36, 0.0 }
 0x1f1   : > { %v3768_v53 = vpop.f32.mrf.mxu1  ;;  %4107 = vst [vmem:[%s6502_s13] sm:$0xff] %v4607_v45  ;;  %v3966_v24 = vmax.f32 %v3930_v21, 0.0  ;;  %v3646_v61 = vadd.f32 %v3645_v51, %v6394_v33  ;;  %v3931_v5 = vadd.f32 %v6487_v60, %v3765_v59  ;;  %v3767_v63 = vadd.f32 %v3766_v40, %v3644_v50 }
 0x1f2   : > { %v3647_v4 = vpop.f32.mrf.mxu0 }
 0x1f3   : > { %v3770_v3 = vpop.f32.mrf.mxu1  ;;  %v4608_v13 = vpack.c.bf16 %v3966_v24, %v3965_v57  ;;  %v3769_v30 = vadd.f32 %v3768_v53, %v3646_v61  ;;  %v3648_v44 = vadd.f32 %v3647_v4, %v6397_v39  ;;  %v3932_v10 = vadd.f32 %v6490_v7, %v3767_v63 }
 0x1f4   : > { %v3651_v27 = vpop.f32.mrf.mxu0  ;;  %v3967_v33 = vmax.f32 %v3931_v5, 0.0 }
 0x1f5   : > { %v3774_v18 = vpop.f32.mrf.mxu1  ;;  %4108 = vst [vmem:[%s6502_s13 + $0x8] sm:$0xff] %v4608_v13  ;;  %v3933_v22 = vadd.f32 %v6487_v60, %v3769_v30  ;;  %v3771_v8 = vadd.f32 %v3770_v3, %v3648_v44  ;;  %v3652_v17 = vadd.f32 %v3651_v27, %v6400_v42  ;;  %v3968_v25 = vmax.f32 %v3932_v10, 0.0 }
 0x1f6   : > { %v3653_v26 = vpop.f32.mrf.mxu0 }
 0x1f7   : > { %v3776_v28 = vpop.f32.mrf.mxu1  ;;  %v3934_v11 = vadd.f32 %v6490_v7, %v3771_v8  ;;  %v3775_v32 = vadd.f32 %v3774_v18, %v3652_v17  ;;  %v3654_v39 = vadd.f32 %v3653_v26, %v6403_v46  ;;  %v4609_v36 = vpack.c.bf16 %v3968_v25, %v3967_v33 }
 0x1f8   : > { %v3969_v35 = vmax.f32 %v3933_v22, 0.0  ;;  %v3655_v54 = vpop.f32.mrf.mxu0 }
 0x1f9   : > { %v3778_v16 = vpop.f32.mrf.mxu1  ;;  %v3970_v40 = vmax.f32 %v3934_v11, 0.0  ;;  %v3935_v45 = vadd.f32 %v6487_v60, %v3775_v32  ;;  %v3777_v21 = vadd.f32 %v3776_v28, %v3654_v39  ;;  %v3656_v42 = vadd.f32 %v3655_v54, %v6406_v52  ;;  %4109 = vst [vmem:[%s6502_s13 + $0x10] sm:$0xff] %v4609_v36 }
 0x1fa   : > { %v3657_v59 = vpop.f32.mrf.mxu0 }
 0x1fb   : > { %v3780_v50 = vpop.f32.mrf.mxu1  ;;  %v4610_v51 = vpack.c.bf16 %v3970_v40, %v3969_v35  ;;  %v3936_v53 = vadd.f32 %v6490_v7, %v3777_v21  ;;  %v3779_v57 = vadd.f32 %v3778_v16, %v3656_v42  ;;  %v3658_v46 = vadd.f32 %v3657_v59, %v6409_v58 }
 0x1fc   : > { %v3661_v24 = vpop.f32.mrf.mxu0  ;;  %v3971_v5 = vmax.f32 %v3935_v45, 0.0 }
 0x1fd   : > { %v3784_v61 = vpop.f32.mrf.mxu1  ;;  %4110 = vst [vmem:[%s6502_s13 + $0x18] sm:$0xff] %v4610_v51  ;;  %v3972_v63 = vmax.f32 %v3936_v53, 0.0  ;;  %v3662_v4 = vadd.f32 %v3661_v24, %v6412_v62  ;;  %v3937_v3 = vadd.f32 %v6487_v60, %v3779_v57  ;;  %v3781_v52 = vadd.f32 %v3780_v50, %v3658_v46 }
 0x1fe   : > { %v3663_v13 = vpop.f32.mrf.mxu0 }
 0x1ff   : > { %v3786_v30 = vpop.f32.mrf.mxu1  ;;  %v4611_v44 = vpack.c.bf16 %v3972_v63, %v3971_v5  ;;  %v3785_v10 = vadd.f32 %v3784_v61, %v3662_v4  ;;  %v3664_v27 = vadd.f32 %v3663_v13, %v6415_v2  ;;  %v3938_v18 = vadd.f32 %v6490_v7, %v3781_v52 }
 0x200   : > { %v3665_v58 = vpop.f32.mrf.mxu0  ;;  %v3973_v62 = vmax.f32 %v3937_v3, 0.0 }
 0x201   : > { %v3788_v22 = vpop.f32.mrf.mxu1  ;;  %4111 = vst [vmem:[%s6502_s13 + $0x20] sm:$0xff] %v4611_v44  ;;  %v3939_v8 = vadd.f32 %v6487_v60, %v3785_v10  ;;  %v3787_v17 = vadd.f32 %v3786_v30, %v3664_v27  ;;  %v3666_v33 = vadd.f32 %v3665_v58, %v6418_v9  ;;  %v3974_v25 = vmax.f32 %v3938_v18, 0.0 }
 0x202   : > { %v3667_v26 = vpop.f32.mrf.mxu0 }
 0x203   : > { %v3790_v28 = vpop.f32.mrf.mxu1  ;;  %v3940_v11 = vadd.f32 %v6490_v7, %v3787_v17  ;;  %v3789_v32 = vadd.f32 %v3788_v22, %v3666_v33  ;;  %v3668_v2 = vadd.f32 %v3667_v26, %v6421_v15  ;;  %v4612_v39 = vpack.c.bf16 %v3974_v25, %v3973_v62 }
 0x204   : > { %v3975_v36 = vmax.f32 %v3939_v8, 0.0  ;;  %v3671_v35 = vpop.f32.mrf.mxu0 }
 0x205   : > { %v3794_v54 = vpop.f32.mrf.mxu1  ;;  %v3976_v16 = vmax.f32 %v3940_v11, 0.0  ;;  %v3941_v40 = vadd.f32 %v6487_v60, %v3789_v32  ;;  %v3791_v45 = vadd.f32 %v3790_v28, %v3668_v2  ;;  %v3672_v9 = vadd.f32 %v3671_v35, %v6424_v19  ;;  %4112 = vst [vmem:[%s6502_s13 + $0x28] sm:$0xff] %v4612_v39 }
 0x206   : > { %v3673_v21 = vpop.f32.mrf.mxu0 }
 0x207   : > { %v3796_v42 = vpop.f32.mrf.mxu1  ;;  %v4613_v59 = vpack.c.bf16 %v3976_v16, %v3975_v36  ;;  %v3942_v50 = vadd.f32 %v6490_v7, %v3791_v45  ;;  %v3795_v51 = vadd.f32 %v3794_v54, %v3672_v9  ;;  %v3674_v15 = vadd.f32 %v3673_v21, %v6427_v23 }
 0x208   : > { %v3675_v53 = vpop.f32.mrf.mxu0  ;;  %v3977_v46 = vmax.f32 %v3941_v40, 0.0 }
 0x209   : > { %v3798_v57 = vpop.f32.mrf.mxu1  ;;  %4113 = vst [vmem:[%s6502_s13 + $0x30] sm:$0xff] %v4613_v59  ;;  %v3978_v24 = vmax.f32 %v3942_v50, 0.0  ;;  %v3676_v61 = vadd.f32 %v3675_v53, %v6430_v31  ;;  %v3943_v5 = vadd.f32 %v6487_v60, %v3795_v51  ;;  %v3797_v19 = vadd.f32 %v3796_v42, %v3674_v15 }
 0x20a   : > { %v3677_v63 = vpop.f32.mrf.mxu0 }
 0x20b   : > { %v3800_v4 = vpop.f32.mrf.mxu1  ;;  %v4614_v3 = vpack.c.bf16 %v3978_v24, %v3977_v46  ;;  %v3799_v52 = vadd.f32 %v3798_v57, %v3676_v61  ;;  %v3678_v13 = vadd.f32 %v3677_v63, %v6433_v38  ;;  %v3944_v30 = vadd.f32 %v6490_v7, %v3797_v19 }
 0x20c   : > { %v3681_v23 = vpop.f32.mrf.mxu0  ;;  %v3979_v31 = vmax.f32 %v3943_v5, 0.0 }
 0x20d   : > { %v3804_v44 = vpop.f32.mrf.mxu1  ;;  %4114 = vst [vmem:[%s6502_s13 + $0x38] sm:$0xff] %v4614_v3  ;;  %v3945_v10 = vadd.f32 %v6487_v60, %v3799_v52  ;;  %v3801_v27 = vadd.f32 %v3800_v4, %v3678_v13  ;;  %v3682_v18 = vadd.f32 %v3681_v23, %v6436_v43  ;;  %v3980_v58 = vmax.f32 %v3944_v30, 0.0 }
 0x20e   : > { %v3683_v22 = vpop.f32.mrf.mxu0 }
 0x20f   : > { %v3806_v8 = vpop.f32.mrf.mxu1  ;;  %v3946_v17 = vadd.f32 %v6490_v7, %v3801_v27  ;;  %v3805_v33 = vadd.f32 %v3804_v44, %v3682_v18  ;;  %v3684_v38 = vadd.f32 %v3683_v22, %v6439_v48  ;;  %v4615_v62 = vpack.c.bf16 %v3980_v58, %v3979_v31 }
 0x210   : > { %v3981_v25 = vmax.f32 %v3945_v10, 0.0  ;;  %v3685_v26 = vpop.f32.mrf.mxu0 }
 0x211   : > { %v3808_v28 = vpop.f32.mrf.mxu1  ;;  %v3982_v11 = vmax.f32 %v3946_v17, 0.0  ;;  %v3947_v32 = vadd.f32 %v6487_v60, %v3805_v33  ;;  %v3807_v2 = vadd.f32 %v3806_v8, %v3684_v38  ;;  %v3686_v43 = vadd.f32 %v3685_v26, %v6442_v56  ;;  %4115 = vst [vmem:[%s6502_s13 + $0x40] sm:$0xff] %v4615_v62 }
 0x212   : > { %v3687_v39 = vpop.f32.mrf.mxu0 }
 0x213   : > { %v3810_v36 = vpop.f32.mrf.mxu1  ;;  %v4616_v35 = vpack.c.bf16 %v3982_v11, %v3981_v25  ;;  %v3948_v54 = vadd.f32 %v6490_v7, %v3807_v2  ;;  %v3809_v16 = vadd.f32 %v3808_v28, %v3686_v43  ;;  %v3688_v48 = vadd.f32 %v3687_v39, %v6445_v1 }
 0x214   : > { %v3691_v40 = vpop.f32.mrf.mxu0  ;;  %v3983_v9 = vmax.f32 %v3947_v32, 0.0 }
 0x215   : > { %v3814_v45 = vpop.f32.mrf.mxu1  ;;  %4116 = vst [vmem:[%s6502_s13 + $0x48] sm:$0xff] %v4616_v35  ;;  %v3984_v21 = vmax.f32 %v3948_v54, 0.0  ;;  %v3692_v42 = vadd.f32 %v3691_v40, %v6448_v6  ;;  %v3949_v59 = vadd.f32 %v6487_v60, %v3809_v16  ;;  %v3811_v56 = vadd.f32 %v3810_v36, %v3688_v48 }
 0x216   : > { %v3693_v50 = vpop.f32.mrf.mxu0 }
 0x217   : > { %v3816_v51 = vpop.f32.mrf.mxu1  ;;  %v4617_v15 = vpack.c.bf16 %v3984_v21, %v3983_v9  ;;  %v3815_v53 = vadd.f32 %v3814_v45, %v3692_v42  ;;  %v3694_v57 = vadd.f32 %v3693_v50, %v6451_v12  ;;  %v3950_v46 = vadd.f32 %v6490_v7, %v3811_v56 }
 0x218   : > { %v3695_v1 = vpop.f32.mrf.mxu0  ;;  %v3985_v6 = vmax.f32 %v3949_v59, 0.0 }
 0x219   : > { %v3818_v24 = vpop.f32.mrf.mxu1  ;;  %4117 = vst [vmem:[%s6502_s13 + $0x50] sm:$0xff] %v4617_v15  ;;  %v3951_v61 = vadd.f32 %v6487_v60, %v3815_v53  ;;  %v3817_v5 = vadd.f32 %v3816_v51, %v3694_v57  ;;  %v3696_v19 = vadd.f32 %v3695_v1, %v6454_v20  ;;  %v3986_v63 = vmax.f32 %v3950_v46, 0.0 }
 0x21a   : > { %v3697_v4 = vpop.f32.mrf.mxu0 }
 0x21b   : > { %v3820_v3 = vpop.f32.mrf.mxu1  ;;  %v3952_v52 = vadd.f32 %v6490_v7, %v3817_v5  ;;  %v3819_v13 = vadd.f32 %v3818_v24, %v3696_v19  ;;  %v3698_v12 = vadd.f32 %v3697_v4, %v6457_v29  ;;  %v4618_v30 = vpack.c.bf16 %v3986_v63, %v3985_v6 }
 0x21c   : > { %v3987_v23 = vmax.f32 %v3951_v61, 0.0  ;;  %v3701_v44 = vpop.f32.mrf.mxu0 }
 0x21d   : > { %v3824_v10 = vpop.f32.mrf.mxu1  ;;  %v3988_v27 = vmax.f32 %v3952_v52, 0.0  ;;  %v3953_v18 = vadd.f32 %v6487_v60, %v3819_v13  ;;  %v3821_v31 = vadd.f32 %v3820_v3, %v3698_v12  ;;  %v3702_v20 = vadd.f32 %v3701_v44, %v6460_v41  ;;  %4118 = vst [vmem:[%s6502_s13 + $0x58] sm:$0xff] %v4618_v30 }
 0x21e   : > { %v3703_v58 = vpop.f32.mrf.mxu0 }
 0x21f   : > { %v3826_v22 = vpop.f32.mrf.mxu1  ;;  %v4619_v8 = vpack.c.bf16 %v3988_v27, %v3987_v23  ;;  %v3954_v17 = vadd.f32 %v6490_v7, %v3821_v31  ;;  %v3825_v33 = vadd.f32 %v3824_v10, %v3702_v20  ;;  %v3704_v29 = vadd.f32 %v3703_v58, %v6463_v55 }
 0x220   : > { %v3705_v38 = vpop.f32.mrf.mxu0  ;;  %v3989_v25 = vmax.f32 %v3953_v18, 0.0 }
 0x221   : > { %v3828_v62 = vpop.f32.mrf.mxu1  ;;  %4119 = vst [vmem:[%s6502_s13 + $0x60] sm:$0xff] %v4619_v8  ;;  %v3990_v26 = vmax.f32 %v3954_v17, 0.0  ;;  %v3706_v28 = vadd.f32 %v3705_v38, %v6466_v37  ;;  %v3955_v11 = vadd.f32 %v6487_v60, %v3825_v33  ;;  %v3827_v41 = vadd.f32 %v3826_v22, %v3704_v29 }
 0x222   : > { %v3707_v32 = vpop.f32.mrf.mxu0 }
 0x223   : > { %v3830_v2 = vpop.f32.mrf.mxu1  ;;  %v4620_v43 = vpack.c.bf16 %v3990_v26, %v3989_v25  ;;  %v3829_v39 = vadd.f32 %v3828_v62, %v3706_v28  ;;  %v3708_v36 = vadd.f32 %v3707_v32, %v6469_v14  ;;  %v3956_v35 = vadd.f32 %v6490_v7, %v3827_v41 }
 0x224   : > { %v3711_v55 = vpop.f32.mrf.mxu0  ;;  %v3991_v37 = vmax.f32 %v3955_v11, 0.0 }
 0x225   : > { %v3834_v54 = vpop.f32.mrf.mxu1  ;;  %4120 = vst [vmem:[%s6502_s13 + $0x68] sm:$0xff] %v4620_v43  ;;  %v3957_v16 = vadd.f32 %v6487_v60, %v3829_v39  ;;  %v3831_v48 = vadd.f32 %v3830_v2, %v3708_v36  ;;  %v3712_v40 = vadd.f32 %v3711_v55, %v6472_v49  ;;  %v3992_v45 = vmax.f32 %v3956_v35, 0.0 }
 0x226   : > { %v3713_v9 = vpop.f32.mrf.mxu0 }
 0x227   : > { %v3836_v21 = vpop.f32.mrf.mxu1  ;;  %v3958_v42 = vadd.f32 %v6490_v7, %v3831_v48  ;;  %v3835_v59 = vadd.f32 %v3834_v54, %v3712_v40  ;;  %v3714_v14 = vadd.f32 %v3713_v9, %v6475_v34  ;;  %v4621_v56 = vpack.c.bf16 %v3992_v45, %v3991_v37 }
 0x228   : > { %v3993_v50 = vmax.f32 %v3957_v16, 0.0  ;;  %v3715_v51 = vpop.f32.mrf.mxu0 }
 0x229   : > { %v3994_v15 = vmax.f32 %v3958_v42, 0.0  ;;  %v3959_v53 = vadd.f32 %v6487_v60, %v3835_v59  ;;  %v3837_v57 = vadd.f32 %v3836_v21, %v3714_v14  ;;  %v3716_v49 = vadd.f32 %v3715_v51, %v6481_v47  ;;  %v3838_v46 = vpop.f32.mrf.mxu1  ;;  %4121 = vst [vmem:[%s6502_s13 + $0x70] sm:$0xff] %v4621_v56 }
 0x22a   : > { %v3717_v1 = vpop.f32.mrf.mxu0 }
 0x22b   : > { %v4622_v24 = vpack.c.bf16 %v3994_v15, %v3993_v50  ;;  %v3960_v61 = vadd.f32 %v6490_v7, %v3837_v57  ;;  %v3839_v5 = vadd.f32 %v3838_v46, %v3716_v49  ;;  %v3718_v34 = vadd.f32 %v3717_v1, %v6484_v0  ;;  %v3840_v63 = vpop.f32.mrf.mxu1 }
 0x22c   : > { %v3995_v19 = vmax.f32 %v3959_v53, 0.0 }
 0x22d   : > { %4122 = vst [vmem:[%s6502_s13 + $0x78] sm:$0xff] %v4622_v24  ;;  %v3996_v6 = vmax.f32 %v3960_v61, 0.0  ;;  %v3961_v4 = vadd.f32 %v6487_v60, %v3839_v5  ;;  %v3841_v3 = vadd.f32 %v3840_v63, %v3718_v34 }
 0x22f   : > { %v4623_v52 = vpack.c.bf16 %v3996_v6, %v3995_v19  ;;  %v3962_v47 = vadd.f32 %v6490_v7, %v3841_v3  ;;  %v3997_v13 = vmax.f32 %v3961_v4, 0.0 }
 0x231   : > { %4123 = vst [vmem:[%s6502_s13 + $0x80] sm:$0xff] %v4623_v52  ;;  %v3998_v12 = vmax.f32 %v3962_v47, 0.0 }
 0x233   : > { %v4624_v30 = vpack.c.bf16 %v3998_v12, %v3997_v13 }
 0x235   : > { %4124 = vst [vmem:[%s6502_s13 + $0x88] sm:$0xff] %v4624_v30 }
 0x236 PF: > { %s13_s12 = sadd.s32 1, %s5241_s12  }
 0x237   : > { %p10_p4 = scmp.ge.s32.totalorder %s13_s12, 4  }
 0x239   :  { %12 = sbr.rel (!%p10_p4) target bundleno = 1 (0x1), region = 62 }

// kernel: cnnbase_forward.7
= control target key start
LH: loop header
LB: loop body
LE: loop exit
PB: predicated region body
PF: predicated region fallthrough
CT: control target
= control target key end

     0   :  { %s2714_s0 = inlined_call_operand.vmem [shape: bf16[2,14336], index: 0, kind: input, shape index: {}]   ;;  %s2715_s1 = inlined_call_operand.vmem [shape: bf16[14336,128], index: 1, kind: input, shape index: {}]   ;;  %s2716_s2 = inlined_call_operand.vmem [shape: f32[1,128], index: 2, kind: input, shape index: {}]   ;;  %s2717_s3 = inlined_call_operand.vmem [shape: f32[1,128], index: 3, kind: input, shape index: {}]   ;;  %s2718_s4 = inlined_call_operand.<no memory space> [shape: f32[1,1], index: 4, kind: input, shape index: {}]   ;;  %s2719_s5 = inlined_call_operand.hbm [shape: f32[2,128], index: 5, kind: output, shape index: {0}]   ;;  %s2720_s6 = inlined_call_operand.vmem [shape: f32[2,1], index: 6, kind: output, shape index: {1}]  }
   0x1   :  { %v12_v0 = vstv %s2718_s4 }
   0x2   :  { %13 = vst [vmem:[#allocation3] sm:$0x1] %v12_v0 }
   0x3   :  { %14 = vsyncpa [#allocation5], 0  ;;  %s2490_s23 = smov 0   ;;  %s2492_s24 = smov 0  }
   0x4   :  { %s2494_s25 = smov 0  }
   0x5 LB: > { %s1913_s4 = sadd.s32 4294967295, %s2447_s25   ;;  %s29_s26 = sadd.s32 1, %s2443_s24  ;;  %s2447_s25 = sphi %s2494_s25, %s20_s25   ;;  %s2443_s24 = sphi %s2492_s24, %s2723_s24   ;;  %s2439_s23 = sphi %s2490_s23, %s2722_s23  }
   0x6   : > { %p30_p0 = scmp.ge.s32.totalorder %s29_s26, 7  ;;  %p1916_p1 = scmp.ge.s32.totalorder %s2447_s25, 1 }
   0x7   : > { %p247_p2 = scmp.lt.s32.totalorder %s2447_s25, 8 }
   0x8   : > { %s2725_s26 = smov (%p30_p0, %s29_s26), 0 }
   0x9   : > { %p248_p3 = pnand %p1916_p1, %p247_p2 }
   0xa   : > { %s1917_s27 = sshll.u32 (!%p248_p3), %s2439_s23, 4  ;;  %s1918_s28 = sshll.u32 (!%p248_p3), %s2439_s23, 8 }
   0xb   : > { %251 = sbr.rel (%p248_p3) target bundleno = 529 (0x211), region = 40  ;;  %p287_p4 = scmp.lt.s32.totalorder (!%p248_p3), %s1917_s27, 111 }
   0xc   : > { %p294_p5 = scmp.lt.s32.totalorder (!%p248_p3), %s1918_s28, 1791  ;;  %p1920_p6 = scmp.ne.s32.totalorder (!%p248_p3), %s2439_s23, 0 }
  0x10   : > { %s2727_s27 = smov (!%p287_p4, %s1917_s27), 111  ;;  %s2729_s28 = smov (!%p294_p5, %s1918_s28), 1791 }
  0x11   : > { %s2516_s7 = scalar_lea.vmem %s2714_s0, %s2727_s27  ;;  %s1919_s8 = sshll.u32 %s2729_s28, 2 }
  0x12   : > { %s2521_s11 = scalar_lea.vmem %s2715_s1, %s1919_s8  ;;  %307 = sbr.rel (%p1920_p6) target bundleno = 25 (0x19), region = 44 }
  0x17   : > { %v2449_v1 = vmov 0.0  }
  0x18   : > { %308 = vst [vmem:[#allocation2] sm:$0x3] %v2449_v1 }
  0x19 PF: > { %v2267_v2 = vld [vmem:[%s2521_s11 + $0x78] sm:$0xff]   ;;  %v2271_v6 = vld [vmem:[%s2521_s11 + $0x70] sm:$0xff]   ;;  %v2275_v10 = vld [vmem:[%s2521_s11 + $0x68] sm:$0xff]   ;;  %v574_v30 = vlaneseq  ;;  %v2450_v38 = vmov 1966171168   ;;  %p2049_p7 = scmp.ne.s32.totalorder %s2439_s23, 6 }
  0x1a   : > { %v2268_v3 = vld [vmem:[%s2521_s11 + $0xf8] sm:$0xff]   ;;  %2058 = vmatprep.subr.bf16.mxu0 %v2267_v2  ;;  %v2272_v7 = vld [vmem:[%s2521_s11 + $0xf0] sm:$0xff]   ;;  %v2276_v11 = vld [vmem:[%s2521_s11 + $0xe8] sm:$0xff]   ;;  %v572_v39 = vunpack.c.l.s4 %v2450_v38 }
  0x1b   : > { %v2269_v4 = vld [vmem:[%s2521_s11 + $0x38] sm:$0xff]   ;;  %2080 = vmatprep.subr.bf16.mxu1 %v2268_v3  ;;  %v2273_v8 = vld [vmem:[%s2521_s11 + $0x30] sm:$0xff]   ;;  %v2277_v12 = vld [vmem:[%s2521_s11 + $0x28] sm:$0xff]   ;;  %v575_v35 = vshrl.u32 %v574_v30, 7 }
  0x1c   : > { %v2270_v5 = vld [vmem:[%s2521_s11 + $0xb8] sm:$0xff]   ;;  %2059 = vmatpush3.bf16.msra.mxu0 %v2269_v4  ;;  %v2274_v9 = vld [vmem:[%s2521_s11 + $0xb0] sm:$0xff]   ;;  %v2278_v13 = vld [vmem:[%s2521_s11 + $0xa8] sm:$0xff]   ;;  %v573_v42 = vunpack.c.0.s8 %v572_v39 }
  0x1d   : > { %2081 = vmatpush3.bf16.msra.mxu1 %v2270_v5  ;;  %2060 = vmatprep.subr.bf16.mxu0 %v2271_v6  ;;  %v2279_v14 = vld [vmem:[%s2521_s11 + $0x60] sm:$0xff]   ;;  %v2283_v18 = vld [vmem:[%s2521_s11 + $0x58] sm:$0xff]   ;;  %v2287_v22 = vld [vmem:[%s2521_s11 + $0x50] sm:$0xff]  }
  0x1e   : > { %2082 = vmatprep.subr.bf16.mxu1 %v2272_v7  ;;  %v2280_v15 = vld [vmem:[%s2521_s11 + $0xe0] sm:$0xff]   ;;  %v2284_v19 = vld [vmem:[%s2521_s11 + $0xd8] sm:$0xff]   ;;  %v2288_v23 = vld [vmem:[%s2521_s11 + $0xd0] sm:$0xff]   ;;  %v2559_v43 = vsub.s32 %v573_v42, %v575_v35 }
  0x1f   : > { %v2281_v16 = vld [vmem:[%s2521_s11 + $0x20] sm:$0xff]   ;;  %v2285_v20 = vld [vmem:[%s2521_s11 + $0x18] sm:$0xff]   ;;  %v2289_v24 = vld [vmem:[%s2521_s11 + $0x10] sm:$0xff]  }
  0x20   : > { %2061 = vmatpush3.bf16.msra.mxu0 %v2273_v8  ;;  %v2282_v17 = vld [vmem:[%s2521_s11 + $0xa0] sm:$0xff]   ;;  %v2286_v21 = vld [vmem:[%s2521_s11 + $0x98] sm:$0xff]   ;;  %v2290_v25 = vld [vmem:[%s2521_s11 + $0x90] sm:$0xff]  }
  0x21   : > { %2083 = vmatpush3.bf16.msra.mxu1 %v2274_v9  ;;  %2062 = vmatprep.subr.bf16.mxu0 %v2275_v10  ;;  %v2291_v26 = vld [vmem:[%s2521_s11 + $0x48] sm:$0xff]   ;;  %v2295_v31 = vld [vmem:[%s2521_s11 + $0x40] sm:$0xff]   ;;  %v2300_v37 = vld [vmem:[%s2521_s11 + $0x178] sm:$0xff]  }
  0x22   : > { %2084 = vmatprep.subr.bf16.mxu1 %v2276_v11  ;;  %v2292_v27 = vld [vmem:[%s2521_s11 + $0xc8] sm:$0xff]   ;;  %v2296_v32 = vld [vmem:[%s2521_s11 + $0xc0] sm:$0xff]   ;;  %v2301_v40 = vld [vmem:[%s2521_s11 + $0x1f8] sm:$0xff]  }
  0x23   : > { %v2293_v28 = vld [vmem:[%s2521_s11 + $0x8] sm:$0xff]   ;;  %v2297_v33 = vld [vmem:[%s2521_s11] sm:$0xff]   ;;  %v2302_v50 = vld [vmem:[%s2521_s11 + $0x138] sm:$0xff]  }
  0x24   : > { %2063 = vmatpush3.bf16.msra.mxu0 %v2277_v12  ;;  %v2294_v29 = vld [vmem:[%s2521_s11 + $0x88] sm:$0xff]   ;;  %v2298_v34 = vld [vmem:[%s2521_s11 + $0x80] sm:$0xff]   ;;  %v2304_v53 = vld [vmem:[%s2521_s11 + $0x170] sm:$0xff]  }
  0x25   : > { %2085 = vmatpush3.bf16.msra.mxu1 %v2278_v13  ;;  %2064 = vmatprep.subr.bf16.mxu0 %v2279_v14  ;;  %v310_v36 = vld [vmem:[%s2516_s7] sm:$0xff]  ;;  %v2303_v55 = vld [vmem:[%s2521_s11 + $0x1b8] sm:$0xff]   ;;  %v2305_v56 = vld [vmem:[%s2521_s11 + $0x1f0] sm:$0xff]  }
  0x26   : > { %2086 = vmatprep.subr.bf16.mxu1 %v2280_v15  ;;  %v570_v41 = vcombine.high %v310_v36, %v310_v36  ;;  %v577_v44 = vrot.slane %v310_v36, %v2559_v43  ;;  %v2306_v58 = vld [vmem:[%s2521_s11 + $0x130] sm:$0xff]   ;;  %v2308_v59 = vld [vmem:[%s2521_s11 + $0x168] sm:$0xff]   ;;  %v2312_v63 = vld [vmem:[%s2521_s11 + $0x160] sm:$0xff]  }
  0x27   : > { %v2307_v60 = vld [vmem:[%s2521_s11 + $0x1b0] sm:$0xff]   ;;  %v2309_v61 = vld [vmem:[%s2521_s11 + $0x1e8] sm:$0xff]   ;;  %v2313_v1 = vld [vmem:[%s2521_s11 + $0x1e0] sm:$0xff]  }
  0x28   : > { %2065 = vmatpush3.bf16.msra.mxu0 %v2281_v16  ;;  %v2563_v45 = vrot.slane %v570_v41, %v2559_v43  ;;  %v585_v46 = vcombine.high %v577_v44, %v577_v44  ;;  %v593_v47 = vrot.slane %v577_v44, %v2559_v43  ;;  %v2310_v62 = vld [vmem:[%s2521_s11 + $0x128] sm:$0xff]   ;;  %v2314_v2 = vld [vmem:[%s2521_s11 + $0x120] sm:$0xff]   ;;  %v2316_v3 = vld [vmem:[%s2521_s11 + $0x158] sm:$0xff]  }
  0x29   : > { %2087 = vmatpush3.bf16.msra.mxu1 %v2282_v17  ;;  %2066 = vmatprep.subr.bf16.mxu0 %v2283_v18  ;;  %v2311_v0 = vld [vmem:[%s2521_s11 + $0x1a8] sm:$0xff]   ;;  %v2315_v4 = vld [vmem:[%s2521_s11 + $0x1a0] sm:$0xff]   ;;  %v2317_v5 = vld [vmem:[%s2521_s11 + $0x1d8] sm:$0xff]  }
  0x2a   : > { %2088 = vmatprep.subr.bf16.mxu1 %v2284_v19  ;;  %v586_v48 = vcombine.high %v2563_v45, %v2563_v45  ;;  %v607_v49 = vrot.slane %v585_v46, %v2559_v43  ;;  %v615_v52 = vcombine.high %v593_v47, %v593_v47  ;;  %v2318_v6 = vld [vmem:[%s2521_s11 + $0x118] sm:$0xff]   ;;  %v2320_v7 = vld [vmem:[%s2521_s11 + $0x150] sm:$0xff]   ;;  %v2324_v11 = vld [vmem:[%s2521_s11 + $0x148] sm:$0xff]   ;;  %v600_v19 = vrot.slane %v2563_v45, %v2559_v43 }
  0x2b   : > { %v2319_v8 = vld [vmem:[%s2521_s11 + $0x198] sm:$0xff]   ;;  %v2321_v9 = vld [vmem:[%s2521_s11 + $0x1d0] sm:$0xff]   ;;  %v2325_v13 = vld [vmem:[%s2521_s11 + $0x1c8] sm:$0xff]  }
  0x2c   : > { %2067 = vmatpush3.bf16.msra.mxu0 %v2285_v20  ;;  %v614_v51 = vrot.slane %v586_v48, %v2559_v43  ;;  %1484 = vmatprep.mubr.bf16.mxu0 %v607_v49  ;;  %v617_v54 = vcombine.high %v607_v49, %v607_v49  ;;  %v2322_v10 = vld [vmem:[%s2521_s11 + $0x110] sm:$0xff]   ;;  %v2326_v14 = vld [vmem:[%s2521_s11 + $0x108] sm:$0xff]   ;;  %v2328_v15 = vld [vmem:[%s2521_s11 + $0x140] sm:$0xff]  }
  0x2d   : > { %2089 = vmatpush3.bf16.msra.mxu1 %v2286_v21  ;;  %2068 = vmatprep.subr.bf16.mxu0 %v2287_v22  ;;  %v2323_v12 = vld [vmem:[%s2521_s11 + $0x190] sm:$0xff]   ;;  %v2327_v16 = vld [vmem:[%s2521_s11 + $0x188] sm:$0xff]   ;;  %v2329_v17 = vld [vmem:[%s2521_s11 + $0x1c0] sm:$0xff]  }
  0x2e   : > { %2090 = vmatprep.subr.bf16.mxu1 %v2288_v23  ;;  %v618_v57 = vcombine.high %v614_v51, %v614_v51  ;;  %1524 = vmatprep.mubr.bf16.mxu1 %v617_v54  ;;  %v2330_v18 = vld [vmem:[%s2521_s11 + $0x100] sm:$0xff]   ;;  %v2332_v20 = vld [vmem:[%s2521_s11 + $0x278] sm:$0xff]   ;;  %v2339_v30 = vld [vmem:[%s2521_s11 + $0x2b0] sm:$0xff]  }
  0x2f   : > { %v2331_v21 = vld [vmem:[%s2521_s11 + $0x180] sm:$0xff]   ;;  %v2333_v22 = vld [vmem:[%s2521_s11 + $0x2f8] sm:$0xff]   ;;  %v2352_v41 = vld [vmem:[%s2521_s11 + $0x250] sm:$0xff]  }
  0x30   : > { %2069 = vmatpush3.bf16.msra.mxu0 %v2289_v24  ;;  %v2334_v23 = vld [vmem:[%s2521_s11 + $0x238] sm:$0xff]   ;;  %v616_v24 = vcombine.high %v600_v19, %v600_v19  ;;  %v2345_v35 = vld [vmem:[%s2521_s11 + $0x2e0] sm:$0xff]   ;;  %v2353_v44 = vld [vmem:[%s2521_s11 + $0x2d0] sm:$0xff]  }
  0x31   : > { %2091 = vmatpush3.bf16.msra.mxu1 %v2290_v25  ;;  %2070 = vmatprep.subr.bf16.mxu0 %v2291_v26  ;;  %v2336_v25 = vld [vmem:[%s2521_s11 + $0x270] sm:$0xff]   ;;  %v2335_v26 = vld [vmem:[%s2521_s11 + $0x2b8] sm:$0xff]   ;;  %v2346_v36 = vld [vmem:[%s2521_s11 + $0x220] sm:$0xff]  }
  0x32   : > { %2092 = vmatprep.subr.bf16.mxu1 %v2292_v27  ;;  %v2337_v27 = vld [vmem:[%s2521_s11 + $0x2f0] sm:$0xff]   ;;  %v2347_v38 = vld [vmem:[%s2521_s11 + $0x2a0] sm:$0xff]   ;;  %v2349_v39 = vld [vmem:[%s2521_s11 + $0x2d8] sm:$0xff]  }
  0x33   : > { %v2351_v42 = vld [vmem:[%s2521_s11 + $0x298] sm:$0xff]   ;;  %v2354_v45 = vld [vmem:[%s2521_s11 + $0x210] sm:$0xff]   ;;  %v2356_v46 = vld [vmem:[%s2521_s11 + $0x248] sm:$0xff]  }
  0x34   : > { %2071 = vmatpush3.bf16.msra.mxu0 %v2293_v28  ;;  %v2338_v28 = vld [vmem:[%s2521_s11 + $0x230] sm:$0xff]  }
  0x35   : > { %2093 = vmatpush3.bf16.msra.mxu1 %v2294_v29  ;;  %2072 = vmatprep.subr.bf16.mxu0 %v2295_v31  ;;  %v2340_v29 = vld [vmem:[%s2521_s11 + $0x268] sm:$0xff]   ;;  %v2355_v48 = vld [vmem:[%s2521_s11 + $0x290] sm:$0xff]  }
  0x36   : > { %2094 = vmatprep.subr.bf16.mxu1 %v2296_v32  ;;  %v2341_v31 = vld [vmem:[%s2521_s11 + $0x2e8] sm:$0xff]  }
  0x37   : > { %v2342_v32 = vld [vmem:[%s2521_s11 + $0x228] sm:$0xff]  }
  0x38   : > { %2073 = vmatpush3.bf16.msra.mxu0 %v2297_v33  ;;  %v2344_v33 = vld [vmem:[%s2521_s11 + $0x260] sm:$0xff]  }
  0x39   : > { %2095 = vmatpush3.bf16.msra.mxu1 %v2298_v34  ;;  %2102 = vmatprep.subr.bf16.mxu0 %v2300_v37  ;;  %v2343_v34 = vld [vmem:[%s2521_s11 + $0x2a8] sm:$0xff]   ;;  %v2348_v37 = vld [vmem:[%s2521_s11 + $0x258] sm:$0xff]  }
  0x3a   : > { %2124 = vmatprep.subr.bf16.mxu1 %v2301_v40  ;;  %v2350_v40 = vld [vmem:[%s2521_s11 + $0x218] sm:$0xff]  }
  0x3b   : > { %1485 = vmatmul.mubr.bf16.vlgmr.msra.gmra.mxu0 %v593_v47  ;;  %v311_v47 = vld [vmem:[%s2516_s7 + $0x8] sm:$0xff] }
  0x3c   : > { %2103 = vmatpush3.bf16.msra.mxu0 %v2302_v50  ;;  %1525 = vmatmul.mubr.bf16.vlgmr.msra.gmra.mxu1 %v615_v52  ;;  %v626_v49 = vrot.slane %v311_v47, %v2559_v43  ;;  %v619_v50 = vcombine.high %v311_v47, %v311_v47  ;;  %v2358_v52 = vld [vmem:[%s2521_s11 + $0x208] sm:$0xff]  }
  0x3d   : > { %2104 = vmatprep.subr.bf16.mxu0 %v2304_v53  ;;  %2125 = vmatpush3.bf16.msra.mxu1 %v2303_v55  ;;  %v2360_v55 = vld [vmem:[%s2521_s11 + $0x240] sm:$0xff]  }
  0x3e   : > { %1564 = vmatprep.mubr.bf16.mxu0 %v614_v51  ;;  %2126 = vmatprep.subr.bf16.mxu1 %v2305_v56  ;;  %v2357_v51 = vld [vmem:[%s2521_s11 + $0x2c8] sm:$0xff]   ;;  %v634_v53 = vcombine.high %v626_v49, %v626_v49  ;;  %v2632_v54 = vrot.slane %v619_v50, %v2559_v43 }
  0x3f   : > { %1604 = vmatprep.mubr.bf16.mxu1 %v618_v57  ;;  %v2359_v56 = vld [vmem:[%s2521_s11 + $0x288] sm:$0xff]  }
  0x40   : > { %2105 = vmatpush3.bf16.msra.mxu0 %v2306_v58  ;;  %v656_v57 = vrot.slane %v634_v53, %v2559_v43  ;;  %v635_v58 = vcombine.high %v2632_v54, %v2632_v54 }
  0x41   : > { %2106 = vmatprep.subr.bf16.mxu0 %v2308_v59  ;;  %2127 = vmatpush3.bf16.msra.mxu1 %v2307_v60  ;;  %v2361_v59 = vld [vmem:[%s2521_s11 + $0x2c0] sm:$0xff]  }
  0x42   : > { %2128 = vmatprep.subr.bf16.mxu1 %v2309_v61  ;;  %v2362_v60 = vld [vmem:[%s2521_s11 + $0x200] sm:$0xff]   ;;  %v666_v61 = vcombine.high %v656_v57, %v656_v57 }
  0x44   : > { %2107 = vmatpush3.bf16.msra.mxu0 %v2310_v62  ;;  %v642_v62 = vrot.slane %v626_v49, %v2559_v43 }
  0x45   : > { %2108 = vmatprep.subr.bf16.mxu0 %v2312_v63  ;;  %2129 = vmatpush3.bf16.msra.mxu1 %v2311_v0  ;;  %v2364_v63 = vld [vmem:[%s2521_s11 + $0x378] sm:$0xff]   ;;  %v2363_v0 = vld [vmem:[%s2521_s11 + $0x280] sm:$0xff]  }
  0x46   : > { %2130 = vmatprep.subr.bf16.mxu1 %v2313_v1  ;;  %v663_v1 = vrot.slane %v635_v58, %v2559_v43 }
  0x48   : > { %2109 = vmatpush3.bf16.msra.mxu0 %v2314_v2  ;;  %v2365_v2 = vld [vmem:[%s2521_s11 + $0x3f8] sm:$0xff]  }
  0x49   : > { %2110 = vmatprep.subr.bf16.mxu0 %v2316_v3  ;;  %2131 = vmatpush3.bf16.msra.mxu1 %v2315_v4  ;;  %v2366_v3 = vld [vmem:[%s2521_s11 + $0x338] sm:$0xff]   ;;  %v664_v4 = vcombine.high %v642_v62, %v642_v62 }
  0x4a   : > { %2132 = vmatprep.subr.bf16.mxu1 %v2317_v5  ;;  %v2368_v5 = vld [vmem:[%s2521_s11 + $0x370] sm:$0xff]  }
  0x4c   : > { %2111 = vmatpush3.bf16.msra.mxu0 %v2318_v6  ;;  %v2367_v6 = vld [vmem:[%s2521_s11 + $0x3b8] sm:$0xff]  }
  0x4d   : > { %2112 = vmatprep.subr.bf16.mxu0 %v2320_v7  ;;  %2133 = vmatpush3.bf16.msra.mxu1 %v2319_v8  ;;  %v667_v7 = vcombine.high %v663_v1, %v663_v1  ;;  %v2369_v8 = vld [vmem:[%s2521_s11 + $0x3f0] sm:$0xff]  }
  0x4e   : > { %2134 = vmatprep.subr.bf16.mxu1 %v2321_v9  ;;  %v2370_v9 = vld [vmem:[%s2521_s11 + $0x330] sm:$0xff]  }
  0x50   : > { %2113 = vmatpush3.bf16.msra.mxu0 %v2322_v10  ;;  %v2372_v10 = vld [vmem:[%s2521_s11 + $0x368] sm:$0xff]  }
  0x51   : > { %2114 = vmatprep.subr.bf16.mxu0 %v2324_v11  ;;  %2135 = vmatpush3.bf16.msra.mxu1 %v2323_v12  ;;  %v2371_v11 = vld [vmem:[%s2521_s11 + $0x3b0] sm:$0xff]   ;;  %v2373_v12 = vld [vmem:[%s2521_s11 + $0x3e8] sm:$0xff]  }
  0x52   : > { %2136 = vmatprep.subr.bf16.mxu1 %v2325_v13  ;;  %v2374_v13 = vld [vmem:[%s2521_s11 + $0x328] sm:$0xff]  }
  0x54   : > { %2115 = vmatpush3.bf16.msra.mxu0 %v2326_v14  ;;  %v2376_v14 = vld [vmem:[%s2521_s11 + $0x360] sm:$0xff]  }
  0x55   : > { %2116 = vmatprep.subr.bf16.mxu0 %v2328_v15  ;;  %2137 = vmatpush3.bf16.msra.mxu1 %v2327_v16  ;;  %v2375_v15 = vld [vmem:[%s2521_s11 + $0x3a8] sm:$0xff]   ;;  %v2377_v16 = vld [vmem:[%s2521_s11 + $0x3e0] sm:$0xff]  }
  0x56   : > { %2138 = vmatprep.subr.bf16.mxu1 %v2329_v17  ;;  %v2378_v17 = vld [vmem:[%s2521_s11 + $0x320] sm:$0xff]  }
  0x58   : > { %2117 = vmatpush3.bf16.msra.mxu0 %v2330_v18  ;;  %v2380_v18 = vld [vmem:[%s2521_s11 + $0x358] sm:$0xff]  }
  0x59   : > { %2146 = vmatprep.subr.bf16.mxu0 %v2332_v20  ;;  %2139 = vmatpush3.bf16.msra.mxu1 %v2331_v21  ;;  %v2381_v20 = vld [vmem:[%s2521_s11 + $0x3d8] sm:$0xff]  }
  0x5a   : > { %2168 = vmatprep.subr.bf16.mxu1 %v2333_v22  ;;  %v2382_v21 = vld [vmem:[%s2521_s11 + $0x318] sm:$0xff]   ;;  %v2384_v22 = vld [vmem:[%s2521_s11 + $0x350] sm:$0xff]  }
  0x5b   : > { %1565 = vmatmul.mubr.bf16.vlgmr.msra.gmra.mxu0 %v600_v19  ;;  %v2379_v19 = vld [vmem:[%s2521_s11 + $0x3a0] sm:$0xff]  }
  0x5c   : > { %2147 = vmatpush3.bf16.msra.mxu0 %v2334_v23  ;;  %1605 = vmatmul.mubr.bf16.vlgmr.msra.gmra.mxu1 %v616_v24  ;;  %v2383_v23 = vld [vmem:[%s2521_s11 + $0x398] sm:$0xff]   ;;  %v2385_v24 = vld [vmem:[%s2521_s11 + $0x3d0] sm:$0xff]  }
  0x5d   : > { %2148 = vmatprep.subr.bf16.mxu0 %v2336_v25  ;;  %2169 = vmatpush3.bf16.msra.mxu1 %v2335_v26  ;;  %v2386_v25 = vld [vmem:[%s2521_s11 + $0x310] sm:$0xff]   ;;  %v2388_v26 = vld [vmem:[%s2521_s11 + $0x348] sm:$0xff]  }
  0x5e   : > { %2170 = vmatprep.subr.bf16.mxu1 %v2337_v27  ;;  %1644 = vmatprep.mubr.bf16.mxu0 %v656_v57  ;;  %v2387_v27 = vld [vmem:[%s2521_s11 + $0x390] sm:$0xff]  }
  0x5f   : > { %1684 = vmatprep.mubr.bf16.mxu1 %v666_v61 }
  0x60   : > { %2149 = vmatpush3.bf16.msra.mxu0 %v2338_v28  ;;  %v2389_v28 = vld [vmem:[%s2521_s11 + $0x3c8] sm:$0xff]  }
  0x61   : > { %2150 = vmatprep.subr.bf16.mxu0 %v2340_v29  ;;  %2171 = vmatpush3.bf16.msra.mxu1 %v2339_v30  ;;  %v2390_v29 = vld [vmem:[%s2521_s11 + $0x308] sm:$0xff]   ;;  %v2392_v30 = vld [vmem:[%s2521_s11 + $0x340] sm:$0xff]  }
  0x62   : > { %2172 = vmatprep.subr.bf16.mxu1 %v2341_v31  ;;  %v2391_v31 = vld [vmem:[%s2521_s11 + $0x388] sm:$0xff]  }
  0x64   : > { %2151 = vmatpush3.bf16.msra.mxu0 %v2342_v32  ;;  %v2393_v32 = vld [vmem:[%s2521_s11 + $0x3c0] sm:$0xff]  }
  0x65   : > { %2152 = vmatprep.subr.bf16.mxu0 %v2344_v33  ;;  %2173 = vmatpush3.bf16.msra.mxu1 %v2343_v34  ;;  %v2394_v33 = vld [vmem:[%s2521_s11 + $0x300] sm:$0xff]   ;;  %v649_v34 = vrot.slane %v2632_v54, %v2559_v43 }
  0x66   : > { %2174 = vmatprep.subr.bf16.mxu1 %v2345_v35  ;;  %v2395_v35 = vld [vmem:[%s2521_s11 + $0x380] sm:$0xff]  }
  0x68   : > { %2153 = vmatpush3.bf16.msra.mxu0 %v2346_v36  ;;  %v665_v36 = vcombine.high %v649_v34, %v649_v34 }
  0x69   : > { %2154 = vmatprep.subr.bf16.mxu0 %v2348_v37  ;;  %2175 = vmatpush3.bf16.msra.mxu1 %v2347_v38 }
  0x6a   : > { %2176 = vmatprep.subr.bf16.mxu1 %v2349_v39 }
  0x6c   : > { %2155 = vmatpush3.bf16.msra.mxu0 %v2350_v40 }
  0x6d   : > { %2156 = vmatprep.subr.bf16.mxu0 %v2352_v41  ;;  %2177 = vmatpush3.bf16.msra.mxu1 %v2351_v42 }
  0x6e   : > { %2178 = vmatprep.subr.bf16.mxu1 %v2353_v44 }
  0x70   : > { %2157 = vmatpush3.bf16.msra.mxu0 %v2354_v45 }
  0x71   : > { %2158 = vmatprep.subr.bf16.mxu0 %v2356_v46  ;;  %2179 = vmatpush3.bf16.msra.mxu1 %v2355_v48 }
  0x72   : > { %2180 = vmatprep.subr.bf16.mxu1 %v2357_v51 }
  0x74   : > { %2159 = vmatpush3.bf16.msra.mxu0 %v2358_v52 }
  0x75   : > { %2160 = vmatprep.subr.bf16.mxu0 %v2360_v55  ;;  %2181 = vmatpush3.bf16.msra.mxu1 %v2359_v56 }
  0x76   : > { %2182 = vmatprep.subr.bf16.mxu1 %v2361_v59 }
  0x78   : > { %2161 = vmatpush3.bf16.msra.mxu0 %v2362_v60 }
  0x79   : > { %2190 = vmatprep.subr.bf16.mxu0 %v2364_v63  ;;  %2183 = vmatpush3.bf16.msra.mxu1 %v2363_v0 }
  0x7a   : > { %2212 = vmatprep.subr.bf16.mxu1 %v2365_v2 }
  0x7b   : > { %1645 = vmatmul.mubr.bf16.vlgmr.msra.gmra.mxu0 %v642_v62 }
  0x7c   : > { %2191 = vmatpush3.bf16.msra.mxu0 %v2366_v3  ;;  %1724 = vmatprep.mubr.bf16.mxu0 %v663_v1 }
  0x7d   : > { %1685 = vmatmul.mubr.bf16.vlgmr.msra.gmra.mxu1 %v664_v4  ;;  %2192 = vmatprep.subr.bf16.mxu0 %v2368_v5 }
  0x7e   : > { %2213 = vmatpush3.bf16.msra.mxu1 %v2367_v6  ;;  %1764 = vmatprep.mubr.bf16.mxu1 %v667_v7 }
  0x7f   : > { %2214 = vmatprep.subr.bf16.mxu1 %v2369_v8 }
  0x80   : > { %2193 = vmatpush3.bf16.msra.mxu0 %v2370_v9 }
  0x81   : > { %2194 = vmatprep.subr.bf16.mxu0 %v2372_v10 }
  0x82   : > { %2215 = vmatpush3.bf16.msra.mxu1 %v2371_v11 }
  0x83   : > { %2216 = vmatprep.subr.bf16.mxu1 %v2373_v12 }
  0x84   : > { %2195 = vmatpush3.bf16.msra.mxu0 %v2374_v13 }
  0x85   : > { %2196 = vmatprep.subr.bf16.mxu0 %v2376_v14 }
  0x86   : > { %2217 = vmatpush3.bf16.msra.mxu1 %v2375_v15 }
  0x87   : > { %2218 = vmatprep.subr.bf16.mxu1 %v2377_v16  ;;  %v309_v16 = vld [vmem:[#allocation2] sm:$0x3] }
  0x88   : > { %2197 = vmatpush3.bf16.msra.mxu0 %v2378_v17 }
  0x89   : > { %2198 = vmatprep.subr.bf16.mxu0 %v2380_v18 }
  0x8a   : > { %2219 = vmatpush3.bf16.msra.mxu1 %v2379_v19 }
  0x8b   : > { %2220 = vmatprep.subr.bf16.mxu1 %v2381_v20 }
  0x8c   : > { %2199 = vmatpush3.bf16.msra.mxu0 %v2382_v21 }
  0x8d   : > { %2200 = vmatprep.subr.bf16.mxu0 %v2384_v22 }
  0x8e   : > { %2221 = vmatpush3.bf16.msra.mxu1 %v2383_v23 }
  0x8f   : > { %2222 = vmatprep.subr.bf16.mxu1 %v2385_v24 }
  0x90   : > { %2201 = vmatpush3.bf16.msra.mxu0 %v2386_v25 }
  0x91   : > { %2202 = vmatprep.subr.bf16.mxu0 %v2388_v26 }
  0x92   : > { %2223 = vmatpush3.bf16.msra.mxu1 %v2387_v27 }
  0x93   : > { %2224 = vmatprep.subr.bf16.mxu1 %v2389_v28 }
  0x94   : > { %2203 = vmatpush3.bf16.msra.mxu0 %v2390_v29 }
  0x95   : > { %2204 = vmatprep.subr.bf16.mxu0 %v2392_v30 }
  0x96   : > { %2225 = vmatpush3.bf16.msra.mxu1 %v2391_v31 }
  0x97   : > { %2226 = vmatprep.subr.bf16.mxu1 %v2393_v32 }
  0x98   : > { %2205 = vmatpush3.bf16.msra.mxu0 %v2394_v33 }
  0x9a   : > { %2227 = vmatpush3.bf16.msra.mxu1 %v2395_v35 }
  0x9b   : > { %1725 = vmatmul.mubr.bf16.vlgmr.msra.gmra.mxu0 %v649_v34 }
  0x9d   : > { %1765 = vmatmul.mubr.bf16.vlgmr.msra.gmra.mxu1 %v665_v36 }
  0xfb   : > { %v2074_v37 = vpop.f32.mrf.mxu0 }
  0xfc   : > { %v2096_v38 = vpop.f32.mrf.mxu1 }
  0xfd   : > { %v2075_v39 = vpop.f32.mrf.mxu0 }
  0xfe   : > { %v2076_v40 = vadd.f32 %v2075_v39, %v2074_v37  ;;  %v2097_v41 = vpop.f32.mrf.mxu1 }
  0xff   : > { %v2077_v42 = vpop.f32.mrf.mxu0  ;;  %v2098_v44 = vadd.f32 %v2097_v41, %v2096_v38 }
 0x100   : > { %v2099_v45 = vpop.f32.mrf.mxu1 }
 0x101   : > { %v2078_v46 = vpop.f32.mrf.mxu0  ;;  %v1527_v47 = vadd.f32 %v2098_v44, %v2076_v40 }
 0x102   : > { %v2100_v48 = vpop.f32.mrf.mxu1 }
 0x11b   : > { %v2118_v43 = vpop.f32.mrf.mxu0 }
 0x11c   : > { %v2140_v49 = vpop.f32.mrf.mxu1 }
 0x11d   : > { %v2119_v50 = vpop.f32.mrf.mxu0 }
 0x11e   : > { %v2141_v51 = vpop.f32.mrf.mxu1  ;;  %v2120_v0 = vadd.f32 %v2119_v50, %v2118_v43 }
 0x11f   : > { %v2121_v52 = vpop.f32.mrf.mxu0  ;;  %v2142_v2 = vadd.f32 %v2141_v51, %v2140_v49 }
 0x120   : > { %v2143_v53 = vpop.f32.mrf.mxu1  ;;  %v1567_v1 = vadd.f32 %v2120_v0, %v1527_v47 }
 0x121   : > { %v2122_v54 = vpop.f32.mrf.mxu0 }
 0x122   : > { %v2144_v55 = vpop.f32.mrf.mxu1  ;;  %v1607_v4 = vadd.f32 %v2142_v2, %v1567_v1 }
 0x13b   : > { %v2162_v56 = vpop.f32.mrf.mxu0 }
 0x13d   : > { %v2184_v57 = vpop.f32.mrf.mxu1  ;;  %v2163_v58 = vpop.f32.mrf.mxu0 }
 0x13e   : > { %v2164_v3 = vadd.f32 %v2163_v58, %v2162_v56 }
 0x13f   : > { %v2185_v59 = vpop.f32.mrf.mxu1  ;;  %v2165_v60 = vpop.f32.mrf.mxu0 }
 0x140   : > { %v1647_v5 = vadd.f32 %v2164_v3, %v1607_v4  ;;  %v2186_v6 = vadd.f32 %v2185_v59, %v2184_v57 }
 0x141   : > { %v2187_v61 = vpop.f32.mrf.mxu1  ;;  %v2166_v62 = vpop.f32.mrf.mxu0 }
 0x142   : > { %v1687_v10 = vadd.f32 %v2186_v6, %v1647_v5 }
 0x143   : > { %v2188_v63 = vpop.f32.mrf.mxu1 }
 0x15b   : > { %v2206_v7 = vpop.f32.mrf.mxu0 }
 0x15d   : > { %v2228_v8 = vpop.f32.mrf.mxu1  ;;  %v2207_v9 = vpop.f32.mrf.mxu0 }
 0x15e   : > { %v2208_v11 = vadd.f32 %v2207_v9, %v2206_v7 }
 0x15f   : > { %v2229_v12 = vpop.f32.mrf.mxu1  ;;  %v2209_v13 = vpop.f32.mrf.mxu0 }
 0x160   : > { %v1727_v14 = vadd.f32 %v2208_v11, %v1687_v10  ;;  %v2230_v15 = vadd.f32 %v2229_v12, %v2228_v8 }
 0x161   : > { %v2231_v17 = vpop.f32.mrf.mxu1  ;;  %v2210_v18 = vpop.f32.mrf.mxu0 }
 0x162   : > { %v1767_v19 = vadd.f32 %v2230_v15, %v1727_v14  ;;  %1777 = sbr.rel (%p2049_p7) target bundleno = 514 (0x202), region = 48 }
 0x163   : > { %v2232_v20 = vpop.f32.mrf.mxu1 }
 0x164   : > { %v1772_v21 = vadd.f32 %v1767_v19, %v309_v16 }
 0x166   : > { %1773 = vst [vmem:[#allocation2] sm:$0x3] %v1772_v21 }
 0x167   : > { %v2050_v23 = vld [vmem:[%s2716_s2] ss:$0 sm:$0xff]  ;;  %vm1797_vm0 = vcmask 1041408   ;;  %v2052_v29 = vld [vmem:[#allocation3] ss:$0 sm:$0xff]  ;;  %vm1809_vm1 = vcmask 1024  }
 0x168   : > { %v2051_v25 = vld [vmem:[%s2717_s3] ss:$0 sm:$0xff] }
 0x16d   : > { %v1778_v22 = vld [vmem:[#allocation2] sm:$0x3] }
 0x16e   : > { %v1786_v24 = vadd.f32 %v2050_v23, %v1778_v22 }
 0x170   : > { %v1787_v26 = vmax.f32 %v1786_v24, 0.0 }
 0x172   : > { %1788 = vst [vmem:[#allocation4] sm:$0x3] %v1787_v26  ;;  %v1796_v27 = vmul.f32 %v2051_v25, %v1787_v26 }
 0x174   : > { %v1798_v28 = vsel %vm1797_vm0, %v1796_v27, 0.0 }
 0x175   : > { %1799 = vadd.xlane.f32.xlu0 %v1798_v28 }
 0x1fe   : > { %v1800_v30 = vpop.xlane.xlu0 %1799 }
 0x1ff   : > { %v1808_v31 = vadd.f32 %v2052_v29, %v1800_v30 }
 0x201   : > { %1810 = vst.msk [vmem:[%s2720_s6] sm:$0x3] %vm1809_vm1, %v1808_v31 }
 0x202 PF: > { %p2690_p8 = scmp.eq.s32.totalorder %s1913_s4, 6  ;;  %s2451_s19 = smov [#allocation4]  }
 0x203   : > { %s1824_s20 = sshll.u32 %s2451_s19, 4  ;;  %s1825_s20 = int_to_ptr.vmem [resolvable:$true] %s1824_s20 }
 0x204   : > { %s2397_s21 = scalar_lea.vmem %s1825_s20, 32  ;;  %p2404_p12 = scmp.lt.s32.totalorder %s1825_s20, %s1825_s20 }
 0x205   : > { %p2398_p9 = scmp.ne.s32.totalorder %s1825_s20, %s2397_s21  ;;  %p2405_p13 = scmp.lt.s32.totalorder %s2397_s21, %s2397_s21 }
 0x207   : > { %p2399_p10 = pnand %p2398_p9, %p2690_p8  ;;  %p2406_p0 = por %p2405_p13, %p2404_p12 }
 0x209   : > { %p2400_p11 = pneg %p2399_p10 }
 0x20b   : > { %p2407_p1 = pnand %p2406_p0, %p2400_p11 }
 0x20d   : > { %2410 = shalt.err (!%p2407_p1)
}
 0x20e   : > { %2235 = dma.vmem_to_hbm [thread:$0]  (%p2690_p8), %s1825_s20, 32, %s2719_s5, [#allocation5]  }
 0x20f   : > { %2434 = dma.done.wait (%p2690_p8), [#allocation5], 32  }
 0x210   : > { %2436 = vsyncadd (%p2690_p8), [#allocation5], 4294967264 }
 0x211 PF: > { %s20_s25 = sadd.s32 1, %s2447_s25   ;;  %s2722_s23 = smov %s2443_s24 }
 0x212   : > { %p17_p2 = scmp.ge.s32.totalorder %s20_s25, 9   ;;  %s2723_s24 = smov %s2725_s26 }
 0x214   :  { %19 = sbr.rel (!%p17_p2) target bundleno = 5 (0x5), region = 91 }
 0x219   :  { %1847 = vsyncpa [#allocation5], 1 }
 0x21a   :  { %1849 = vsyncpa [#allocation5 + $0x1], 1 }

// kernel: cnnbase_forward.6
= control target key start
LH: loop header
LB: loop body
LE: loop exit
PB: predicated region body
PF: predicated region fallthrough
CT: control target
= control target key end

     0   :  { %s4513_s12 = smov 0   ;;  %s5512_s0 = inlined_call_operand.vmem [shape: bf16[2,432,256], index: 0, kind: input, shape index: {}]   ;;  %s5513_s1 = inlined_call_operand.vmem [shape: bf16[2304,128], index: 1, kind: input, shape index: {}]   ;;  %s5514_s2 = inlined_call_operand.vmem [shape: f32[1,128], index: 2, kind: input, shape index: {}]   ;;  %s5515_s3 = inlined_call_operand.vmem [shape: bf16[2,112,128], index: 3, kind: output, shape index: {}]  }
   0x1 LB: > { %s3321_s13 = sadd.s32 4294967295, %s4491_s12   ;;  %p3325_p0 = scmp.ge.s32.totalorder %s4491_s12, 1  ;;  %s4491_s12 = sphi %s4513_s12, %s13_s12  }
   0x2   : > { %p137_p1 = scmp.lt.s32.totalorder %s4491_s12, 3 }
   0x4   : > { %p138_p2 = pnand %p3325_p0, %p137_p1 }
   0x6   : > { %141 = sbr.rel (%p138_p2) target bundleno = 504 (0x1f8), region = 32 }
   0xb   : > { %v4218_v0 = vld [vmem:[%s5513_s1 + $0x78] sm:$0xff]   ;;  %v4220_v2 = vld [vmem:[%s5513_s1 + $0x70] sm:$0xff]   ;;  %p161_p3 = scmp.lt.s32.totalorder %s3321_s13, 1  ;;  %v4222_v4 = vld [vmem:[%s5513_s1 + $0x68] sm:$0xff]  }
   0xc   : > { %v4219_v1 = vld [vmem:[%s5513_s1 + $0x38] sm:$0xff]   ;;  %3670 = vmatprep.subr.bf16.mxu0 %v4218_v0  ;;  %4192 = vmatprep.subr.bf16.mxu1 %v4218_v0  ;;  %v4221_v3 = vld [vmem:[%s5513_s1 + $0x30] sm:$0xff]   ;;  %v4223_v5 = vld [vmem:[%s5513_s1 + $0x28] sm:$0xff]  }
   0xd   : > { %3671 = vmatpush3.bf16.msra.mxu0 %v4219_v1  ;;  %4200 = vmatpush3.bf16.msra.mxu1 %v4219_v1  ;;  %s5561_s13 = smov (!%p161_p3, %s3321_s13), 1  ;;  %v4224_v6 = vld [vmem:[%s5513_s1 + $0x60] sm:$0xff]   ;;  %v4226_v8 = vld [vmem:[%s5513_s1 + $0x58] sm:$0xff]   ;;  %v4228_v10 = vld [vmem:[%s5513_s1 + $0x50] sm:$0xff]  }
   0xe   : > { %3672 = vmatprep.subr.bf16.mxu0 %v4220_v2  ;;  %4193 = vmatprep.subr.bf16.mxu1 %v4220_v2  ;;  %s4208_s28 = smul.u32 432, %s5561_s13  ;;  %v4225_v7 = vld [vmem:[%s5513_s1 + $0x20] sm:$0xff]   ;;  %v4227_v9 = vld [vmem:[%s5513_s1 + $0x18] sm:$0xff]   ;;  %v4229_v13 = vld [vmem:[%s5513_s1 + $0x10] sm:$0xff]  }
   0xf   : > { %v4230_v14 = vld [vmem:[%s5513_s1 + $0x48] sm:$0xff]   ;;  %v4232_v16 = vld [vmem:[%s5513_s1 + $0x40] sm:$0xff]   ;;  %v4240_v18 = vld [vmem:[%s5513_s1 + $0xf8] sm:$0xff]   ;;  %s4209_s18 = smul.u32 56, %s5561_s13 }
  0x10   : > { %s4554_s8 = scalar_lea.vmem %s5512_s0, %s4208_s28  ;;  %v4231_v15 = vld [vmem:[%s5513_s1 + $0x8] sm:$0xff]   ;;  %v4233_v17 = vld [vmem:[%s5513_s1] sm:$0xff]   ;;  %v4241_v21 = vld [vmem:[%s5513_s1 + $0x178] sm:$0xff]  }
  0x11   : > { %3673 = vmatpush3.bf16.msra.mxu0 %v4221_v3  ;;  %4201 = vmatpush3.bf16.msra.mxu1 %v4221_v3  ;;  %v4236_v11 = vld [vmem:[%s4554_s8 + $0x4] ss:$8 sps:$4 sm:$0xff]   ;;  %v4234_v19 = vld [vmem:[%s4554_s8] ss:$8 sps:$4 sm:$0xff]   ;;  %v4242_v22 = vld [vmem:[%s5513_s1 + $0xb8] sm:$0xff]   ;;  %s5443_s20 = scalar_lea.vmem %s5515_s3, %s4209_s18 }
  0x12   : > { %3674 = vmatprep.subr.bf16.mxu0 %v4222_v4  ;;  %4194 = vmatprep.subr.bf16.mxu1 %v4222_v4  ;;  %v4564_v12 = vld [vmem:[%s4554_s8 + $0x44] ss:$8 sps:$4 sm:$0xff]   ;;  %v4587_v20 = vld [vmem:[%s4554_s8 + $0x40] ss:$8 sps:$4 sm:$0xff]   ;;  %v4243_v23 = vld [vmem:[%s5513_s1 + $0x138] sm:$0xff]  }
  0x13   : > { %2364 = vmatprep.mubr.bf16.mxu0 %v4236_v11  ;;  %2396 = vmatprep.mubr.bf16.mxu1 %v4564_v12  ;;  %v4244_v24 = vld [vmem:[%s5513_s1 + $0xf0] sm:$0xff]   ;;  %v4251_v30 = vld [vmem:[%s5513_s1 + $0xe8] sm:$0xff]   ;;  %v4258_v36 = vld [vmem:[%s5513_s1 + $0xe0] sm:$0xff]  }
  0x14   : > { %v4245_v25 = vld [vmem:[%s5513_s1 + $0x170] sm:$0xff]   ;;  %v4252_v32 = vld [vmem:[%s5513_s1 + $0x168] sm:$0xff]   ;;  %v4259_v37 = vld [vmem:[%s5513_s1 + $0x160] sm:$0xff]  }
  0x15   : > { %3675 = vmatpush3.bf16.msra.mxu0 %v4223_v5  ;;  %4202 = vmatpush3.bf16.msra.mxu1 %v4223_v5  ;;  %v4605_v26 = vld [vmem:[%s4554_s8 + $0x14] ss:$8 sps:$4 sm:$0xff]   ;;  %v4621_v31 = vld [vmem:[%s4554_s8 + $0x10] ss:$8 sps:$4 sm:$0xff]   ;;  %v4253_v33 = vld [vmem:[%s5513_s1 + $0xa8] sm:$0xff]  }
  0x16   : > { %3676 = vmatprep.subr.bf16.mxu0 %v4224_v6  ;;  %4195 = vmatprep.subr.bf16.mxu1 %v4224_v6  ;;  %v4246_v27 = vld [vmem:[%s5513_s1 + $0xb0] sm:$0xff]   ;;  %v4254_v34 = vld [vmem:[%s5513_s1 + $0x128] sm:$0xff]   ;;  %v4260_v38 = vld [vmem:[%s5513_s1 + $0xa0] sm:$0xff]  }
  0x17   : > { %v4611_v28 = vld [vmem:[%s4554_s8 + $0x54] ss:$8 sps:$4 sm:$0xff]   ;;  %v4635_v35 = vld [vmem:[%s4554_s8 + $0x50] ss:$8 sps:$4 sm:$0xff]   ;;  %v4647_v39 = vld [vmem:[%s4554_s8 + $0x24] ss:$8 sps:$4 sm:$0xff]  }
  0x18   : > { %v4247_v29 = vld [vmem:[%s5513_s1 + $0x130] sm:$0xff]   ;;  %v4261_v40 = vld [vmem:[%s5513_s1 + $0x120] sm:$0xff]   ;;  %v4265_v41 = vld [vmem:[%s5513_s1 + $0xd8] sm:$0xff]  }
  0x19   : > { %3677 = vmatpush3.bf16.msra.mxu0 %v4225_v7  ;;  %4203 = vmatpush3.bf16.msra.mxu1 %v4225_v7  ;;  %v4658_v42 = vld [vmem:[%s4554_s8 + $0x64] ss:$8 sps:$4 sm:$0xff]   ;;  %v4661_v43 = vld [vmem:[%s4554_s8 + $0x20] ss:$8 sps:$4 sm:$0xff]   ;;  %v4266_v44 = vld [vmem:[%s5513_s1 + $0x158] sm:$0xff]  }
  0x1a   : > { %3678 = vmatprep.subr.bf16.mxu0 %v4226_v8  ;;  %4196 = vmatprep.subr.bf16.mxu1 %v4226_v8  ;;  %v4267_v45 = vld [vmem:[%s5513_s1 + $0x98] sm:$0xff]   ;;  %v4675_v47 = vld [vmem:[%s4554_s8 + $0x60] ss:$8 sps:$4 sm:$0xff]   ;;  %v4272_v48 = vld [vmem:[%s5513_s1 + $0xd0] sm:$0xff]  }
  0x1b   : > { %v4268_v46 = vld [vmem:[%s5513_s1 + $0x118] sm:$0xff]   ;;  %v4273_v49 = vld [vmem:[%s5513_s1 + $0x150] sm:$0xff]   ;;  %v4279_v53 = vld [vmem:[%s5513_s1 + $0xc8] sm:$0xff]  }
  0x1c   : > { %v4274_v50 = vld [vmem:[%s5513_s1 + $0x90] sm:$0xff]   ;;  %v4280_v55 = vld [vmem:[%s5513_s1 + $0x148] sm:$0xff]   ;;  %v4283_v58 = vld [vmem:[%s5513_s1 + $0xc0] sm:$0xff]  }
  0x1d   : > { %3679 = vmatpush3.bf16.msra.mxu0 %v4227_v9  ;;  %4204 = vmatpush3.bf16.msra.mxu1 %v4227_v9  ;;  %v4687_v51 = vld [vmem:[%s4554_s8 + $0x34] ss:$8 sps:$4 sm:$0xff]   ;;  %v4698_v54 = vld [vmem:[%s4554_s8 + $0x30] ss:$8 sps:$4 sm:$0xff]   ;;  %v4281_v56 = vld [vmem:[%s5513_s1 + $0x88] sm:$0xff]  }
  0x1e   : > { %3680 = vmatprep.subr.bf16.mxu0 %v4228_v10  ;;  %4197 = vmatprep.subr.bf16.mxu1 %v4228_v10  ;;  %v4275_v52 = vld [vmem:[%s5513_s1 + $0x110] sm:$0xff]   ;;  %v4282_v57 = vld [vmem:[%s5513_s1 + $0x108] sm:$0xff]   ;;  %v4284_v59 = vld [vmem:[%s5513_s1 + $0x140] sm:$0xff]  }
  0x1f   : > { %v4285_v60 = vld [vmem:[%s5513_s1 + $0x80] sm:$0xff]   ;;  %v4289_v61 = vld [vmem:[%s4554_s8 + $0x94] ss:$8 sps:$4 sm:$0xff]   ;;  %v4287_v0 = vld [vmem:[%s4554_s8 + $0x90] ss:$8 sps:$4 sm:$0xff]  }
  0x20   : > { %v4286_v62 = vld [vmem:[%s5513_s1 + $0x100] sm:$0xff]   ;;  %v4293_v2 = vld [vmem:[%s5513_s1 + $0x1f8] sm:$0xff]   ;;  %v4301_v8 = vld [vmem:[%s5513_s1 + $0x1f0] sm:$0xff]  }
  0x21   : > { %3681 = vmatpush3.bf16.msra.mxu0 %v4229_v13  ;;  %4205 = vmatpush3.bf16.msra.mxu1 %v4229_v13  ;;  %v4292_v63 = vld [vmem:[%s4554_s8 + $0x124] ss:$8 sps:$4 sm:$0xff]   ;;  %v4290_v1 = vld [vmem:[%s4554_s8 + $0x120] ss:$8 sps:$4 sm:$0xff]   ;;  %v4294_v3 = vld [vmem:[%s5513_s1 + $0x1b8] sm:$0xff]  }
  0x22   : > { %3682 = vmatprep.subr.bf16.mxu0 %v4230_v14  ;;  %4198 = vmatprep.subr.bf16.mxu1 %v4230_v14  ;;  %v4295_v4 = vld [vmem:[%s5513_s1 + $0x278] sm:$0xff]   ;;  %v4740_v6 = vld [vmem:[%s4554_s8 + $0xa4] ss:$8 sps:$4 sm:$0xff]   ;;  %v4751_v9 = vld [vmem:[%s4554_s8 + $0xa0] ss:$8 sps:$4 sm:$0xff]  }
  0x23   : > { %v4296_v5 = vld [vmem:[%s5513_s1 + $0x238] sm:$0xff]   ;;  %v4304_v11 = vld [vmem:[%s5513_s1 + $0x1b0] sm:$0xff]  }
  0x24   : > { %v4743_v7 = vld [vmem:[%s4554_s8 + $0x134] ss:$8 sps:$4 sm:$0xff]   ;;  %v4754_v10 = vld [vmem:[%s4554_s8 + $0x130] ss:$8 sps:$4 sm:$0xff]  }
  0x25   : > { %3683 = vmatpush3.bf16.msra.mxu0 %v4231_v15  ;;  %4206 = vmatpush3.bf16.msra.mxu1 %v4231_v15  ;;  %v4305_v13 = vld [vmem:[%s5513_s1 + $0x270] sm:$0xff]   ;;  %v4307_v15 = vld [vmem:[%s5513_s1 + $0x1e8] sm:$0xff]  }
  0x26   : > { %3684 = vmatprep.subr.bf16.mxu0 %v4232_v16  ;;  %4199 = vmatprep.subr.bf16.mxu1 %v4232_v16  ;;  %v4306_v14 = vld [vmem:[%s5513_s1 + $0x230] sm:$0xff]  }
  0x27   : > { %v4769_v16 = vld [vmem:[%s4554_s8 + $0xb4] ss:$8 sps:$4 sm:$0xff]  }
  0x29   : > { %3685 = vmatpush3.bf16.msra.mxu0 %v4233_v17  ;;  %4207 = vmatpush3.bf16.msra.mxu1 %v4233_v17  ;;  %v4772_v17 = vld [vmem:[%s4554_s8 + $0x144] ss:$8 sps:$4 sm:$0xff]  }
  0x2a   : > { %3728 = vmatprep.subr.bf16.mxu1 %v4240_v18  ;;  %3786 = vmatprep.subr.bf16.mxu0 %v4241_v21  ;;  %v4312_v18 = vld [vmem:[%s5513_s1 + $0x1a8] sm:$0xff]  }
  0x2b   : > { %v4785_v21 = vld [vmem:[%s4554_s8 + $0x140] ss:$8 sps:$4 sm:$0xff]  }
  0x2c   : > { %2365 = vmatmul.mubr.bf16.vlgmr.msra.gmra.mxu0 %v4234_v19  ;;  %2397 = vmatmul.mubr.bf16.vlgmr.msra.gmra.mxu1 %v4587_v20  ;;  %v4782_v19 = vld [vmem:[%s4554_s8 + $0xb0] ss:$8 sps:$4 sm:$0xff]  }
  0x2d   : > { %3729 = vmatpush3.bf16.msra.mxu1 %v4242_v22  ;;  %3787 = vmatpush3.bf16.msra.mxu0 %v4243_v23  ;;  %v4315_v22 = vld [vmem:[%s5513_s1 + $0x268] sm:$0xff]  }
  0x2e   : > { %3730 = vmatprep.subr.bf16.mxu1 %v4244_v24  ;;  %3788 = vmatprep.subr.bf16.mxu0 %v4245_v25  ;;  %v4316_v23 = vld [vmem:[%s5513_s1 + $0x228] sm:$0xff]   ;;  %v4317_v24 = vld [vmem:[%s5513_s1 + $0x1e0] sm:$0xff]  }
  0x2f   : > { %2372 = vmatprep.mubr.bf16.mxu0 %v4605_v26  ;;  %2404 = vmatprep.mubr.bf16.mxu1 %v4611_v28  ;;  %v4318_v25 = vld [vmem:[%s5513_s1 + $0x1a0] sm:$0xff]  }
  0x31   : > { %3731 = vmatpush3.bf16.msra.mxu1 %v4246_v27  ;;  %3789 = vmatpush3.bf16.msra.mxu0 %v4247_v29  ;;  %v4800_v27 = vld [vmem:[%s4554_s8 + $0xc4] ss:$8 sps:$4 sm:$0xff]   ;;  %v4803_v29 = vld [vmem:[%s4554_s8 + $0x154] ss:$8 sps:$4 sm:$0xff]  }
  0x32   : > { %3732 = vmatprep.subr.bf16.mxu1 %v4251_v30  ;;  %3790 = vmatprep.subr.bf16.mxu0 %v4252_v32  ;;  %v4323_v30 = vld [vmem:[%s5513_s1 + $0x260] sm:$0xff]  }
  0x33   : > { %v4326_v32 = vld [vmem:[%s5513_s1 + $0x220] sm:$0xff]  }
  0x34   : > { %2373 = vmatmul.mubr.bf16.gmra.mxu0 %v4621_v31  ;;  %2405 = vmatmul.mubr.bf16.gmra.mxu1 %v4635_v35 }
  0x35   : > { %3733 = vmatpush3.bf16.msra.mxu1 %v4253_v33  ;;  %3791 = vmatpush3.bf16.msra.mxu0 %v4254_v34  ;;  %v4816_v33 = vld [vmem:[%s4554_s8 + $0xc0] ss:$8 sps:$4 sm:$0xff]   ;;  %v4819_v34 = vld [vmem:[%s4554_s8 + $0x150] ss:$8 sps:$4 sm:$0xff]  }
  0x36   : > { %3734 = vmatprep.subr.bf16.mxu1 %v4258_v36  ;;  %3792 = vmatprep.subr.bf16.mxu0 %v4259_v37  ;;  %v4327_v36 = vld [vmem:[%s5513_s1 + $0x1d8] sm:$0xff]  }
  0x37   : > { %2380 = vmatprep.mubr.bf16.mxu0 %v4647_v39  ;;  %2412 = vmatprep.mubr.bf16.mxu1 %v4658_v42  ;;  %v4328_v37 = vld [vmem:[%s5513_s1 + $0x198] sm:$0xff]  }
  0x39   : > { %3735 = vmatpush3.bf16.msra.mxu1 %v4260_v38  ;;  %3793 = vmatpush3.bf16.msra.mxu0 %v4261_v40  ;;  %v4329_v38 = vld [vmem:[%s5513_s1 + $0x258] sm:$0xff]  }
  0x3a   : > { %3736 = vmatprep.subr.bf16.mxu1 %v4265_v41  ;;  %3794 = vmatprep.subr.bf16.mxu0 %v4266_v44  ;;  %v4831_v40 = vld [vmem:[%s4554_s8 + $0xd4] ss:$8 sps:$4 sm:$0xff]   ;;  %v4834_v41 = vld [vmem:[%s4554_s8 + $0x164] ss:$8 sps:$4 sm:$0xff]  }
  0x3b   : > { %v4334_v44 = vld [vmem:[%s5513_s1 + $0x218] sm:$0xff]  }
  0x3c   : > { %2381 = vmatmul.mubr.bf16.gmra.mxu0 %v4661_v43  ;;  %2413 = vmatmul.mubr.bf16.gmra.mxu1 %v4675_v47 }
  0x3d   : > { %3737 = vmatpush3.bf16.msra.mxu1 %v4267_v45  ;;  %3795 = vmatpush3.bf16.msra.mxu0 %v4268_v46  ;;  %v4337_v45 = vld [vmem:[%s5513_s1 + $0x1d0] sm:$0xff]  }
  0x3e   : > { %3738 = vmatprep.subr.bf16.mxu1 %v4272_v48  ;;  %3796 = vmatprep.subr.bf16.mxu0 %v4273_v49  ;;  %v4847_v46 = vld [vmem:[%s4554_s8 + $0xd0] ss:$8 sps:$4 sm:$0xff]   ;;  %v4850_v48 = vld [vmem:[%s4554_s8 + $0x160] ss:$8 sps:$4 sm:$0xff]  }
  0x3f   : > { %2388 = vmatprep.mubr.bf16.mxu0 %v4687_v51  ;;  %2453 = vmatprep.mubr.bf16.mxu1 %v4289_v61  ;;  %v4338_v49 = vld [vmem:[%s5513_s1 + $0x190] sm:$0xff]  }
  0x40   : > { %v4887_v61 = vld [vmem:[%s4554_s8 + $0x170] ss:$8 sps:$4 sm:$0xff]  }
  0x41   : > { %3739 = vmatpush3.bf16.msra.mxu1 %v4274_v50  ;;  %3797 = vmatpush3.bf16.msra.mxu0 %v4275_v52  ;;  %v4339_v50 = vld [vmem:[%s5513_s1 + $0x250] sm:$0xff]  }
  0x42   : > { %3740 = vmatprep.subr.bf16.mxu1 %v4279_v53  ;;  %3798 = vmatprep.subr.bf16.mxu0 %v4280_v55  ;;  %v4340_v52 = vld [vmem:[%s5513_s1 + $0x210] sm:$0xff]   ;;  %v4862_v53 = vld [vmem:[%s4554_s8 + $0xe4] ss:$8 sps:$4 sm:$0xff]  }
  0x43   : > { %v4865_v55 = vld [vmem:[%s4554_s8 + $0x174] ss:$8 sps:$4 sm:$0xff]  }
  0x44   : > { %2389 = vmatmul.mubr.bf16.gmra.mxu0 %v4698_v54 }
  0x45   : > { %3741 = vmatpush3.bf16.msra.mxu1 %v4281_v56  ;;  %3799 = vmatpush3.bf16.msra.mxu0 %v4282_v57  ;;  %v4347_v56 = vld [vmem:[%s5513_s1 + $0x1c8] sm:$0xff]  }
  0x46   : > { %3742 = vmatprep.subr.bf16.mxu1 %v4283_v58  ;;  %3800 = vmatprep.subr.bf16.mxu0 %v4284_v59  ;;  %v4348_v57 = vld [vmem:[%s5513_s1 + $0x188] sm:$0xff]  }
  0x47   : > { %2542 = vmatprep.mubr.bf16.mxu0 %v4292_v63  ;;  %v4878_v58 = vld [vmem:[%s4554_s8 + $0xe0] ss:$8 sps:$4 sm:$0xff]   ;;  %v4893_v63 = vld [vmem:[%s4554_s8 + $0x184] ss:$8 sps:$4 sm:$0xff]  }
  0x48   : > { %v4349_v59 = vld [vmem:[%s5513_s1 + $0x248] sm:$0xff]  }
  0x49   : > { %3743 = vmatpush3.bf16.msra.mxu1 %v4285_v60  ;;  %3801 = vmatpush3.bf16.msra.mxu0 %v4286_v62  ;;  %v4350_v60 = vld [vmem:[%s5513_s1 + $0x208] sm:$0xff]   ;;  %v4890_v62 = vld [vmem:[%s4554_s8 + $0xf4] ss:$8 sps:$4 sm:$0xff]  }
  0x4a   : > { %3844 = vmatprep.subr.bf16.mxu1 %v4293_v2  ;;  %3902 = vmatprep.subr.bf16.mxu0 %v4295_v4  ;;  %v4359_v2 = vld [vmem:[%s5513_s1 + $0x240] sm:$0xff]   ;;  %v4912_v4 = vld [vmem:[%s4554_s8 + $0xf0] ss:$8 sps:$4 sm:$0xff]  }
  0x4c   : > { %2454 = vmatmul.mubr.bf16.vlgmr.msra.gmra.mxu1 %v4287_v0  ;;  %2543 = vmatmul.mubr.bf16.vlgmr.msra.gmra.mxu0 %v4290_v1  ;;  %v4357_v0 = vld [vmem:[%s5513_s1 + $0x1c0] sm:$0xff]  }
  0x4d   : > { %3845 = vmatpush3.bf16.msra.mxu1 %v4294_v3  ;;  %3903 = vmatpush3.bf16.msra.mxu0 %v4296_v5  ;;  %v4358_v1 = vld [vmem:[%s5513_s1 + $0x180] sm:$0xff]   ;;  %v4361_v5 = vld [vmem:[%s5513_s1 + $0x2f8] sm:$0xff]  }
  0x4e   : > { %2461 = vmatprep.mubr.bf16.mxu1 %v4740_v6  ;;  %2550 = vmatprep.mubr.bf16.mxu0 %v4743_v7  ;;  %v4360_v3 = vld [vmem:[%s5513_s1 + $0x200] sm:$0xff]  }
  0x4f   : > { %3846 = vmatprep.subr.bf16.mxu1 %v4301_v8  ;;  %3904 = vmatprep.subr.bf16.mxu0 %v4305_v13  ;;  %v4918_v8 = vld [vmem:[%s4554_s8 + $0x180] ss:$8 sps:$4 sm:$0xff]   ;;  %v4362_v13 = vld [vmem:[%s5513_s1 + $0x2b8] sm:$0xff]  }
  0x51   : > { %3847 = vmatpush3.bf16.msra.mxu1 %v4304_v11  ;;  %3905 = vmatpush3.bf16.msra.mxu0 %v4306_v14  ;;  %v4363_v11 = vld [vmem:[%s5513_s1 + $0x378] sm:$0xff]  }
  0x52   : > { %3848 = vmatprep.subr.bf16.mxu1 %v4307_v15  ;;  %3906 = vmatprep.subr.bf16.mxu0 %v4315_v22  ;;  %v4364_v14 = vld [vmem:[%s5513_s1 + $0x338] sm:$0xff]   ;;  %v4365_v15 = vld [vmem:[%s5513_s1 + $0x2f0] sm:$0xff]   ;;  %v4369_v22 = vld [vmem:[%s5513_s1 + $0x2e8] sm:$0xff]  }
  0x54   : > { %2462 = vmatmul.mubr.bf16.gmra.mxu1 %v4751_v9  ;;  %2551 = vmatmul.mubr.bf16.gmra.mxu0 %v4754_v10 }
  0x55   : > { %2469 = vmatprep.mubr.bf16.mxu1 %v4769_v16  ;;  %2558 = vmatprep.mubr.bf16.mxu0 %v4772_v17 }
  0x56   : > { %3849 = vmatpush3.bf16.msra.mxu1 %v4312_v18  ;;  %3907 = vmatpush3.bf16.msra.mxu0 %v4316_v23  ;;  %v4366_v18 = vld [vmem:[%s5513_s1 + $0x2b0] sm:$0xff]   ;;  %v4372_v23 = vld [vmem:[%s5513_s1 + $0x328] sm:$0xff]  }
  0x57   : > { %3850 = vmatprep.subr.bf16.mxu1 %v4317_v24  ;;  %3908 = vmatprep.subr.bf16.mxu0 %v4323_v30  ;;  %v4374_v24 = vld [vmem:[%s5513_s1 + $0x2a0] sm:$0xff]   ;;  %v4380_v30 = vld [vmem:[%s5513_s1 + $0x318] sm:$0xff]  }
  0x5a   : > { %3851 = vmatpush3.bf16.msra.mxu1 %v4318_v25  ;;  %3909 = vmatpush3.bf16.msra.mxu0 %v4326_v32  ;;  %v4376_v25 = vld [vmem:[%s5513_s1 + $0x320] sm:$0xff]   ;;  %v4381_v32 = vld [vmem:[%s5513_s1 + $0x2d0] sm:$0xff]  }
  0x5b   : > { %3852 = vmatprep.subr.bf16.mxu1 %v4327_v36  ;;  %3910 = vmatprep.subr.bf16.mxu0 %v4329_v38  ;;  %v4383_v36 = vld [vmem:[%s5513_s1 + $0x350] sm:$0xff]  }
  0x5c   : > { %2470 = vmatmul.mubr.bf16.gmra.mxu1 %v4782_v19  ;;  %2559 = vmatmul.mubr.bf16.gmra.mxu0 %v4785_v21  ;;  %v4384_v38 = vld [vmem:[%s5513_s1 + $0x310] sm:$0xff]  }
  0x5d   : > { %2477 = vmatprep.mubr.bf16.mxu1 %v4800_v27  ;;  %2566 = vmatprep.mubr.bf16.mxu0 %v4803_v29 }
  0x5e   : > { %3853 = vmatpush3.bf16.msra.mxu1 %v4328_v37  ;;  %3911 = vmatpush3.bf16.msra.mxu0 %v4334_v44  ;;  %v4382_v37 = vld [vmem:[%s5513_s1 + $0x290] sm:$0xff]   ;;  %v4395_v44 = vld [vmem:[%s5513_s1 + $0x2c0] sm:$0xff]  }
  0x5f   : > { %3854 = vmatprep.subr.bf16.mxu1 %v4337_v45  ;;  %3912 = vmatprep.subr.bf16.mxu0 %v4339_v50  ;;  %v4397_v45 = vld [vmem:[%s5513_s1 + $0x340] sm:$0xff]  }
  0x60   : > { %v4398_v50 = vld [vmem:[%s5513_s1 + $0x300] sm:$0xff]  }
  0x62   : > { %3855 = vmatpush3.bf16.msra.mxu1 %v4338_v49  ;;  %3913 = vmatpush3.bf16.msra.mxu0 %v4340_v52  ;;  %v4396_v49 = vld [vmem:[%s5513_s1 + $0x280] sm:$0xff]  }
  0x63   : > { %3856 = vmatprep.subr.bf16.mxu1 %v4347_v56  ;;  %3914 = vmatprep.subr.bf16.mxu0 %v4349_v59  ;;  %v5047_v52 = vld [vmem:[%s4554_s8 + $0x104] ss:$8 sps:$4 sm:$0xff]   ;;  %v4402_v56 = vld [vmem:[%s5513_s1 + $0x438] sm:$0xff]   ;;  %v4483_v59 = vld [vmem:[%s4554_s8 + $0x20] ss:$8 sps:$4 sm:$0xff]  }
  0x64   : > { %2478 = vmatmul.mubr.bf16.gmra.mxu1 %v4816_v33  ;;  %2567 = vmatmul.mubr.bf16.gmra.mxu0 %v4819_v34 }
  0x65   : > { %2485 = vmatprep.mubr.bf16.mxu1 %v4831_v40  ;;  %2574 = vmatprep.mubr.bf16.mxu0 %v4834_v41 }
  0x66   : > { %3857 = vmatpush3.bf16.msra.mxu1 %v4348_v57  ;;  %3915 = vmatpush3.bf16.msra.mxu0 %v4350_v60  ;;  %v4403_v57 = vld [vmem:[%s5513_s1 + $0x3f0] sm:$0xff]  }
  0x67   : > { %3858 = vmatprep.subr.bf16.mxu1 %v4357_v0  ;;  %3916 = vmatprep.subr.bf16.mxu0 %v4359_v2  ;;  %v4406_v60 = vld [vmem:[%s5513_s1 + $0x430] sm:$0xff]   ;;  %v4408_v0 = vld [vmem:[%s4554_s8 + $0x44] ss:$8 sps:$4 sm:$0xff]  }
  0x68   : > { %v4413_v2 = vld [vmem:[%s5513_s1 + $0x428] sm:$0xff]  }
  0x6a   : > { %3859 = vmatpush3.bf16.msra.mxu1 %v4358_v1  ;;  %3917 = vmatpush3.bf16.msra.mxu0 %v4360_v3  ;;  %v4410_v1 = vld [vmem:[%s5513_s1 + $0x3a8] sm:$0xff]   ;;  %v4484_v3 = vld [vmem:[%s4554_s8 + $0x30] ss:$8 sps:$4 sm:$0xff]  }
  0x6b   : > { %3960 = vmatprep.subr.bf16.mxu1 %v4361_v5  ;;  %4018 = vmatprep.subr.bf16.mxu0 %v4363_v11  ;;  %v4420_v5 = vld [vmem:[%s5513_s1 + $0x420] sm:$0xff]   ;;  %v4421_v11 = vld [vmem:[%s5513_s1 + $0x3d8] sm:$0xff]  }
  0x6c   : > { %2486 = vmatmul.mubr.bf16.gmra.mxu1 %v4847_v46  ;;  %2575 = vmatmul.mubr.bf16.gmra.mxu0 %v4850_v48 }
  0x6d   : > { %2493 = vmatprep.mubr.bf16.mxu1 %v4862_v53  ;;  %2582 = vmatprep.mubr.bf16.mxu0 %v4865_v55 }
  0x74   : > { %2494 = vmatmul.mubr.bf16.gmra.mxu1 %v4878_v58  ;;  %2583 = vmatmul.mubr.bf16.gmra.mxu0 %v4887_v61 }
  0x75   : > { %2501 = vmatprep.mubr.bf16.mxu1 %v4890_v62  ;;  %2590 = vmatprep.mubr.bf16.mxu0 %v4893_v63 }
  0x7c   : > { %2502 = vmatmul.mubr.bf16.gmra.mxu1 %v4912_v4  ;;  %2591 = vmatmul.mubr.bf16.gmra.mxu0 %v4918_v8 }
  0x7d   : > { %2631 = vmatprep.mubr.bf16.mxu1 %v4605_v26  ;;  %2720 = vmatprep.mubr.bf16.mxu0 %v4740_v6  ;;  %v4367_v26 = vld [vmem:[%s5513_s1 + $0x370] sm:$0xff]  }
  0x7e   : > { %v4368_v6 = vld [vmem:[%s5513_s1 + $0x330] sm:$0xff]  }
  0x84   : > { %2632 = vmatmul.mubr.bf16.vlgmr.msra.gmra.mxu1 %v4621_v31  ;;  %2721 = vmatmul.mubr.bf16.vlgmr.msra.gmra.mxu0 %v4751_v9  ;;  %v4371_v31 = vld [vmem:[%s5513_s1 + $0x368] sm:$0xff]  }
  0x85   : > { %3961 = vmatpush3.bf16.msra.mxu1 %v4362_v13  ;;  %4019 = vmatpush3.bf16.msra.mxu0 %v4364_v14  ;;  %v4370_v9 = vld [vmem:[%s5513_s1 + $0x2a8] sm:$0xff]   ;;  %v4416_v13 = vld [vmem:[%s4554_s8 + $0x54] ss:$8 sps:$4 sm:$0xff]  }
  0x86   : > { %2639 = vmatprep.mubr.bf16.mxu1 %v4647_v39  ;;  %2728 = vmatprep.mubr.bf16.mxu0 %v4769_v16  ;;  %v4373_v39 = vld [vmem:[%s5513_s1 + $0x2e0] sm:$0xff]   ;;  %v4422_v14 = vld [vmem:[%s5513_s1 + $0x398] sm:$0xff]  }
  0x87   : > { %3962 = vmatprep.subr.bf16.mxu1 %v4365_v15  ;;  %4020 = vmatprep.subr.bf16.mxu0 %v4367_v26  ;;  %v4375_v16 = vld [vmem:[%s5513_s1 + $0x360] sm:$0xff]   ;;  %v4426_v15 = vld [vmem:[%s5513_s1 + $0x418] sm:$0xff]   ;;  %v4430_v26 = vld [vmem:[%s5513_s1 + $0x450] sm:$0xff]  }
  0x89   : > { %3963 = vmatpush3.bf16.msra.mxu1 %v4366_v18  ;;  %4021 = vmatpush3.bf16.msra.mxu0 %v4368_v6  ;;  %v4428_v18 = vld [vmem:[%s5513_s1 + $0x3d0] sm:$0xff]  }
  0x8a   : > { %3964 = vmatprep.subr.bf16.mxu1 %v4369_v22  ;;  %4022 = vmatprep.subr.bf16.mxu0 %v4371_v31  ;;  %v4429_v6 = vld [vmem:[%s5513_s1 + $0x390] sm:$0xff]  }
  0x8b   : > { %v4431_v22 = vld [vmem:[%s5513_s1 + $0x410] sm:$0xff]  }
  0x8c   : > { %2640 = vmatmul.mubr.bf16.gmra.mxu1 %v4661_v43  ;;  %2729 = vmatmul.mubr.bf16.gmra.mxu0 %v4782_v19  ;;  %v4377_v43 = vld [vmem:[%s5513_s1 + $0x2d8] sm:$0xff]  }
  0x8d   : > { %2647 = vmatprep.mubr.bf16.mxu1 %v4687_v51  ;;  %2736 = vmatprep.mubr.bf16.mxu0 %v4800_v27  ;;  %v4379_v19 = vld [vmem:[%s5513_s1 + $0x358] sm:$0xff]  }
  0x8e   : > { %3965 = vmatpush3.bf16.msra.mxu1 %v4370_v9  ;;  %4023 = vmatpush3.bf16.msra.mxu0 %v4372_v23  ;;  %v4378_v27 = vld [vmem:[%s5513_s1 + $0x298] sm:$0xff]   ;;  %v4424_v9 = vld [vmem:[%s4554_s8 + $0x64] ss:$8 sps:$4 sm:$0xff]  }
  0x8f   : > { %3966 = vmatprep.subr.bf16.mxu1 %v4373_v39  ;;  %4024 = vmatprep.subr.bf16.mxu0 %v4375_v16  ;;  %v4419_v31 = vld [vmem:[%s4554_s8 + $0x50] ss:$8 sps:$4 sm:$0xff]   ;;  %v4433_v23 = vld [vmem:[%s5513_s1 + $0x388] sm:$0xff]   ;;  %v4442_v16 = vld [vmem:[%s5513_s1 + $0x3c0] sm:$0xff]  }
  0x90   : > { %v4435_v39 = vld [vmem:[%s5513_s1 + $0x408] sm:$0xff]  }
  0x92   : > { %3967 = vmatpush3.bf16.msra.mxu1 %v4374_v24  ;;  %4025 = vmatpush3.bf16.msra.mxu0 %v4376_v25  ;;  %v4444_v24 = vld [vmem:[%s5513_s1 + $0x440] sm:$0xff]  }
  0x93   : > { %3968 = vmatprep.subr.bf16.mxu1 %v4377_v43  ;;  %4026 = vmatprep.subr.bf16.mxu0 %v4379_v19  ;;  %v4443_v25 = vld [vmem:[%s5513_s1 + $0x380] sm:$0xff]  }
  0x94   : > { %2648 = vmatmul.mubr.bf16.gmra.mxu1 %v4698_v54  ;;  %2737 = vmatmul.mubr.bf16.gmra.mxu0 %v4816_v33  ;;  %v4385_v54 = vld [vmem:[%s5513_s1 + $0x2c8] sm:$0xff]   ;;  %v4445_v43 = vld [vmem:[%s5513_s1 + $0x400] sm:$0xff]  }
  0x95   : > { %2655 = vmatprep.mubr.bf16.mxu1 %v4564_v12  ;;  %2744 = vmatprep.mubr.bf16.mxu0 %v4831_v40  ;;  %v4387_v33 = vld [vmem:[%s5513_s1 + $0x348] sm:$0xff]  }
  0x96   : > { %3969 = vmatpush3.bf16.msra.mxu1 %v4378_v27  ;;  %4027 = vmatpush3.bf16.msra.mxu0 %v4380_v30  ;;  %v4386_v12 = vld [vmem:[%s5513_s1 + $0x288] sm:$0xff]   ;;  %v5181_v27 = vld [vmem:[%s4554_s8 + $0x190] ss:$8 sps:$4 sm:$0xff]  }
  0x97   : > { %3970 = vmatprep.subr.bf16.mxu1 %v4381_v32  ;;  %4028 = vmatprep.subr.bf16.mxu0 %v4383_v36  ;;  %v4388_v40 = vld [vmem:[%s5513_s1 + $0x308] sm:$0xff]  }
  0x98   : > { %v4438_v19 = vld [vmem:[%s4554_s8 + $0x84] ss:$8 sps:$4 sm:$0xff]   ;;  %v4441_v30 = vld [vmem:[%s4554_s8 + $0x80] ss:$8 sps:$4 sm:$0xff]  }
  0x9a   : > { %3971 = vmatpush3.bf16.msra.mxu1 %v4382_v37  ;;  %4029 = vmatpush3.bf16.msra.mxu0 %v4384_v38 }
  0x9b   : > { %3972 = vmatprep.subr.bf16.mxu1 %v4385_v54  ;;  %4030 = vmatprep.subr.bf16.mxu0 %v4387_v33 }
  0x9c   : > { %2656 = vmatmul.mubr.bf16.gmra.mxu1 %v4587_v20  ;;  %2745 = vmatmul.mubr.bf16.gmra.mxu0 %v4847_v46  ;;  %v4399_v20 = vld [vmem:[%s5513_s1 + $0x3f8] sm:$0xff]  }
  0x9d   : > { %2663 = vmatprep.mubr.bf16.mxu1 %v4611_v28  ;;  %2752 = vmatprep.mubr.bf16.mxu0 %v4862_v53  ;;  %v4401_v28 = vld [vmem:[%s5513_s1 + $0x478] sm:$0xff]   ;;  %v5057_v53 = vld [vmem:[%s4554_s8 + $0x100] ss:$8 sps:$4 sm:$0xff]  }
  0x9e   : > { %3973 = vmatpush3.bf16.msra.mxu1 %v4386_v12  ;;  %4031 = vmatpush3.bf16.msra.mxu0 %v4388_v40  ;;  %v5044_v46 = vld [vmem:[%s4554_s8 + $0x74] ss:$8 sps:$4 sm:$0xff]   ;;  %v4446_v40 = vld [vmem:[%s4554_s8 + $0xb0] ss:$8 sps:$4 sm:$0xff]  }
  0x9f   : > { %3974 = vmatprep.subr.bf16.mxu1 %v4395_v44  ;;  %4032 = vmatprep.subr.bf16.mxu0 %v4397_v45  ;;  %v4449_v44 = vld [vmem:[%s4554_s8 + $0x140] ss:$8 sps:$4 sm:$0xff]   ;;  %v4452_v45 = vld [vmem:[%s4554_s8 + $0xc4] ss:$8 sps:$4 sm:$0xff]  }
  0xa2   : > { %3975 = vmatpush3.bf16.msra.mxu1 %v4396_v49  ;;  %4033 = vmatpush3.bf16.msra.mxu0 %v4398_v50  ;;  %v4454_v49 = vld [vmem:[%s4554_s8 + $0x154] ss:$8 sps:$4 sm:$0xff]  }
  0xa3   : > { %4076 = vmatprep.subr.bf16.mxu1 %v4399_v20  ;;  %4134 = vmatprep.subr.bf16.mxu0 %v4401_v28 }
  0xa4   : > { %2664 = vmatmul.mubr.bf16.gmra.mxu1 %v4635_v35  ;;  %2753 = vmatmul.mubr.bf16.gmra.mxu0 %v4878_v58  ;;  %v5054_v35 = vld [vmem:[%s4554_s8 + $0x70] ss:$8 sps:$4 sm:$0xff]  }
  0xa5   : > { %2671 = vmatprep.mubr.bf16.mxu1 %v4658_v42  ;;  %2760 = vmatprep.mubr.bf16.mxu0 %v4890_v62  ;;  %v4482_v42 = vld [vmem:[%s4554_s8 + $0x24] ss:$8 sps:$4 sm:$0xff]   ;;  %v4404_v58 = vld [vmem:[%s5513_s1 + $0x3b0] sm:$0xff]  }
  0xa6   : > { %v4407_v62 = vld [vmem:[%s5513_s1 + $0x3e8] sm:$0xff]  }
  0xac   : > { %2672 = vmatmul.mubr.bf16.gmra.mxu1 %v4675_v47  ;;  %2761 = vmatmul.mubr.bf16.gmra.mxu0 %v4912_v4  ;;  %v4400_v47 = vld [vmem:[%s5513_s1 + $0x3b8] sm:$0xff]   ;;  %v4415_v4 = vld [vmem:[%s5513_s1 + $0x3a0] sm:$0xff]  }
  0xad   : > { %2679 = vmatprep.mubr.bf16.mxu1 %v5044_v46  ;;  %2768 = vmatprep.mubr.bf16.mxu0 %v5047_v52 }
  0xb4   : > { %2680 = vmatmul.mubr.bf16.gmra.mxu1 %v5054_v35  ;;  %2769 = vmatmul.mubr.bf16.gmra.mxu0 %v5057_v53 }
  0xb5   : > { %2809 = vmatprep.mubr.bf16.mxu1 %v4743_v7  ;;  %2898 = vmatprep.mubr.bf16.mxu0 %v4482_v42  ;;  %v4405_v7 = vld [vmem:[%s5513_s1 + $0x470] sm:$0xff]  }
  0xbc   : > { %2810 = vmatmul.mubr.bf16.vlgmr.msra.gmra.mxu1 %v4754_v10  ;;  %2899 = vmatmul.mubr.bf16.vlgmr.msra.gmra.mxu0 %v4483_v59  ;;  %v4412_v10 = vld [vmem:[%s5513_s1 + $0x468] sm:$0xff]  }
  0xbd   : > { %4077 = vmatpush3.bf16.msra.mxu1 %v4400_v47  ;;  %4135 = vmatpush3.bf16.msra.mxu0 %v4402_v56 }
  0xbe   : > { %2817 = vmatprep.mubr.bf16.mxu1 %v4772_v17  ;;  %2906 = vmatprep.mubr.bf16.mxu0 %v4687_v51  ;;  %v4414_v51 = vld [vmem:[%s5513_s1 + $0x3e0] sm:$0xff]  }
  0xbf   : > { %4078 = vmatprep.subr.bf16.mxu1 %v4403_v57  ;;  %4136 = vmatprep.subr.bf16.mxu0 %v4405_v7  ;;  %v4418_v17 = vld [vmem:[%s5513_s1 + $0x460] sm:$0xff]  }
  0xc1   : > { %4079 = vmatpush3.bf16.msra.mxu1 %v4404_v58  ;;  %4137 = vmatpush3.bf16.msra.mxu0 %v4406_v60  ;;  %v4456_v60 = vld [vmem:[%s4554_s8 + $0xc0] ss:$8 sps:$4 sm:$0xff]  }
  0xc2   : > { %4080 = vmatprep.subr.bf16.mxu1 %v4407_v62  ;;  %4138 = vmatprep.subr.bf16.mxu0 %v4412_v10  ;;  %v4457_v62 = vld [vmem:[%s4554_s8 + $0x150] ss:$8 sps:$4 sm:$0xff]   ;;  %v4458_v10 = vld [vmem:[%s4554_s8 + $0xd4] ss:$8 sps:$4 sm:$0xff]  }
  0xc4   : > { %2818 = vmatmul.mubr.bf16.gmra.mxu1 %v4785_v21  ;;  %2907 = vmatmul.mubr.bf16.gmra.mxu0 %v4484_v3  ;;  %v4423_v21 = vld [vmem:[%s5513_s1 + $0x458] sm:$0xff]  }
  0xc5   : > { %2825 = vmatprep.mubr.bf16.mxu1 %v4803_v29  ;;  %2914 = vmatprep.mubr.bf16.mxu0 %v4408_v0  ;;  %v4411_v29 = vld [vmem:[%s4554_s8 + $0x40] ss:$8 sps:$4 sm:$0xff]   ;;  %v4460_v0 = vld [vmem:[%s4554_s8 + $0x164] ss:$8 sps:$4 sm:$0xff]  }
  0xc6   : > { %4081 = vmatpush3.bf16.msra.mxu1 %v4410_v1  ;;  %4139 = vmatpush3.bf16.msra.mxu0 %v4413_v2 }
  0xc7   : > { %4082 = vmatprep.subr.bf16.mxu1 %v4414_v51  ;;  %4140 = vmatprep.subr.bf16.mxu0 %v4418_v17 }
  0xca   : > { %4083 = vmatpush3.bf16.msra.mxu1 %v4415_v4  ;;  %4141 = vmatpush3.bf16.msra.mxu0 %v4420_v5 }
  0xcb   : > { %4084 = vmatprep.subr.bf16.mxu1 %v4421_v11  ;;  %4142 = vmatprep.subr.bf16.mxu0 %v4423_v21 }
  0xcc   : > { %2826 = vmatmul.mubr.bf16.gmra.mxu1 %v4819_v34  ;;  %2915 = vmatmul.mubr.bf16.gmra.mxu0 %v4411_v29  ;;  %v4432_v34 = vld [vmem:[%s5513_s1 + $0x3c8] sm:$0xff]  }
  0xcd   : > { %2833 = vmatprep.mubr.bf16.mxu1 %v4834_v41  ;;  %2922 = vmatprep.mubr.bf16.mxu0 %v4416_v13  ;;  %v4434_v41 = vld [vmem:[%s5513_s1 + $0x448] sm:$0xff]  }
  0xce   : > { %4085 = vmatpush3.bf16.msra.mxu1 %v4422_v14  ;;  %4143 = vmatpush3.bf16.msra.mxu0 %v4426_v15  ;;  %v4462_v15 = vld [vmem:[%s4554_s8 + $0xd0] ss:$8 sps:$4 sm:$0xff]  }
  0xcf   : > { %4086 = vmatprep.subr.bf16.mxu1 %v4428_v18  ;;  %4144 = vmatprep.subr.bf16.mxu0 %v4430_v26  ;;  %v4463_v18 = vld [vmem:[%s4554_s8 + $0x160] ss:$8 sps:$4 sm:$0xff]   ;;  %v4464_v26 = vld [vmem:[%s4554_s8 + $0xe4] ss:$8 sps:$4 sm:$0xff]  }
  0xd2   : > { %4087 = vmatpush3.bf16.msra.mxu1 %v4429_v6  ;;  %4145 = vmatpush3.bf16.msra.mxu0 %v4431_v22  ;;  %v4468_v6 = vld [vmem:[%s4554_s8 + $0x174] ss:$8 sps:$4 sm:$0xff]  }
  0xd3   : > { %4088 = vmatprep.subr.bf16.mxu1 %v4432_v34  ;;  %4146 = vmatprep.subr.bf16.mxu0 %v4434_v41 }
  0xd4   : > { %2834 = vmatmul.mubr.bf16.gmra.mxu1 %v4850_v48  ;;  %2923 = vmatmul.mubr.bf16.gmra.mxu0 %v4419_v31  ;;  %v4427_v48 = vld [vmem:[%s4554_s8 + $0x60] ss:$8 sps:$4 sm:$0xff]  }
  0xd5   : > { %2841 = vmatprep.mubr.bf16.mxu1 %v4865_v55  ;;  %2930 = vmatprep.mubr.bf16.mxu0 %v4424_v9  ;;  %v5174_v55 = vld [vmem:[%s4554_s8 + $0x194] ss:$8 sps:$4 sm:$0xff]  }
  0xd6   : > { %4089 = vmatpush3.bf16.msra.mxu1 %v4433_v23  ;;  %4147 = vmatpush3.bf16.msra.mxu0 %v4435_v39 }
  0xd7   : > { %4090 = vmatprep.subr.bf16.mxu1 %v4442_v16  ;;  %4148 = vmatprep.subr.bf16.mxu0 %v4444_v24  ;;  %v4466_v24 = vld [vmem:[%s4554_s8 + $0x170] ss:$8 sps:$4 sm:$0xff]  }
  0xda   : > { %4091 = vmatpush3.bf16.msra.mxu1 %v4443_v25  ;;  %4149 = vmatpush3.bf16.msra.mxu0 %v4445_v43  ;;  %v4469_v25 = vld [vmem:[%s4554_s8 + $0xe0] ss:$8 sps:$4 sm:$0xff]   ;;  %v4472_v43 = vld [vmem:[%s4554_s8 + $0xf4] ss:$8 sps:$4 sm:$0xff]  }
  0xdc   : > { %2842 = vmatmul.mubr.bf16.gmra.mxu1 %v4887_v61  ;;  %2931 = vmatmul.mubr.bf16.gmra.mxu0 %v4427_v48  ;;  %v4448_v61 = vld [vmem:[%s4554_s8 + $0xb4] ss:$8 sps:$4 sm:$0xff]   ;;  %v4475_v48 = vld [vmem:[%s4554_s8 + $0x184] ss:$8 sps:$4 sm:$0xff]  }
  0xdd   : > { %2849 = vmatprep.mubr.bf16.mxu1 %v4893_v63  ;;  %2938 = vmatprep.mubr.bf16.mxu0 %v5044_v46  ;;  %v4451_v63 = vld [vmem:[%s4554_s8 + $0x144] ss:$8 sps:$4 sm:$0xff]  }
  0xe4   : > { %2850 = vmatmul.mubr.bf16.gmra.mxu1 %v4918_v8  ;;  %2939 = vmatmul.mubr.bf16.gmra.mxu0 %v5054_v35 }
  0xe5   : > { %2857 = vmatprep.mubr.bf16.mxu1 %v5174_v55  ;;  %2946 = vmatprep.mubr.bf16.mxu0 %v4438_v19 }
  0xec   : > { %v3686_v32 = vpop.f32.mrf.mxu0  ;;  %v3710_v36 = vpop.f32.mrf.mxu1  ;;  %2858 = vmatmul.mubr.bf16.gmra.mxu1 %v5181_v27  ;;  %2947 = vmatmul.mubr.bf16.gmra.mxu0 %v4441_v30 }
  0xed   : > { %2987 = vmatprep.mubr.bf16.mxu1 %v4448_v61  ;;  %3076 = vmatprep.mubr.bf16.mxu0 %v4451_v63 }
  0xee   : > { %v3687_v8 = vpop.f32.mrf.mxu0  ;;  %v3711_v37 = vpop.f32.mrf.mxu1 }
  0xef   : > { %v5187_v38 = vadd.f32 %v3687_v8, %v3686_v32  ;;  %v5189_v54 = vadd.f32 %v3711_v37, %v3710_v36 }
  0xf0   : > { %v3689_v33 = vpop.f32.mrf.mxu0  ;;  %v3713_v12 = vpop.f32.mrf.mxu1 }
  0xf2   : > { %v3690_v50 = vpop.f32.mrf.mxu0  ;;  %v3714_v20 = vpop.f32.mrf.mxu1 }
  0xf3   : > { %v5195_v28 = vadd.f32 %v3690_v50, %v3689_v33  ;;  %v5197_v46 = vadd.f32 %v3714_v20, %v3713_v12 }
  0xf4   : > { %v3692_v35 = vpop.f32.mrf.mxu0  ;;  %2988 = vmatmul.mubr.bf16.vlgmr.msra.gmra.mxu1 %v4446_v40  ;;  %3077 = vmatmul.mubr.bf16.vlgmr.msra.gmra.mxu0 %v4449_v44  ;;  %v3716_v42 = vpop.f32.mrf.mxu1  ;;  %v4470_v40 = vld [vmem:[%s4554_s8 + $0xf0] ss:$8 sps:$4 sm:$0xff]   ;;  %v4473_v44 = vld [vmem:[%s4554_s8 + $0x180] ss:$8 sps:$4 sm:$0xff]  }
  0xf5   : > { %2995 = vmatprep.mubr.bf16.mxu1 %v4452_v45  ;;  %3084 = vmatprep.mubr.bf16.mxu0 %v4454_v49 }
  0xf6   : > { %v3693_v47 = vpop.f32.mrf.mxu0  ;;  %v3717_v56 = vpop.f32.mrf.mxu1 }
  0xf7   : > { %v5199_v57 = vadd.f32 %v3693_v47, %v3692_v35  ;;  %v5201_v58 = vadd.f32 %v3717_v56, %v3716_v42 }
  0xf8   : > { %v3695_v7 = vpop.f32.mrf.mxu0  ;;  %v3719_v59 = vpop.f32.mrf.mxu1 }
  0xfa   : > { %v3696_v1 = vpop.f32.mrf.mxu0  ;;  %v3720_v2 = vpop.f32.mrf.mxu1 }
  0xfb   : > { %v5207_v51 = vadd.f32 %v3696_v1, %v3695_v7  ;;  %v5209_v17 = vadd.f32 %v3720_v2, %v3719_v59 }
  0xfc   : > { %v3698_v3 = vpop.f32.mrf.mxu0  ;;  %2996 = vmatmul.mubr.bf16.gmra.mxu1 %v4456_v60  ;;  %3085 = vmatmul.mubr.bf16.gmra.mxu0 %v4457_v62  ;;  %v3722_v4 = vpop.f32.mrf.mxu1 }
  0xfd   : > { %3003 = vmatprep.mubr.bf16.mxu1 %v4458_v10  ;;  %3092 = vmatprep.mubr.bf16.mxu0 %v4460_v0 }
  0xfe   : > { %v3699_v5 = vpop.f32.mrf.mxu0  ;;  %v3723_v11 = vpop.f32.mrf.mxu1 }
  0xff   : > { %v5211_v21 = vadd.f32 %v3699_v5, %v3698_v3  ;;  %v5213_v29 = vadd.f32 %v3723_v11, %v3722_v4  ;;  %v4478_v3 = vld [vmem:[%s4554_s8 + $0x114] ss:$8 sps:$4 sm:$0xff]   ;;  %v4481_v4 = vld [vmem:[%s4554_s8 + $0x1a4] ss:$8 sps:$4 sm:$0xff]  }
 0x100   : > { %v3701_v13 = vpop.f32.mrf.mxu0  ;;  %v3725_v14 = vpop.f32.mrf.mxu1 }
 0x102   : > { %v3702_v22 = vpop.f32.mrf.mxu0  ;;  %v3726_v34 = vpop.f32.mrf.mxu1 }
 0x103   : > { %v5219_v41 = vadd.f32 %v3702_v22, %v3701_v13  ;;  %v5221_v31 = vadd.f32 %v3726_v34, %v3725_v14 }
 0x104   : > { %v3704_v9 = vpop.f32.mrf.mxu0  ;;  %3004 = vmatmul.mubr.bf16.gmra.mxu1 %v4462_v15  ;;  %3093 = vmatmul.mubr.bf16.gmra.mxu0 %v4463_v18 }
 0x105   : > { %3011 = vmatprep.mubr.bf16.mxu1 %v4464_v26  ;;  %3100 = vmatprep.mubr.bf16.mxu0 %v4468_v6 }
 0x106   : > { %v3705_v23 = vpop.f32.mrf.mxu0 }
 0x107   : > { %v5223_v39 = vadd.f32 %v3705_v23, %v3704_v9  ;;  %v4476_v23 = vld [vmem:[%s4554_s8 + $0x110] ss:$8 sps:$4 sm:$0xff]  }
 0x108   : > { %v3707_v16 = vpop.f32.mrf.mxu0 }
 0x10a   : > { %v3708_v19 = vpop.f32.mrf.mxu0 }
 0x10b   : > { %v5229_v30 = vadd.f32 %v3708_v19, %v3707_v16  ;;  %v4479_v16 = vld [vmem:[%s4554_s8 + $0x1a0] ss:$8 sps:$4 sm:$0xff]  }
 0x10c   : > { %v3744_v61 = vpop.f32.mrf.mxu1  ;;  %v3802_v63 = vpop.f32.mrf.mxu0  ;;  %3012 = vmatmul.mubr.bf16.gmra.mxu1 %v4469_v25  ;;  %3101 = vmatmul.mubr.bf16.gmra.mxu0 %v4466_v24 }
 0x10d   : > { %3019 = vmatprep.mubr.bf16.mxu1 %v4472_v43  ;;  %3108 = vmatprep.mubr.bf16.mxu0 %v4475_v48 }
 0x10e   : > { %v3745_v32 = vpop.f32.mrf.mxu1  ;;  %v3803_v36 = vpop.f32.mrf.mxu0 }
 0x10f   : > { %v3746_v8 = vadd.f32 %v3745_v32, %v3744_v61  ;;  %v3804_v37 = vadd.f32 %v3803_v36, %v3802_v63 }
 0x110   : > { %v3747_v33 = vpop.f32.mrf.mxu1  ;;  %v3805_v12 = vpop.f32.mrf.mxu0 }
 0x111   : > { %v2456_v45 = vadd.f32 %v3746_v8, %v5187_v38 }
 0x112   : > { %v3748_v49 = vpop.f32.mrf.mxu1  ;;  %v3806_v50 = vpop.f32.mrf.mxu0 }
 0x113   : > { %v5234_v20 = vadd.f32 %v3804_v37, %v2456_v45  ;;  %v3749_v35 = vadd.f32 %v3748_v49, %v3747_v33  ;;  %v3807_v42 = vadd.f32 %v3806_v50, %v3805_v12 }
 0x114   : > { %v3750_v47 = vpop.f32.mrf.mxu1  ;;  %v3808_v56 = vpop.f32.mrf.mxu0  ;;  %3020 = vmatmul.mubr.bf16.gmra.mxu1 %v4470_v40  ;;  %3109 = vmatmul.mubr.bf16.gmra.mxu0 %v4473_v44 }
 0x115   : > { %v2459_v7 = vadd.f32 %v3749_v35, %v5195_v28  ;;  %3027 = vmatprep.mubr.bf16.mxu1 %v5047_v52  ;;  %3116 = vmatprep.mubr.bf16.mxu0 %v5174_v55 }
 0x116   : > { %v3751_v59 = vpop.f32.mrf.mxu1  ;;  %v3809_v38 = vpop.f32.mrf.mxu0 }
 0x117   : > { %v5239_v60 = vadd.f32 %v3807_v42, %v2459_v7  ;;  %v3752_v62 = vadd.f32 %v3751_v59, %v3750_v47  ;;  %v3810_v10 = vadd.f32 %v3809_v38, %v3808_v56 }
 0x118   : > { %v3753_v0 = vpop.f32.mrf.mxu1  ;;  %v3811_v1 = vpop.f32.mrf.mxu0 }
 0x119   : > { %v2464_v2 = vadd.f32 %v3752_v62, %v5199_v57 }
 0x11a   : > { %v3754_v5 = vpop.f32.mrf.mxu1  ;;  %v3812_v11 = vpop.f32.mrf.mxu0 }
 0x11b   : > { %v5244_v13 = vadd.f32 %v3810_v10, %v2464_v2  ;;  %v3755_v28 = vadd.f32 %v3754_v5, %v3753_v0  ;;  %v3813_v52 = vadd.f32 %v3812_v11, %v3811_v1 }
 0x11c   : > { %v3756_v55 = vpop.f32.mrf.mxu1  ;;  %v3814_v14 = vpop.f32.mrf.mxu0  ;;  %3028 = vmatmul.mubr.bf16.gmra.mxu1 %v5057_v53  ;;  %3117 = vmatmul.mubr.bf16.gmra.mxu0 %v5181_v27 }
 0x11d   : > { %v2467_v15 = vadd.f32 %v3755_v28, %v5207_v51  ;;  %3035 = vmatprep.mubr.bf16.mxu1 %v4478_v3  ;;  %3124 = vmatprep.mubr.bf16.mxu0 %v4481_v4 }
 0x11e   : > { %v3757_v57 = vpop.f32.mrf.mxu1  ;;  %v3815_v18 = vpop.f32.mrf.mxu0 }
 0x11f   : > { %v5249_v26 = vadd.f32 %v3813_v52, %v2467_v15  ;;  %v3758_v6 = vadd.f32 %v3757_v57, %v3756_v55  ;;  %v3816_v22 = vadd.f32 %v3815_v18, %v3814_v14 }
 0x120   : > { %v3759_v34 = vpop.f32.mrf.mxu1  ;;  %v3817_v9 = vpop.f32.mrf.mxu0 }
 0x121   : > { %v2472_v24 = vadd.f32 %v3758_v6, %v5211_v21 }
 0x122   : > { %v3760_v25 = vpop.f32.mrf.mxu1  ;;  %v3818_v53 = vpop.f32.mrf.mxu0 }
 0x123   : > { %v5254_v43 = vadd.f32 %v3816_v22, %v2472_v24  ;;  %v3761_v27 = vadd.f32 %v3760_v25, %v3759_v34  ;;  %v3819_v51 = vadd.f32 %v3818_v53, %v3817_v9 }
 0x124   : > { %v3762_v48 = vpop.f32.mrf.mxu1  ;;  %v3820_v19 = vpop.f32.mrf.mxu0  ;;  %3036 = vmatmul.mubr.bf16.gmra.mxu1 %v4476_v23  ;;  %3125 = vmatmul.mubr.bf16.gmra.mxu0 %v4479_v16 }
 0x125   : > { %v2475_v61 = vadd.f32 %v3761_v27, %v5219_v41 }
 0x126   : > { %v3763_v63 = vpop.f32.mrf.mxu1  ;;  %v3821_v32 = vpop.f32.mrf.mxu0 }
 0x127   : > { %v5257_v36 = vadd.f32 %v3819_v51, %v2475_v61  ;;  %v3764_v8 = vadd.f32 %v3763_v63, %v3762_v48  ;;  %v3822_v37 = vadd.f32 %v3821_v32, %v3820_v19 }
 0x128   : > { %v3765_v33 = vpop.f32.mrf.mxu1  ;;  %v3823_v21 = vpop.f32.mrf.mxu0 }
 0x129   : > { %v2480_v12 = vadd.f32 %v3764_v8, %v5223_v39 }
 0x12a   : > { %v3766_v40 = vpop.f32.mrf.mxu1  ;;  %v3824_v44 = vpop.f32.mrf.mxu0 }
 0x12b   : > { %v5260_v45 = vadd.f32 %v3822_v37, %v2480_v12  ;;  %v3767_v49 = vadd.f32 %v3766_v40, %v3765_v33  ;;  %v3825_v50 = vadd.f32 %v3824_v44, %v3823_v21 }
 0x12c   : > { %v3768_v35 = vpop.f32.mrf.mxu1  ;;  %v3826_v42 = vpop.f32.mrf.mxu0 }
 0x12d   : > { %v2483_v41 = vadd.f32 %v3767_v49, %v5229_v30 }
 0x12e   : > { %v3769_v47 = vpop.f32.mrf.mxu1  ;;  %v3827_v56 = vpop.f32.mrf.mxu0 }
 0x12f   : > { %v5263_v7 = vadd.f32 %v3825_v50, %v2483_v41  ;;  %v3770_v59 = vadd.f32 %v3769_v47, %v3768_v35  ;;  %v3828_v38 = vadd.f32 %v3827_v56, %v3826_v42 }
 0x130   : > { %v3771_v62 = vpop.f32.mrf.mxu1  ;;  %v3829_v10 = vpop.f32.mrf.mxu0 }
 0x131   : > { %v2488_v39 = vadd.f32 %v3770_v59, %v5189_v54 }
 0x132   : > { %v3772_v0 = vpop.f32.mrf.mxu1  ;;  %v3830_v1 = vpop.f32.mrf.mxu0 }
 0x133   : > { %v5266_v2 = vadd.f32 %v3828_v38, %v2488_v39  ;;  %v3773_v3 = vadd.f32 %v3772_v0, %v3771_v62  ;;  %v3831_v4 = vadd.f32 %v3830_v1, %v3829_v10 }
 0x134   : > { %v3774_v5 = vpop.f32.mrf.mxu1  ;;  %v3832_v11 = vpop.f32.mrf.mxu0 }
 0x135   : > { %v2491_v30 = vadd.f32 %v3773_v3, %v5197_v46 }
 0x136   : > { %v3775_v28 = vpop.f32.mrf.mxu1  ;;  %v3833_v52 = vpop.f32.mrf.mxu0 }
 0x137   : > { %v5269_v55 = vadd.f32 %v3831_v4, %v2491_v30  ;;  %v3776_v14 = vadd.f32 %v3775_v28, %v3774_v5  ;;  %v3834_v15 = vadd.f32 %v3833_v52, %v3832_v11 }
 0x138   : > { %v3777_v57 = vpop.f32.mrf.mxu1  ;;  %v3835_v18 = vpop.f32.mrf.mxu0 }
 0x139   : > { %v2496_v54 = vadd.f32 %v3776_v14, %v5201_v58 }
 0x13a   : > { %v3778_v6 = vpop.f32.mrf.mxu1  ;;  %v3836_v22 = vpop.f32.mrf.mxu0 }
 0x13b   : > { %v5272_v34 = vadd.f32 %v3834_v15, %v2496_v54  ;;  %v3779_v9 = vadd.f32 %v3778_v6, %v3777_v57  ;;  %v3837_v23 = vadd.f32 %v3836_v22, %v3835_v18 }
 0x13c   : > { %v3780_v16 = vpop.f32.mrf.mxu1  ;;  %v3838_v24 = vpop.f32.mrf.mxu0 }
 0x13d   : > { %v2499_v46 = vadd.f32 %v3779_v9, %v5209_v17 }
 0x13e   : > { %v3781_v25 = vpop.f32.mrf.mxu1  ;;  %v3839_v53 = vpop.f32.mrf.mxu0 }
 0x13f   : > { %v5275_v27 = vadd.f32 %v3837_v23, %v2499_v46  ;;  %v3782_v51 = vadd.f32 %v3781_v25, %v3780_v16  ;;  %v3840_v48 = vadd.f32 %v3839_v53, %v3838_v24 }
 0x140   : > { %v3783_v19 = vpop.f32.mrf.mxu1  ;;  %v3841_v61 = vpop.f32.mrf.mxu0 }
 0x141   : > { %v2504_v58 = vadd.f32 %v3782_v51, %v5213_v29 }
 0x142   : > { %v3784_v63 = vpop.f32.mrf.mxu1  ;;  %v3842_v32 = vpop.f32.mrf.mxu0 }
 0x143   : > { %v5278_v8 = vadd.f32 %v3840_v48, %v2504_v58  ;;  %v3785_v37 = vadd.f32 %v3784_v63, %v3783_v19  ;;  %v3843_v33 = vadd.f32 %v3842_v32, %v3841_v61 }
 0x144   : > { %v3860_v21 = vpop.f32.mrf.mxu1  ;;  %v3918_v12 = vpop.f32.mrf.mxu0 }
 0x145   : > { %v2507_v17 = vadd.f32 %v3785_v37, %v5221_v31 }
 0x146   : > { %v3861_v40 = vpop.f32.mrf.mxu1  ;;  %v3919_v44 = vpop.f32.mrf.mxu0 }
 0x147   : > { %v5281_v49 = vadd.f32 %v3843_v33, %v2507_v17  ;;  %v3862_v50 = vadd.f32 %v3861_v40, %v3860_v21  ;;  %v3920_v35 = vadd.f32 %v3919_v44, %v3918_v12 }
 0x148   : > { %v3863_v42 = vpop.f32.mrf.mxu1  ;;  %v3921_v41 = vpop.f32.mrf.mxu0 }
 0x149   : > { %v2634_v29 = vadd.f32 %v3862_v50, %v5234_v20 }
 0x14a   : > { %v3864_v47 = vpop.f32.mrf.mxu1  ;;  %v3922_v56 = vpop.f32.mrf.mxu0 }
 0x14b   : > { %v5284_v59 = vadd.f32 %v3920_v35, %v2634_v29  ;;  %v3865_v38 = vadd.f32 %v3864_v47, %v3863_v42  ;;  %v3923_v62 = vadd.f32 %v3922_v56, %v3921_v41 }
 0x14c   : > { %v3866_v10 = vpop.f32.mrf.mxu1  ;;  %v3924_v39 = vpop.f32.mrf.mxu0 }
 0x14d   : > { %v2637_v31 = vadd.f32 %v3865_v38, %v5239_v60 }
 0x14e   : > { %v3867_v0 = vpop.f32.mrf.mxu1  ;;  %v3925_v1 = vpop.f32.mrf.mxu0 }
 0x14f   : > { %v5287_v3 = vadd.f32 %v3923_v62, %v2637_v31  ;;  %v3868_v4 = vadd.f32 %v3867_v0, %v3866_v10  ;;  %v3926_v5 = vadd.f32 %v3925_v1, %v3924_v39 }
 0x150   : > { %v3869_v11 = vpop.f32.mrf.mxu1  ;;  %v3927_v30 = vpop.f32.mrf.mxu0 }
 0x151   : > { %v2642_v20 = vadd.f32 %v3868_v4, %v5244_v13 }
 0x152   : > { %v3870_v28 = vpop.f32.mrf.mxu1  ;;  %v3928_v52 = vpop.f32.mrf.mxu0 }
 0x153   : > { %v5290_v14 = vadd.f32 %v3926_v5, %v2642_v20  ;;  %v3871_v15 = vadd.f32 %v3870_v28, %v3869_v11  ;;  %v3929_v57 = vadd.f32 %v3928_v52, %v3927_v30 }
 0x154   : > { %v3872_v18 = vpop.f32.mrf.mxu1  ;;  %v3930_v54 = vpop.f32.mrf.mxu0 }
 0x155   : > { %v2645_v60 = vadd.f32 %v3871_v15, %v5249_v26 }
 0x156   : > { %v3873_v6 = vpop.f32.mrf.mxu1  ;;  %v3931_v22 = vpop.f32.mrf.mxu0 }
 0x157   : > { %v5293_v9 = vadd.f32 %v3929_v57, %v2645_v60  ;;  %v3874_v23 = vadd.f32 %v3873_v6, %v3872_v18  ;;  %v3932_v16 = vadd.f32 %v3931_v22, %v3930_v54 }
 0x158   : > { %v3875_v24 = vpop.f32.mrf.mxu1  ;;  %v3933_v46 = vpop.f32.mrf.mxu0 }
 0x159   : > { %v2650_v13 = vadd.f32 %v3874_v23, %v5254_v43 }
 0x15a   : > { %v3876_v25 = vpop.f32.mrf.mxu1  ;;  %v3934_v53 = vpop.f32.mrf.mxu0 }
 0x15b   : > { %v5296_v51 = vadd.f32 %v3932_v16, %v2650_v13  ;;  %v3877_v48 = vadd.f32 %v3876_v25, %v3875_v24  ;;  %v3935_v19 = vadd.f32 %v3934_v53, %v3933_v46 }
 0x15c   : > { %v3878_v61 = vpop.f32.mrf.mxu1  ;;  %v3936_v58 = vpop.f32.mrf.mxu0 }
 0x15d   : > { %v2653_v26 = vadd.f32 %v3877_v48, %v5257_v36 }
 0x15e   : > { %v3879_v63 = vpop.f32.mrf.mxu1  ;;  %v3937_v32 = vpop.f32.mrf.mxu0 }
 0x15f   : > { %v5299_v37 = vadd.f32 %v3935_v19, %v2653_v26  ;;  %v3880_v33 = vadd.f32 %v3879_v63, %v3878_v61  ;;  %v3938_v21 = vadd.f32 %v3937_v32, %v3936_v58 }
 0x160   : > { %v3881_v12 = vpop.f32.mrf.mxu1  ;;  %v3939_v17 = vpop.f32.mrf.mxu0 }
 0x161   : > { %v2658_v43 = vadd.f32 %v3880_v33, %v5260_v45 }
 0x162   : > { %v3882_v40 = vpop.f32.mrf.mxu1  ;;  %v3940_v44 = vpop.f32.mrf.mxu0 }
 0x163   : > { %v5302_v50 = vadd.f32 %v3938_v21, %v2658_v43  ;;  %v3883_v35 = vadd.f32 %v3882_v40, %v3881_v12  ;;  %v3941_v42 = vadd.f32 %v3940_v44, %v3939_v17 }
 0x164   : > { %v3884_v41 = vpop.f32.mrf.mxu1  ;;  %v3942_v29 = vpop.f32.mrf.mxu0 }
 0x165   : > { %v2661_v36 = vadd.f32 %v3883_v35, %v5263_v7 }
 0x166   : > { %v3885_v47 = vpop.f32.mrf.mxu1  ;;  %v3943_v56 = vpop.f32.mrf.mxu0 }
 0x167   : > { %v5305_v38 = vadd.f32 %v3941_v42, %v2661_v36  ;;  %v3886_v62 = vadd.f32 %v3885_v47, %v3884_v41  ;;  %v3944_v10 = vadd.f32 %v3943_v56, %v3942_v29 }
 0x168   : > { %v3887_v39 = vpop.f32.mrf.mxu1  ;;  %v3945_v31 = vpop.f32.mrf.mxu0 }
 0x169   : > { %v2666_v45 = vadd.f32 %v3886_v62, %v5266_v2 }
 0x16a   : > { %v3888_v0 = vpop.f32.mrf.mxu1  ;;  %v3946_v1 = vpop.f32.mrf.mxu0 }
 0x16b   : > { %v5308_v4 = vadd.f32 %v3944_v10, %v2666_v45  ;;  %v3889_v5 = vadd.f32 %v3888_v0, %v3887_v39  ;;  %v3947_v11 = vadd.f32 %v3946_v1, %v3945_v31 }
 0x16c   : > { %v3890_v30 = vpop.f32.mrf.mxu1  ;;  %v3948_v20 = vpop.f32.mrf.mxu0 }
 0x16d   : > { %v2669_v7 = vadd.f32 %v3889_v5, %v5269_v55 }
 0x16e   : > { %v3891_v28 = vpop.f32.mrf.mxu1  ;;  %v3949_v52 = vpop.f32.mrf.mxu0 }
 0x16f   : > { %v5311_v15 = vadd.f32 %v3947_v11, %v2669_v7  ;;  %v3892_v57 = vadd.f32 %v3891_v28, %v3890_v30  ;;  %v3950_v18 = vadd.f32 %v3949_v52, %v3948_v20 }
 0x170   : > { %v3893_v54 = vpop.f32.mrf.mxu1  ;;  %v3951_v60 = vpop.f32.mrf.mxu0 }
 0x171   : > { %v2674_v2 = vadd.f32 %v3892_v57, %v5272_v34 }
 0x172   : > { %v3894_v6 = vpop.f32.mrf.mxu1  ;;  %v3952_v22 = vpop.f32.mrf.mxu0 }
 0x173   : > { %v5314_v23 = vadd.f32 %v3950_v18, %v2674_v2  ;;  %v3895_v16 = vadd.f32 %v3894_v6, %v3893_v54  ;;  %v3953_v24 = vadd.f32 %v3952_v22, %v3951_v60 }
 0x174   : > { %v3896_v46 = vpop.f32.mrf.mxu1  ;;  %v3954_v13 = vpop.f32.mrf.mxu0 }
 0x175   : > { %5516 = vst [vmem:[#allocation4_spill] sm:$0xff] %v5314_v23  ;;  %v2677_v55 = vadd.f32 %v3895_v16, %v5275_v27 }
 0x176   : > { %v3897_v25 = vpop.f32.mrf.mxu1  ;;  %v3955_v53 = vpop.f32.mrf.mxu0 }
 0x177   : > { %v5317_v48 = vadd.f32 %v3953_v24, %v2677_v55  ;;  %v3898_v19 = vadd.f32 %v3897_v25, %v3896_v46  ;;  %v3956_v61 = vadd.f32 %v3955_v53, %v3954_v13 }
 0x178   : > { %v3899_v58 = vpop.f32.mrf.mxu1  ;;  %v3957_v26 = vpop.f32.mrf.mxu0 }
 0x179   : > { %5517 = vst [vmem:[#allocation5_spill] sm:$0xff] %v5317_v48  ;;  %v2682_v34 = vadd.f32 %v3898_v19, %v5278_v8 }
 0x17a   : > { %v3900_v63 = vpop.f32.mrf.mxu1  ;;  %v3958_v32 = vpop.f32.mrf.mxu0 }
 0x17b   : > { %v5320_v33 = vadd.f32 %v3956_v61, %v2682_v34  ;;  %v3901_v21 = vadd.f32 %v3900_v63, %v3899_v58  ;;  %v3959_v12 = vadd.f32 %v3958_v32, %v3957_v26 }
 0x17c   : > { %v3976_v17 = vpop.f32.mrf.mxu1  ;;  %v4034_v43 = vpop.f32.mrf.mxu0 }
 0x17d   : > { %5518 = vst [vmem:[#allocation6_spill] sm:$0xff] %v5320_v33  ;;  %v2685_v27 = vadd.f32 %v3901_v21, %v5281_v49 }
 0x17e   : > { %v3977_v40 = vpop.f32.mrf.mxu1  ;;  %v4035_v44 = vpop.f32.mrf.mxu0 }
 0x17f   : > { %v5323_v35 = vadd.f32 %v3959_v12, %v2685_v27  ;;  %v3978_v48 = vadd.f32 %v3977_v40, %v3976_v17 }
 0x180   : > { %v3979_v42 = vpop.f32.mrf.mxu1  ;;  %v5325_v41 = vpop.f32.mrf.mxu0 }
 0x181   : > { %5519 = vst [vmem:[#allocation7_spill] sm:$0xff] %v5323_v35 }
 0x182   : > { %v3980_v29 = vpop.f32.mrf.mxu1  ;;  %v5327_v36 = vpop.f32.mrf.mxu0 }
 0x184   : > { %v3982_v8 = vpop.f32.mrf.mxu1  ;;  %v5329_v47 = vpop.f32.mrf.mxu0 }
 0x186   : > { %v3983_v56 = vpop.f32.mrf.mxu1  ;;  %v5331_v62 = vpop.f32.mrf.mxu0 }
 0x187   : > { %v3984_v17 = vadd.f32 %v3983_v56, %v3982_v8 }
 0x188   : > { %v3985_v10 = vpop.f32.mrf.mxu1  ;;  %v5333_v39 = vpop.f32.mrf.mxu0 }
 0x18a   : > { %v3986_v49 = vpop.f32.mrf.mxu1  ;;  %v5335_v31 = vpop.f32.mrf.mxu0 }
 0x18c   : > { %v5337_v45 = vpop.f32.mrf.mxu1  ;;  %v5339_v0 = vpop.f32.mrf.mxu0 }
 0x18e   : > { %v5341_v1 = vpop.f32.mrf.mxu1  ;;  %v5343_v5 = vpop.f32.mrf.mxu0 }
 0x190   : > { %v5345_v11 = vpop.f32.mrf.mxu1  ;;  %v5347_v30 = vpop.f32.mrf.mxu0 }
 0x192   : > { %v5349_v20 = vpop.f32.mrf.mxu1  ;;  %v5351_v7 = vpop.f32.mrf.mxu0 }
 0x194   : > { %v5353_v28 = vpop.f32.mrf.mxu1  ;;  %v5355_v52 = vpop.f32.mrf.mxu0 }
 0x196   : > { %v5357_v57 = vpop.f32.mrf.mxu1  ;;  %v5359_v18 = vpop.f32.mrf.mxu0 }
 0x198   : > { %v5361_v54 = vpop.f32.mrf.mxu1  ;;  %v5363_v60 = vpop.f32.mrf.mxu0 }
 0x19a   : > { %v5365_v2 = vpop.f32.mrf.mxu1  ;;  %v5367_v6 = vpop.f32.mrf.mxu0 }
 0x19c   : > { %v5369_v22 = vpop.f32.mrf.mxu1  ;;  %v5371_v16 = vpop.f32.mrf.mxu0 }
 0x19e   : > { %v5373_v24 = vpop.f32.mrf.mxu1  ;;  %v5375_v46 = vpop.f32.mrf.mxu0 }
 0x1a0   : > { %v5377_v13 = vpop.f32.mrf.mxu1  ;;  %v5379_v55 = vpop.f32.mrf.mxu0 }
 0x1a1   : > { %5520 = vst [vmem:[#allocation8_spill] sm:$0xff] %v5379_v55 }
 0x1a2   : > { %v5381_v25 = vpop.f32.mrf.mxu1  ;;  %v5383_v53 = vpop.f32.mrf.mxu0 }
 0x1a3   : > { %5521 = vst [vmem:[#allocation9_spill] sm:$0xff] %v5383_v53  ;;  %v4036_v53 = vadd.f32 %v4035_v44, %v4034_v43  ;;  %v2820_v43 = vadd.f32 %v3984_v17, %v5290_v14  ;;  %v3990_v14 = vadd.f32 %v5341_v1, %v5337_v45  ;;  %v3993_v1 = vadd.f32 %v5349_v20, %v5345_v11 }
 0x1a4   : > { %v5385_v19 = vpop.f32.mrf.mxu1  ;;  %v5387_v61 = vpop.f32.mrf.mxu0 }
 0x1a5   : > { %5522 = vst [vmem:[#allocation10_spill] sm:$0xff] %v5385_v19  ;;  %5523 = vst [vmem:[#allocation11_spill] sm:$0xff] %v5387_v61  ;;  %v3987_v19 = vadd.f32 %v3986_v49, %v3985_v10  ;;  %v2828_v45 = vadd.f32 %v3990_v14, %v5296_v51  ;;  %v4048_v51 = vadd.f32 %v5343_v5, %v5339_v0 }
 0x1a6   : > { %v5389_v58 = vpop.f32.mrf.mxu1  ;;  %v5391_v26 = vpop.f32.mrf.mxu0  ;;  %v2831_v20 = vadd.f32 %v3993_v1, %v5299_v37  ;;  %v4057_v1 = vadd.f32 %v5367_v6, %v5363_v60 }
 0x1a7   : > { %5524 = vst [vmem:[#allocation12_spill] sm:$0xff] %v5389_v58  ;;  %5525 = vst [vmem:[#allocation13_spill] sm:$0xff] %v5391_v26  ;;  %v2823_v56 = vadd.f32 %v3987_v19, %v5293_v9 }
 0x1a8   : > { %v5393_v34 = vpop.f32.mrf.mxu1  ;;  %v5395_v63 = vpop.f32.mrf.mxu0 }
 0x1a9   : > { %5526 = vst [vmem:[#allocation14_spill] sm:$0xff] %v5393_v34  ;;  %5527 = vst [vmem:[#allocation15_spill] sm:$0xff] %v5395_v63 }
 0x1aa   : > { %v5397_v32 = vpop.f32.mrf.mxu1  ;;  %v5399_v21 = vpop.f32.mrf.mxu0 }
 0x1ab   : > { %5528 = vst [vmem:[#allocation16_spill] sm:$0xff] %v5397_v32  ;;  %5529 = vst [vmem:[#allocation17_spill] sm:$0xff] %v5399_v21  ;;  %v2812_v32 = vadd.f32 %v3978_v48, %v5284_v59  ;;  %v3981_v21 = vadd.f32 %v3980_v29, %v3979_v42 }
 0x1ac   : > { %v5401_v12 = vpop.f32.mrf.mxu1  ;;  %v5403_v27 = vpop.f32.mrf.mxu0 }
 0x1ad   : > { %5530 = vst [vmem:[#allocation18_spill] sm:$0xff] %v5401_v12  ;;  %5531 = vst [vmem:[#allocation19_spill] sm:$0xff] %v5403_v27 }
 0x1ae   : > { %v5405_v35 = vpop.f32.mrf.mxu1  ;;  %v5407_v33 = vpop.f32.mrf.mxu0 }
 0x1af   : > { %5532 = vst [vmem:[#allocation20_spill] sm:$0xff] %v5405_v35  ;;  %5533 = vst [vmem:[#allocation21_spill] sm:$0xff] %v5407_v33  ;;  %v2901_v35 = vadd.f32 %v4036_v53, %v2812_v32  ;;  %v2815_v33 = vadd.f32 %v3981_v21, %v5287_v3  ;;  %v5425_v3 = vld [vmem:[%s5514_s2] ss:$0 sm:$0xff] }
 0x1b0   : > { %v5409_v61 = vpop.f32.mrf.mxu1  ;;  %v5411_v26 = vpop.f32.mrf.mxu0 }
 0x1b1   : > { %5534 = vst [vmem:[#allocation22_spill] sm:$0xff] %v5409_v61  ;;  %5535 = vst [vmem:[#allocation23_spill] sm:$0xff] %v5411_v26  ;;  %v4039_v26 = vadd.f32 %v5327_v36, %v5325_v41 }
 0x1b2   : > { %v5413_v34 = vpop.f32.mrf.mxu1  ;;  %v5415_v63 = vpop.f32.mrf.mxu0 }
 0x1b3   : > { %5536 = vst [vmem:[#allocation24_spill] sm:$0xff] %v5413_v34  ;;  %5537 = vst [vmem:[#allocation25_spill] sm:$0xff] %v5415_v63  ;;  %v2904_v42 = vadd.f32 %v4039_v26, %v2815_v33  ;;  %v4045_v26 = vadd.f32 %v5335_v31, %v5333_v39 }
 0x1b4   : > { %v4092_v23 = vpop.f32.mrf.mxu1  ;;  %v4150_v12 = vpop.f32.mrf.mxu0 }
 0x1b5   : > { %v2912_v19 = vadd.f32 %v4045_v26, %v2823_v56 }
 0x1b6   : > { %v4093_v27 = vpop.f32.mrf.mxu1  ;;  %v4151_v55 = vpop.f32.mrf.mxu0 }
 0x1b7   : > { %v4094_v40 = vadd.f32 %v4093_v27, %v4092_v23  ;;  %v4152_v63 = vadd.f32 %v4151_v55, %v4150_v12 }
 0x1b8   : > { %v4095_v61 = vpop.f32.mrf.mxu1  ;;  %v4153_v58 = vpop.f32.mrf.mxu0 }
 0x1b9   : > { %v2990_v34 = vadd.f32 %v4094_v40, %v2901_v35  ;;  %v4042_v35 = vadd.f32 %v5331_v62, %v5329_v47 }
 0x1ba   : > { %v4096_v59 = vpop.f32.mrf.mxu1  ;;  %v4154_v48 = vpop.f32.mrf.mxu0 }
 0x1bb   : > { %v3079_v44 = vadd.f32 %v4152_v63, %v2990_v34  ;;  %v4097_v29 = vadd.f32 %v4096_v59, %v4095_v61  ;;  %v4155_v36 = vadd.f32 %v4154_v48, %v4153_v58  ;;  %v2909_v49 = vadd.f32 %v4042_v35, %v2820_v43 }
 0x1bc   : > { %v4098_v23 = vpop.f32.mrf.mxu1  ;;  %v4156_v8 = vpop.f32.mrf.mxu0  ;;  %v3996_v48 = vadd.f32 %v5357_v57, %v5353_v28  ;;  %v4051_v35 = vadd.f32 %v5351_v7, %v5347_v30  ;;  %v3999_v57 = vadd.f32 %v5365_v2, %v5361_v54  ;;  %v4002_v54 = vadd.f32 %v5373_v24, %v5369_v22 }
 0x1bd   : > { %v2993_v41 = vadd.f32 %v4097_v29, %v2904_v42  ;;  %v3168_v55 = vadd.f32 %v5425_v3, %v3079_v44  ;;  %v2917_v44 = vadd.f32 %v4048_v51, %v2828_v45  ;;  %v4005_v24 = vadd.f32 %v5381_v25, %v5377_v13 }
 0x1be   : > { %v4099_v33 = vpop.f32.mrf.mxu1  ;;  %v4157_v10 = vpop.f32.mrf.mxu0  ;;  %v2920_v56 = vadd.f32 %v4051_v35, %v2831_v20  ;;  %v2836_v28 = vadd.f32 %v3996_v48, %v5302_v50  ;;  %v2839_v50 = vadd.f32 %v3999_v57, %v5305_v38  ;;  %v2844_v22 = vadd.f32 %v4002_v54, %v5308_v4  ;;  %v5538_v48 = vld [vmem:[#allocation10_spill] sm:$0xff]  ;;  %v5540_v35 = vld [vmem:[#allocation8_spill] sm:$0xff] }
 0x1bf   : > { %v3082_v53 = vadd.f32 %v4155_v36, %v2993_v41  ;;  %v4100_v61 = vadd.f32 %v4099_v33, %v4098_v23  ;;  %v4158_v9 = vadd.f32 %v4157_v10, %v4156_v8  ;;  %v3182_v21 = vmax.f32 %v3168_v55, 0.0  ;;  %v5543_v57 = vld [vmem:[#allocation14_spill] sm:$0xff] }
 0x1c0   : > { %v4101_v34 = vpop.f32.mrf.mxu1  ;;  %v4159_v47 = vpop.f32.mrf.mxu0  ;;  %v2847_v4 = vadd.f32 %v4005_v24, %v5311_v15  ;;  %v5551_v24 = vld [vmem:[#allocation17_spill] sm:$0xff] }
 0x1c1   : > { %v3169_v62 = vadd.f32 %v5425_v3, %v3082_v53  ;;  %v2998_v58 = vadd.f32 %v4100_v61, %v2909_v49  ;;  %v4054_v61 = vadd.f32 %v5359_v18, %v5355_v52 }
 0x1c2   : > { %v4102_v63 = vpop.f32.mrf.mxu1  ;;  %v4160_v32 = vpop.f32.mrf.mxu0 }
 0x1c3   : > { %v3183_v12 = vmax.f32 %v3169_v62, 0.0  ;;  %v3087_v27 = vadd.f32 %v4158_v9, %v2998_v58  ;;  %v4103_v17 = vadd.f32 %v4102_v63, %v4101_v34  ;;  %v4161_v11 = vadd.f32 %v4160_v32, %v4159_v47 }
 0x1c4   : > { %v4104_v39 = vpop.f32.mrf.mxu1  ;;  %v4162_v31 = vpop.f32.mrf.mxu0  ;;  %v2925_v58 = vadd.f32 %v4054_v61, %v2836_v28 }
 0x1c5   : > { %v3632_v40 = vpack.c.bf16 %v3183_v12, %v3182_v21  ;;  %v3001_v59 = vadd.f32 %v4103_v17, %v2912_v19  ;;  %v3170_v29 = vadd.f32 %v5425_v3, %v3087_v27  ;;  %v2928_v21 = vadd.f32 %v4057_v1, %v2839_v50 }
 0x1c6   : > { %v4105_v42 = vpop.f32.mrf.mxu1  ;;  %v4163_v43 = vpop.f32.mrf.mxu0 }
 0x1c7   : > { %3633 = vst [vmem:[%s5443_s20] sm:$0xff] %v3632_v40   ;;  %v3090_v23 = vadd.f32 %v4161_v11, %v3001_v59  ;;  %v4106_v8 = vadd.f32 %v4105_v42, %v4104_v39  ;;  %v4164_v37 = vadd.f32 %v4163_v43, %v4162_v31  ;;  %v3184_v10 = vmax.f32 %v3170_v29, 0.0  ;;  %v5539_v42 = vld [vmem:[#allocation12_spill] sm:$0xff] }
 0x1c8   : > { %v4107_v0 = vpop.f32.mrf.mxu1  ;;  %v4165_v5 = vpop.f32.mrf.mxu0  ;;  %v4060_v40 = vadd.f32 %v5375_v46, %v5371_v16  ;;  %v4008_v13 = vadd.f32 %v5539_v42, %v5538_v48 }
 0x1c9   : > { %v3171_v41 = vadd.f32 %v5425_v3, %v3090_v23  ;;  %v3006_v36 = vadd.f32 %v4106_v8, %v2917_v44 }
 0x1ca   : > { %v4108_v14 = vpop.f32.mrf.mxu1  ;;  %v4166_v33 = vpop.f32.mrf.mxu0  ;;  %v2933_v44 = vadd.f32 %v4060_v40, %v2844_v22  ;;  %v5550_v22 = vld [vmem:[#allocation15_spill] sm:$0xff] }
 0x1cb   : > { %v3185_v49 = vmax.f32 %v3171_v41, 0.0  ;;  %v3095_v55 = vadd.f32 %v4164_v37, %v3006_v36  ;;  %v4109_v53 = vadd.f32 %v4108_v14, %v4107_v0  ;;  %v4167_v47 = vadd.f32 %v4166_v33, %v4165_v5  ;;  %v5541_v0 = vld [vmem:[#allocation9_spill] sm:$0xff]  ;;  %v5544_v14 = vld [vmem:[#allocation16_spill] sm:$0xff] }
 0x1cc   : > { %v4110_v30 = vpop.f32.mrf.mxu1  ;;  %v4168_v7 = vpop.f32.mrf.mxu0  ;;  %v4063_v5 = vadd.f32 %v5541_v0, %v5540_v35  ;;  %v4011_v33 = vadd.f32 %v5544_v14, %v5543_v57  ;;  %v5558_v14 = vld [vmem:[#allocation23_spill] sm:$0xff] }
 0x1cd   : > { %v3637_v26 = vpack.c.bf16 %v3185_v49, %v3184_v10  ;;  %v3009_v34 = vadd.f32 %v4109_v53, %v2920_v56  ;;  %v3172_v9 = vadd.f32 %v5425_v3, %v3095_v55  ;;  %v5542_v56 = vld [vmem:[#allocation4_spill] sm:$0xff] }
 0x1ce   : > { %v4111_v2 = vpop.f32.mrf.mxu1  ;;  %v4169_v62 = vpop.f32.mrf.mxu0  ;;  %v2936_v37 = vadd.f32 %v4063_v5, %v2847_v4  ;;  %v2852_v28 = vadd.f32 %v4008_v13, %v5542_v56 }
 0x1cf   : > { %3664 = vst [vmem:[%s5443_s20 + $0x8] sm:$0xff] %v3637_v26   ;;  %v3098_v19 = vadd.f32 %v4167_v47, %v3009_v34  ;;  %v4112_v45 = vadd.f32 %v4111_v2, %v4110_v30  ;;  %v4170_v38 = vadd.f32 %v4169_v62, %v4168_v7  ;;  %v3186_v17 = vmax.f32 %v3172_v9, 0.0  ;;  %v5545_v34 = vld [vmem:[#allocation11_spill] sm:$0xff]  ;;  %v5546_v47 = vld [vmem:[#allocation13_spill] sm:$0xff] }
 0x1d0   : > { %v4113_v52 = vpop.f32.mrf.mxu1  ;;  %v4171_v18 = vpop.f32.mrf.mxu0  ;;  %v4066_v50 = vadd.f32 %v5546_v47, %v5545_v34 }
 0x1d1   : > { %v3173_v63 = vadd.f32 %v5425_v3, %v3098_v19  ;;  %v3014_v32 = vadd.f32 %v4112_v45, %v2925_v58  ;;  %v5547_v58 = vld [vmem:[#allocation5_spill] sm:$0xff]  ;;  %v5548_v19 = vld [vmem:[#allocation18_spill] sm:$0xff]  ;;  %v5549_v45 = vld [vmem:[#allocation20_spill] sm:$0xff] }
 0x1d2   : > { %v4114_v12 = vpop.f32.mrf.mxu1  ;;  %v4172_v27 = vpop.f32.mrf.mxu0  ;;  %v2855_v9 = vadd.f32 %v4011_v33, %v5547_v58  ;;  %v4014_v1 = vadd.f32 %v5549_v45, %v5548_v19  ;;  %v5559_v33 = vld [vmem:[#allocation25_spill] sm:$0xff] }
 0x1d3   : > { %v3187_v39 = vmax.f32 %v3173_v63, 0.0  ;;  %v3103_v31 = vadd.f32 %v4170_v38, %v3014_v32  ;;  %v4115_v51 = vadd.f32 %v4114_v12, %v4113_v52  ;;  %v4173_v20 = vadd.f32 %v4172_v27, %v4171_v18 }
 0x1d4   : > { %v4116_v60 = vpop.f32.mrf.mxu1  ;;  %v4174_v6 = vpop.f32.mrf.mxu0  ;;  %v2941_v63 = vadd.f32 %v4066_v50, %v2852_v28  ;;  %v4069_v12 = vadd.f32 %v5551_v24, %v5550_v22 }
 0x1d5   : > { %v3642_v59 = vpack.c.bf16 %v3187_v39, %v3186_v17  ;;  %v3017_v11 = vadd.f32 %v4115_v51, %v2928_v21  ;;  %v3174_v29 = vadd.f32 %v5425_v3, %v3103_v31 }
 0x1d6   : > { %v4117_v25 = vpop.f32.mrf.mxu1  ;;  %v4175_v43 = vpop.f32.mrf.mxu0 }
 0x1d7   : > { %3665 = vst [vmem:[%s5443_s20 + $0x10] sm:$0xff] %v3642_v59   ;;  %v3106_v23 = vadd.f32 %v4173_v20, %v3017_v11  ;;  %v4118_v8 = vadd.f32 %v4117_v25, %v4116_v60  ;;  %v4176_v15 = vadd.f32 %v4175_v43, %v4174_v6  ;;  %v3188_v55 = vmax.f32 %v3174_v29, 0.0  ;;  %v5552_v6 = vld [vmem:[#allocation6_spill] sm:$0xff]  ;;  %v5554_v11 = vld [vmem:[#allocation24_spill] sm:$0xff] }
 0x1d8   : > { %v4119_v16 = vpop.f32.mrf.mxu1  ;;  %v4177_v46 = vpop.f32.mrf.mxu0  ;;  %v2944_v60 = vadd.f32 %v4069_v12, %v2855_v9  ;;  %v2860_v40 = vadd.f32 %v4014_v1, %v5552_v6  ;;  %v5553_v59 = vld [vmem:[#allocation22_spill] sm:$0xff] }
 0x1d9   : > { %v3175_v41 = vadd.f32 %v5425_v3, %v3106_v23  ;;  %v3022_v36 = vadd.f32 %v4118_v8, %v2933_v44  ;;  %v4017_v20 = vadd.f32 %v5554_v11, %v5553_v59  ;;  %v5555_v23 = vld [vmem:[#allocation19_spill] sm:$0xff]  ;;  %v5556_v8 = vld [vmem:[#allocation21_spill] sm:$0xff] }
 0x1da   : > { %v4120_v10 = vpop.f32.mrf.mxu1  ;;  %v4178_v49 = vpop.f32.mrf.mxu0  ;;  %v4072_v35 = vadd.f32 %v5556_v8, %v5555_v23 }
 0x1db   : > { %v3189_v53 = vmax.f32 %v3175_v41, 0.0  ;;  %v3111_v30 = vadd.f32 %v4176_v15, %v3022_v36  ;;  %v4121_v7 = vadd.f32 %v4120_v10, %v4119_v16  ;;  %v4179_v62 = vadd.f32 %v4178_v49, %v4177_v46  ;;  %v5557_v46 = vld [vmem:[#allocation7_spill] sm:$0xff] }
 0x1dc   : > { %v4122_v61 = vpop.f32.mrf.mxu1  ;;  %v4180_v26 = vpop.f32.mrf.mxu0  ;;  %v2863_v41 = vadd.f32 %v4017_v20, %v5557_v46  ;;  %v4075_v10 = vadd.f32 %v5559_v33, %v5558_v14 }
 0x1dd   : > { %v3647_v54 = vpack.c.bf16 %v3189_v53, %v3188_v55  ;;  %v3025_v2 = vadd.f32 %v4121_v7, %v2936_v37  ;;  %v3176_v32 = vadd.f32 %v5425_v3, %v3111_v30  ;;  %v2949_v37 = vadd.f32 %v4072_v35, %v2860_v40 }
 0x1de   : > { %v4123_v52 = vpop.f32.mrf.mxu1  ;;  %v4181_v18 = vpop.f32.mrf.mxu0 }
 0x1df   : > { %3666 = vst [vmem:[%s5443_s20 + $0x18] sm:$0xff] %v3647_v54   ;;  %v3114_v38 = vadd.f32 %v4179_v62, %v3025_v2  ;;  %v4124_v21 = vadd.f32 %v4123_v52, %v4122_v61  ;;  %v4182_v51 = vadd.f32 %v4181_v18, %v4180_v26  ;;  %v3190_v42 = vmax.f32 %v3176_v32, 0.0 }
 0x1e0   : > { %v4125_v27 = vpop.f32.mrf.mxu1  ;;  %v4183_v17 = vpop.f32.mrf.mxu0  ;;  %v2952_v61 = vadd.f32 %v4075_v10, %v2863_v41 }
 0x1e1   : > { %v3177_v39 = vadd.f32 %v5425_v3, %v3114_v38  ;;  %v3030_v31 = vadd.f32 %v4124_v21, %v2941_v63 }
 0x1e2   : > { %v4126_v4 = vpop.f32.mrf.mxu1  ;;  %v4184_v48 = vpop.f32.mrf.mxu0 }
 0x1e3   : > { %v3191_v13 = vmax.f32 %v3177_v39, 0.0  ;;  %v3119_v25 = vadd.f32 %v4182_v51, %v3030_v31  ;;  %v4127_v43 = vadd.f32 %v4126_v4, %v4125_v27  ;;  %v4185_v16 = vadd.f32 %v4184_v48, %v4183_v17 }
 0x1e4   : > { %v4128_v44 = vpop.f32.mrf.mxu1  ;;  %v4186_v29 = vpop.f32.mrf.mxu0 }
 0x1e5   : > { %v3652_v0 = vpack.c.bf16 %v3191_v13, %v3190_v42  ;;  %v3033_v5 = vadd.f32 %v4127_v43, %v2944_v60  ;;  %v3178_v56 = vadd.f32 %v5425_v3, %v3119_v25 }
 0x1e6   : > { %v4129_v36 = vpop.f32.mrf.mxu1  ;;  %v4187_v15 = vpop.f32.mrf.mxu0 }
 0x1e7   : > { %3667 = vst [vmem:[%s5443_s20 + $0x20] sm:$0xff] %v3652_v0   ;;  %v3122_v28 = vadd.f32 %v4185_v16, %v3033_v5  ;;  %v4130_v57 = vadd.f32 %v4129_v36, %v4128_v44  ;;  %v4188_v7 = vadd.f32 %v4187_v15, %v4186_v29  ;;  %v3192_v47 = vmax.f32 %v3178_v56, 0.0 }
 0x1e8   : > { %v4131_v49 = vpop.f32.mrf.mxu1  ;;  %v4189_v55 = vpop.f32.mrf.mxu0 }
 0x1e9   : > { %v3179_v53 = vadd.f32 %v5425_v3, %v3122_v28  ;;  %v3038_v30 = vadd.f32 %v4130_v57, %v2949_v37 }
 0x1ea   : > { %v4132_v26 = vpop.f32.mrf.mxu1  ;;  %v4190_v34 = vpop.f32.mrf.mxu0 }
 0x1eb   : > { %v3193_v50 = vmax.f32 %v3179_v53, 0.0  ;;  %v3127_v54 = vadd.f32 %v4188_v7, %v3038_v30  ;;  %v4133_v2 = vadd.f32 %v4132_v26, %v4131_v49  ;;  %v4191_v9 = vadd.f32 %v4190_v34, %v4189_v55 }
 0x1ed   : > { %v3657_v62 = vpack.c.bf16 %v3193_v50, %v3192_v47  ;;  %v3041_v58 = vadd.f32 %v4133_v2, %v2952_v61  ;;  %v3180_v19 = vadd.f32 %v5425_v3, %v3127_v54 }
 0x1ef   : > { %3668 = vst [vmem:[%s5443_s20 + $0x28] sm:$0xff] %v3657_v62   ;;  %v3130_v45 = vadd.f32 %v4191_v9, %v3041_v58  ;;  %v3194_v52 = vmax.f32 %v3180_v19, 0.0 }
 0x1f1   : > { %v3181_v1 = vadd.f32 %v5425_v3, %v3130_v45 }
 0x1f3   : > { %v3195_v18 = vmax.f32 %v3181_v1, 0.0 }
 0x1f5   : > { %v3662_v63 = vpack.c.bf16 %v3195_v18, %v3194_v52 }
 0x1f7   : > { %3669 = vst [vmem:[%s5443_s20 + $0x30] sm:$0xff] %v3662_v63  }
 0x1f8 PF: > { %s13_s12 = sadd.s32 1, %s4491_s12  }
 0x1f9   : > { %p10_p4 = scmp.ge.s32.totalorder %s13_s12, 4  }
 0x1fb   :  { %12 = sbr.rel (!%p10_p4) target bundleno = 1 (0x1), region = 62 }

</bundles_post_ra>
